<compile_context>
chip_gen: v7x
topology: tpu7x:2x2x1
jax: 0.10.0
libtpu: 0.0.40
codegen_flags: <defaults>
</compile_context>

<pallas_src>
import functools

import jax
import jax.numpy as jnp
from jax.experimental import pallas as pl
from jax.experimental.pallas import tpu as pltpu

SOS_TOKEN = 1


def greedy_search_kernel(
    x_emb_ref,                      # (T, H)  embedded input sequence
    emb_ref,                        # (V, H)  embedding table (decode feedback lookups)
    ewf_ih_ref, ewf_hh_ref, ebf_ih_ref, ebf_hh_ref,   # encoder fwd GRU (gate-padded)
    ewb_ih_ref, ewb_hh_ref, ebb_ih_ref, ebb_hh_ref,   # encoder bwd GRU (gate-padded)
    dw_ih_ref, dw_hh_ref, db_ih_ref, db_hh_ref,       # decoder GRU      (gate-padded)
    wcat_r_ref, wcat_c_ref, bcat_ref,                 # Linear(2H -> H), split halves
    wout_ref, bout_ref,                               # Linear(H -> V)
    tokens_ref,                     # out: (1, L) int32   (lane-major)
    scores_ref,                     # out: (1, L) float32 (lane-major)
    *, T, H, HP, V, L,
):
    f32 = jnp.float32

    def gates(g):
        # r / z / n slices of a gate-padded (·, 3*HP) projection; starts are 128-aligned.
        return g[:, 0:H], g[:, HP:HP + H], g[:, 2 * HP:2 * HP + H]

    def gru_step(gi_r, gi_z, gi_n, h, w_hh_ref, b_hh_ref):
        # PyTorch GRU cell with the input projection (gi_*) already computed.
        gh = jnp.dot(h, w_hh_ref[...], preferred_element_type=f32) + b_hh_ref[...]
        gh_r, gh_z, gh_n = gates(gh)
        r = jax.nn.sigmoid(gi_r + gh_r)
        z = jax.nn.sigmoid(gi_z + gh_z)
        n = jnp.tanh(gi_n + r * gh_n)
        return (1.0 - z) * n + z * h

    x = x_emb_ref[...]                                                 # (T, H)

    # ---------------- Encoder: batched input projections (one matmul per direction) ----
    gi_f = jnp.dot(x, ewf_ih_ref[...], preferred_element_type=f32) + ebf_ih_ref[...]  # (T, 3HP)
    gi_b = jnp.dot(x, ewb_ih_ref[...], preferred_element_type=f32) + ebb_ih_ref[...]  # (T, 3HP)

    # ---------------- Encoder recurrence (T small & static -> unrolled) ----------------
    h_f = jnp.zeros((1, H), f32)
    fwd_outs = []
    for t in range(T):
        r_, z_, n_ = gates(gi_f[t:t + 1, :])
        h_f = gru_step(r_, z_, n_, h_f, ewf_hh_ref, ebf_hh_ref)
        fwd_outs.append(h_f)

    h_b = jnp.zeros((1, H), f32)
    bwd_outs = [None] * T
    for t in range(T - 1, -1, -1):
        r_, z_, n_ = gates(gi_b[t:t + 1, :])
        h_b = gru_step(r_, z_, n_, h_b, ewb_hh_ref, ebb_hh_ref)
        bwd_outs[t] = h_b

    # EncoderRNN sums the two directions: outputs[:, :, :H] + outputs[:, :, H:]
    enc_outputs = jnp.concatenate(fwd_outs, axis=0) + jnp.concatenate(bwd_outs, axis=0)  # (T, H)
    enc_outputs_t = enc_outputs.T                                      # (H, T), transposed once

    # decoder_hidden = encoder_hidden[:decoder.n_layers]  (n_layers=1 -> fwd final hidden)
    dec_h = h_f                                                        # (1, H)

    # ---------------- Greedy decode loop (unrolled over max_length) --------------------
    lane_iota = jax.lax.broadcasted_iota(jnp.int32, (1, V), 1)         # (1, V)
    dec_in_oh = (lane_iota == SOS_TOKEN).astype(f32)                   # SOS one-hot

    tok_list, score_list = [], []
    for _ in range(L):
        # embedding lookup of the previous greedy token (one-hot matmul, see TODO above)
        emb_t = jnp.dot(dec_in_oh, emb_ref[...], preferred_element_type=f32)   # (1, H)

        gi = jnp.dot(emb_t, dw_ih_ref[...], preferred_element_type=f32) + db_ih_ref[...]
        gi_r, gi_z, gi_n = gates(gi)
        dec_h = gru_step(gi_r, gi_z, gi_n, dec_h, dw_hh_ref, db_hh_ref)
        rnn_out = dec_h                                                # (1, H)

        # Luong "dot" attention over encoder outputs
        energies = jnp.dot(rnn_out, enc_outputs_t, preferred_element_type=f32)  # (1, T)
        e = jnp.exp(energies - jnp.max(energies, axis=1, keepdims=True))
        attn = e * pl.reciprocal(jnp.sum(e, axis=1, keepdims=True), approx=True)
        context = jnp.dot(attn, enc_outputs, preferred_element_type=f32)        # (1, H)

        # tanh(Linear(cat(rnn_out, context)))  -- concat Linear split into two matmuls
        concat_out = jnp.tanh(
            jnp.dot(rnn_out, wcat_r_ref[...], preferred_element_type=f32)
            + jnp.dot(context, wcat_c_ref[...], preferred_element_type=f32)
            + bcat_ref[...])                                           # (1, H)

        logits = (jnp.dot(concat_out, wout_ref[...], preferred_element_type=f32)
                  + bout_ref[...])                                     # (1, V)

        # torch.max(softmax(logits), dim=1) without materializing the softmax:
        #   argmax(softmax) == argmax(logits);  max prob == 1 / sum(exp(logits - max)).
        maxl = jnp.max(logits, axis=1, keepdims=True)                  # (1, 1)
        denom = jnp.sum(jnp.exp(logits - maxl), axis=1, keepdims=True) # (1, 1)
        score = pl.reciprocal(denom, approx=False)                     # (1, 1) max softmax prob
        idx = jnp.min(jnp.where(logits == maxl, lane_iota, V),
                      axis=1, keepdims=True)                           # (1, 1) int32, first max

        tok_list.append(idx)
        score_list.append(score)
        dec_in_oh = (lane_iota == idx).astype(f32)                     # feed back greedily

    tokens_ref[...] = jnp.concatenate(tok_list, axis=1)                # (1, L), single store
    scores_ref[...] = jnp.concatenate(score_list, axis=1)              # (1, L), single store


def greedy_search_decode(input_seq, params, *, max_length):
    """input_seq: (T,) int32 token ids (batch = 1).  Returns (all_tokens, all_scores)."""
    T = int(input_seq.shape[0])
    V, H = params["embedding"].shape
    L = int(max_length)
    HP = ((H + 127) // 128) * 128          # 128-lane-aligned gate stride

    emb = jnp.asarray(params["embedding"], jnp.float32)                # (V, H)
    # Static input-token embedding lookup is plain data prep (indices are not
    # data-dependent), done once at the JAX level.
    x_emb = emb[input_seq]                                             # (T, H)

    def gate_pad_w(w):
        """torch GRU weight (3H, Hin) -> (Hin, 3*HP), gate g at columns [g*HP, g*HP+H)."""
        w = jnp.asarray(w, jnp.float32)
        out = jnp.zeros((w.shape[1], 3 * HP), jnp.float32)
        for g in range(3):
            out = out.at[:, g * HP: g * HP + H].set(w[g * H:(g + 1) * H, :].T)
        return out

    def gate_pad_b(b):
        """torch GRU bias (3H,) -> (1, 3*HP) with the same gate-aligned layout."""
        b = jnp.asarray(b, jnp.float32)
        out = jnp.zeros((1, 3 * HP), jnp.float32)
        for g in range(3):
            out = out.at[0, g * HP: g * HP + H].set(b[g * H:(g + 1) * H])
        return out

    def b_row(v):
        return jnp.asarray(v, jnp.float32).reshape(1, -1)

    w_cat = jnp.asarray(params["w_concat"], jnp.float32)               # (H, 2H)
    wcat_r, wcat_c = w_cat[:, :H].T, w_cat[:, H:].T                    # each (H, H)

    args = (
        x_emb, emb,
        gate_pad_w(params["e_fwd_w_ih"]), gate_pad_w(params["e_fwd_w_hh"]),
        gate_pad_b(params["e_fwd_b_ih"]), gate_pad_b(params["e_fwd_b_hh"]),
        gate_pad_w(params["e_bwd_w_ih"]), gate_pad_w(params["e_bwd_w_hh"]),
        gate_pad_b(params["e_bwd_b_ih"]), gate_pad_b(params["e_bwd_b_hh"]),
        gate_pad_w(params["d_w_ih"]), gate_pad_w(params["d_w_hh"]),
        gate_pad_b(params["d_b_ih"]), gate_pad_b(params["d_b_hh"]),
        wcat_r, wcat_c, b_row(params["b_concat"]),
        jnp.asarray(params["w_out"], jnp.float32).T, b_row(params["b_out"]),
    )

    # Raise scoped VMEM past the 16/32 MiB per-generation defaults (everything is
    # VMEM-resident); stay well below physical VMEM on every generation.
    arg_bytes = sum(int(a.size) * a.dtype.itemsize for a in args)
    vmem_limit = int(min(max(2 * arg_bytes + (4 << 20), 16 << 20), 48 << 20))

    vmem = pl.BlockSpec(memory_space=pltpu.MemorySpace.VMEM)
    kernel = functools.partial(greedy_search_kernel, T=T, H=H, HP=HP, V=V, L=L)

    tokens, scores = pl.pallas_call(
        kernel,
        out_shape=(jax.ShapeDtypeStruct((1, L), jnp.int32),
                   jax.ShapeDtypeStruct((1, L), jnp.float32)),
        in_specs=[vmem] * len(args),
        out_specs=(vmem, vmem),
        compiler_params=pltpu.CompilerParams(vmem_limit_bytes=vmem_limit),
    )(*args)

    return tokens.reshape(L), scores.reshape(L)


def make_params(key, vocab, hidden):
    """Deterministic synthetic weights with the shapes the torch modules imply."""
    keys = jax.random.split(key, 20)
    n = iter(range(20))
    s = 0.2

    def w(shape):
        return s * jax.random.normal(keys[next(n)], shape, jnp.float32)

    return {
        "embedding": w((vocab, hidden)),
        # encoder bidirectional GRU (n_layers=1): per direction W_ih/W_hh (3H, H), biases (3H,)
        "e_fwd_w_ih": w((3 * hidden, hidden)), "e_fwd_w_hh": w((3 * hidden, hidden)),
        "e_fwd_b_ih": w((3 * hidden,)),        "e_fwd_b_hh": w((3 * hidden,)),
        "e_bwd_w_ih": w((3 * hidden, hidden)), "e_bwd_w_hh": w((3 * hidden, hidden)),
        "e_bwd_b_ih": w((3 * hidden,)),        "e_bwd_b_hh": w((3 * hidden,)),
        # decoder GRU (n_layers=1)
        "d_w_ih": w((3 * hidden, hidden)), "d_w_hh": w((3 * hidden, hidden)),
        "d_b_ih": w((3 * hidden,)),        "d_b_hh": w((3 * hidden,)),
        # concat Linear(2H -> H), out Linear(H -> V)
        "w_concat": w((hidden, 2 * hidden)), "b_concat": w((hidden,)),
        "w_out": w((vocab, hidden)),         "b_out": w((vocab,)),
    }


if __name__ == "__main__":
    VOCAB, HIDDEN, SEQ_LEN, MAX_LEN = 64, 32, 8, 8

    key = jax.random.PRNGKey(0)
    k_seq, k_par = jax.random.split(key)
    params = make_params(k_par, VOCAB, HIDDEN)

    # input_seq: (seq_len,) token ids (torch shape is (seq_len, 1), batch = 1)
    input_seq = jax.random.randint(k_seq, (SEQ_LEN,), 2, VOCAB, dtype=jnp.int32)

    all_tokens, all_scores = greedy_search_decode(input_seq, params, max_length=MAX_LEN)
    jax.block_until_ready((all_tokens, all_scores))

    assert all_tokens.shape == (MAX_LEN,) and all_tokens.dtype == jnp.int32
    assert all_scores.shape == (MAX_LEN,) and all_scores.dtype == jnp.float32
    print("KERNEL_OK")
</pallas_src>

<mosaic_0001>
module attributes {stable_mosaic.version = 11 : i64} {
  func.func @greedy_search_kernel(%arg0: memref<8x32xf32, #tpu.memory_space<vmem>>, %arg1: memref<64x32xf32, #tpu.memory_space<vmem>>, %arg2: memref<32x384xf32, #tpu.memory_space<vmem>>, %arg3: memref<32x384xf32, #tpu.memory_space<vmem>>, %arg4: memref<1x384xf32, #tpu.memory_space<vmem>>, %arg5: memref<1x384xf32, #tpu.memory_space<vmem>>, %arg6: memref<32x384xf32, #tpu.memory_space<vmem>>, %arg7: memref<32x384xf32, #tpu.memory_space<vmem>>, %arg8: memref<1x384xf32, #tpu.memory_space<vmem>>, %arg9: memref<1x384xf32, #tpu.memory_space<vmem>>, %arg10: memref<32x384xf32, #tpu.memory_space<vmem>>, %arg11: memref<32x384xf32, #tpu.memory_space<vmem>>, %arg12: memref<1x384xf32, #tpu.memory_space<vmem>>, %arg13: memref<1x384xf32, #tpu.memory_space<vmem>>, %arg14: memref<32x32xf32, #tpu.memory_space<vmem>>, %arg15: memref<32x32xf32, #tpu.memory_space<vmem>>, %arg16: memref<1x32xf32, #tpu.memory_space<vmem>>, %arg17: memref<32x64xf32, #tpu.memory_space<vmem>>, %arg18: memref<1x64xf32, #tpu.memory_space<vmem>>, %arg19: memref<1x8xi32, #tpu.memory_space<vmem>>, %arg20: memref<1x8xf32, #tpu.memory_space<vmem>>) attributes {dimension_semantics = [], scalar_prefetch = 0 : i64, scratch_operands = 0 : i64, tpu.core_type = #tpu.core_type<tc>} {
    %c0 = arith.constant 0 : index
    %c0_0 = arith.constant 0 : index
    %0 = vector.load %arg0[%c0, %c0_0] : memref<8x32xf32, #tpu.memory_space<vmem>>, vector<8x32xf32>
    %c0_1 = arith.constant 0 : index
    %c0_2 = arith.constant 0 : index
    %1 = vector.load %arg2[%c0_1, %c0_2] : memref<32x384xf32, #tpu.memory_space<vmem>>, vector<32x384xf32>
    %cst = arith.constant dense<0.000000e+00> : vector<8x384xf32>
    %2 = tpu.matmul %0, %1, %cst {dimension_numbers = #tpu.dot_dimension_numbers<[1], [0], [0], [1], [0, 0, 1, 1], [], []>} : vector<8x32xf32>, vector<32x384xf32>, vector<8x384xf32> -> vector<8x384xf32>
    %c0_3 = arith.constant 0 : index
    %c0_4 = arith.constant 0 : index
    %3 = vector.load %arg4[%c0_3, %c0_4] : memref<1x384xf32, #tpu.memory_space<vmem>>, vector<1x384xf32>
    %4 = vector.broadcast %3 : vector<1x384xf32> to vector<8x384xf32>
    %5 = arith.addf %2, %4 : vector<8x384xf32>
    %c0_5 = arith.constant 0 : index
    %c0_6 = arith.constant 0 : index
    %6 = vector.load %arg6[%c0_5, %c0_6] : memref<32x384xf32, #tpu.memory_space<vmem>>, vector<32x384xf32>
    %cst_7 = arith.constant dense<0.000000e+00> : vector<8x384xf32>
    %7 = tpu.matmul %0, %6, %cst_7 {dimension_numbers = #tpu.dot_dimension_numbers<[1], [0], [0], [1], [0, 0, 1, 1], [], []>} : vector<8x32xf32>, vector<32x384xf32>, vector<8x384xf32> -> vector<8x384xf32>
    %c0_8 = arith.constant 0 : index
    %c0_9 = arith.constant 0 : index
    %8 = vector.load %arg8[%c0_8, %c0_9] : memref<1x384xf32, #tpu.memory_space<vmem>>, vector<1x384xf32>
    %9 = vector.broadcast %8 : vector<1x384xf32> to vector<8x384xf32>
    %10 = arith.addf %7, %9 : vector<8x384xf32>
    %cst_10 = arith.constant 0.000000e+00 : f32
    %11 = vector.broadcast %cst_10 : f32 to vector<1x32xf32>
    %12 = vector.extract_strided_slice %5 {offsets = [0, 0], sizes = [1, 384], strides = [1, 1]} : vector<8x384xf32> to vector<1x384xf32>
    %13 = vector.extract_strided_slice %12 {offsets = [0, 0], sizes = [1, 32], strides = [1, 1]} : vector<1x384xf32> to vector<1x32xf32>
    %14 = vector.extract_strided_slice %12 {offsets = [0, 128], sizes = [1, 32], strides = [1, 1]} : vector<1x384xf32> to vector<1x32xf32>
    %15 = vector.extract_strided_slice %12 {offsets = [0, 256], sizes = [1, 32], strides = [1, 1]} : vector<1x384xf32> to vector<1x32xf32>
    %c0_11 = arith.constant 0 : index
    %c0_12 = arith.constant 0 : index
    %16 = vector.load %arg3[%c0_11, %c0_12] : memref<32x384xf32, #tpu.memory_space<vmem>>, vector<32x384xf32>
    %cst_13 = arith.constant dense<0.000000e+00> : vector<1x384xf32>
    %17 = tpu.matmul %11, %16, %cst_13 {dimension_numbers = #tpu.dot_dimension_numbers<[1], [0], [0], [1], [0, 0, 1, 1], [], []>} : vector<1x32xf32>, vector<32x384xf32>, vector<1x384xf32> -> vector<1x384xf32>
    %c0_14 = arith.constant 0 : index
    %c0_15 = arith.constant 0 : index
    %18 = vector.load %arg5[%c0_14, %c0_15] : memref<1x384xf32, #tpu.memory_space<vmem>>, vector<1x384xf32>
    %19 = arith.addf %17, %18 : vector<1x384xf32>
    %20 = vector.extract_strided_slice %19 {offsets = [0, 0], sizes = [1, 32], strides = [1, 1]} : vector<1x384xf32> to vector<1x32xf32>
    %21 = vector.extract_strided_slice %19 {offsets = [0, 128], sizes = [1, 32], strides = [1, 1]} : vector<1x384xf32> to vector<1x32xf32>
    %22 = vector.extract_strided_slice %19 {offsets = [0, 256], sizes = [1, 32], strides = [1, 1]} : vector<1x384xf32> to vector<1x32xf32>
    %23 = arith.addf %13, %20 : vector<1x32xf32>
    %24 = arith.negf %23 : vector<1x32xf32>
    %25 = math.exp %24 : vector<1x32xf32>
    %cst_16 = arith.constant 1.000000e+00 : f32
    %26 = vector.broadcast %cst_16 : f32 to vector<1x32xf32>
    %27 = arith.addf %26, %25 : vector<1x32xf32>
    %28 = arith.divf %26, %27 : vector<1x32xf32>
    %29 = arith.addf %14, %21 : vector<1x32xf32>
    %30 = arith.negf %29 : vector<1x32xf32>
    %31 = math.exp %30 : vector<1x32xf32>
    %cst_17 = arith.constant 1.000000e+00 : f32
    %32 = vector.broadcast %cst_17 : f32 to vector<1x32xf32>
    %33 = arith.addf %32, %31 : vector<1x32xf32>
    %34 = arith.divf %32, %33 : vector<1x32xf32>
    %35 = arith.mulf %28, %22 : vector<1x32xf32>
    %36 = arith.addf %15, %35 : vector<1x32xf32>
    %37 = math.tanh %36 : vector<1x32xf32>
    %cst_18 = arith.constant 1.000000e+00 : f32
    %38 = vector.broadcast %cst_18 : f32 to vector<1x32xf32>
    %39 = arith.subf %38, %34 : vector<1x32xf32>
    %40 = arith.mulf %39, %37 : vector<1x32xf32>
    %41 = arith.mulf %34, %11 : vector<1x32xf32>
    %42 = arith.addf %40, %41 : vector<1x32xf32>
    %43 = vector.extract_strided_slice %5 {offsets = [1, 0], sizes = [1, 384], strides = [1, 1]} : vector<8x384xf32> to vector<1x384xf32>
    %44 = vector.extract_strided_slice %43 {offsets = [0, 0], sizes = [1, 32], strides = [1, 1]} : vector<1x384xf32> to vector<1x32xf32>
    %45 = vector.extract_strided_slice %43 {offsets = [0, 128], sizes = [1, 32], strides = [1, 1]} : vector<1x384xf32> to vector<1x32xf32>
    %46 = vector.extract_strided_slice %43 {offsets = [0, 256], sizes = [1, 32], strides = [1, 1]} : vector<1x384xf32> to vector<1x32xf32>
    %c0_19 = arith.constant 0 : index
    %c0_20 = arith.constant 0 : index
    %47 = vector.load %arg3[%c0_19, %c0_20] : memref<32x384xf32, #tpu.memory_space<vmem>>, vector<32x384xf32>
    %cst_21 = arith.constant dense<0.000000e+00> : vector<1x384xf32>
    %48 = tpu.matmul %42, %47, %cst_21 {dimension_numbers = #tpu.dot_dimension_numbers<[1], [0], [0], [1], [0, 0, 1, 1], [], []>} : vector<1x32xf32>, vector<32x384xf32>, vector<1x384xf32> -> vector<1x384xf32>
    %c0_22 = arith.constant 0 : index
    %c0_23 = arith.constant 0 : index
    %49 = vector.load %arg5[%c0_22, %c0_23] : memref<1x384xf32, #tpu.memory_space<vmem>>, vector<1x384xf32>
    %50 = arith.addf %48, %49 : vector<1x384xf32>
    %51 = vector.extract_strided_slice %50 {offsets = [0, 0], sizes = [1, 32], strides = [1, 1]} : vector<1x384xf32> to vector<1x32xf32>
    %52 = vector.extract_strided_slice %50 {offsets = [0, 128], sizes = [1, 32], strides = [1, 1]} : vector<1x384xf32> to vector<1x32xf32>
    %53 = vector.extract_strided_slice %50 {offsets = [0, 256], sizes = [1, 32], strides = [1, 1]} : vector<1x384xf32> to vector<1x32xf32>
    %54 = arith.addf %44, %51 : vector<1x32xf32>
    %55 = arith.negf %54 : vector<1x32xf32>
    %56 = math.exp %55 : vector<1x32xf32>
    %cst_24 = arith.constant 1.000000e+00 : f32
    %57 = vector.broadcast %cst_24 : f32 to vector<1x32xf32>
    %58 = arith.addf %57, %56 : vector<1x32xf32>
    %59 = arith.divf %57, %58 : vector<1x32xf32>
    %60 = arith.addf %45, %52 : vector<1x32xf32>
    %61 = arith.negf %60 : vector<1x32xf32>
    %62 = math.exp %61 : vector<1x32xf32>
    %cst_25 = arith.constant 1.000000e+00 : f32
    %63 = vector.broadcast %cst_25 : f32 to vector<1x32xf32>
    %64 = arith.addf %63, %62 : vector<1x32xf32>
    %65 = arith.divf %63, %64 : vector<1x32xf32>
    %66 = arith.mulf %59, %53 : vector<1x32xf32>
    %67 = arith.addf %46, %66 : vector<1x32xf32>
    %68 = math.tanh %67 : vector<1x32xf32>
    %cst_26 = arith.constant 1.000000e+00 : f32
    %69 = vector.broadcast %cst_26 : f32 to vector<1x32xf32>
    %70 = arith.subf %69, %65 : vector<1x32xf32>
    %71 = arith.mulf %70, %68 : vector<1x32xf32>
    %72 = arith.mulf %65, %42 : vector<1x32xf32>
    %73 = arith.addf %71, %72 : vector<1x32xf32>
    %74 = vector.extract_strided_slice %5 {offsets = [2, 0], sizes = [1, 384], strides = [1, 1]} : vector<8x384xf32> to vector<1x384xf32>
    %75 = vector.extract_strided_slice %74 {offsets = [0, 0], sizes = [1, 32], strides = [1, 1]} : vector<1x384xf32> to vector<1x32xf32>
    %76 = vector.extract_strided_slice %74 {offsets = [0, 128], sizes = [1, 32], strides = [1, 1]} : vector<1x384xf32> to vector<1x32xf32>
    %77 = vector.extract_strided_slice %74 {offsets = [0, 256], sizes = [1, 32], strides = [1, 1]} : vector<1x384xf32> to vector<1x32xf32>
    %c0_27 = arith.constant 0 : index
    %c0_28 = arith.constant 0 : index
    %78 = vector.load %arg3[%c0_27, %c0_28] : memref<32x384xf32, #tpu.memory_space<vmem>>, vector<32x384xf32>
    %cst_29 = arith.constant dense<0.000000e+00> : vector<1x384xf32>
    %79 = tpu.matmul %73, %78, %cst_29 {dimension_numbers = #tpu.dot_dimension_numbers<[1], [0], [0], [1], [0, 0, 1, 1], [], []>} : vector<1x32xf32>, vector<32x384xf32>, vector<1x384xf32> -> vector<1x384xf32>
    %c0_30 = arith.constant 0 : index
    %c0_31 = arith.constant 0 : index
    %80 = vector.load %arg5[%c0_30, %c0_31] : memref<1x384xf32, #tpu.memory_space<vmem>>, vector<1x384xf32>
    %81 = arith.addf %79, %80 : vector<1x384xf32>
    %82 = vector.extract_strided_slice %81 {offsets = [0, 0], sizes = [1, 32], strides = [1, 1]} : vector<1x384xf32> to vector<1x32xf32>
    %83 = vector.extract_strided_slice %81 {offsets = [0, 128], sizes = [1, 32], strides = [1, 1]} : vector<1x384xf32> to vector<1x32xf32>
    %84 = vector.extract_strided_slice %81 {offsets = [0, 256], sizes = [1, 32], strides = [1, 1]} : vector<1x384xf32> to vector<1x32xf32>
    %85 = arith.addf %75, %82 : vector<1x32xf32>
    %86 = arith.negf %85 : vector<1x32xf32>
    %87 = math.exp %86 : vector<1x32xf32>
    %cst_32 = arith.constant 1.000000e+00 : f32
    %88 = vector.broadcast %cst_32 : f32 to vector<1x32xf32>
    %89 = arith.addf %88, %87 : vector<1x32xf32>
    %90 = arith.divf %88, %89 : vector<1x32xf32>
    %91 = arith.addf %76, %83 : vector<1x32xf32>
    %92 = arith.negf %91 : vector<1x32xf32>
    %93 = math.exp %92 : vector<1x32xf32>
    %cst_33 = arith.constant 1.000000e+00 : f32
    %94 = vector.broadcast %cst_33 : f32 to vector<1x32xf32>
    %95 = arith.addf %94, %93 : vector<1x32xf32>
    %96 = arith.divf %94, %95 : vector<1x32xf32>
    %97 = arith.mulf %90, %84 : vector<1x32xf32>
    %98 = arith.addf %77, %97 : vector<1x32xf32>
    %99 = math.tanh %98 : vector<1x32xf32>
    %cst_34 = arith.constant 1.000000e+00 : f32
    %100 = vector.broadcast %cst_34 : f32 to vector<1x32xf32>
    %101 = arith.subf %100, %96 : vector<1x32xf32>
    %102 = arith.mulf %101, %99 : vector<1x32xf32>
    %103 = arith.mulf %96, %73 : vector<1x32xf32>
    %104 = arith.addf %102, %103 : vector<1x32xf32>
    %105 = vector.extract_strided_slice %5 {offsets = [3, 0], sizes = [1, 384], strides = [1, 1]} : vector<8x384xf32> to vector<1x384xf32>
    %106 = vector.extract_strided_slice %105 {offsets = [0, 0], sizes = [1, 32], strides = [1, 1]} : vector<1x384xf32> to vector<1x32xf32>
    %107 = vector.extract_strided_slice %105 {offsets = [0, 128], sizes = [1, 32], strides = [1, 1]} : vector<1x384xf32> to vector<1x32xf32>
    %108 = vector.extract_strided_slice %105 {offsets = [0, 256], sizes = [1, 32], strides = [1, 1]} : vector<1x384xf32> to vector<1x32xf32>
    %c0_35 = arith.constant 0 : index
    %c0_36 = arith.constant 0 : index
    %109 = vector.load %arg3[%c0_35, %c0_36] : memref<32x384xf32, #tpu.memory_space<vmem>>, vector<32x384xf32>
    %cst_37 = arith.constant dense<0.000000e+00> : vector<1x384xf32>
    %110 = tpu.matmul %104, %109, %cst_37 {dimension_numbers = #tpu.dot_dimension_numbers<[1], [0], [0], [1], [0, 0, 1, 1], [], []>} : vector<1x32xf32>, vector<32x384xf32>, vector<1x384xf32> -> vector<1x384xf32>
    %c0_38 = arith.constant 0 : index
    %c0_39 = arith.constant 0 : index
    %111 = vector.load %arg5[%c0_38, %c0_39] : memref<1x384xf32, #tpu.memory_space<vmem>>, vector<1x384xf32>
    %112 = arith.addf %110, %111 : vector<1x384xf32>
    %113 = vector.extract_strided_slice %112 {offsets = [0, 0], sizes = [1, 32], strides = [1, 1]} : vector<1x384xf32> to vector<1x32xf32>
    %114 = vector.extract_strided_slice %112 {offsets = [0, 128], sizes = [1, 32], strides = [1, 1]} : vector<1x384xf32> to vector<1x32xf32>
    %115 = vector.extract_strided_slice %112 {offsets = [0, 256], sizes = [1, 32], strides = [1, 1]} : vector<1x384xf32> to vector<1x32xf32>
    %116 = arith.addf %106, %113 : vector<1x32xf32>
    %117 = arith.negf %116 : vector<1x32xf32>
    %118 = math.exp %117 : vector<1x32xf32>
    %cst_40 = arith.constant 1.000000e+00 : f32
    %119 = vector.broadcast %cst_40 : f32 to vector<1x32xf32>
    %120 = arith.addf %119, %118 : vector<1x32xf32>
    %121 = arith.divf %119, %120 : vector<1x32xf32>
    %122 = arith.addf %107, %114 : vector<1x32xf32>
    %123 = arith.negf %122 : vector<1x32xf32>
    %124 = math.exp %123 : vector<1x32xf32>
    %cst_41 = arith.constant 1.000000e+00 : f32
    %125 = vector.broadcast %cst_41 : f32 to vector<1x32xf32>
    %126 = arith.addf %125, %124 : vector<1x32xf32>
    %127 = arith.divf %125, %126 : vector<1x32xf32>
    %128 = arith.mulf %121, %115 : vector<1x32xf32>
    %129 = arith.addf %108, %128 : vector<1x32xf32>
    %130 = math.tanh %129 : vector<1x32xf32>
    %cst_42 = arith.constant 1.000000e+00 : f32
    %131 = vector.broadcast %cst_42 : f32 to vector<1x32xf32>
    %132 = arith.subf %131, %127 : vector<1x32xf32>
    %133 = arith.mulf %132, %130 : vector<1x32xf32>
    %134 = arith.mulf %127, %104 : vector<1x32xf32>
    %135 = arith.addf %133, %134 : vector<1x32xf32>
    %136 = vector.extract_strided_slice %5 {offsets = [4, 0], sizes = [1, 384], strides = [1, 1]} : vector<8x384xf32> to vector<1x384xf32>
    %137 = vector.extract_strided_slice %136 {offsets = [0, 0], sizes = [1, 32], strides = [1, 1]} : vector<1x384xf32> to vector<1x32xf32>
    %138 = vector.extract_strided_slice %136 {offsets = [0, 128], sizes = [1, 32], strides = [1, 1]} : vector<1x384xf32> to vector<1x32xf32>
    %139 = vector.extract_strided_slice %136 {offsets = [0, 256], sizes = [1, 32], strides = [1, 1]} : vector<1x384xf32> to vector<1x32xf32>
    %c0_43 = arith.constant 0 : index
    %c0_44 = arith.constant 0 : index
    %140 = vector.load %arg3[%c0_43, %c0_44] : memref<32x384xf32, #tpu.memory_space<vmem>>, vector<32x384xf32>
    %cst_45 = arith.constant dense<0.000000e+00> : vector<1x384xf32>
    %141 = tpu.matmul %135, %140, %cst_45 {dimension_numbers = #tpu.dot_dimension_numbers<[1], [0], [0], [1], [0, 0, 1, 1], [], []>} : vector<1x32xf32>, vector<32x384xf32>, vector<1x384xf32> -> vector<1x384xf32>
    %c0_46 = arith.constant 0 : index
    %c0_47 = arith.constant 0 : index
    %142 = vector.load %arg5[%c0_46, %c0_47] : memref<1x384xf32, #tpu.memory_space<vmem>>, vector<1x384xf32>
    %143 = arith.addf %141, %142 : vector<1x384xf32>
    %144 = vector.extract_strided_slice %143 {offsets = [0, 0], sizes = [1, 32], strides = [1, 1]} : vector<1x384xf32> to vector<1x32xf32>
    %145 = vector.extract_strided_slice %143 {offsets = [0, 128], sizes = [1, 32], strides = [1, 1]} : vector<1x384xf32> to vector<1x32xf32>
    %146 = vector.extract_strided_slice %143 {offsets = [0, 256], sizes = [1, 32], strides = [1, 1]} : vector<1x384xf32> to vector<1x32xf32>
    %147 = arith.addf %137, %144 : vector<1x32xf32>
    %148 = arith.negf %147 : vector<1x32xf32>
    %149 = math.exp %148 : vector<1x32xf32>
    %cst_48 = arith.constant 1.000000e+00 : f32
    %150 = vector.broadcast %cst_48 : f32 to vector<1x32xf32>
    %151 = arith.addf %150, %149 : vector<1x32xf32>
    %152 = arith.divf %150, %151 : vector<1x32xf32>
    %153 = arith.addf %138, %145 : vector<1x32xf32>
    %154 = arith.negf %153 : vector<1x32xf32>
    %155 = math.exp %154 : vector<1x32xf32>
    %cst_49 = arith.constant 1.000000e+00 : f32
    %156 = vector.broadcast %cst_49 : f32 to vector<1x32xf32>
    %157 = arith.addf %156, %155 : vector<1x32xf32>
    %158 = arith.divf %156, %157 : vector<1x32xf32>
    %159 = arith.mulf %152, %146 : vector<1x32xf32>
    %160 = arith.addf %139, %159 : vector<1x32xf32>
    %161 = math.tanh %160 : vector<1x32xf32>
    %cst_50 = arith.constant 1.000000e+00 : f32
    %162 = vector.broadcast %cst_50 : f32 to vector<1x32xf32>
    %163 = arith.subf %162, %158 : vector<1x32xf32>
    %164 = arith.mulf %163, %161 : vector<1x32xf32>
    %165 = arith.mulf %158, %135 : vector<1x32xf32>
    %166 = arith.addf %164, %165 : vector<1x32xf32>
    %167 = vector.extract_strided_slice %5 {offsets = [5, 0], sizes = [1, 384], strides = [1, 1]} : vector<8x384xf32> to vector<1x384xf32>
    %168 = vector.extract_strided_slice %167 {offsets = [0, 0], sizes = [1, 32], strides = [1, 1]} : vector<1x384xf32> to vector<1x32xf32>
    %169 = vector.extract_strided_slice %167 {offsets = [0, 128], sizes = [1, 32], strides = [1, 1]} : vector<1x384xf32> to vector<1x32xf32>
    %170 = vector.extract_strided_slice %167 {offsets = [0, 256], sizes = [1, 32], strides = [1, 1]} : vector<1x384xf32> to vector<1x32xf32>
    %c0_51 = arith.constant 0 : index
    %c0_52 = arith.constant 0 : index
    %171 = vector.load %arg3[%c0_51, %c0_52] : memref<32x384xf32, #tpu.memory_space<vmem>>, vector<32x384xf32>
    %cst_53 = arith.constant dense<0.000000e+00> : vector<1x384xf32>
    %172 = tpu.matmul %166, %171, %cst_53 {dimension_numbers = #tpu.dot_dimension_numbers<[1], [0], [0], [1], [0, 0, 1, 1], [], []>} : vector<1x32xf32>, vector<32x384xf32>, vector<1x384xf32> -> vector<1x384xf32>
    %c0_54 = arith.constant 0 : index
    %c0_55 = arith.constant 0 : index
    %173 = vector.load %arg5[%c0_54, %c0_55] : memref<1x384xf32, #tpu.memory_space<vmem>>, vector<1x384xf32>
    %174 = arith.addf %172, %173 : vector<1x384xf32>
    %175 = vector.extract_strided_slice %174 {offsets = [0, 0], sizes = [1, 32], strides = [1, 1]} : vector<1x384xf32> to vector<1x32xf32>
    %176 = vector.extract_strided_slice %174 {offsets = [0, 128], sizes = [1, 32], strides = [1, 1]} : vector<1x384xf32> to vector<1x32xf32>
    %177 = vector.extract_strided_slice %174 {offsets = [0, 256], sizes = [1, 32], strides = [1, 1]} : vector<1x384xf32> to vector<1x32xf32>
    %178 = arith.addf %168, %175 : vector<1x32xf32>
    %179 = arith.negf %178 : vector<1x32xf32>
    %180 = math.exp %179 : vector<1x32xf32>
    %cst_56 = arith.constant 1.000000e+00 : f32
    %181 = vector.broadcast %cst_56 : f32 to vector<1x32xf32>
    %182 = arith.addf %181, %180 : vector<1x32xf32>
    %183 = arith.divf %181, %182 : vector<1x32xf32>
    %184 = arith.addf %169, %176 : vector<1x32xf32>
    %185 = arith.negf %184 : vector<1x32xf32>
    %186 = math.exp %185 : vector<1x32xf32>
    %cst_57 = arith.constant 1.000000e+00 : f32
    %187 = vector.broadcast %cst_57 : f32 to vector<1x32xf32>
    %188 = arith.addf %187, %186 : vector<1x32xf32>
    %189 = arith.divf %187, %188 : vector<1x32xf32>
    %190 = arith.mulf %183, %177 : vector<1x32xf32>
    %191 = arith.addf %170, %190 : vector<1x32xf32>
    %192 = math.tanh %191 : vector<1x32xf32>
    %cst_58 = arith.constant 1.000000e+00 : f32
    %193 = vector.broadcast %cst_58 : f32 to vector<1x32xf32>
    %194 = arith.subf %193, %189 : vector<1x32xf32>
    %195 = arith.mulf %194, %192 : vector<1x32xf32>
    %196 = arith.mulf %189, %166 : vector<1x32xf32>
    %197 = arith.addf %195, %196 : vector<1x32xf32>
    %198 = vector.extract_strided_slice %5 {offsets = [6, 0], sizes = [1, 384], strides = [1, 1]} : vector<8x384xf32> to vector<1x384xf32>
    %199 = vector.extract_strided_slice %198 {offsets = [0, 0], sizes = [1, 32], strides = [1, 1]} : vector<1x384xf32> to vector<1x32xf32>
    %200 = vector.extract_strided_slice %198 {offsets = [0, 128], sizes = [1, 32], strides = [1, 1]} : vector<1x384xf32> to vector<1x32xf32>
    %201 = vector.extract_strided_slice %198 {offsets = [0, 256], sizes = [1, 32], strides = [1, 1]} : vector<1x384xf32> to vector<1x32xf32>
    %c0_59 = arith.constant 0 : index
    %c0_60 = arith.constant 0 : index
    %202 = vector.load %arg3[%c0_59, %c0_60] : memref<32x384xf32, #tpu.memory_space<vmem>>, vector<32x384xf32>
    %cst_61 = arith.constant dense<0.000000e+00> : vector<1x384xf32>
    %203 = tpu.matmul %197, %202, %cst_61 {dimension_numbers = #tpu.dot_dimension_numbers<[1], [0], [0], [1], [0, 0, 1, 1], [], []>} : vector<1x32xf32>, vector<32x384xf32>, vector<1x384xf32> -> vector<1x384xf32>
    %c0_62 = arith.constant 0 : index
    %c0_63 = arith.constant 0 : index
    %204 = vector.load %arg5[%c0_62, %c0_63] : memref<1x384xf32, #tpu.memory_space<vmem>>, vector<1x384xf32>
    %205 = arith.addf %203, %204 : vector<1x384xf32>
    %206 = vector.extract_strided_slice %205 {offsets = [0, 0], sizes = [1, 32], strides = [1, 1]} : vector<1x384xf32> to vector<1x32xf32>
    %207 = vector.extract_strided_slice %205 {offsets = [0, 128], sizes = [1, 32], strides = [1, 1]} : vector<1x384xf32> to vector<1x32xf32>
    %208 = vector.extract_strided_slice %205 {offsets = [0, 256], sizes = [1, 32], strides = [1, 1]} : vector<1x384xf32> to vector<1x32xf32>
    %209 = arith.addf %199, %206 : vector<1x32xf32>
    %210 = arith.negf %209 : vector<1x32xf32>
    %211 = math.exp %210 : vector<1x32xf32>
    %cst_64 = arith.constant 1.000000e+00 : f32
    %212 = vector.broadcast %cst_64 : f32 to vector<1x32xf32>
    %213 = arith.addf %212, %211 : vector<1x32xf32>
    %214 = arith.divf %212, %213 : vector<1x32xf32>
    %215 = arith.addf %200, %207 : vector<1x32xf32>
    %216 = arith.negf %215 : vector<1x32xf32>
    %217 = math.exp %216 : vector<1x32xf32>
    %cst_65 = arith.constant 1.000000e+00 : f32
    %218 = vector.broadcast %cst_65 : f32 to vector<1x32xf32>
    %219 = arith.addf %218, %217 : vector<1x32xf32>
    %220 = arith.divf %218, %219 : vector<1x32xf32>
    %221 = arith.mulf %214, %208 : vector<1x32xf32>
    %222 = arith.addf %201, %221 : vector<1x32xf32>
    %223 = math.tanh %222 : vector<1x32xf32>
    %cst_66 = arith.constant 1.000000e+00 : f32
    %224 = vector.broadcast %cst_66 : f32 to vector<1x32xf32>
    %225 = arith.subf %224, %220 : vector<1x32xf32>
    %226 = arith.mulf %225, %223 : vector<1x32xf32>
    %227 = arith.mulf %220, %197 : vector<1x32xf32>
    %228 = arith.addf %226, %227 : vector<1x32xf32>
    %229 = vector.extract_strided_slice %5 {offsets = [7, 0], sizes = [1, 384], strides = [1, 1]} : vector<8x384xf32> to vector<1x384xf32>
    %230 = vector.extract_strided_slice %229 {offsets = [0, 0], sizes = [1, 32], strides = [1, 1]} : vector<1x384xf32> to vector<1x32xf32>
    %231 = vector.extract_strided_slice %229 {offsets = [0, 128], sizes = [1, 32], strides = [1, 1]} : vector<1x384xf32> to vector<1x32xf32>
    %232 = vector.extract_strided_slice %229 {offsets = [0, 256], sizes = [1, 32], strides = [1, 1]} : vector<1x384xf32> to vector<1x32xf32>
    %c0_67 = arith.constant 0 : index
    %c0_68 = arith.constant 0 : index
    %233 = vector.load %arg3[%c0_67, %c0_68] : memref<32x384xf32, #tpu.memory_space<vmem>>, vector<32x384xf32>
    %cst_69 = arith.constant dense<0.000000e+00> : vector<1x384xf32>
    %234 = tpu.matmul %228, %233, %cst_69 {dimension_numbers = #tpu.dot_dimension_numbers<[1], [0], [0], [1], [0, 0, 1, 1], [], []>} : vector<1x32xf32>, vector<32x384xf32>, vector<1x384xf32> -> vector<1x384xf32>
    %c0_70 = arith.constant 0 : index
    %c0_71 = arith.constant 0 : index
    %235 = vector.load %arg5[%c0_70, %c0_71] : memref<1x384xf32, #tpu.memory_space<vmem>>, vector<1x384xf32>
    %236 = arith.addf %234, %235 : vector<1x384xf32>
    %237 = vector.extract_strided_slice %236 {offsets = [0, 0], sizes = [1, 32], strides = [1, 1]} : vector<1x384xf32> to vector<1x32xf32>
    %238 = vector.extract_strided_slice %236 {offsets = [0, 128], sizes = [1, 32], strides = [1, 1]} : vector<1x384xf32> to vector<1x32xf32>
    %239 = vector.extract_strided_slice %236 {offsets = [0, 256], sizes = [1, 32], strides = [1, 1]} : vector<1x384xf32> to vector<1x32xf32>
    %240 = arith.addf %230, %237 : vector<1x32xf32>
    %241 = arith.negf %240 : vector<1x32xf32>
    %242 = math.exp %241 : vector<1x32xf32>
    %cst_72 = arith.constant 1.000000e+00 : f32
    %243 = vector.broadcast %cst_72 : f32 to vector<1x32xf32>
    %244 = arith.addf %243, %242 : vector<1x32xf32>
    %245 = arith.divf %243, %244 : vector<1x32xf32>
    %246 = arith.addf %231, %238 : vector<1x32xf32>
    %247 = arith.negf %246 : vector<1x32xf32>
    %248 = math.exp %247 : vector<1x32xf32>
    %cst_73 = arith.constant 1.000000e+00 : f32
    %249 = vector.broadcast %cst_73 : f32 to vector<1x32xf32>
    %250 = arith.addf %249, %248 : vector<1x32xf32>
    %251 = arith.divf %249, %250 : vector<1x32xf32>
    %252 = arith.mulf %245, %239 : vector<1x32xf32>
    %253 = arith.addf %232, %252 : vector<1x32xf32>
    %254 = math.tanh %253 : vector<1x32xf32>
    %cst_74 = arith.constant 1.000000e+00 : f32
    %255 = vector.broadcast %cst_74 : f32 to vector<1x32xf32>
    %256 = arith.subf %255, %251 : vector<1x32xf32>
    %257 = arith.mulf %256, %254 : vector<1x32xf32>
    %258 = arith.mulf %251, %228 : vector<1x32xf32>
    %259 = arith.addf %257, %258 : vector<1x32xf32>
    %cst_75 = arith.constant 0.000000e+00 : f32
    %260 = vector.broadcast %cst_75 : f32 to vector<1x32xf32>
    %261 = vector.extract_strided_slice %10 {offsets = [7, 0], sizes = [1, 384], strides = [1, 1]} : vector<8x384xf32> to vector<1x384xf32>
    %262 = vector.extract_strided_slice %261 {offsets = [0, 0], sizes = [1, 32], strides = [1, 1]} : vector<1x384xf32> to vector<1x32xf32>
    %263 = vector.extract_strided_slice %261 {offsets = [0, 128], sizes = [1, 32], strides = [1, 1]} : vector<1x384xf32> to vector<1x32xf32>
    %264 = vector.extract_strided_slice %261 {offsets = [0, 256], sizes = [1, 32], strides = [1, 1]} : vector<1x384xf32> to vector<1x32xf32>
    %c0_76 = arith.constant 0 : index
    %c0_77 = arith.constant 0 : index
    %265 = vector.load %arg7[%c0_76, %c0_77] : memref<32x384xf32, #tpu.memory_space<vmem>>, vector<32x384xf32>
    %cst_78 = arith.constant dense<0.000000e+00> : vector<1x384xf32>
    %266 = tpu.matmul %260, %265, %cst_78 {dimension_numbers = #tpu.dot_dimension_numbers<[1], [0], [0], [1], [0, 0, 1, 1], [], []>} : vector<1x32xf32>, vector<32x384xf32>, vector<1x384xf32> -> vector<1x384xf32>
    %c0_79 = arith.constant 0 : index
    %c0_80 = arith.constant 0 : index
    %267 = vector.load %arg9[%c0_79, %c0_80] : memref<1x384xf32, #tpu.memory_space<vmem>>, vector<1x384xf32>
    %268 = arith.addf %266, %267 : vector<1x384xf32>
    %269 = vector.extract_strided_slice %268 {offsets = [0, 0], sizes = [1, 32], strides = [1, 1]} : vector<1x384xf32> to vector<1x32xf32>
    %270 = vector.extract_strided_slice %268 {offsets = [0, 128], sizes = [1, 32], strides = [1, 1]} : vector<1x384xf32> to vector<1x32xf32>
    %271 = vector.extract_strided_slice %268 {offsets = [0, 256], sizes = [1, 32], strides = [1, 1]} : vector<1x384xf32> to vector<1x32xf32>
    %272 = arith.addf %262, %269 : vector<1x32xf32>
    %273 = arith.negf %272 : vector<1x32xf32>
    %274 = math.exp %273 : vector<1x32xf32>
    %cst_81 = arith.constant 1.000000e+00 : f32
    %275 = vector.broadcast %cst_81 : f32 to vector<1x32xf32>
    %276 = arith.addf %275, %274 : vector<1x32xf32>
    %277 = arith.divf %275, %276 : vector<1x32xf32>
    %278 = arith.addf %263, %270 : vector<1x32xf32>
    %279 = arith.negf %278 : vector<1x32xf32>
    %280 = math.exp %279 : vector<1x32xf32>
    %cst_82 = arith.constant 1.000000e+00 : f32
    %281 = vector.broadcast %cst_82 : f32 to vector<1x32xf32>
    %282 = arith.addf %281, %280 : vector<1x32xf32>
    %283 = arith.divf %281, %282 : vector<1x32xf32>
    %284 = arith.mulf %277, %271 : vector<1x32xf32>
    %285 = arith.addf %264, %284 : vector<1x32xf32>
    %286 = math.tanh %285 : vector<1x32xf32>
    %cst_83 = arith.constant 1.000000e+00 : f32
    %287 = vector.broadcast %cst_83 : f32 to vector<1x32xf32>
    %288 = arith.subf %287, %283 : vector<1x32xf32>
    %289 = arith.mulf %288, %286 : vector<1x32xf32>
    %290 = arith.mulf %283, %260 : vector<1x32xf32>
    %291 = arith.addf %289, %290 : vector<1x32xf32>
    %292 = vector.extract_strided_slice %10 {offsets = [6, 0], sizes = [1, 384], strides = [1, 1]} : vector<8x384xf32> to vector<1x384xf32>
    %293 = vector.extract_strided_slice %292 {offsets = [0, 0], sizes = [1, 32], strides = [1, 1]} : vector<1x384xf32> to vector<1x32xf32>
    %294 = vector.extract_strided_slice %292 {offsets = [0, 128], sizes = [1, 32], strides = [1, 1]} : vector<1x384xf32> to vector<1x32xf32>
    %295 = vector.extract_strided_slice %292 {offsets = [0, 256], sizes = [1, 32], strides = [1, 1]} : vector<1x384xf32> to vector<1x32xf32>
    %c0_84 = arith.constant 0 : index
    %c0_85 = arith.constant 0 : index
    %296 = vector.load %arg7[%c0_84, %c0_85] : memref<32x384xf32, #tpu.memory_space<vmem>>, vector<32x384xf32>
    %cst_86 = arith.constant dense<0.000000e+00> : vector<1x384xf32>
    %297 = tpu.matmul %291, %296, %cst_86 {dimension_numbers = #tpu.dot_dimension_numbers<[1], [0], [0], [1], [0, 0, 1, 1], [], []>} : vector<1x32xf32>, vector<32x384xf32>, vector<1x384xf32> -> vector<1x384xf32>
    %c0_87 = arith.constant 0 : index
    %c0_88 = arith.constant 0 : index
    %298 = vector.load %arg9[%c0_87, %c0_88] : memref<1x384xf32, #tpu.memory_space<vmem>>, vector<1x384xf32>
    %299 = arith.addf %297, %298 : vector<1x384xf32>
    %300 = vector.extract_strided_slice %299 {offsets = [0, 0], sizes = [1, 32], strides = [1, 1]} : vector<1x384xf32> to vector<1x32xf32>
    %301 = vector.extract_strided_slice %299 {offsets = [0, 128], sizes = [1, 32], strides = [1, 1]} : vector<1x384xf32> to vector<1x32xf32>
    %302 = vector.extract_strided_slice %299 {offsets = [0, 256], sizes = [1, 32], strides = [1, 1]} : vector<1x384xf32> to vector<1x32xf32>
    %303 = arith.addf %293, %300 : vector<1x32xf32>
    %304 = arith.negf %303 : vector<1x32xf32>
    %305 = math.exp %304 : vector<1x32xf32>
    %cst_89 = arith.constant 1.000000e+00 : f32
    %306 = vector.broadcast %cst_89 : f32 to vector<1x32xf32>
    %307 = arith.addf %306, %305 : vector<1x32xf32>
    %308 = arith.divf %306, %307 : vector<1x32xf32>
    %309 = arith.addf %294, %301 : vector<1x32xf32>
    %310 = arith.negf %309 : vector<1x32xf32>
    %311 = math.exp %310 : vector<1x32xf32>
    %cst_90 = arith.constant 1.000000e+00 : f32
    %312 = vector.broadcast %cst_90 : f32 to vector<1x32xf32>
    %313 = arith.addf %312, %311 : vector<1x32xf32>
    %314 = arith.divf %312, %313 : vector<1x32xf32>
    %315 = arith.mulf %308, %302 : vector<1x32xf32>
    %316 = arith.addf %295, %315 : vector<1x32xf32>
    %317 = math.tanh %316 : vector<1x32xf32>
    %cst_91 = arith.constant 1.000000e+00 : f32
    %318 = vector.broadcast %cst_91 : f32 to vector<1x32xf32>
    %319 = arith.subf %318, %314 : vector<1x32xf32>
    %320 = arith.mulf %319, %317 : vector<1x32xf32>
    %321 = arith.mulf %314, %291 : vector<1x32xf32>
    %322 = arith.addf %320, %321 : vector<1x32xf32>
    %323 = vector.extract_strided_slice %10 {offsets = [5, 0], sizes = [1, 384], strides = [1, 1]} : vector<8x384xf32> to vector<1x384xf32>
    %324 = vector.extract_strided_slice %323 {offsets = [0, 0], sizes = [1, 32], strides = [1, 1]} : vector<1x384xf32> to vector<1x32xf32>
    %325 = vector.extract_strided_slice %323 {offsets = [0, 128], sizes = [1, 32], strides = [1, 1]} : vector<1x384xf32> to vector<1x32xf32>
    %326 = vector.extract_strided_slice %323 {offsets = [0, 256], sizes = [1, 32], strides = [1, 1]} : vector<1x384xf32> to vector<1x32xf32>
    %c0_92 = arith.constant 0 : index
    %c0_93 = arith.constant 0 : index
    %327 = vector.load %arg7[%c0_92, %c0_93] : memref<32x384xf32, #tpu.memory_space<vmem>>, vector<32x384xf32>
    %cst_94 = arith.constant dense<0.000000e+00> : vector<1x384xf32>
    %328 = tpu.matmul %322, %327, %cst_94 {dimension_numbers = #tpu.dot_dimension_numbers<[1], [0], [0], [1], [0, 0, 1, 1], [], []>} : vector<1x32xf32>, vector<32x384xf32>, vector<1x384xf32> -> vector<1x384xf32>
    %c0_95 = arith.constant 0 : index
    %c0_96 = arith.constant 0 : index
    %329 = vector.load %arg9[%c0_95, %c0_96] : memref<1x384xf32, #tpu.memory_space<vmem>>, vector<1x384xf32>
    %330 = arith.addf %328, %329 : vector<1x384xf32>
    %331 = vector.extract_strided_slice %330 {offsets = [0, 0], sizes = [1, 32], strides = [1, 1]} : vector<1x384xf32> to vector<1x32xf32>
    %332 = vector.extract_strided_slice %330 {offsets = [0, 128], sizes = [1, 32], strides = [1, 1]} : vector<1x384xf32> to vector<1x32xf32>
    %333 = vector.extract_strided_slice %330 {offsets = [0, 256], sizes = [1, 32], strides = [1, 1]} : vector<1x384xf32> to vector<1x32xf32>
    %334 = arith.addf %324, %331 : vector<1x32xf32>
    %335 = arith.negf %334 : vector<1x32xf32>
    %336 = math.exp %335 : vector<1x32xf32>
    %cst_97 = arith.constant 1.000000e+00 : f32
    %337 = vector.broadcast %cst_97 : f32 to vector<1x32xf32>
    %338 = arith.addf %337, %336 : vector<1x32xf32>
    %339 = arith.divf %337, %338 : vector<1x32xf32>
    %340 = arith.addf %325, %332 : vector<1x32xf32>
    %341 = arith.negf %340 : vector<1x32xf32>
    %342 = math.exp %341 : vector<1x32xf32>
    %cst_98 = arith.constant 1.000000e+00 : f32
    %343 = vector.broadcast %cst_98 : f32 to vector<1x32xf32>
    %344 = arith.addf %343, %342 : vector<1x32xf32>
    %345 = arith.divf %343, %344 : vector<1x32xf32>
    %346 = arith.mulf %339, %333 : vector<1x32xf32>
    %347 = arith.addf %326, %346 : vector<1x32xf32>
    %348 = math.tanh %347 : vector<1x32xf32>
    %cst_99 = arith.constant 1.000000e+00 : f32
    %349 = vector.broadcast %cst_99 : f32 to vector<1x32xf32>
    %350 = arith.subf %349, %345 : vector<1x32xf32>
    %351 = arith.mulf %350, %348 : vector<1x32xf32>
    %352 = arith.mulf %345, %322 : vector<1x32xf32>
    %353 = arith.addf %351, %352 : vector<1x32xf32>
    %354 = vector.extract_strided_slice %10 {offsets = [4, 0], sizes = [1, 384], strides = [1, 1]} : vector<8x384xf32> to vector<1x384xf32>
    %355 = vector.extract_strided_slice %354 {offsets = [0, 0], sizes = [1, 32], strides = [1, 1]} : vector<1x384xf32> to vector<1x32xf32>
    %356 = vector.extract_strided_slice %354 {offsets = [0, 128], sizes = [1, 32], strides = [1, 1]} : vector<1x384xf32> to vector<1x32xf32>
    %357 = vector.extract_strided_slice %354 {offsets = [0, 256], sizes = [1, 32], strides = [1, 1]} : vector<1x384xf32> to vector<1x32xf32>
    %c0_100 = arith.constant 0 : index
    %c0_101 = arith.constant 0 : index
    %358 = vector.load %arg7[%c0_100, %c0_101] : memref<32x384xf32, #tpu.memory_space<vmem>>, vector<32x384xf32>
    %cst_102 = arith.constant dense<0.000000e+00> : vector<1x384xf32>
    %359 = tpu.matmul %353, %358, %cst_102 {dimension_numbers = #tpu.dot_dimension_numbers<[1], [0], [0], [1], [0, 0, 1, 1], [], []>} : vector<1x32xf32>, vector<32x384xf32>, vector<1x384xf32> -> vector<1x384xf32>
    %c0_103 = arith.constant 0 : index
    %c0_104 = arith.constant 0 : index
    %360 = vector.load %arg9[%c0_103, %c0_104] : memref<1x384xf32, #tpu.memory_space<vmem>>, vector<1x384xf32>
    %361 = arith.addf %359, %360 : vector<1x384xf32>
    %362 = vector.extract_strided_slice %361 {offsets = [0, 0], sizes = [1, 32], strides = [1, 1]} : vector<1x384xf32> to vector<1x32xf32>
    %363 = vector.extract_strided_slice %361 {offsets = [0, 128], sizes = [1, 32], strides = [1, 1]} : vector<1x384xf32> to vector<1x32xf32>
    %364 = vector.extract_strided_slice %361 {offsets = [0, 256], sizes = [1, 32], strides = [1, 1]} : vector<1x384xf32> to vector<1x32xf32>
    %365 = arith.addf %355, %362 : vector<1x32xf32>
    %366 = arith.negf %365 : vector<1x32xf32>
    %367 = math.exp %366 : vector<1x32xf32>
    %cst_105 = arith.constant 1.000000e+00 : f32
    %368 = vector.broadcast %cst_105 : f32 to vector<1x32xf32>
    %369 = arith.addf %368, %367 : vector<1x32xf32>
    %370 = arith.divf %368, %369 : vector<1x32xf32>
    %371 = arith.addf %356, %363 : vector<1x32xf32>
    %372 = arith.negf %371 : vector<1x32xf32>
    %373 = math.exp %372 : vector<1x32xf32>
    %cst_106 = arith.constant 1.000000e+00 : f32
    %374 = vector.broadcast %cst_106 : f32 to vector<1x32xf32>
    %375 = arith.addf %374, %373 : vector<1x32xf32>
    %376 = arith.divf %374, %375 : vector<1x32xf32>
    %377 = arith.mulf %370, %364 : vector<1x32xf32>
    %378 = arith.addf %357, %377 : vector<1x32xf32>
    %379 = math.tanh %378 : vector<1x32xf32>
    %cst_107 = arith.constant 1.000000e+00 : f32
    %380 = vector.broadcast %cst_107 : f32 to vector<1x32xf32>
    %381 = arith.subf %380, %376 : vector<1x32xf32>
    %382 = arith.mulf %381, %379 : vector<1x32xf32>
    %383 = arith.mulf %376, %353 : vector<1x32xf32>
    %384 = arith.addf %382, %383 : vector<1x32xf32>
    %385 = vector.extract_strided_slice %10 {offsets = [3, 0], sizes = [1, 384], strides = [1, 1]} : vector<8x384xf32> to vector<1x384xf32>
    %386 = vector.extract_strided_slice %385 {offsets = [0, 0], sizes = [1, 32], strides = [1, 1]} : vector<1x384xf32> to vector<1x32xf32>
    %387 = vector.extract_strided_slice %385 {offsets = [0, 128], sizes = [1, 32], strides = [1, 1]} : vector<1x384xf32> to vector<1x32xf32>
    %388 = vector.extract_strided_slice %385 {offsets = [0, 256], sizes = [1, 32], strides = [1, 1]} : vector<1x384xf32> to vector<1x32xf32>
    %c0_108 = arith.constant 0 : index
    %c0_109 = arith.constant 0 : index
    %389 = vector.load %arg7[%c0_108, %c0_109] : memref<32x384xf32, #tpu.memory_space<vmem>>, vector<32x384xf32>
    %cst_110 = arith.constant dense<0.000000e+00> : vector<1x384xf32>
    %390 = tpu.matmul %384, %389, %cst_110 {dimension_numbers = #tpu.dot_dimension_numbers<[1], [0], [0], [1], [0, 0, 1, 1], [], []>} : vector<1x32xf32>, vector<32x384xf32>, vector<1x384xf32> -> vector<1x384xf32>
    %c0_111 = arith.constant 0 : index
    %c0_112 = arith.constant 0 : index
    %391 = vector.load %arg9[%c0_111, %c0_112] : memref<1x384xf32, #tpu.memory_space<vmem>>, vector<1x384xf32>
    %392 = arith.addf %390, %391 : vector<1x384xf32>
    %393 = vector.extract_strided_slice %392 {offsets = [0, 0], sizes = [1, 32], strides = [1, 1]} : vector<1x384xf32> to vector<1x32xf32>
    %394 = vector.extract_strided_slice %392 {offsets = [0, 128], sizes = [1, 32], strides = [1, 1]} : vector<1x384xf32> to vector<1x32xf32>
    %395 = vector.extract_strided_slice %392 {offsets = [0, 256], sizes = [1, 32], strides = [1, 1]} : vector<1x384xf32> to vector<1x32xf32>
    %396 = arith.addf %386, %393 : vector<1x32xf32>
    %397 = arith.negf %396 : vector<1x32xf32>
    %398 = math.exp %397 : vector<1x32xf32>
    %cst_113 = arith.constant 1.000000e+00 : f32
    %399 = vector.broadcast %cst_113 : f32 to vector<1x32xf32>
    %400 = arith.addf %399, %398 : vector<1x32xf32>
    %401 = arith.divf %399, %400 : vector<1x32xf32>
    %402 = arith.addf %387, %394 : vector<1x32xf32>
    %403 = arith.negf %402 : vector<1x32xf32>
    %404 = math.exp %403 : vector<1x32xf32>
    %cst_114 = arith.constant 1.000000e+00 : f32
    %405 = vector.broadcast %cst_114 : f32 to vector<1x32xf32>
    %406 = arith.addf %405, %404 : vector<1x32xf32>
    %407 = arith.divf %405, %406 : vector<1x32xf32>
    %408 = arith.mulf %401, %395 : vector<1x32xf32>
    %409 = arith.addf %388, %408 : vector<1x32xf32>
    %410 = math.tanh %409 : vector<1x32xf32>
    %cst_115 = arith.constant 1.000000e+00 : f32
    %411 = vector.broadcast %cst_115 : f32 to vector<1x32xf32>
    %412 = arith.subf %411, %407 : vector<1x32xf32>
    %413 = arith.mulf %412, %410 : vector<1x32xf32>
    %414 = arith.mulf %407, %384 : vector<1x32xf32>
    %415 = arith.addf %413, %414 : vector<1x32xf32>
    %416 = vector.extract_strided_slice %10 {offsets = [2, 0], sizes = [1, 384], strides = [1, 1]} : vector<8x384xf32> to vector<1x384xf32>
    %417 = vector.extract_strided_slice %416 {offsets = [0, 0], sizes = [1, 32], strides = [1, 1]} : vector<1x384xf32> to vector<1x32xf32>
    %418 = vector.extract_strided_slice %416 {offsets = [0, 128], sizes = [1, 32], strides = [1, 1]} : vector<1x384xf32> to vector<1x32xf32>
    %419 = vector.extract_strided_slice %416 {offsets = [0, 256], sizes = [1, 32], strides = [1, 1]} : vector<1x384xf32> to vector<1x32xf32>
    %c0_116 = arith.constant 0 : index
    %c0_117 = arith.constant 0 : index
    %420 = vector.load %arg7[%c0_116, %c0_117] : memref<32x384xf32, #tpu.memory_space<vmem>>, vector<32x384xf32>
    %cst_118 = arith.constant dense<0.000000e+00> : vector<1x384xf32>
    %421 = tpu.matmul %415, %420, %cst_118 {dimension_numbers = #tpu.dot_dimension_numbers<[1], [0], [0], [1], [0, 0, 1, 1], [], []>} : vector<1x32xf32>, vector<32x384xf32>, vector<1x384xf32> -> vector<1x384xf32>
    %c0_119 = arith.constant 0 : index
    %c0_120 = arith.constant 0 : index
    %422 = vector.load %arg9[%c0_119, %c0_120] : memref<1x384xf32, #tpu.memory_space<vmem>>, vector<1x384xf32>
    %423 = arith.addf %421, %422 : vector<1x384xf32>
    %424 = vector.extract_strided_slice %423 {offsets = [0, 0], sizes = [1, 32], strides = [1, 1]} : vector<1x384xf32> to vector<1x32xf32>
    %425 = vector.extract_strided_slice %423 {offsets = [0, 128], sizes = [1, 32], strides = [1, 1]} : vector<1x384xf32> to vector<1x32xf32>
    %426 = vector.extract_strided_slice %423 {offsets = [0, 256], sizes = [1, 32], strides = [1, 1]} : vector<1x384xf32> to vector<1x32xf32>
    %427 = arith.addf %417, %424 : vector<1x32xf32>
    %428 = arith.negf %427 : vector<1x32xf32>
    %429 = math.exp %428 : vector<1x32xf32>
    %cst_121 = arith.constant 1.000000e+00 : f32
    %430 = vector.broadcast %cst_121 : f32 to vector<1x32xf32>
    %431 = arith.addf %430, %429 : vector<1x32xf32>
    %432 = arith.divf %430, %431 : vector<1x32xf32>
    %433 = arith.addf %418, %425 : vector<1x32xf32>
    %434 = arith.negf %433 : vector<1x32xf32>
    %435 = math.exp %434 : vector<1x32xf32>
    %cst_122 = arith.constant 1.000000e+00 : f32
    %436 = vector.broadcast %cst_122 : f32 to vector<1x32xf32>
    %437 = arith.addf %436, %435 : vector<1x32xf32>
    %438 = arith.divf %436, %437 : vector<1x32xf32>
    %439 = arith.mulf %432, %426 : vector<1x32xf32>
    %440 = arith.addf %419, %439 : vector<1x32xf32>
    %441 = math.tanh %440 : vector<1x32xf32>
    %cst_123 = arith.constant 1.000000e+00 : f32
    %442 = vector.broadcast %cst_123 : f32 to vector<1x32xf32>
    %443 = arith.subf %442, %438 : vector<1x32xf32>
    %444 = arith.mulf %443, %441 : vector<1x32xf32>
    %445 = arith.mulf %438, %415 : vector<1x32xf32>
    %446 = arith.addf %444, %445 : vector<1x32xf32>
    %447 = vector.extract_strided_slice %10 {offsets = [1, 0], sizes = [1, 384], strides = [1, 1]} : vector<8x384xf32> to vector<1x384xf32>
    %448 = vector.extract_strided_slice %447 {offsets = [0, 0], sizes = [1, 32], strides = [1, 1]} : vector<1x384xf32> to vector<1x32xf32>
    %449 = vector.extract_strided_slice %447 {offsets = [0, 128], sizes = [1, 32], strides = [1, 1]} : vector<1x384xf32> to vector<1x32xf32>
    %450 = vector.extract_strided_slice %447 {offsets = [0, 256], sizes = [1, 32], strides = [1, 1]} : vector<1x384xf32> to vector<1x32xf32>
    %c0_124 = arith.constant 0 : index
    %c0_125 = arith.constant 0 : index
    %451 = vector.load %arg7[%c0_124, %c0_125] : memref<32x384xf32, #tpu.memory_space<vmem>>, vector<32x384xf32>
    %cst_126 = arith.constant dense<0.000000e+00> : vector<1x384xf32>
    %452 = tpu.matmul %446, %451, %cst_126 {dimension_numbers = #tpu.dot_dimension_numbers<[1], [0], [0], [1], [0, 0, 1, 1], [], []>} : vector<1x32xf32>, vector<32x384xf32>, vector<1x384xf32> -> vector<1x384xf32>
    %c0_127 = arith.constant 0 : index
    %c0_128 = arith.constant 0 : index
    %453 = vector.load %arg9[%c0_127, %c0_128] : memref<1x384xf32, #tpu.memory_space<vmem>>, vector<1x384xf32>
    %454 = arith.addf %452, %453 : vector<1x384xf32>
    %455 = vector.extract_strided_slice %454 {offsets = [0, 0], sizes = [1, 32], strides = [1, 1]} : vector<1x384xf32> to vector<1x32xf32>
    %456 = vector.extract_strided_slice %454 {offsets = [0, 128], sizes = [1, 32], strides = [1, 1]} : vector<1x384xf32> to vector<1x32xf32>
    %457 = vector.extract_strided_slice %454 {offsets = [0, 256], sizes = [1, 32], strides = [1, 1]} : vector<1x384xf32> to vector<1x32xf32>
    %458 = arith.addf %448, %455 : vector<1x32xf32>
    %459 = arith.negf %458 : vector<1x32xf32>
    %460 = math.exp %459 : vector<1x32xf32>
    %cst_129 = arith.constant 1.000000e+00 : f32
    %461 = vector.broadcast %cst_129 : f32 to vector<1x32xf32>
    %462 = arith.addf %461, %460 : vector<1x32xf32>
    %463 = arith.divf %461, %462 : vector<1x32xf32>
    %464 = arith.addf %449, %456 : vector<1x32xf32>
    %465 = arith.negf %464 : vector<1x32xf32>
    %466 = math.exp %465 : vector<1x32xf32>
    %cst_130 = arith.constant 1.000000e+00 : f32
    %467 = vector.broadcast %cst_130 : f32 to vector<1x32xf32>
    %468 = arith.addf %467, %466 : vector<1x32xf32>
    %469 = arith.divf %467, %468 : vector<1x32xf32>
    %470 = arith.mulf %463, %457 : vector<1x32xf32>
    %471 = arith.addf %450, %470 : vector<1x32xf32>
    %472 = math.tanh %471 : vector<1x32xf32>
    %cst_131 = arith.constant 1.000000e+00 : f32
    %473 = vector.broadcast %cst_131 : f32 to vector<1x32xf32>
    %474 = arith.subf %473, %469 : vector<1x32xf32>
    %475 = arith.mulf %474, %472 : vector<1x32xf32>
    %476 = arith.mulf %469, %446 : vector<1x32xf32>
    %477 = arith.addf %475, %476 : vector<1x32xf32>
    %478 = vector.extract_strided_slice %10 {offsets = [0, 0], sizes = [1, 384], strides = [1, 1]} : vector<8x384xf32> to vector<1x384xf32>
    %479 = vector.extract_strided_slice %478 {offsets = [0, 0], sizes = [1, 32], strides = [1, 1]} : vector<1x384xf32> to vector<1x32xf32>
    %480 = vector.extract_strided_slice %478 {offsets = [0, 128], sizes = [1, 32], strides = [1, 1]} : vector<1x384xf32> to vector<1x32xf32>
    %481 = vector.extract_strided_slice %478 {offsets = [0, 256], sizes = [1, 32], strides = [1, 1]} : vector<1x384xf32> to vector<1x32xf32>
    %c0_132 = arith.constant 0 : index
    %c0_133 = arith.constant 0 : index
    %482 = vector.load %arg7[%c0_132, %c0_133] : memref<32x384xf32, #tpu.memory_space<vmem>>, vector<32x384xf32>
    %cst_134 = arith.constant dense<0.000000e+00> : vector<1x384xf32>
    %483 = tpu.matmul %477, %482, %cst_134 {dimension_numbers = #tpu.dot_dimension_numbers<[1], [0], [0], [1], [0, 0, 1, 1], [], []>} : vector<1x32xf32>, vector<32x384xf32>, vector<1x384xf32> -> vector<1x384xf32>
    %c0_135 = arith.constant 0 : index
    %c0_136 = arith.constant 0 : index
    %484 = vector.load %arg9[%c0_135, %c0_136] : memref<1x384xf32, #tpu.memory_space<vmem>>, vector<1x384xf32>
    %485 = arith.addf %483, %484 : vector<1x384xf32>
    %486 = vector.extract_strided_slice %485 {offsets = [0, 0], sizes = [1, 32], strides = [1, 1]} : vector<1x384xf32> to vector<1x32xf32>
    %487 = vector.extract_strided_slice %485 {offsets = [0, 128], sizes = [1, 32], strides = [1, 1]} : vector<1x384xf32> to vector<1x32xf32>
    %488 = vector.extract_strided_slice %485 {offsets = [0, 256], sizes = [1, 32], strides = [1, 1]} : vector<1x384xf32> to vector<1x32xf32>
    %489 = arith.addf %479, %486 : vector<1x32xf32>
    %490 = arith.negf %489 : vector<1x32xf32>
    %491 = math.exp %490 : vector<1x32xf32>
    %cst_137 = arith.constant 1.000000e+00 : f32
    %492 = vector.broadcast %cst_137 : f32 to vector<1x32xf32>
    %493 = arith.addf %492, %491 : vector<1x32xf32>
    %494 = arith.divf %492, %493 : vector<1x32xf32>
    %495 = arith.addf %480, %487 : vector<1x32xf32>
    %496 = arith.negf %495 : vector<1x32xf32>
    %497 = math.exp %496 : vector<1x32xf32>
    %cst_138 = arith.constant 1.000000e+00 : f32
    %498 = vector.broadcast %cst_138 : f32 to vector<1x32xf32>
    %499 = arith.addf %498, %497 : vector<1x32xf32>
    %500 = arith.divf %498, %499 : vector<1x32xf32>
    %501 = arith.mulf %494, %488 : vector<1x32xf32>
    %502 = arith.addf %481, %501 : vector<1x32xf32>
    %503 = math.tanh %502 : vector<1x32xf32>
    %cst_139 = arith.constant 1.000000e+00 : f32
    %504 = vector.broadcast %cst_139 : f32 to vector<1x32xf32>
    %505 = arith.subf %504, %500 : vector<1x32xf32>
    %506 = arith.mulf %505, %503 : vector<1x32xf32>
    %507 = arith.mulf %500, %477 : vector<1x32xf32>
    %508 = arith.addf %506, %507 : vector<1x32xf32>
    %509 = tpu.concatenate %42, %73, %104, %135, %166, %197, %228, %259 in 0 : vector<1x32xf32>, vector<1x32xf32>, vector<1x32xf32>, vector<1x32xf32>, vector<1x32xf32>, vector<1x32xf32>, vector<1x32xf32>, vector<1x32xf32> -> vector<8x32xf32>
    %510 = tpu.concatenate %508, %477, %446, %415, %384, %353, %322, %291 in 0 : vector<1x32xf32>, vector<1x32xf32>, vector<1x32xf32>, vector<1x32xf32>, vector<1x32xf32>, vector<1x32xf32>, vector<1x32xf32>, vector<1x32xf32> -> vector<8x32xf32>
    %511 = arith.addf %509, %510 : vector<8x32xf32>
    %512 = tpu.transpose %511, [1, 0] : vector<8x32xf32> -> vector<32x8xf32>
    %513 = tpu.iota {dimensions = array<i32: 1>} : vector<1x64xi32>
    %c1_i32 = arith.constant 1 : i32
    %514 = vector.broadcast %c1_i32 : i32 to vector<1x64xi32>
    %515 = arith.cmpi eq, %513, %514 : vector<1x64xi32>
    %516 = arith.extui %515 : vector<1x64xi1> to vector<1x64xi32>
    %517 = arith.sitofp %516 : vector<1x64xi32> to vector<1x64xf32>
    %c0_140 = arith.constant 0 : index
    %c0_141 = arith.constant 0 : index
    %518 = vector.load %arg1[%c0_140, %c0_141] : memref<64x32xf32, #tpu.memory_space<vmem>>, vector<64x32xf32>
    %cst_142 = arith.constant dense<0.000000e+00> : vector<1x32xf32>
    %519 = tpu.matmul %517, %518, %cst_142 {dimension_numbers = #tpu.dot_dimension_numbers<[1], [0], [0], [1], [0, 0, 1, 1], [], []>} : vector<1x64xf32>, vector<64x32xf32>, vector<1x32xf32> -> vector<1x32xf32>
    %c0_143 = arith.constant 0 : index
    %c0_144 = arith.constant 0 : index
    %520 = vector.load %arg10[%c0_143, %c0_144] : memref<32x384xf32, #tpu.memory_space<vmem>>, vector<32x384xf32>
    %cst_145 = arith.constant dense<0.000000e+00> : vector<1x384xf32>
    %521 = tpu.matmul %519, %520, %cst_145 {dimension_numbers = #tpu.dot_dimension_numbers<[1], [0], [0], [1], [0, 0, 1, 1], [], []>} : vector<1x32xf32>, vector<32x384xf32>, vector<1x384xf32> -> vector<1x384xf32>
    %c0_146 = arith.constant 0 : index
    %c0_147 = arith.constant 0 : index
    %522 = vector.load %arg12[%c0_146, %c0_147] : memref<1x384xf32, #tpu.memory_space<vmem>>, vector<1x384xf32>
    %523 = arith.addf %521, %522 : vector<1x384xf32>
    %524 = vector.extract_strided_slice %523 {offsets = [0, 0], sizes = [1, 32], strides = [1, 1]} : vector<1x384xf32> to vector<1x32xf32>
    %525 = vector.extract_strided_slice %523 {offsets = [0, 128], sizes = [1, 32], strides = [1, 1]} : vector<1x384xf32> to vector<1x32xf32>
    %526 = vector.extract_strided_slice %523 {offsets = [0, 256], sizes = [1, 32], strides = [1, 1]} : vector<1x384xf32> to vector<1x32xf32>
    %c0_148 = arith.constant 0 : index
    %c0_149 = arith.constant 0 : index
    %527 = vector.load %arg11[%c0_148, %c0_149] : memref<32x384xf32, #tpu.memory_space<vmem>>, vector<32x384xf32>
    %cst_150 = arith.constant dense<0.000000e+00> : vector<1x384xf32>
    %528 = tpu.matmul %259, %527, %cst_150 {dimension_numbers = #tpu.dot_dimension_numbers<[1], [0], [0], [1], [0, 0, 1, 1], [], []>} : vector<1x32xf32>, vector<32x384xf32>, vector<1x384xf32> -> vector<1x384xf32>
    %c0_151 = arith.constant 0 : index
    %c0_152 = arith.constant 0 : index
    %529 = vector.load %arg13[%c0_151, %c0_152] : memref<1x384xf32, #tpu.memory_space<vmem>>, vector<1x384xf32>
    %530 = arith.addf %528, %529 : vector<1x384xf32>
    %531 = vector.extract_strided_slice %530 {offsets = [0, 0], sizes = [1, 32], strides = [1, 1]} : vector<1x384xf32> to vector<1x32xf32>
    %532 = vector.extract_strided_slice %530 {offsets = [0, 128], sizes = [1, 32], strides = [1, 1]} : vector<1x384xf32> to vector<1x32xf32>
    %533 = vector.extract_strided_slice %530 {offsets = [0, 256], sizes = [1, 32], strides = [1, 1]} : vector<1x384xf32> to vector<1x32xf32>
    %534 = arith.addf %524, %531 : vector<1x32xf32>
    %535 = arith.negf %534 : vector<1x32xf32>
    %536 = math.exp %535 : vector<1x32xf32>
    %cst_153 = arith.constant 1.000000e+00 : f32
    %537 = vector.broadcast %cst_153 : f32 to vector<1x32xf32>
    %538 = arith.addf %537, %536 : vector<1x32xf32>
    %539 = arith.divf %537, %538 : vector<1x32xf32>
    %540 = arith.addf %525, %532 : vector<1x32xf32>
    %541 = arith.negf %540 : vector<1x32xf32>
    %542 = math.exp %541 : vector<1x32xf32>
    %cst_154 = arith.constant 1.000000e+00 : f32
    %543 = vector.broadcast %cst_154 : f32 to vector<1x32xf32>
    %544 = arith.addf %543, %542 : vector<1x32xf32>
    %545 = arith.divf %543, %544 : vector<1x32xf32>
    %546 = arith.mulf %539, %533 : vector<1x32xf32>
    %547 = arith.addf %526, %546 : vector<1x32xf32>
    %548 = math.tanh %547 : vector<1x32xf32>
    %cst_155 = arith.constant 1.000000e+00 : f32
    %549 = vector.broadcast %cst_155 : f32 to vector<1x32xf32>
    %550 = arith.subf %549, %545 : vector<1x32xf32>
    %551 = arith.mulf %550, %548 : vector<1x32xf32>
    %552 = arith.mulf %545, %259 : vector<1x32xf32>
    %553 = arith.addf %551, %552 : vector<1x32xf32>
    %cst_156 = arith.constant dense<0.000000e+00> : vector<1x8xf32>
    %554 = tpu.matmul %553, %512, %cst_156 {dimension_numbers = #tpu.dot_dimension_numbers<[1], [0], [0], [1], [0, 0, 1, 1], [], []>} : vector<1x32xf32>, vector<32x8xf32>, vector<1x8xf32> -> vector<1x8xf32>
    %cst_157 = arith.constant dense<0xFF800000> : vector<1xf32>
    %555 = vector.multi_reduction <maximumf>, %554, %cst_157 [1] : vector<1x8xf32> to vector<1xf32>
    %556 = vector.shape_cast %555 : vector<1xf32> to vector<1x1xf32>
    %557 = vector.broadcast %556 : vector<1x1xf32> to vector<1x8xf32>
    %558 = arith.subf %554, %557 : vector<1x8xf32>
    %559 = math.exp %558 : vector<1x8xf32>
    %cst_158 = arith.constant dense<0.000000e+00> : vector<1xf32>
    %560 = vector.multi_reduction <add>, %559, %cst_158 [1] : vector<1x8xf32> to vector<1xf32>
    %561 = vector.shape_cast %560 : vector<1xf32> to vector<1x1xf32>
    %562 = tpu.reciprocal %561 {approx = true} : vector<1x1xf32> -> vector<1x1xf32>
    %563 = vector.broadcast %562 : vector<1x1xf32> to vector<1x8xf32>
    %564 = arith.mulf %559, %563 : vector<1x8xf32>
    %cst_159 = arith.constant dense<0.000000e+00> : vector<1x32xf32>
    %565 = tpu.matmul %564, %511, %cst_159 {dimension_numbers = #tpu.dot_dimension_numbers<[1], [0], [0], [1], [0, 0, 1, 1], [], []>} : vector<1x8xf32>, vector<8x32xf32>, vector<1x32xf32> -> vector<1x32xf32>
    %c0_160 = arith.constant 0 : index
    %c0_161 = arith.constant 0 : index
    %566 = vector.load %arg14[%c0_160, %c0_161] : memref<32x32xf32, #tpu.memory_space<vmem>>, vector<32x32xf32>
    %cst_162 = arith.constant dense<0.000000e+00> : vector<1x32xf32>
    %567 = tpu.matmul %553, %566, %cst_162 {dimension_numbers = #tpu.dot_dimension_numbers<[1], [0], [0], [1], [0, 0, 1, 1], [], []>} : vector<1x32xf32>, vector<32x32xf32>, vector<1x32xf32> -> vector<1x32xf32>
    %c0_163 = arith.constant 0 : index
    %c0_164 = arith.constant 0 : index
    %568 = vector.load %arg15[%c0_163, %c0_164] : memref<32x32xf32, #tpu.memory_space<vmem>>, vector<32x32xf32>
    %cst_165 = arith.constant dense<0.000000e+00> : vector<1x32xf32>
    %569 = tpu.matmul %565, %568, %cst_165 {dimension_numbers = #tpu.dot_dimension_numbers<[1], [0], [0], [1], [0, 0, 1, 1], [], []>} : vector<1x32xf32>, vector<32x32xf32>, vector<1x32xf32> -> vector<1x32xf32>
    %570 = arith.addf %567, %569 : vector<1x32xf32>
    %c0_166 = arith.constant 0 : index
    %c0_167 = arith.constant 0 : index
    %571 = vector.load %arg16[%c0_166, %c0_167] : memref<1x32xf32, #tpu.memory_space<vmem>>, vector<1x32xf32>
    %572 = arith.addf %570, %571 : vector<1x32xf32>
    %573 = math.tanh %572 : vector<1x32xf32>
    %c0_168 = arith.constant 0 : index
    %c0_169 = arith.constant 0 : index
    %574 = vector.load %arg17[%c0_168, %c0_169] : memref<32x64xf32, #tpu.memory_space<vmem>>, vector<32x64xf32>
    %cst_170 = arith.constant dense<0.000000e+00> : vector<1x64xf32>
    %575 = tpu.matmul %573, %574, %cst_170 {dimension_numbers = #tpu.dot_dimension_numbers<[1], [0], [0], [1], [0, 0, 1, 1], [], []>} : vector<1x32xf32>, vector<32x64xf32>, vector<1x64xf32> -> vector<1x64xf32>
    %c0_171 = arith.constant 0 : index
    %c0_172 = arith.constant 0 : index
    %576 = vector.load %arg18[%c0_171, %c0_172] : memref<1x64xf32, #tpu.memory_space<vmem>>, vector<1x64xf32>
    %577 = arith.addf %575, %576 : vector<1x64xf32>
    %cst_173 = arith.constant dense<0xFF800000> : vector<1xf32>
    %578 = vector.multi_reduction <maximumf>, %577, %cst_173 [1] : vector<1x64xf32> to vector<1xf32>
    %579 = vector.shape_cast %578 : vector<1xf32> to vector<1x1xf32>
    %580 = vector.broadcast %579 : vector<1x1xf32> to vector<1x64xf32>
    %581 = arith.subf %577, %580 : vector<1x64xf32>
    %582 = math.exp %581 : vector<1x64xf32>
    %cst_174 = arith.constant dense<0.000000e+00> : vector<1xf32>
    %583 = vector.multi_reduction <add>, %582, %cst_174 [1] : vector<1x64xf32> to vector<1xf32>
    %584 = vector.shape_cast %583 : vector<1xf32> to vector<1x1xf32>
    %585 = tpu.reciprocal %584 : vector<1x1xf32> -> vector<1x1xf32>
    %586 = vector.broadcast %579 : vector<1x1xf32> to vector<1x64xf32>
    %587 = arith.cmpf oeq, %577, %586 : vector<1x64xf32>
    %c64_i32 = arith.constant 64 : i32
    %588 = vector.broadcast %c64_i32 : i32 to vector<1x64xi32>
    %589 = arith.select %587, %513, %588 : vector<1x64xi1>, vector<1x64xi32>
    %cst_175 = arith.constant dense<2147483647> : vector<1xi32>
    %590 = vector.multi_reduction <minsi>, %589, %cst_175 [1] : vector<1x64xi32> to vector<1xi32>
    %591 = vector.shape_cast %590 : vector<1xi32> to vector<1x1xi32>
    %592 = vector.broadcast %591 : vector<1x1xi32> to vector<1x64xi32>
    %593 = arith.cmpi eq, %513, %592 : vector<1x64xi32>
    %594 = arith.extui %593 : vector<1x64xi1> to vector<1x64xi32>
    %595 = arith.sitofp %594 : vector<1x64xi32> to vector<1x64xf32>
    %c0_176 = arith.constant 0 : index
    %c0_177 = arith.constant 0 : index
    %596 = vector.load %arg1[%c0_176, %c0_177] : memref<64x32xf32, #tpu.memory_space<vmem>>, vector<64x32xf32>
    %cst_178 = arith.constant dense<0.000000e+00> : vector<1x32xf32>
    %597 = tpu.matmul %595, %596, %cst_178 {dimension_numbers = #tpu.dot_dimension_numbers<[1], [0], [0], [1], [0, 0, 1, 1], [], []>} : vector<1x64xf32>, vector<64x32xf32>, vector<1x32xf32> -> vector<1x32xf32>
    %c0_179 = arith.constant 0 : index
    %c0_180 = arith.constant 0 : index
    %598 = vector.load %arg10[%c0_179, %c0_180] : memref<32x384xf32, #tpu.memory_space<vmem>>, vector<32x384xf32>
    %cst_181 = arith.constant dense<0.000000e+00> : vector<1x384xf32>
    %599 = tpu.matmul %597, %598, %cst_181 {dimension_numbers = #tpu.dot_dimension_numbers<[1], [0], [0], [1], [0, 0, 1, 1], [], []>} : vector<1x32xf32>, vector<32x384xf32>, vector<1x384xf32> -> vector<1x384xf32>
    %c0_182 = arith.constant 0 : index
    %c0_183 = arith.constant 0 : index
    %600 = vector.load %arg12[%c0_182, %c0_183] : memref<1x384xf32, #tpu.memory_space<vmem>>, vector<1x384xf32>
    %601 = arith.addf %599, %600 : vector<1x384xf32>
    %602 = vector.extract_strided_slice %601 {offsets = [0, 0], sizes = [1, 32], strides = [1, 1]} : vector<1x384xf32> to vector<1x32xf32>
    %603 = vector.extract_strided_slice %601 {offsets = [0, 128], sizes = [1, 32], strides = [1, 1]} : vector<1x384xf32> to vector<1x32xf32>
    %604 = vector.extract_strided_slice %601 {offsets = [0, 256], sizes = [1, 32], strides = [1, 1]} : vector<1x384xf32> to vector<1x32xf32>
    %c0_184 = arith.constant 0 : index
    %c0_185 = arith.constant 0 : index
    %605 = vector.load %arg11[%c0_184, %c0_185] : memref<32x384xf32, #tpu.memory_space<vmem>>, vector<32x384xf32>
    %cst_186 = arith.constant dense<0.000000e+00> : vector<1x384xf32>
    %606 = tpu.matmul %553, %605, %cst_186 {dimension_numbers = #tpu.dot_dimension_numbers<[1], [0], [0], [1], [0, 0, 1, 1], [], []>} : vector<1x32xf32>, vector<32x384xf32>, vector<1x384xf32> -> vector<1x384xf32>
    %c0_187 = arith.constant 0 : index
    %c0_188 = arith.constant 0 : index
    %607 = vector.load %arg13[%c0_187, %c0_188] : memref<1x384xf32, #tpu.memory_space<vmem>>, vector<1x384xf32>
    %608 = arith.addf %606, %607 : vector<1x384xf32>
    %609 = vector.extract_strided_slice %608 {offsets = [0, 0], sizes = [1, 32], strides = [1, 1]} : vector<1x384xf32> to vector<1x32xf32>
    %610 = vector.extract_strided_slice %608 {offsets = [0, 128], sizes = [1, 32], strides = [1, 1]} : vector<1x384xf32> to vector<1x32xf32>
    %611 = vector.extract_strided_slice %608 {offsets = [0, 256], sizes = [1, 32], strides = [1, 1]} : vector<1x384xf32> to vector<1x32xf32>
    %612 = arith.addf %602, %609 : vector<1x32xf32>
    %613 = arith.negf %612 : vector<1x32xf32>
    %614 = math.exp %613 : vector<1x32xf32>
    %cst_189 = arith.constant 1.000000e+00 : f32
    %615 = vector.broadcast %cst_189 : f32 to vector<1x32xf32>
    %616 = arith.addf %615, %614 : vector<1x32xf32>
    %617 = arith.divf %615, %616 : vector<1x32xf32>
    %618 = arith.addf %603, %610 : vector<1x32xf32>
    %619 = arith.negf %618 : vector<1x32xf32>
    %620 = math.exp %619 : vector<1x32xf32>
    %cst_190 = arith.constant 1.000000e+00 : f32
    %621 = vector.broadcast %cst_190 : f32 to vector<1x32xf32>
    %622 = arith.addf %621, %620 : vector<1x32xf32>
    %623 = arith.divf %621, %622 : vector<1x32xf32>
    %624 = arith.mulf %617, %611 : vector<1x32xf32>
    %625 = arith.addf %604, %624 : vector<1x32xf32>
    %626 = math.tanh %625 : vector<1x32xf32>
    %cst_191 = arith.constant 1.000000e+00 : f32
    %627 = vector.broadcast %cst_191 : f32 to vector<1x32xf32>
    %628 = arith.subf %627, %623 : vector<1x32xf32>
    %629 = arith.mulf %628, %626 : vector<1x32xf32>
    %630 = arith.mulf %623, %553 : vector<1x32xf32>
    %631 = arith.addf %629, %630 : vector<1x32xf32>
    %cst_192 = arith.constant dense<0.000000e+00> : vector<1x8xf32>
    %632 = tpu.matmul %631, %512, %cst_192 {dimension_numbers = #tpu.dot_dimension_numbers<[1], [0], [0], [1], [0, 0, 1, 1], [], []>} : vector<1x32xf32>, vector<32x8xf32>, vector<1x8xf32> -> vector<1x8xf32>
    %cst_193 = arith.constant dense<0xFF800000> : vector<1xf32>
    %633 = vector.multi_reduction <maximumf>, %632, %cst_193 [1] : vector<1x8xf32> to vector<1xf32>
    %634 = vector.shape_cast %633 : vector<1xf32> to vector<1x1xf32>
    %635 = vector.broadcast %634 : vector<1x1xf32> to vector<1x8xf32>
    %636 = arith.subf %632, %635 : vector<1x8xf32>
    %637 = math.exp %636 : vector<1x8xf32>
    %cst_194 = arith.constant dense<0.000000e+00> : vector<1xf32>
    %638 = vector.multi_reduction <add>, %637, %cst_194 [1] : vector<1x8xf32> to vector<1xf32>
    %639 = vector.shape_cast %638 : vector<1xf32> to vector<1x1xf32>
    %640 = tpu.reciprocal %639 {approx = true} : vector<1x1xf32> -> vector<1x1xf32>
    %641 = vector.broadcast %640 : vector<1x1xf32> to vector<1x8xf32>
    %642 = arith.mulf %637, %641 : vector<1x8xf32>
    %cst_195 = arith.constant dense<0.000000e+00> : vector<1x32xf32>
    %643 = tpu.matmul %642, %511, %cst_195 {dimension_numbers = #tpu.dot_dimension_numbers<[1], [0], [0], [1], [0, 0, 1, 1], [], []>} : vector<1x8xf32>, vector<8x32xf32>, vector<1x32xf32> -> vector<1x32xf32>
    %c0_196 = arith.constant 0 : index
    %c0_197 = arith.constant 0 : index
    %644 = vector.load %arg14[%c0_196, %c0_197] : memref<32x32xf32, #tpu.memory_space<vmem>>, vector<32x32xf32>
    %cst_198 = arith.constant dense<0.000000e+00> : vector<1x32xf32>
    %645 = tpu.matmul %631, %644, %cst_198 {dimension_numbers = #tpu.dot_dimension_numbers<[1], [0], [0], [1], [0, 0, 1, 1], [], []>} : vector<1x32xf32>, vector<32x32xf32>, vector<1x32xf32> -> vector<1x32xf32>
    %c0_199 = arith.constant 0 : index
    %c0_200 = arith.constant 0 : index
    %646 = vector.load %arg15[%c0_199, %c0_200] : memref<32x32xf32, #tpu.memory_space<vmem>>, vector<32x32xf32>
    %cst_201 = arith.constant dense<0.000000e+00> : vector<1x32xf32>
    %647 = tpu.matmul %643, %646, %cst_201 {dimension_numbers = #tpu.dot_dimension_numbers<[1], [0], [0], [1], [0, 0, 1, 1], [], []>} : vector<1x32xf32>, vector<32x32xf32>, vector<1x32xf32> -> vector<1x32xf32>
    %648 = arith.addf %645, %647 : vector<1x32xf32>
    %c0_202 = arith.constant 0 : index
    %c0_203 = arith.constant 0 : index
    %649 = vector.load %arg16[%c0_202, %c0_203] : memref<1x32xf32, #tpu.memory_space<vmem>>, vector<1x32xf32>
    %650 = arith.addf %648, %649 : vector<1x32xf32>
    %651 = math.tanh %650 : vector<1x32xf32>
    %c0_204 = arith.constant 0 : index
    %c0_205 = arith.constant 0 : index
    %652 = vector.load %arg17[%c0_204, %c0_205] : memref<32x64xf32, #tpu.memory_space<vmem>>, vector<32x64xf32>
    %cst_206 = arith.constant dense<0.000000e+00> : vector<1x64xf32>
    %653 = tpu.matmul %651, %652, %cst_206 {dimension_numbers = #tpu.dot_dimension_numbers<[1], [0], [0], [1], [0, 0, 1, 1], [], []>} : vector<1x32xf32>, vector<32x64xf32>, vector<1x64xf32> -> vector<1x64xf32>
    %c0_207 = arith.constant 0 : index
    %c0_208 = arith.constant 0 : index
    %654 = vector.load %arg18[%c0_207, %c0_208] : memref<1x64xf32, #tpu.memory_space<vmem>>, vector<1x64xf32>
    %655 = arith.addf %653, %654 : vector<1x64xf32>
    %cst_209 = arith.constant dense<0xFF800000> : vector<1xf32>
    %656 = vector.multi_reduction <maximumf>, %655, %cst_209 [1] : vector<1x64xf32> to vector<1xf32>
    %657 = vector.shape_cast %656 : vector<1xf32> to vector<1x1xf32>
    %658 = vector.broadcast %657 : vector<1x1xf32> to vector<1x64xf32>
    %659 = arith.subf %655, %658 : vector<1x64xf32>
    %660 = math.exp %659 : vector<1x64xf32>
    %cst_210 = arith.constant dense<0.000000e+00> : vector<1xf32>
    %661 = vector.multi_reduction <add>, %660, %cst_210 [1] : vector<1x64xf32> to vector<1xf32>
    %662 = vector.shape_cast %661 : vector<1xf32> to vector<1x1xf32>
    %663 = tpu.reciprocal %662 : vector<1x1xf32> -> vector<1x1xf32>
    %664 = vector.broadcast %657 : vector<1x1xf32> to vector<1x64xf32>
    %665 = arith.cmpf oeq, %655, %664 : vector<1x64xf32>
    %c64_i32_211 = arith.constant 64 : i32
    %666 = vector.broadcast %c64_i32_211 : i32 to vector<1x64xi32>
    %667 = arith.select %665, %513, %666 : vector<1x64xi1>, vector<1x64xi32>
    %cst_212 = arith.constant dense<2147483647> : vector<1xi32>
    %668 = vector.multi_reduction <minsi>, %667, %cst_212 [1] : vector<1x64xi32> to vector<1xi32>
    %669 = vector.shape_cast %668 : vector<1xi32> to vector<1x1xi32>
    %670 = vector.broadcast %669 : vector<1x1xi32> to vector<1x64xi32>
    %671 = arith.cmpi eq, %513, %670 : vector<1x64xi32>
    %672 = arith.extui %671 : vector<1x64xi1> to vector<1x64xi32>
    %673 = arith.sitofp %672 : vector<1x64xi32> to vector<1x64xf32>
    %c0_213 = arith.constant 0 : index
    %c0_214 = arith.constant 0 : index
    %674 = vector.load %arg1[%c0_213, %c0_214] : memref<64x32xf32, #tpu.memory_space<vmem>>, vector<64x32xf32>
    %cst_215 = arith.constant dense<0.000000e+00> : vector<1x32xf32>
    %675 = tpu.matmul %673, %674, %cst_215 {dimension_numbers = #tpu.dot_dimension_numbers<[1], [0], [0], [1], [0, 0, 1, 1], [], []>} : vector<1x64xf32>, vector<64x32xf32>, vector<1x32xf32> -> vector<1x32xf32>
    %c0_216 = arith.constant 0 : index
    %c0_217 = arith.constant 0 : index
    %676 = vector.load %arg10[%c0_216, %c0_217] : memref<32x384xf32, #tpu.memory_space<vmem>>, vector<32x384xf32>
    %cst_218 = arith.constant dense<0.000000e+00> : vector<1x384xf32>
    %677 = tpu.matmul %675, %676, %cst_218 {dimension_numbers = #tpu.dot_dimension_numbers<[1], [0], [0], [1], [0, 0, 1, 1], [], []>} : vector<1x32xf32>, vector<32x384xf32>, vector<1x384xf32> -> vector<1x384xf32>
    %c0_219 = arith.constant 0 : index
    %c0_220 = arith.constant 0 : index
    %678 = vector.load %arg12[%c0_219, %c0_220] : memref<1x384xf32, #tpu.memory_space<vmem>>, vector<1x384xf32>
    %679 = arith.addf %677, %678 : vector<1x384xf32>
    %680 = vector.extract_strided_slice %679 {offsets = [0, 0], sizes = [1, 32], strides = [1, 1]} : vector<1x384xf32> to vector<1x32xf32>
    %681 = vector.extract_strided_slice %679 {offsets = [0, 128], sizes = [1, 32], strides = [1, 1]} : vector<1x384xf32> to vector<1x32xf32>
    %682 = vector.extract_strided_slice %679 {offsets = [0, 256], sizes = [1, 32], strides = [1, 1]} : vector<1x384xf32> to vector<1x32xf32>
    %c0_221 = arith.constant 0 : index
    %c0_222 = arith.constant 0 : index
    %683 = vector.load %arg11[%c0_221, %c0_222] : memref<32x384xf32, #tpu.memory_space<vmem>>, vector<32x384xf32>
    %cst_223 = arith.constant dense<0.000000e+00> : vector<1x384xf32>
    %684 = tpu.matmul %631, %683, %cst_223 {dimension_numbers = #tpu.dot_dimension_numbers<[1], [0], [0], [1], [0, 0, 1, 1], [], []>} : vector<1x32xf32>, vector<32x384xf32>, vector<1x384xf32> -> vector<1x384xf32>
    %c0_224 = arith.constant 0 : index
    %c0_225 = arith.constant 0 : index
    %685 = vector.load %arg13[%c0_224, %c0_225] : memref<1x384xf32, #tpu.memory_space<vmem>>, vector<1x384xf32>
    %686 = arith.addf %684, %685 : vector<1x384xf32>
    %687 = vector.extract_strided_slice %686 {offsets = [0, 0], sizes = [1, 32], strides = [1, 1]} : vector<1x384xf32> to vector<1x32xf32>
    %688 = vector.extract_strided_slice %686 {offsets = [0, 128], sizes = [1, 32], strides = [1, 1]} : vector<1x384xf32> to vector<1x32xf32>
    %689 = vector.extract_strided_slice %686 {offsets = [0, 256], sizes = [1, 32], strides = [1, 1]} : vector<1x384xf32> to vector<1x32xf32>
    %690 = arith.addf %680, %687 : vector<1x32xf32>
    %691 = arith.negf %690 : vector<1x32xf32>
    %692 = math.exp %691 : vector<1x32xf32>
    %cst_226 = arith.constant 1.000000e+00 : f32
    %693 = vector.broadcast %cst_226 : f32 to vector<1x32xf32>
    %694 = arith.addf %693, %692 : vector<1x32xf32>
    %695 = arith.divf %693, %694 : vector<1x32xf32>
    %696 = arith.addf %681, %688 : vector<1x32xf32>
    %697 = arith.negf %696 : vector<1x32xf32>
    %698 = math.exp %697 : vector<1x32xf32>
    %cst_227 = arith.constant 1.000000e+00 : f32
    %699 = vector.broadcast %cst_227 : f32 to vector<1x32xf32>
    %700 = arith.addf %699, %698 : vector<1x32xf32>
    %701 = arith.divf %699, %700 : vector<1x32xf32>
    %702 = arith.mulf %695, %689 : vector<1x32xf32>
    %703 = arith.addf %682, %702 : vector<1x32xf32>
    %704 = math.tanh %703 : vector<1x32xf32>
    %cst_228 = arith.constant 1.000000e+00 : f32
    %705 = vector.broadcast %cst_228 : f32 to vector<1x32xf32>
    %706 = arith.subf %705, %701 : vector<1x32xf32>
    %707 = arith.mulf %706, %704 : vector<1x32xf32>
    %708 = arith.mulf %701, %631 : vector<1x32xf32>
    %709 = arith.addf %707, %708 : vector<1x32xf32>
    %cst_229 = arith.constant dense<0.000000e+00> : vector<1x8xf32>
    %710 = tpu.matmul %709, %512, %cst_229 {dimension_numbers = #tpu.dot_dimension_numbers<[1], [0], [0], [1], [0, 0, 1, 1], [], []>} : vector<1x32xf32>, vector<32x8xf32>, vector<1x8xf32> -> vector<1x8xf32>
    %cst_230 = arith.constant dense<0xFF800000> : vector<1xf32>
    %711 = vector.multi_reduction <maximumf>, %710, %cst_230 [1] : vector<1x8xf32> to vector<1xf32>
    %712 = vector.shape_cast %711 : vector<1xf32> to vector<1x1xf32>
    %713 = vector.broadcast %712 : vector<1x1xf32> to vector<1x8xf32>
    %714 = arith.subf %710, %713 : vector<1x8xf32>
    %715 = math.exp %714 : vector<1x8xf32>
    %cst_231 = arith.constant dense<0.000000e+00> : vector<1xf32>
    %716 = vector.multi_reduction <add>, %715, %cst_231 [1] : vector<1x8xf32> to vector<1xf32>
    %717 = vector.shape_cast %716 : vector<1xf32> to vector<1x1xf32>
    %718 = tpu.reciprocal %717 {approx = true} : vector<1x1xf32> -> vector<1x1xf32>
    %719 = vector.broadcast %718 : vector<1x1xf32> to vector<1x8xf32>
    %720 = arith.mulf %715, %719 : vector<1x8xf32>
    %cst_232 = arith.constant dense<0.000000e+00> : vector<1x32xf32>
    %721 = tpu.matmul %720, %511, %cst_232 {dimension_numbers = #tpu.dot_dimension_numbers<[1], [0], [0], [1], [0, 0, 1, 1], [], []>} : vector<1x8xf32>, vector<8x32xf32>, vector<1x32xf32> -> vector<1x32xf32>
    %c0_233 = arith.constant 0 : index
    %c0_234 = arith.constant 0 : index
    %722 = vector.load %arg14[%c0_233, %c0_234] : memref<32x32xf32, #tpu.memory_space<vmem>>, vector<32x32xf32>
    %cst_235 = arith.constant dense<0.000000e+00> : vector<1x32xf32>
    %723 = tpu.matmul %709, %722, %cst_235 {dimension_numbers = #tpu.dot_dimension_numbers<[1], [0], [0], [1], [0, 0, 1, 1], [], []>} : vector<1x32xf32>, vector<32x32xf32>, vector<1x32xf32> -> vector<1x32xf32>
    %c0_236 = arith.constant 0 : index
    %c0_237 = arith.constant 0 : index
    %724 = vector.load %arg15[%c0_236, %c0_237] : memref<32x32xf32, #tpu.memory_space<vmem>>, vector<32x32xf32>
    %cst_238 = arith.constant dense<0.000000e+00> : vector<1x32xf32>
    %725 = tpu.matmul %721, %724, %cst_238 {dimension_numbers = #tpu.dot_dimension_numbers<[1], [0], [0], [1], [0, 0, 1, 1], [], []>} : vector<1x32xf32>, vector<32x32xf32>, vector<1x32xf32> -> vector<1x32xf32>
    %726 = arith.addf %723, %725 : vector<1x32xf32>
    %c0_239 = arith.constant 0 : index
    %c0_240 = arith.constant 0 : index
    %727 = vector.load %arg16[%c0_239, %c0_240] : memref<1x32xf32, #tpu.memory_space<vmem>>, vector<1x32xf32>
    %728 = arith.addf %726, %727 : vector<1x32xf32>
    %729 = math.tanh %728 : vector<1x32xf32>
    %c0_241 = arith.constant 0 : index
    %c0_242 = arith.constant 0 : index
    %730 = vector.load %arg17[%c0_241, %c0_242] : memref<32x64xf32, #tpu.memory_space<vmem>>, vector<32x64xf32>
    %cst_243 = arith.constant dense<0.000000e+00> : vector<1x64xf32>
    %731 = tpu.matmul %729, %730, %cst_243 {dimension_numbers = #tpu.dot_dimension_numbers<[1], [0], [0], [1], [0, 0, 1, 1], [], []>} : vector<1x32xf32>, vector<32x64xf32>, vector<1x64xf32> -> vector<1x64xf32>
    %c0_244 = arith.constant 0 : index
    %c0_245 = arith.constant 0 : index
    %732 = vector.load %arg18[%c0_244, %c0_245] : memref<1x64xf32, #tpu.memory_space<vmem>>, vector<1x64xf32>
    %733 = arith.addf %731, %732 : vector<1x64xf32>
    %cst_246 = arith.constant dense<0xFF800000> : vector<1xf32>
    %734 = vector.multi_reduction <maximumf>, %733, %cst_246 [1] : vector<1x64xf32> to vector<1xf32>
    %735 = vector.shape_cast %734 : vector<1xf32> to vector<1x1xf32>
    %736 = vector.broadcast %735 : vector<1x1xf32> to vector<1x64xf32>
    %737 = arith.subf %733, %736 : vector<1x64xf32>
    %738 = math.exp %737 : vector<1x64xf32>
    %cst_247 = arith.constant dense<0.000000e+00> : vector<1xf32>
    %739 = vector.multi_reduction <add>, %738, %cst_247 [1] : vector<1x64xf32> to vector<1xf32>
    %740 = vector.shape_cast %739 : vector<1xf32> to vector<1x1xf32>
    %741 = tpu.reciprocal %740 : vector<1x1xf32> -> vector<1x1xf32>
    %742 = vector.broadcast %735 : vector<1x1xf32> to vector<1x64xf32>
    %743 = arith.cmpf oeq, %733, %742 : vector<1x64xf32>
    %c64_i32_248 = arith.constant 64 : i32
    %744 = vector.broadcast %c64_i32_248 : i32 to vector<1x64xi32>
    %745 = arith.select %743, %513, %744 : vector<1x64xi1>, vector<1x64xi32>
    %cst_249 = arith.constant dense<2147483647> : vector<1xi32>
    %746 = vector.multi_reduction <minsi>, %745, %cst_249 [1] : vector<1x64xi32> to vector<1xi32>
    %747 = vector.shape_cast %746 : vector<1xi32> to vector<1x1xi32>
    %748 = vector.broadcast %747 : vector<1x1xi32> to vector<1x64xi32>
    %749 = arith.cmpi eq, %513, %748 : vector<1x64xi32>
    %750 = arith.extui %749 : vector<1x64xi1> to vector<1x64xi32>
    %751 = arith.sitofp %750 : vector<1x64xi32> to vector<1x64xf32>
    %c0_250 = arith.constant 0 : index
    %c0_251 = arith.constant 0 : index
    %752 = vector.load %arg1[%c0_250, %c0_251] : memref<64x32xf32, #tpu.memory_space<vmem>>, vector<64x32xf32>
    %cst_252 = arith.constant dense<0.000000e+00> : vector<1x32xf32>
    %753 = tpu.matmul %751, %752, %cst_252 {dimension_numbers = #tpu.dot_dimension_numbers<[1], [0], [0], [1], [0, 0, 1, 1], [], []>} : vector<1x64xf32>, vector<64x32xf32>, vector<1x32xf32> -> vector<1x32xf32>
    %c0_253 = arith.constant 0 : index
    %c0_254 = arith.constant 0 : index
    %754 = vector.load %arg10[%c0_253, %c0_254] : memref<32x384xf32, #tpu.memory_space<vmem>>, vector<32x384xf32>
    %cst_255 = arith.constant dense<0.000000e+00> : vector<1x384xf32>
    %755 = tpu.matmul %753, %754, %cst_255 {dimension_numbers = #tpu.dot_dimension_numbers<[1], [0], [0], [1], [0, 0, 1, 1], [], []>} : vector<1x32xf32>, vector<32x384xf32>, vector<1x384xf32> -> vector<1x384xf32>
    %c0_256 = arith.constant 0 : index
    %c0_257 = arith.constant 0 : index
    %756 = vector.load %arg12[%c0_256, %c0_257] : memref<1x384xf32, #tpu.memory_space<vmem>>, vector<1x384xf32>
    %757 = arith.addf %755, %756 : vector<1x384xf32>
    %758 = vector.extract_strided_slice %757 {offsets = [0, 0], sizes = [1, 32], strides = [1, 1]} : vector<1x384xf32> to vector<1x32xf32>
    %759 = vector.extract_strided_slice %757 {offsets = [0, 128], sizes = [1, 32], strides = [1, 1]} : vector<1x384xf32> to vector<1x32xf32>
    %760 = vector.extract_strided_slice %757 {offsets = [0, 256], sizes = [1, 32], strides = [1, 1]} : vector<1x384xf32> to vector<1x32xf32>
    %c0_258 = arith.constant 0 : index
    %c0_259 = arith.constant 0 : index
    %761 = vector.load %arg11[%c0_258, %c0_259] : memref<32x384xf32, #tpu.memory_space<vmem>>, vector<32x384xf32>
    %cst_260 = arith.constant dense<0.000000e+00> : vector<1x384xf32>
    %762 = tpu.matmul %709, %761, %cst_260 {dimension_numbers = #tpu.dot_dimension_numbers<[1], [0], [0], [1], [0, 0, 1, 1], [], []>} : vector<1x32xf32>, vector<32x384xf32>, vector<1x384xf32> -> vector<1x384xf32>
    %c0_261 = arith.constant 0 : index
    %c0_262 = arith.constant 0 : index
    %763 = vector.load %arg13[%c0_261, %c0_262] : memref<1x384xf32, #tpu.memory_space<vmem>>, vector<1x384xf32>
    %764 = arith.addf %762, %763 : vector<1x384xf32>
    %765 = vector.extract_strided_slice %764 {offsets = [0, 0], sizes = [1, 32], strides = [1, 1]} : vector<1x384xf32> to vector<1x32xf32>
    %766 = vector.extract_strided_slice %764 {offsets = [0, 128], sizes = [1, 32], strides = [1, 1]} : vector<1x384xf32> to vector<1x32xf32>
    %767 = vector.extract_strided_slice %764 {offsets = [0, 256], sizes = [1, 32], strides = [1, 1]} : vector<1x384xf32> to vector<1x32xf32>
    %768 = arith.addf %758, %765 : vector<1x32xf32>
    %769 = arith.negf %768 : vector<1x32xf32>
    %770 = math.exp %769 : vector<1x32xf32>
    %cst_263 = arith.constant 1.000000e+00 : f32
    %771 = vector.broadcast %cst_263 : f32 to vector<1x32xf32>
    %772 = arith.addf %771, %770 : vector<1x32xf32>
    %773 = arith.divf %771, %772 : vector<1x32xf32>
    %774 = arith.addf %759, %766 : vector<1x32xf32>
    %775 = arith.negf %774 : vector<1x32xf32>
    %776 = math.exp %775 : vector<1x32xf32>
    %cst_264 = arith.constant 1.000000e+00 : f32
    %777 = vector.broadcast %cst_264 : f32 to vector<1x32xf32>
    %778 = arith.addf %777, %776 : vector<1x32xf32>
    %779 = arith.divf %777, %778 : vector<1x32xf32>
    %780 = arith.mulf %773, %767 : vector<1x32xf32>
    %781 = arith.addf %760, %780 : vector<1x32xf32>
    %782 = math.tanh %781 : vector<1x32xf32>
    %cst_265 = arith.constant 1.000000e+00 : f32
    %783 = vector.broadcast %cst_265 : f32 to vector<1x32xf32>
    %784 = arith.subf %783, %779 : vector<1x32xf32>
    %785 = arith.mulf %784, %782 : vector<1x32xf32>
    %786 = arith.mulf %779, %709 : vector<1x32xf32>
    %787 = arith.addf %785, %786 : vector<1x32xf32>
    %cst_266 = arith.constant dense<0.000000e+00> : vector<1x8xf32>
    %788 = tpu.matmul %787, %512, %cst_266 {dimension_numbers = #tpu.dot_dimension_numbers<[1], [0], [0], [1], [0, 0, 1, 1], [], []>} : vector<1x32xf32>, vector<32x8xf32>, vector<1x8xf32> -> vector<1x8xf32>
    %cst_267 = arith.constant dense<0xFF800000> : vector<1xf32>
    %789 = vector.multi_reduction <maximumf>, %788, %cst_267 [1] : vector<1x8xf32> to vector<1xf32>
    %790 = vector.shape_cast %789 : vector<1xf32> to vector<1x1xf32>
    %791 = vector.broadcast %790 : vector<1x1xf32> to vector<1x8xf32>
    %792 = arith.subf %788, %791 : vector<1x8xf32>
    %793 = math.exp %792 : vector<1x8xf32>
    %cst_268 = arith.constant dense<0.000000e+00> : vector<1xf32>
    %794 = vector.multi_reduction <add>, %793, %cst_268 [1] : vector<1x8xf32> to vector<1xf32>
    %795 = vector.shape_cast %794 : vector<1xf32> to vector<1x1xf32>
    %796 = tpu.reciprocal %795 {approx = true} : vector<1x1xf32> -> vector<1x1xf32>
    %797 = vector.broadcast %796 : vector<1x1xf32> to vector<1x8xf32>
    %798 = arith.mulf %793, %797 : vector<1x8xf32>
    %cst_269 = arith.constant dense<0.000000e+00> : vector<1x32xf32>
    %799 = tpu.matmul %798, %511, %cst_269 {dimension_numbers = #tpu.dot_dimension_numbers<[1], [0], [0], [1], [0, 0, 1, 1], [], []>} : vector<1x8xf32>, vector<8x32xf32>, vector<1x32xf32> -> vector<1x32xf32>
    %c0_270 = arith.constant 0 : index
    %c0_271 = arith.constant 0 : index
    %800 = vector.load %arg14[%c0_270, %c0_271] : memref<32x32xf32, #tpu.memory_space<vmem>>, vector<32x32xf32>
    %cst_272 = arith.constant dense<0.000000e+00> : vector<1x32xf32>
    %801 = tpu.matmul %787, %800, %cst_272 {dimension_numbers = #tpu.dot_dimension_numbers<[1], [0], [0], [1], [0, 0, 1, 1], [], []>} : vector<1x32xf32>, vector<32x32xf32>, vector<1x32xf32> -> vector<1x32xf32>
    %c0_273 = arith.constant 0 : index
    %c0_274 = arith.constant 0 : index
    %802 = vector.load %arg15[%c0_273, %c0_274] : memref<32x32xf32, #tpu.memory_space<vmem>>, vector<32x32xf32>
    %cst_275 = arith.constant dense<0.000000e+00> : vector<1x32xf32>
    %803 = tpu.matmul %799, %802, %cst_275 {dimension_numbers = #tpu.dot_dimension_numbers<[1], [0], [0], [1], [0, 0, 1, 1], [], []>} : vector<1x32xf32>, vector<32x32xf32>, vector<1x32xf32> -> vector<1x32xf32>
    %804 = arith.addf %801, %803 : vector<1x32xf32>
    %c0_276 = arith.constant 0 : index
    %c0_277 = arith.constant 0 : index
    %805 = vector.load %arg16[%c0_276, %c0_277] : memref<1x32xf32, #tpu.memory_space<vmem>>, vector<1x32xf32>
    %806 = arith.addf %804, %805 : vector<1x32xf32>
    %807 = math.tanh %806 : vector<1x32xf32>
    %c0_278 = arith.constant 0 : index
    %c0_279 = arith.constant 0 : index
    %808 = vector.load %arg17[%c0_278, %c0_279] : memref<32x64xf32, #tpu.memory_space<vmem>>, vector<32x64xf32>
    %cst_280 = arith.constant dense<0.000000e+00> : vector<1x64xf32>
    %809 = tpu.matmul %807, %808, %cst_280 {dimension_numbers = #tpu.dot_dimension_numbers<[1], [0], [0], [1], [0, 0, 1, 1], [], []>} : vector<1x32xf32>, vector<32x64xf32>, vector<1x64xf32> -> vector<1x64xf32>
    %c0_281 = arith.constant 0 : index
    %c0_282 = arith.constant 0 : index
    %810 = vector.load %arg18[%c0_281, %c0_282] : memref<1x64xf32, #tpu.memory_space<vmem>>, vector<1x64xf32>
    %811 = arith.addf %809, %810 : vector<1x64xf32>
    %cst_283 = arith.constant dense<0xFF800000> : vector<1xf32>
    %812 = vector.multi_reduction <maximumf>, %811, %cst_283 [1] : vector<1x64xf32> to vector<1xf32>
    %813 = vector.shape_cast %812 : vector<1xf32> to vector<1x1xf32>
    %814 = vector.broadcast %813 : vector<1x1xf32> to vector<1x64xf32>
    %815 = arith.subf %811, %814 : vector<1x64xf32>
    %816 = math.exp %815 : vector<1x64xf32>
    %cst_284 = arith.constant dense<0.000000e+00> : vector<1xf32>
    %817 = vector.multi_reduction <add>, %816, %cst_284 [1] : vector<1x64xf32> to vector<1xf32>
    %818 = vector.shape_cast %817 : vector<1xf32> to vector<1x1xf32>
    %819 = tpu.reciprocal %818 : vector<1x1xf32> -> vector<1x1xf32>
    %820 = vector.broadcast %813 : vector<1x1xf32> to vector<1x64xf32>
    %821 = arith.cmpf oeq, %811, %820 : vector<1x64xf32>
    %c64_i32_285 = arith.constant 64 : i32
    %822 = vector.broadcast %c64_i32_285 : i32 to vector<1x64xi32>
    %823 = arith.select %821, %513, %822 : vector<1x64xi1>, vector<1x64xi32>
    %cst_286 = arith.constant dense<2147483647> : vector<1xi32>
    %824 = vector.multi_reduction <minsi>, %823, %cst_286 [1] : vector<1x64xi32> to vector<1xi32>
    %825 = vector.shape_cast %824 : vector<1xi32> to vector<1x1xi32>
    %826 = vector.broadcast %825 : vector<1x1xi32> to vector<1x64xi32>
    %827 = arith.cmpi eq, %513, %826 : vector<1x64xi32>
    %828 = arith.extui %827 : vector<1x64xi1> to vector<1x64xi32>
    %829 = arith.sitofp %828 : vector<1x64xi32> to vector<1x64xf32>
    %c0_287 = arith.constant 0 : index
    %c0_288 = arith.constant 0 : index
    %830 = vector.load %arg1[%c0_287, %c0_288] : memref<64x32xf32, #tpu.memory_space<vmem>>, vector<64x32xf32>
    %cst_289 = arith.constant dense<0.000000e+00> : vector<1x32xf32>
    %831 = tpu.matmul %829, %830, %cst_289 {dimension_numbers = #tpu.dot_dimension_numbers<[1], [0], [0], [1], [0, 0, 1, 1], [], []>} : vector<1x64xf32>, vector<64x32xf32>, vector<1x32xf32> -> vector<1x32xf32>
    %c0_290 = arith.constant 0 : index
    %c0_291 = arith.constant 0 : index
    %832 = vector.load %arg10[%c0_290, %c0_291] : memref<32x384xf32, #tpu.memory_space<vmem>>, vector<32x384xf32>
    %cst_292 = arith.constant dense<0.000000e+00> : vector<1x384xf32>
    %833 = tpu.matmul %831, %832, %cst_292 {dimension_numbers = #tpu.dot_dimension_numbers<[1], [0], [0], [1], [0, 0, 1, 1], [], []>} : vector<1x32xf32>, vector<32x384xf32>, vector<1x384xf32> -> vector<1x384xf32>
    %c0_293 = arith.constant 0 : index
    %c0_294 = arith.constant 0 : index
    %834 = vector.load %arg12[%c0_293, %c0_294] : memref<1x384xf32, #tpu.memory_space<vmem>>, vector<1x384xf32>
    %835 = arith.addf %833, %834 : vector<1x384xf32>
    %836 = vector.extract_strided_slice %835 {offsets = [0, 0], sizes = [1, 32], strides = [1, 1]} : vector<1x384xf32> to vector<1x32xf32>
    %837 = vector.extract_strided_slice %835 {offsets = [0, 128], sizes = [1, 32], strides = [1, 1]} : vector<1x384xf32> to vector<1x32xf32>
    %838 = vector.extract_strided_slice %835 {offsets = [0, 256], sizes = [1, 32], strides = [1, 1]} : vector<1x384xf32> to vector<1x32xf32>
    %c0_295 = arith.constant 0 : index
    %c0_296 = arith.constant 0 : index
    %839 = vector.load %arg11[%c0_295, %c0_296] : memref<32x384xf32, #tpu.memory_space<vmem>>, vector<32x384xf32>
    %cst_297 = arith.constant dense<0.000000e+00> : vector<1x384xf32>
    %840 = tpu.matmul %787, %839, %cst_297 {dimension_numbers = #tpu.dot_dimension_numbers<[1], [0], [0], [1], [0, 0, 1, 1], [], []>} : vector<1x32xf32>, vector<32x384xf32>, vector<1x384xf32> -> vector<1x384xf32>
    %c0_298 = arith.constant 0 : index
    %c0_299 = arith.constant 0 : index
    %841 = vector.load %arg13[%c0_298, %c0_299] : memref<1x384xf32, #tpu.memory_space<vmem>>, vector<1x384xf32>
    %842 = arith.addf %840, %841 : vector<1x384xf32>
    %843 = vector.extract_strided_slice %842 {offsets = [0, 0], sizes = [1, 32], strides = [1, 1]} : vector<1x384xf32> to vector<1x32xf32>
    %844 = vector.extract_strided_slice %842 {offsets = [0, 128], sizes = [1, 32], strides = [1, 1]} : vector<1x384xf32> to vector<1x32xf32>
    %845 = vector.extract_strided_slice %842 {offsets = [0, 256], sizes = [1, 32], strides = [1, 1]} : vector<1x384xf32> to vector<1x32xf32>
    %846 = arith.addf %836, %843 : vector<1x32xf32>
    %847 = arith.negf %846 : vector<1x32xf32>
    %848 = math.exp %847 : vector<1x32xf32>
    %cst_300 = arith.constant 1.000000e+00 : f32
    %849 = vector.broadcast %cst_300 : f32 to vector<1x32xf32>
    %850 = arith.addf %849, %848 : vector<1x32xf32>
    %851 = arith.divf %849, %850 : vector<1x32xf32>
    %852 = arith.addf %837, %844 : vector<1x32xf32>
    %853 = arith.negf %852 : vector<1x32xf32>
    %854 = math.exp %853 : vector<1x32xf32>
    %cst_301 = arith.constant 1.000000e+00 : f32
    %855 = vector.broadcast %cst_301 : f32 to vector<1x32xf32>
    %856 = arith.addf %855, %854 : vector<1x32xf32>
    %857 = arith.divf %855, %856 : vector<1x32xf32>
    %858 = arith.mulf %851, %845 : vector<1x32xf32>
    %859 = arith.addf %838, %858 : vector<1x32xf32>
    %860 = math.tanh %859 : vector<1x32xf32>
    %cst_302 = arith.constant 1.000000e+00 : f32
    %861 = vector.broadcast %cst_302 : f32 to vector<1x32xf32>
    %862 = arith.subf %861, %857 : vector<1x32xf32>
    %863 = arith.mulf %862, %860 : vector<1x32xf32>
    %864 = arith.mulf %857, %787 : vector<1x32xf32>
    %865 = arith.addf %863, %864 : vector<1x32xf32>
    %cst_303 = arith.constant dense<0.000000e+00> : vector<1x8xf32>
    %866 = tpu.matmul %865, %512, %cst_303 {dimension_numbers = #tpu.dot_dimension_numbers<[1], [0], [0], [1], [0, 0, 1, 1], [], []>} : vector<1x32xf32>, vector<32x8xf32>, vector<1x8xf32> -> vector<1x8xf32>
    %cst_304 = arith.constant dense<0xFF800000> : vector<1xf32>
    %867 = vector.multi_reduction <maximumf>, %866, %cst_304 [1] : vector<1x8xf32> to vector<1xf32>
    %868 = vector.shape_cast %867 : vector<1xf32> to vector<1x1xf32>
    %869 = vector.broadcast %868 : vector<1x1xf32> to vector<1x8xf32>
    %870 = arith.subf %866, %869 : vector<1x8xf32>
    %871 = math.exp %870 : vector<1x8xf32>
    %cst_305 = arith.constant dense<0.000000e+00> : vector<1xf32>
    %872 = vector.multi_reduction <add>, %871, %cst_305 [1] : vector<1x8xf32> to vector<1xf32>
    %873 = vector.shape_cast %872 : vector<1xf32> to vector<1x1xf32>
    %874 = tpu.reciprocal %873 {approx = true} : vector<1x1xf32> -> vector<1x1xf32>
    %875 = vector.broadcast %874 : vector<1x1xf32> to vector<1x8xf32>
    %876 = arith.mulf %871, %875 : vector<1x8xf32>
    %cst_306 = arith.constant dense<0.000000e+00> : vector<1x32xf32>
    %877 = tpu.matmul %876, %511, %cst_306 {dimension_numbers = #tpu.dot_dimension_numbers<[1], [0], [0], [1], [0, 0, 1, 1], [], []>} : vector<1x8xf32>, vector<8x32xf32>, vector<1x32xf32> -> vector<1x32xf32>
    %c0_307 = arith.constant 0 : index
    %c0_308 = arith.constant 0 : index
    %878 = vector.load %arg14[%c0_307, %c0_308] : memref<32x32xf32, #tpu.memory_space<vmem>>, vector<32x32xf32>
    %cst_309 = arith.constant dense<0.000000e+00> : vector<1x32xf32>
    %879 = tpu.matmul %865, %878, %cst_309 {dimension_numbers = #tpu.dot_dimension_numbers<[1], [0], [0], [1], [0, 0, 1, 1], [], []>} : vector<1x32xf32>, vector<32x32xf32>, vector<1x32xf32> -> vector<1x32xf32>
    %c0_310 = arith.constant 0 : index
    %c0_311 = arith.constant 0 : index
    %880 = vector.load %arg15[%c0_310, %c0_311] : memref<32x32xf32, #tpu.memory_space<vmem>>, vector<32x32xf32>
    %cst_312 = arith.constant dense<0.000000e+00> : vector<1x32xf32>
    %881 = tpu.matmul %877, %880, %cst_312 {dimension_numbers = #tpu.dot_dimension_numbers<[1], [0], [0], [1], [0, 0, 1, 1], [], []>} : vector<1x32xf32>, vector<32x32xf32>, vector<1x32xf32> -> vector<1x32xf32>
    %882 = arith.addf %879, %881 : vector<1x32xf32>
    %c0_313 = arith.constant 0 : index
    %c0_314 = arith.constant 0 : index
    %883 = vector.load %arg16[%c0_313, %c0_314] : memref<1x32xf32, #tpu.memory_space<vmem>>, vector<1x32xf32>
    %884 = arith.addf %882, %883 : vector<1x32xf32>
    %885 = math.tanh %884 : vector<1x32xf32>
    %c0_315 = arith.constant 0 : index
    %c0_316 = arith.constant 0 : index
    %886 = vector.load %arg17[%c0_315, %c0_316] : memref<32x64xf32, #tpu.memory_space<vmem>>, vector<32x64xf32>
    %cst_317 = arith.constant dense<0.000000e+00> : vector<1x64xf32>
    %887 = tpu.matmul %885, %886, %cst_317 {dimension_numbers = #tpu.dot_dimension_numbers<[1], [0], [0], [1], [0, 0, 1, 1], [], []>} : vector<1x32xf32>, vector<32x64xf32>, vector<1x64xf32> -> vector<1x64xf32>
    %c0_318 = arith.constant 0 : index
    %c0_319 = arith.constant 0 : index
    %888 = vector.load %arg18[%c0_318, %c0_319] : memref<1x64xf32, #tpu.memory_space<vmem>>, vector<1x64xf32>
    %889 = arith.addf %887, %888 : vector<1x64xf32>
    %cst_320 = arith.constant dense<0xFF800000> : vector<1xf32>
    %890 = vector.multi_reduction <maximumf>, %889, %cst_320 [1] : vector<1x64xf32> to vector<1xf32>
    %891 = vector.shape_cast %890 : vector<1xf32> to vector<1x1xf32>
    %892 = vector.broadcast %891 : vector<1x1xf32> to vector<1x64xf32>
    %893 = arith.subf %889, %892 : vector<1x64xf32>
    %894 = math.exp %893 : vector<1x64xf32>
    %cst_321 = arith.constant dense<0.000000e+00> : vector<1xf32>
    %895 = vector.multi_reduction <add>, %894, %cst_321 [1] : vector<1x64xf32> to vector<1xf32>
    %896 = vector.shape_cast %895 : vector<1xf32> to vector<1x1xf32>
    %897 = tpu.reciprocal %896 : vector<1x1xf32> -> vector<1x1xf32>
    %898 = vector.broadcast %891 : vector<1x1xf32> to vector<1x64xf32>
    %899 = arith.cmpf oeq, %889, %898 : vector<1x64xf32>
    %c64_i32_322 = arith.constant 64 : i32
    %900 = vector.broadcast %c64_i32_322 : i32 to vector<1x64xi32>
    %901 = arith.select %899, %513, %900 : vector<1x64xi1>, vector<1x64xi32>
    %cst_323 = arith.constant dense<2147483647> : vector<1xi32>
    %902 = vector.multi_reduction <minsi>, %901, %cst_323 [1] : vector<1x64xi32> to vector<1xi32>
    %903 = vector.shape_cast %902 : vector<1xi32> to vector<1x1xi32>
    %904 = vector.broadcast %903 : vector<1x1xi32> to vector<1x64xi32>
    %905 = arith.cmpi eq, %513, %904 : vector<1x64xi32>
    %906 = arith.extui %905 : vector<1x64xi1> to vector<1x64xi32>
    %907 = arith.sitofp %906 : vector<1x64xi32> to vector<1x64xf32>
    %c0_324 = arith.constant 0 : index
    %c0_325 = arith.constant 0 : index
    %908 = vector.load %arg1[%c0_324, %c0_325] : memref<64x32xf32, #tpu.memory_space<vmem>>, vector<64x32xf32>
    %cst_326 = arith.constant dense<0.000000e+00> : vector<1x32xf32>
    %909 = tpu.matmul %907, %908, %cst_326 {dimension_numbers = #tpu.dot_dimension_numbers<[1], [0], [0], [1], [0, 0, 1, 1], [], []>} : vector<1x64xf32>, vector<64x32xf32>, vector<1x32xf32> -> vector<1x32xf32>
    %c0_327 = arith.constant 0 : index
    %c0_328 = arith.constant 0 : index
    %910 = vector.load %arg10[%c0_327, %c0_328] : memref<32x384xf32, #tpu.memory_space<vmem>>, vector<32x384xf32>
    %cst_329 = arith.constant dense<0.000000e+00> : vector<1x384xf32>
    %911 = tpu.matmul %909, %910, %cst_329 {dimension_numbers = #tpu.dot_dimension_numbers<[1], [0], [0], [1], [0, 0, 1, 1], [], []>} : vector<1x32xf32>, vector<32x384xf32>, vector<1x384xf32> -> vector<1x384xf32>
    %c0_330 = arith.constant 0 : index
    %c0_331 = arith.constant 0 : index
    %912 = vector.load %arg12[%c0_330, %c0_331] : memref<1x384xf32, #tpu.memory_space<vmem>>, vector<1x384xf32>
    %913 = arith.addf %911, %912 : vector<1x384xf32>
    %914 = vector.extract_strided_slice %913 {offsets = [0, 0], sizes = [1, 32], strides = [1, 1]} : vector<1x384xf32> to vector<1x32xf32>
    %915 = vector.extract_strided_slice %913 {offsets = [0, 128], sizes = [1, 32], strides = [1, 1]} : vector<1x384xf32> to vector<1x32xf32>
    %916 = vector.extract_strided_slice %913 {offsets = [0, 256], sizes = [1, 32], strides = [1, 1]} : vector<1x384xf32> to vector<1x32xf32>
    %c0_332 = arith.constant 0 : index
    %c0_333 = arith.constant 0 : index
    %917 = vector.load %arg11[%c0_332, %c0_333] : memref<32x384xf32, #tpu.memory_space<vmem>>, vector<32x384xf32>
    %cst_334 = arith.constant dense<0.000000e+00> : vector<1x384xf32>
    %918 = tpu.matmul %865, %917, %cst_334 {dimension_numbers = #tpu.dot_dimension_numbers<[1], [0], [0], [1], [0, 0, 1, 1], [], []>} : vector<1x32xf32>, vector<32x384xf32>, vector<1x384xf32> -> vector<1x384xf32>
    %c0_335 = arith.constant 0 : index
    %c0_336 = arith.constant 0 : index
    %919 = vector.load %arg13[%c0_335, %c0_336] : memref<1x384xf32, #tpu.memory_space<vmem>>, vector<1x384xf32>
    %920 = arith.addf %918, %919 : vector<1x384xf32>
    %921 = vector.extract_strided_slice %920 {offsets = [0, 0], sizes = [1, 32], strides = [1, 1]} : vector<1x384xf32> to vector<1x32xf32>
    %922 = vector.extract_strided_slice %920 {offsets = [0, 128], sizes = [1, 32], strides = [1, 1]} : vector<1x384xf32> to vector<1x32xf32>
    %923 = vector.extract_strided_slice %920 {offsets = [0, 256], sizes = [1, 32], strides = [1, 1]} : vector<1x384xf32> to vector<1x32xf32>
    %924 = arith.addf %914, %921 : vector<1x32xf32>
    %925 = arith.negf %924 : vector<1x32xf32>
    %926 = math.exp %925 : vector<1x32xf32>
    %cst_337 = arith.constant 1.000000e+00 : f32
    %927 = vector.broadcast %cst_337 : f32 to vector<1x32xf32>
    %928 = arith.addf %927, %926 : vector<1x32xf32>
    %929 = arith.divf %927, %928 : vector<1x32xf32>
    %930 = arith.addf %915, %922 : vector<1x32xf32>
    %931 = arith.negf %930 : vector<1x32xf32>
    %932 = math.exp %931 : vector<1x32xf32>
    %cst_338 = arith.constant 1.000000e+00 : f32
    %933 = vector.broadcast %cst_338 : f32 to vector<1x32xf32>
    %934 = arith.addf %933, %932 : vector<1x32xf32>
    %935 = arith.divf %933, %934 : vector<1x32xf32>
    %936 = arith.mulf %929, %923 : vector<1x32xf32>
    %937 = arith.addf %916, %936 : vector<1x32xf32>
    %938 = math.tanh %937 : vector<1x32xf32>
    %cst_339 = arith.constant 1.000000e+00 : f32
    %939 = vector.broadcast %cst_339 : f32 to vector<1x32xf32>
    %940 = arith.subf %939, %935 : vector<1x32xf32>
    %941 = arith.mulf %940, %938 : vector<1x32xf32>
    %942 = arith.mulf %935, %865 : vector<1x32xf32>
    %943 = arith.addf %941, %942 : vector<1x32xf32>
    %cst_340 = arith.constant dense<0.000000e+00> : vector<1x8xf32>
    %944 = tpu.matmul %943, %512, %cst_340 {dimension_numbers = #tpu.dot_dimension_numbers<[1], [0], [0], [1], [0, 0, 1, 1], [], []>} : vector<1x32xf32>, vector<32x8xf32>, vector<1x8xf32> -> vector<1x8xf32>
    %cst_341 = arith.constant dense<0xFF800000> : vector<1xf32>
    %945 = vector.multi_reduction <maximumf>, %944, %cst_341 [1] : vector<1x8xf32> to vector<1xf32>
    %946 = vector.shape_cast %945 : vector<1xf32> to vector<1x1xf32>
    %947 = vector.broadcast %946 : vector<1x1xf32> to vector<1x8xf32>
    %948 = arith.subf %944, %947 : vector<1x8xf32>
    %949 = math.exp %948 : vector<1x8xf32>
    %cst_342 = arith.constant dense<0.000000e+00> : vector<1xf32>
    %950 = vector.multi_reduction <add>, %949, %cst_342 [1] : vector<1x8xf32> to vector<1xf32>
    %951 = vector.shape_cast %950 : vector<1xf32> to vector<1x1xf32>
    %952 = tpu.reciprocal %951 {approx = true} : vector<1x1xf32> -> vector<1x1xf32>
    %953 = vector.broadcast %952 : vector<1x1xf32> to vector<1x8xf32>
    %954 = arith.mulf %949, %953 : vector<1x8xf32>
    %cst_343 = arith.constant dense<0.000000e+00> : vector<1x32xf32>
    %955 = tpu.matmul %954, %511, %cst_343 {dimension_numbers = #tpu.dot_dimension_numbers<[1], [0], [0], [1], [0, 0, 1, 1], [], []>} : vector<1x8xf32>, vector<8x32xf32>, vector<1x32xf32> -> vector<1x32xf32>
    %c0_344 = arith.constant 0 : index
    %c0_345 = arith.constant 0 : index
    %956 = vector.load %arg14[%c0_344, %c0_345] : memref<32x32xf32, #tpu.memory_space<vmem>>, vector<32x32xf32>
    %cst_346 = arith.constant dense<0.000000e+00> : vector<1x32xf32>
    %957 = tpu.matmul %943, %956, %cst_346 {dimension_numbers = #tpu.dot_dimension_numbers<[1], [0], [0], [1], [0, 0, 1, 1], [], []>} : vector<1x32xf32>, vector<32x32xf32>, vector<1x32xf32> -> vector<1x32xf32>
    %c0_347 = arith.constant 0 : index
    %c0_348 = arith.constant 0 : index
    %958 = vector.load %arg15[%c0_347, %c0_348] : memref<32x32xf32, #tpu.memory_space<vmem>>, vector<32x32xf32>
    %cst_349 = arith.constant dense<0.000000e+00> : vector<1x32xf32>
    %959 = tpu.matmul %955, %958, %cst_349 {dimension_numbers = #tpu.dot_dimension_numbers<[1], [0], [0], [1], [0, 0, 1, 1], [], []>} : vector<1x32xf32>, vector<32x32xf32>, vector<1x32xf32> -> vector<1x32xf32>
    %960 = arith.addf %957, %959 : vector<1x32xf32>
    %c0_350 = arith.constant 0 : index
    %c0_351 = arith.constant 0 : index
    %961 = vector.load %arg16[%c0_350, %c0_351] : memref<1x32xf32, #tpu.memory_space<vmem>>, vector<1x32xf32>
    %962 = arith.addf %960, %961 : vector<1x32xf32>
    %963 = math.tanh %962 : vector<1x32xf32>
    %c0_352 = arith.constant 0 : index
    %c0_353 = arith.constant 0 : index
    %964 = vector.load %arg17[%c0_352, %c0_353] : memref<32x64xf32, #tpu.memory_space<vmem>>, vector<32x64xf32>
    %cst_354 = arith.constant dense<0.000000e+00> : vector<1x64xf32>
    %965 = tpu.matmul %963, %964, %cst_354 {dimension_numbers = #tpu.dot_dimension_numbers<[1], [0], [0], [1], [0, 0, 1, 1], [], []>} : vector<1x32xf32>, vector<32x64xf32>, vector<1x64xf32> -> vector<1x64xf32>
    %c0_355 = arith.constant 0 : index
    %c0_356 = arith.constant 0 : index
    %966 = vector.load %arg18[%c0_355, %c0_356] : memref<1x64xf32, #tpu.memory_space<vmem>>, vector<1x64xf32>
    %967 = arith.addf %965, %966 : vector<1x64xf32>
    %cst_357 = arith.constant dense<0xFF800000> : vector<1xf32>
    %968 = vector.multi_reduction <maximumf>, %967, %cst_357 [1] : vector<1x64xf32> to vector<1xf32>
    %969 = vector.shape_cast %968 : vector<1xf32> to vector<1x1xf32>
    %970 = vector.broadcast %969 : vector<1x1xf32> to vector<1x64xf32>
    %971 = arith.subf %967, %970 : vector<1x64xf32>
    %972 = math.exp %971 : vector<1x64xf32>
    %cst_358 = arith.constant dense<0.000000e+00> : vector<1xf32>
    %973 = vector.multi_reduction <add>, %972, %cst_358 [1] : vector<1x64xf32> to vector<1xf32>
    %974 = vector.shape_cast %973 : vector<1xf32> to vector<1x1xf32>
    %975 = tpu.reciprocal %974 : vector<1x1xf32> -> vector<1x1xf32>
    %976 = vector.broadcast %969 : vector<1x1xf32> to vector<1x64xf32>
    %977 = arith.cmpf oeq, %967, %976 : vector<1x64xf32>
    %c64_i32_359 = arith.constant 64 : i32
    %978 = vector.broadcast %c64_i32_359 : i32 to vector<1x64xi32>
    %979 = arith.select %977, %513, %978 : vector<1x64xi1>, vector<1x64xi32>
    %cst_360 = arith.constant dense<2147483647> : vector<1xi32>
    %980 = vector.multi_reduction <minsi>, %979, %cst_360 [1] : vector<1x64xi32> to vector<1xi32>
    %981 = vector.shape_cast %980 : vector<1xi32> to vector<1x1xi32>
    %982 = vector.broadcast %981 : vector<1x1xi32> to vector<1x64xi32>
    %983 = arith.cmpi eq, %513, %982 : vector<1x64xi32>
    %984 = arith.extui %983 : vector<1x64xi1> to vector<1x64xi32>
    %985 = arith.sitofp %984 : vector<1x64xi32> to vector<1x64xf32>
    %c0_361 = arith.constant 0 : index
    %c0_362 = arith.constant 0 : index
    %986 = vector.load %arg1[%c0_361, %c0_362] : memref<64x32xf32, #tpu.memory_space<vmem>>, vector<64x32xf32>
    %cst_363 = arith.constant dense<0.000000e+00> : vector<1x32xf32>
    %987 = tpu.matmul %985, %986, %cst_363 {dimension_numbers = #tpu.dot_dimension_numbers<[1], [0], [0], [1], [0, 0, 1, 1], [], []>} : vector<1x64xf32>, vector<64x32xf32>, vector<1x32xf32> -> vector<1x32xf32>
    %c0_364 = arith.constant 0 : index
    %c0_365 = arith.constant 0 : index
    %988 = vector.load %arg10[%c0_364, %c0_365] : memref<32x384xf32, #tpu.memory_space<vmem>>, vector<32x384xf32>
    %cst_366 = arith.constant dense<0.000000e+00> : vector<1x384xf32>
    %989 = tpu.matmul %987, %988, %cst_366 {dimension_numbers = #tpu.dot_dimension_numbers<[1], [0], [0], [1], [0, 0, 1, 1], [], []>} : vector<1x32xf32>, vector<32x384xf32>, vector<1x384xf32> -> vector<1x384xf32>
    %c0_367 = arith.constant 0 : index
    %c0_368 = arith.constant 0 : index
    %990 = vector.load %arg12[%c0_367, %c0_368] : memref<1x384xf32, #tpu.memory_space<vmem>>, vector<1x384xf32>
    %991 = arith.addf %989, %990 : vector<1x384xf32>
    %992 = vector.extract_strided_slice %991 {offsets = [0, 0], sizes = [1, 32], strides = [1, 1]} : vector<1x384xf32> to vector<1x32xf32>
    %993 = vector.extract_strided_slice %991 {offsets = [0, 128], sizes = [1, 32], strides = [1, 1]} : vector<1x384xf32> to vector<1x32xf32>
    %994 = vector.extract_strided_slice %991 {offsets = [0, 256], sizes = [1, 32], strides = [1, 1]} : vector<1x384xf32> to vector<1x32xf32>
    %c0_369 = arith.constant 0 : index
    %c0_370 = arith.constant 0 : index
    %995 = vector.load %arg11[%c0_369, %c0_370] : memref<32x384xf32, #tpu.memory_space<vmem>>, vector<32x384xf32>
    %cst_371 = arith.constant dense<0.000000e+00> : vector<1x384xf32>
    %996 = tpu.matmul %943, %995, %cst_371 {dimension_numbers = #tpu.dot_dimension_numbers<[1], [0], [0], [1], [0, 0, 1, 1], [], []>} : vector<1x32xf32>, vector<32x384xf32>, vector<1x384xf32> -> vector<1x384xf32>
    %c0_372 = arith.constant 0 : index
    %c0_373 = arith.constant 0 : index
    %997 = vector.load %arg13[%c0_372, %c0_373] : memref<1x384xf32, #tpu.memory_space<vmem>>, vector<1x384xf32>
    %998 = arith.addf %996, %997 : vector<1x384xf32>
    %999 = vector.extract_strided_slice %998 {offsets = [0, 0], sizes = [1, 32], strides = [1, 1]} : vector<1x384xf32> to vector<1x32xf32>
    %1000 = vector.extract_strided_slice %998 {offsets = [0, 128], sizes = [1, 32], strides = [1, 1]} : vector<1x384xf32> to vector<1x32xf32>
    %1001 = vector.extract_strided_slice %998 {offsets = [0, 256], sizes = [1, 32], strides = [1, 1]} : vector<1x384xf32> to vector<1x32xf32>
    %1002 = arith.addf %992, %999 : vector<1x32xf32>
    %1003 = arith.negf %1002 : vector<1x32xf32>
    %1004 = math.exp %1003 : vector<1x32xf32>
    %cst_374 = arith.constant 1.000000e+00 : f32
    %1005 = vector.broadcast %cst_374 : f32 to vector<1x32xf32>
    %1006 = arith.addf %1005, %1004 : vector<1x32xf32>
    %1007 = arith.divf %1005, %1006 : vector<1x32xf32>
    %1008 = arith.addf %993, %1000 : vector<1x32xf32>
    %1009 = arith.negf %1008 : vector<1x32xf32>
    %1010 = math.exp %1009 : vector<1x32xf32>
    %cst_375 = arith.constant 1.000000e+00 : f32
    %1011 = vector.broadcast %cst_375 : f32 to vector<1x32xf32>
    %1012 = arith.addf %1011, %1010 : vector<1x32xf32>
    %1013 = arith.divf %1011, %1012 : vector<1x32xf32>
    %1014 = arith.mulf %1007, %1001 : vector<1x32xf32>
    %1015 = arith.addf %994, %1014 : vector<1x32xf32>
    %1016 = math.tanh %1015 : vector<1x32xf32>
    %cst_376 = arith.constant 1.000000e+00 : f32
    %1017 = vector.broadcast %cst_376 : f32 to vector<1x32xf32>
    %1018 = arith.subf %1017, %1013 : vector<1x32xf32>
    %1019 = arith.mulf %1018, %1016 : vector<1x32xf32>
    %1020 = arith.mulf %1013, %943 : vector<1x32xf32>
    %1021 = arith.addf %1019, %1020 : vector<1x32xf32>
    %cst_377 = arith.constant dense<0.000000e+00> : vector<1x8xf32>
    %1022 = tpu.matmul %1021, %512, %cst_377 {dimension_numbers = #tpu.dot_dimension_numbers<[1], [0], [0], [1], [0, 0, 1, 1], [], []>} : vector<1x32xf32>, vector<32x8xf32>, vector<1x8xf32> -> vector<1x8xf32>
    %cst_378 = arith.constant dense<0xFF800000> : vector<1xf32>
    %1023 = vector.multi_reduction <maximumf>, %1022, %cst_378 [1] : vector<1x8xf32> to vector<1xf32>
    %1024 = vector.shape_cast %1023 : vector<1xf32> to vector<1x1xf32>
    %1025 = vector.broadcast %1024 : vector<1x1xf32> to vector<1x8xf32>
    %1026 = arith.subf %1022, %1025 : vector<1x8xf32>
    %1027 = math.exp %1026 : vector<1x8xf32>
    %cst_379 = arith.constant dense<0.000000e+00> : vector<1xf32>
    %1028 = vector.multi_reduction <add>, %1027, %cst_379 [1] : vector<1x8xf32> to vector<1xf32>
    %1029 = vector.shape_cast %1028 : vector<1xf32> to vector<1x1xf32>
    %1030 = tpu.reciprocal %1029 {approx = true} : vector<1x1xf32> -> vector<1x1xf32>
    %1031 = vector.broadcast %1030 : vector<1x1xf32> to vector<1x8xf32>
    %1032 = arith.mulf %1027, %1031 : vector<1x8xf32>
    %cst_380 = arith.constant dense<0.000000e+00> : vector<1x32xf32>
    %1033 = tpu.matmul %1032, %511, %cst_380 {dimension_numbers = #tpu.dot_dimension_numbers<[1], [0], [0], [1], [0, 0, 1, 1], [], []>} : vector<1x8xf32>, vector<8x32xf32>, vector<1x32xf32> -> vector<1x32xf32>
    %c0_381 = arith.constant 0 : index
    %c0_382 = arith.constant 0 : index
    %1034 = vector.load %arg14[%c0_381, %c0_382] : memref<32x32xf32, #tpu.memory_space<vmem>>, vector<32x32xf32>
    %cst_383 = arith.constant dense<0.000000e+00> : vector<1x32xf32>
    %1035 = tpu.matmul %1021, %1034, %cst_383 {dimension_numbers = #tpu.dot_dimension_numbers<[1], [0], [0], [1], [0, 0, 1, 1], [], []>} : vector<1x32xf32>, vector<32x32xf32>, vector<1x32xf32> -> vector<1x32xf32>
    %c0_384 = arith.constant 0 : index
    %c0_385 = arith.constant 0 : index
    %1036 = vector.load %arg15[%c0_384, %c0_385] : memref<32x32xf32, #tpu.memory_space<vmem>>, vector<32x32xf32>
    %cst_386 = arith.constant dense<0.000000e+00> : vector<1x32xf32>
    %1037 = tpu.matmul %1033, %1036, %cst_386 {dimension_numbers = #tpu.dot_dimension_numbers<[1], [0], [0], [1], [0, 0, 1, 1], [], []>} : vector<1x32xf32>, vector<32x32xf32>, vector<1x32xf32> -> vector<1x32xf32>
    %1038 = arith.addf %1035, %1037 : vector<1x32xf32>
    %c0_387 = arith.constant 0 : index
    %c0_388 = arith.constant 0 : index
    %1039 = vector.load %arg16[%c0_387, %c0_388] : memref<1x32xf32, #tpu.memory_space<vmem>>, vector<1x32xf32>
    %1040 = arith.addf %1038, %1039 : vector<1x32xf32>
    %1041 = math.tanh %1040 : vector<1x32xf32>
    %c0_389 = arith.constant 0 : index
    %c0_390 = arith.constant 0 : index
    %1042 = vector.load %arg17[%c0_389, %c0_390] : memref<32x64xf32, #tpu.memory_space<vmem>>, vector<32x64xf32>
    %cst_391 = arith.constant dense<0.000000e+00> : vector<1x64xf32>
    %1043 = tpu.matmul %1041, %1042, %cst_391 {dimension_numbers = #tpu.dot_dimension_numbers<[1], [0], [0], [1], [0, 0, 1, 1], [], []>} : vector<1x32xf32>, vector<32x64xf32>, vector<1x64xf32> -> vector<1x64xf32>
    %c0_392 = arith.constant 0 : index
    %c0_393 = arith.constant 0 : index
    %1044 = vector.load %arg18[%c0_392, %c0_393] : memref<1x64xf32, #tpu.memory_space<vmem>>, vector<1x64xf32>
    %1045 = arith.addf %1043, %1044 : vector<1x64xf32>
    %cst_394 = arith.constant dense<0xFF800000> : vector<1xf32>
    %1046 = vector.multi_reduction <maximumf>, %1045, %cst_394 [1] : vector<1x64xf32> to vector<1xf32>
    %1047 = vector.shape_cast %1046 : vector<1xf32> to vector<1x1xf32>
    %1048 = vector.broadcast %1047 : vector<1x1xf32> to vector<1x64xf32>
    %1049 = arith.subf %1045, %1048 : vector<1x64xf32>
    %1050 = math.exp %1049 : vector<1x64xf32>
    %cst_395 = arith.constant dense<0.000000e+00> : vector<1xf32>
    %1051 = vector.multi_reduction <add>, %1050, %cst_395 [1] : vector<1x64xf32> to vector<1xf32>
    %1052 = vector.shape_cast %1051 : vector<1xf32> to vector<1x1xf32>
    %1053 = tpu.reciprocal %1052 : vector<1x1xf32> -> vector<1x1xf32>
    %1054 = vector.broadcast %1047 : vector<1x1xf32> to vector<1x64xf32>
    %1055 = arith.cmpf oeq, %1045, %1054 : vector<1x64xf32>
    %c64_i32_396 = arith.constant 64 : i32
    %1056 = vector.broadcast %c64_i32_396 : i32 to vector<1x64xi32>
    %1057 = arith.select %1055, %513, %1056 : vector<1x64xi1>, vector<1x64xi32>
    %cst_397 = arith.constant dense<2147483647> : vector<1xi32>
    %1058 = vector.multi_reduction <minsi>, %1057, %cst_397 [1] : vector<1x64xi32> to vector<1xi32>
    %1059 = vector.shape_cast %1058 : vector<1xi32> to vector<1x1xi32>
    %1060 = vector.broadcast %1059 : vector<1x1xi32> to vector<1x64xi32>
    %1061 = arith.cmpi eq, %513, %1060 : vector<1x64xi32>
    %1062 = arith.extui %1061 : vector<1x64xi1> to vector<1x64xi32>
    %1063 = arith.sitofp %1062 : vector<1x64xi32> to vector<1x64xf32>
    %c0_398 = arith.constant 0 : index
    %c0_399 = arith.constant 0 : index
    %1064 = vector.load %arg1[%c0_398, %c0_399] : memref<64x32xf32, #tpu.memory_space<vmem>>, vector<64x32xf32>
    %cst_400 = arith.constant dense<0.000000e+00> : vector<1x32xf32>
    %1065 = tpu.matmul %1063, %1064, %cst_400 {dimension_numbers = #tpu.dot_dimension_numbers<[1], [0], [0], [1], [0, 0, 1, 1], [], []>} : vector<1x64xf32>, vector<64x32xf32>, vector<1x32xf32> -> vector<1x32xf32>
    %c0_401 = arith.constant 0 : index
    %c0_402 = arith.constant 0 : index
    %1066 = vector.load %arg10[%c0_401, %c0_402] : memref<32x384xf32, #tpu.memory_space<vmem>>, vector<32x384xf32>
    %cst_403 = arith.constant dense<0.000000e+00> : vector<1x384xf32>
    %1067 = tpu.matmul %1065, %1066, %cst_403 {dimension_numbers = #tpu.dot_dimension_numbers<[1], [0], [0], [1], [0, 0, 1, 1], [], []>} : vector<1x32xf32>, vector<32x384xf32>, vector<1x384xf32> -> vector<1x384xf32>
    %c0_404 = arith.constant 0 : index
    %c0_405 = arith.constant 0 : index
    %1068 = vector.load %arg12[%c0_404, %c0_405] : memref<1x384xf32, #tpu.memory_space<vmem>>, vector<1x384xf32>
    %1069 = arith.addf %1067, %1068 : vector<1x384xf32>
    %1070 = vector.extract_strided_slice %1069 {offsets = [0, 0], sizes = [1, 32], strides = [1, 1]} : vector<1x384xf32> to vector<1x32xf32>
    %1071 = vector.extract_strided_slice %1069 {offsets = [0, 128], sizes = [1, 32], strides = [1, 1]} : vector<1x384xf32> to vector<1x32xf32>
    %1072 = vector.extract_strided_slice %1069 {offsets = [0, 256], sizes = [1, 32], strides = [1, 1]} : vector<1x384xf32> to vector<1x32xf32>
    %c0_406 = arith.constant 0 : index
    %c0_407 = arith.constant 0 : index
    %1073 = vector.load %arg11[%c0_406, %c0_407] : memref<32x384xf32, #tpu.memory_space<vmem>>, vector<32x384xf32>
    %cst_408 = arith.constant dense<0.000000e+00> : vector<1x384xf32>
    %1074 = tpu.matmul %1021, %1073, %cst_408 {dimension_numbers = #tpu.dot_dimension_numbers<[1], [0], [0], [1], [0, 0, 1, 1], [], []>} : vector<1x32xf32>, vector<32x384xf32>, vector<1x384xf32> -> vector<1x384xf32>
    %c0_409 = arith.constant 0 : index
    %c0_410 = arith.constant 0 : index
    %1075 = vector.load %arg13[%c0_409, %c0_410] : memref<1x384xf32, #tpu.memory_space<vmem>>, vector<1x384xf32>
    %1076 = arith.addf %1074, %1075 : vector<1x384xf32>
    %1077 = vector.extract_strided_slice %1076 {offsets = [0, 0], sizes = [1, 32], strides = [1, 1]} : vector<1x384xf32> to vector<1x32xf32>
    %1078 = vector.extract_strided_slice %1076 {offsets = [0, 128], sizes = [1, 32], strides = [1, 1]} : vector<1x384xf32> to vector<1x32xf32>
    %1079 = vector.extract_strided_slice %1076 {offsets = [0, 256], sizes = [1, 32], strides = [1, 1]} : vector<1x384xf32> to vector<1x32xf32>
    %1080 = arith.addf %1070, %1077 : vector<1x32xf32>
    %1081 = arith.negf %1080 : vector<1x32xf32>
    %1082 = math.exp %1081 : vector<1x32xf32>
    %cst_411 = arith.constant 1.000000e+00 : f32
    %1083 = vector.broadcast %cst_411 : f32 to vector<1x32xf32>
    %1084 = arith.addf %1083, %1082 : vector<1x32xf32>
    %1085 = arith.divf %1083, %1084 : vector<1x32xf32>
    %1086 = arith.addf %1071, %1078 : vector<1x32xf32>
    %1087 = arith.negf %1086 : vector<1x32xf32>
    %1088 = math.exp %1087 : vector<1x32xf32>
    %cst_412 = arith.constant 1.000000e+00 : f32
    %1089 = vector.broadcast %cst_412 : f32 to vector<1x32xf32>
    %1090 = arith.addf %1089, %1088 : vector<1x32xf32>
    %1091 = arith.divf %1089, %1090 : vector<1x32xf32>
    %1092 = arith.mulf %1085, %1079 : vector<1x32xf32>
    %1093 = arith.addf %1072, %1092 : vector<1x32xf32>
    %1094 = math.tanh %1093 : vector<1x32xf32>
    %cst_413 = arith.constant 1.000000e+00 : f32
    %1095 = vector.broadcast %cst_413 : f32 to vector<1x32xf32>
    %1096 = arith.subf %1095, %1091 : vector<1x32xf32>
    %1097 = arith.mulf %1096, %1094 : vector<1x32xf32>
    %1098 = arith.mulf %1091, %1021 : vector<1x32xf32>
    %1099 = arith.addf %1097, %1098 : vector<1x32xf32>
    %cst_414 = arith.constant dense<0.000000e+00> : vector<1x8xf32>
    %1100 = tpu.matmul %1099, %512, %cst_414 {dimension_numbers = #tpu.dot_dimension_numbers<[1], [0], [0], [1], [0, 0, 1, 1], [], []>} : vector<1x32xf32>, vector<32x8xf32>, vector<1x8xf32> -> vector<1x8xf32>
    %cst_415 = arith.constant dense<0xFF800000> : vector<1xf32>
    %1101 = vector.multi_reduction <maximumf>, %1100, %cst_415 [1] : vector<1x8xf32> to vector<1xf32>
    %1102 = vector.shape_cast %1101 : vector<1xf32> to vector<1x1xf32>
    %1103 = vector.broadcast %1102 : vector<1x1xf32> to vector<1x8xf32>
    %1104 = arith.subf %1100, %1103 : vector<1x8xf32>
    %1105 = math.exp %1104 : vector<1x8xf32>
    %cst_416 = arith.constant dense<0.000000e+00> : vector<1xf32>
    %1106 = vector.multi_reduction <add>, %1105, %cst_416 [1] : vector<1x8xf32> to vector<1xf32>
    %1107 = vector.shape_cast %1106 : vector<1xf32> to vector<1x1xf32>
    %1108 = tpu.reciprocal %1107 {approx = true} : vector<1x1xf32> -> vector<1x1xf32>
    %1109 = vector.broadcast %1108 : vector<1x1xf32> to vector<1x8xf32>
    %1110 = arith.mulf %1105, %1109 : vector<1x8xf32>
    %cst_417 = arith.constant dense<0.000000e+00> : vector<1x32xf32>
    %1111 = tpu.matmul %1110, %511, %cst_417 {dimension_numbers = #tpu.dot_dimension_numbers<[1], [0], [0], [1], [0, 0, 1, 1], [], []>} : vector<1x8xf32>, vector<8x32xf32>, vector<1x32xf32> -> vector<1x32xf32>
    %c0_418 = arith.constant 0 : index
    %c0_419 = arith.constant 0 : index
    %1112 = vector.load %arg14[%c0_418, %c0_419] : memref<32x32xf32, #tpu.memory_space<vmem>>, vector<32x32xf32>
    %cst_420 = arith.constant dense<0.000000e+00> : vector<1x32xf32>
    %1113 = tpu.matmul %1099, %1112, %cst_420 {dimension_numbers = #tpu.dot_dimension_numbers<[1], [0], [0], [1], [0, 0, 1, 1], [], []>} : vector<1x32xf32>, vector<32x32xf32>, vector<1x32xf32> -> vector<1x32xf32>
    %c0_421 = arith.constant 0 : index
    %c0_422 = arith.constant 0 : index
    %1114 = vector.load %arg15[%c0_421, %c0_422] : memref<32x32xf32, #tpu.memory_space<vmem>>, vector<32x32xf32>
    %cst_423 = arith.constant dense<0.000000e+00> : vector<1x32xf32>
    %1115 = tpu.matmul %1111, %1114, %cst_423 {dimension_numbers = #tpu.dot_dimension_numbers<[1], [0], [0], [1], [0, 0, 1, 1], [], []>} : vector<1x32xf32>, vector<32x32xf32>, vector<1x32xf32> -> vector<1x32xf32>
    %1116 = arith.addf %1113, %1115 : vector<1x32xf32>
    %c0_424 = arith.constant 0 : index
    %c0_425 = arith.constant 0 : index
    %1117 = vector.load %arg16[%c0_424, %c0_425] : memref<1x32xf32, #tpu.memory_space<vmem>>, vector<1x32xf32>
    %1118 = arith.addf %1116, %1117 : vector<1x32xf32>
    %1119 = math.tanh %1118 : vector<1x32xf32>
    %c0_426 = arith.constant 0 : index
    %c0_427 = arith.constant 0 : index
    %1120 = vector.load %arg17[%c0_426, %c0_427] : memref<32x64xf32, #tpu.memory_space<vmem>>, vector<32x64xf32>
    %cst_428 = arith.constant dense<0.000000e+00> : vector<1x64xf32>
    %1121 = tpu.matmul %1119, %1120, %cst_428 {dimension_numbers = #tpu.dot_dimension_numbers<[1], [0], [0], [1], [0, 0, 1, 1], [], []>} : vector<1x32xf32>, vector<32x64xf32>, vector<1x64xf32> -> vector<1x64xf32>
    %c0_429 = arith.constant 0 : index
    %c0_430 = arith.constant 0 : index
    %1122 = vector.load %arg18[%c0_429, %c0_430] : memref<1x64xf32, #tpu.memory_space<vmem>>, vector<1x64xf32>
    %1123 = arith.addf %1121, %1122 : vector<1x64xf32>
    %cst_431 = arith.constant dense<0xFF800000> : vector<1xf32>
    %1124 = vector.multi_reduction <maximumf>, %1123, %cst_431 [1] : vector<1x64xf32> to vector<1xf32>
    %1125 = vector.shape_cast %1124 : vector<1xf32> to vector<1x1xf32>
    %1126 = vector.broadcast %1125 : vector<1x1xf32> to vector<1x64xf32>
    %1127 = arith.subf %1123, %1126 : vector<1x64xf32>
    %1128 = math.exp %1127 : vector<1x64xf32>
    %cst_432 = arith.constant dense<0.000000e+00> : vector<1xf32>
    %1129 = vector.multi_reduction <add>, %1128, %cst_432 [1] : vector<1x64xf32> to vector<1xf32>
    %1130 = vector.shape_cast %1129 : vector<1xf32> to vector<1x1xf32>
    %1131 = tpu.reciprocal %1130 : vector<1x1xf32> -> vector<1x1xf32>
    %1132 = vector.broadcast %1125 : vector<1x1xf32> to vector<1x64xf32>
    %1133 = arith.cmpf oeq, %1123, %1132 : vector<1x64xf32>
    %c64_i32_433 = arith.constant 64 : i32
    %1134 = vector.broadcast %c64_i32_433 : i32 to vector<1x64xi32>
    %1135 = arith.select %1133, %513, %1134 : vector<1x64xi1>, vector<1x64xi32>
    %cst_434 = arith.constant dense<2147483647> : vector<1xi32>
    %1136 = vector.multi_reduction <minsi>, %1135, %cst_434 [1] : vector<1x64xi32> to vector<1xi32>
    %1137 = vector.shape_cast %1136 : vector<1xi32> to vector<1x1xi32>
    %1138 = tpu.concatenate %591, %669, %747, %825, %903, %981, %1059, %1137 in 1 : vector<1x1xi32>, vector<1x1xi32>, vector<1x1xi32>, vector<1x1xi32>, vector<1x1xi32>, vector<1x1xi32>, vector<1x1xi32>, vector<1x1xi32> -> vector<1x8xi32>
    %c0_435 = arith.constant 0 : index
    %c0_436 = arith.constant 0 : index
    %1139 = vector.load %arg19[%c0_435, %c0_436] : memref<1x8xi32, #tpu.memory_space<vmem>>, vector<1x8xi32>
    tpu.vector_store %arg19[%c0_435, %c0_436], %1138 {strides = array<i32>} : memref<1x8xi32, #tpu.memory_space<vmem>>, vector<1x8xi32>,
    %1140 = tpu.concatenate %585, %663, %741, %819, %897, %975, %1053, %1131 in 1 : vector<1x1xf32>, vector<1x1xf32>, vector<1x1xf32>, vector<1x1xf32>, vector<1x1xf32>, vector<1x1xf32>, vector<1x1xf32>, vector<1x1xf32> -> vector<1x8xf32>
    %c0_437 = arith.constant 0 : index
    %c0_438 = arith.constant 0 : index
    %1141 = vector.load %arg20[%c0_437, %c0_438] : memref<1x8xf32, #tpu.memory_space<vmem>>, vector<1x8xf32>
    tpu.vector_store %arg20[%c0_437, %c0_438], %1140 {strides = array<i32>} : memref<1x8xf32, #tpu.memory_space<vmem>>, vector<1x8xf32>,
    return
  }
}

</mosaic_0001>

<bundles_post_ra>
// kernel: tpu_custom_call.1
= control target key start
LH: loop header
LB: loop body
LE: loop exit
PB: predicated region body
PF: predicated region fallthrough
CT: control target
= control target key end

     0   :  { %s14601_s0 = inlined_call_operand.hbm [shape: f32[8,32], index: 0, kind: input, shape index: {}]   ;;  %s14602_s1 = inlined_call_operand.vmem [shape: f32[64,32], index: 1, kind: input, shape index: {}]   ;;  %s14603_s2 = inlined_call_operand.vmem [shape: f32[32,384], index: 2, kind: input, shape index: {}]   ;;  %s14604_s3 = inlined_call_operand.hbm [shape: f32[32,384], index: 3, kind: input, shape index: {}]   ;;  %s14605_s4 = inlined_call_operand.hbm [shape: f32[1,384], index: 4, kind: input, shape index: {}]   ;;  %s14606_s5 = inlined_call_operand.hbm [shape: f32[1,384], index: 5, kind: input, shape index: {}]   ;;  %s14607_s6 = inlined_call_operand.hbm [shape: f32[32,384], index: 6, kind: input, shape index: {}]   ;;  %s14608_s7 = inlined_call_operand.hbm [shape: f32[32,384], index: 7, kind: input, shape index: {}]   ;;  %s14609_s8 = inlined_call_operand.hbm [shape: f32[1,384], index: 8, kind: input, shape index: {}]   ;;  %s14610_s9 = inlined_call_operand.hbm [shape: f32[1,384], index: 9, kind: input, shape index: {}]   ;;  %s14611_s10 = inlined_call_operand.hbm [shape: f32[32,384], index: 10, kind: input, shape index: {}]   ;;  %s14612_s11 = inlined_call_operand.hbm [shape: f32[32,384], index: 11, kind: input, shape index: {}]   ;;  %s14613_s12 = inlined_call_operand.hbm [shape: f32[1,384], index: 12, kind: input, shape index: {}]   ;;  %s14614_s13 = inlined_call_operand.hbm [shape: f32[1,384], index: 13, kind: input, shape index: {}]   ;;  %s14615_s14 = inlined_call_operand.vmem [shape: f32[32,32], index: 14, kind: input, shape index: {}]   ;;  %s14616_s15 = inlined_call_operand.hbm [shape: f32[32,32], index: 15, kind: input, shape index: {}]   ;;  %s14617_s16 = inlined_call_operand.hbm [shape: f32[1,32], index: 16, kind: input, shape index: {}]   ;;  %s14618_s17 = inlined_call_operand.vmem [shape: f32[32,64], index: 17, kind: input, shape index: {}]   ;;  %s14619_s18 = inlined_call_operand.vmem [shape: f32[1,64], index: 18, kind: input, shape index: {}]   ;;  %s14620_s19 = inlined_call_operand.hbm [shape: s32[1,8], index: 19, kind: output, shape index: {0}]   ;;  %s14621_s20 = inlined_call_operand.hbm [shape: f32[1,8], index: 20, kind: output, shape index: {1}]  }
   0x1   :  { %14629 = sst [smem:[#allocation38_spill]] %s14601_s0 }
   0x2   :  { %14630 = sst [smem:[#allocation39_spill]] %s14602_s1 }
   0x3   :  { %14631 = sst [smem:[#allocation40_spill]] %s14603_s2 }
   0x4   :  { %14632 = sst [smem:[#allocation41_spill]] %s14604_s3 }
   0x5   :  { %14633 = sst [smem:[#allocation42_spill]] %s14605_s4 }
   0x6   :  { %14634 = sst [smem:[#allocation43_spill]] %s14620_s19 }
   0x7   :  { %14635 = sst [smem:[#allocation44_spill]] %s14621_s20 }
   0x8   :  { %26 = vsyncpa [#allocation3], 0 }
   0x9   :  { %27 = vsyncpa [#allocation6], 0 }
   0xa   :  { %28 = vsyncpa [#allocation9], 0 }
   0xb   :  { %29 = vsyncpa [#allocation12], 0 }
   0xc   :  { %30 = vsyncpa [#allocation15], 0 }
   0xd   :  { %31 = vsyncpa [#allocation18], 0 }
   0xe   :  { %32 = vsyncpa [#allocation21], 0 }
   0xf   :  { %33 = vsyncpa [#allocation24], 0 }
  0x10   :  { %34 = vsyncpa [#allocation4], 0 }
  0x11   :  { %35 = vsyncpa [#allocation27], 0  ;;  %s12814_s1 = smov [#allocation5]   ;;  %s14636_s2 = sld [smem:[#allocation41_spill]] }
  0x12   :  { %s55_s22 = sshll.u32 %s12814_s1, 4  ;;  %s56_s22 = int_to_ptr.vmem [resolvable:$true] %s55_s22 }
  0x17   :  { %s12442_s25 = scalar_lea.hbm %s14636_s2, 1536 }
  0x18   :  { %p12443_p0 = scmp.ne.s32.totalorder %s14636_s2, %s12442_s25  ;;  %p12446_p1 = scmp.lt.u32.totalorder %s12442_s25, %s14636_s2 }
  0x1a   :  { %p12448_p2 = pnand %p12446_p1, %p12443_p0 }
  0x1c   :  { %12451 = shalt.err (!%p12448_p2)
}
  0x1d   :  { %s12452_s4 = scalar_lea.vmem %s56_s22, 1536  ;;  %p12457_p4 = scmp.lt.s32.totalorder %s56_s22, %s56_s22 }
  0x1e   :  { %p12453_p3 = scmp.ne.s32.totalorder %s56_s22, %s12452_s4  ;;  %p12458_p5 = scmp.lt.s32.totalorder %s12452_s4, %s12452_s4 }
  0x20   :  { %p12459_p6 = por %p12458_p5, %p12457_p4 }
  0x22   :  { %p12460_p7 = pnand %p12459_p6, %p12453_p3 }
  0x24   :  { %12463 = shalt.err (!%p12460_p7)
}
  0x25   :  { %s12815_s29 = smov 384   ;;  %s12816_s30 = smov 24  }
  0x26   :  { %61 = dma.hbm_to_vmem [thread:$0]  %s14636_s2, 1536, %s56_s22, [#allocation6], %s12815_s29, %s12815_s29, %s12816_s30  }
  0x27   :  { %s12817_s1 = smov [#allocation8]   ;;  %s12818_s24 = smov [#allocation11]  }
  0x28   :  { %s78_s23 = sshll.u32 %s12817_s1, 4  ;;  %s99_s25 = sshll.u32 %s12818_s24, 4  ;;  %s79_s23 = int_to_ptr.vmem [resolvable:$true] %s78_s23  ;;  %s100_s25 = int_to_ptr.vmem [resolvable:$true] %s99_s25 }
  0x29   :  { %s12464_s27 = scalar_lea.hbm %s14606_s5, 48 }
  0x2a   :  { %p12465_p8 = scmp.ne.s32.totalorder %s14606_s5, %s12464_s27  ;;  %p12468_p9 = scmp.lt.u32.totalorder %s12464_s27, %s14606_s5 }
  0x2c   :  { %p12470_p10 = pnand %p12468_p9, %p12465_p8 }
  0x2e   :  { %12473 = shalt.err (!%p12470_p10)
}
  0x2f   :  { %s12474_s22 = scalar_lea.vmem %s79_s23, 48  ;;  %s12478_s2 = scalar_lea.vmem %s79_s23, 64 }
  0x30   :  { %p12475_p11 = scmp.ne.s32.totalorder %s79_s23, %s12474_s22  ;;  %p12479_p12 = scmp.lt.s32.totalorder %s79_s23, %s79_s23 }
  0x31   :  { %p12480_p13 = scmp.lt.s32.totalorder %s12478_s2, %s12474_s22 }
  0x33   :  { %p12481_p0 = por %p12480_p13, %p12479_p12 }
  0x35   :  { %p12482_p1 = pnand %p12481_p0, %p12475_p11 }
  0x37   :  { %12485 = shalt.err (!%p12482_p1)
}
  0x38   :  { %81 = dma.hbm_to_vmem [thread:$0]  %s14606_s5, 48, %s79_s23, [#allocation9]  }
  0x39   :  { %s12486_s19 = scalar_lea.hbm %s14608_s7, 1536 }
  0x3a   :  { %p12487_p2 = scmp.ne.s32.totalorder %s14608_s7, %s12486_s19  ;;  %p12490_p3 = scmp.lt.u32.totalorder %s12486_s19, %s14608_s7 }
  0x3c   :  { %p12492_p4 = pnand %p12490_p3, %p12487_p2 }
  0x3e   :  { %12495 = shalt.err (!%p12492_p4)
}
  0x3f   :  { %s12496_s28 = scalar_lea.vmem %s100_s25, 1536  ;;  %p12501_p6 = scmp.lt.s32.totalorder %s100_s25, %s100_s25 }
  0x40   :  { %p12497_p5 = scmp.ne.s32.totalorder %s100_s25, %s12496_s28  ;;  %p12502_p7 = scmp.lt.s32.totalorder %s12496_s28, %s12496_s28 }
  0x42   :  { %p12503_p8 = por %p12502_p7, %p12501_p6 }
  0x44   :  { %p12504_p9 = pnand %p12503_p8, %p12497_p5 }
  0x46   :  { %12507 = shalt.err (!%p12504_p9)
}
  0x47   :  { %105 = dma.hbm_to_vmem [thread:$0]  %s14608_s7, 1536, %s100_s25, [#allocation12], %s12815_s29, %s12815_s29, %s12816_s30  }
  0x48   :  { %s12819_s4 = smov [#allocation14]   ;;  %s12820_s2 = smov [#allocation17]  }
  0x49   :  { %s122_s22 = sshll.u32 %s12819_s4, 4  ;;  %s143_s0 = sshll.u32 %s12820_s2, 4  ;;  %s123_s22 = int_to_ptr.vmem [resolvable:$true] %s122_s22  ;;  %s144_s0 = int_to_ptr.vmem [resolvable:$true] %s143_s0 }
  0x4a   :  { %s12508_s24 = scalar_lea.hbm %s14610_s9, 48 }
  0x4b   :  { %p12509_p10 = scmp.ne.s32.totalorder %s14610_s9, %s12508_s24  ;;  %p12512_p11 = scmp.lt.u32.totalorder %s12508_s24, %s14610_s9 }
  0x4d   :  { %p12514_p12 = pnand %p12512_p11, %p12509_p10 }
  0x4f   :  { %12517 = shalt.err (!%p12514_p12)
}
  0x50   :  { %s12518_s7 = scalar_lea.vmem %s123_s22, 48  ;;  %s12522_s25 = scalar_lea.vmem %s123_s22, 64 }
  0x51   :  { %p12519_p13 = scmp.ne.s32.totalorder %s123_s22, %s12518_s7  ;;  %p12523_p0 = scmp.lt.s32.totalorder %s123_s22, %s123_s22 }
  0x52   :  { %p12524_p1 = scmp.lt.s32.totalorder %s12522_s25, %s12518_s7 }
  0x54   :  { %p12525_p2 = por %p12524_p1, %p12523_p0 }
  0x56   :  { %p12526_p3 = pnand %p12525_p2, %p12519_p13 }
  0x58   :  { %12529 = shalt.err (!%p12526_p3)
}
  0x59   :  { %125 = dma.hbm_to_vmem [thread:$0]  %s14610_s9, 48, %s123_s22, [#allocation15]  }
  0x5a   :  { %s12530_s4 = scalar_lea.hbm %s14612_s11, 1536 }
  0x5b   :  { %p12531_p4 = scmp.ne.s32.totalorder %s14612_s11, %s12530_s4  ;;  %p12534_p5 = scmp.lt.u32.totalorder %s12530_s4, %s14612_s11 }
  0x5d   :  { %p12536_p6 = pnand %p12534_p5, %p12531_p4 }
  0x5f   :  { %12539 = shalt.err (!%p12536_p6)
}
  0x60   :  { %s12540_s19 = scalar_lea.vmem %s144_s0, 1536  ;;  %p12545_p8 = scmp.lt.s32.totalorder %s144_s0, %s144_s0 }
  0x61   :  { %p12541_p7 = scmp.ne.s32.totalorder %s144_s0, %s12540_s19  ;;  %p12546_p9 = scmp.lt.s32.totalorder %s12540_s19, %s12540_s19 }
  0x63   :  { %p12547_p10 = por %p12546_p9, %p12545_p8 }
  0x65   :  { %p12548_p11 = pnand %p12547_p10, %p12541_p7 }
  0x67   :  { %12551 = shalt.err (!%p12548_p11)
}
  0x68   :  { %149 = dma.hbm_to_vmem [thread:$0]  %s14612_s11, 1536, %s144_s0, [#allocation18], %s12815_s29, %s12815_s29, %s12816_s30  }
  0x69   :  { %s12821_s20 = smov [#allocation20]   ;;  %s12822_s26 = smov [#allocation2]  }
  0x6a   :  { %s166_s3 = sshll.u32 %s12821_s20, 4  ;;  %s42_s7 = sshll.u32 %s12822_s26, 4  ;;  %s167_s3 = int_to_ptr.vmem [resolvable:$true] %s166_s3  ;;  %s43_s7 = int_to_ptr.vmem [resolvable:$true] %s42_s7 }
  0x6b   :  { %s12552_s28 = scalar_lea.hbm %s14614_s13, 48 }
  0x6c   :  { %p12553_p12 = scmp.ne.s32.totalorder %s14614_s13, %s12552_s28  ;;  %p12556_p13 = scmp.lt.u32.totalorder %s12552_s28, %s14614_s13 }
  0x6e   :  { %p12558_p0 = pnand %p12556_p13, %p12553_p12 }
  0x70   :  { %12561 = shalt.err (!%p12558_p0)
}
  0x71   :  { %s12562_s11 = scalar_lea.vmem %s167_s3, 48  ;;  %s12566_s0 = scalar_lea.vmem %s167_s3, 64 }
  0x72   :  { %p12563_p1 = scmp.ne.s32.totalorder %s167_s3, %s12562_s11  ;;  %p12567_p2 = scmp.lt.s32.totalorder %s167_s3, %s167_s3 }
  0x73   :  { %p12568_p3 = scmp.lt.s32.totalorder %s12566_s0, %s12562_s11 }
  0x75   :  { %p12569_p4 = por %p12568_p3, %p12567_p2 }
  0x77   :  { %p12570_p5 = pnand %p12569_p4, %p12563_p1 }
  0x79   :  { %12573 = shalt.err (!%p12570_p5)
}
  0x7a   :  { %169 = dma.hbm_to_vmem [thread:$0]  %s14614_s13, 48, %s167_s3, [#allocation21]  }
  0x7b   :  { %s14637_s9 = sld [smem:[#allocation38_spill]] }
  0x81   :  { %s12574_s22 = scalar_lea.hbm %s14637_s9, 128 }
  0x82   :  { %p12575_p6 = scmp.ne.s32.totalorder %s14637_s9, %s12574_s22  ;;  %p12578_p7 = scmp.lt.u32.totalorder %s12574_s22, %s14637_s9 }
  0x84   :  { %p12580_p8 = pnand %p12578_p7, %p12575_p6 }
  0x86   :  { %12583 = shalt.err (!%p12580_p8)
}
  0x87   :  { %s12584_s28 = scalar_lea.vmem %s43_s7, 128  ;;  %p12589_p10 = scmp.lt.s32.totalorder %s43_s7, %s43_s7 }
  0x88   :  { %p12585_p9 = scmp.ne.s32.totalorder %s43_s7, %s12584_s28  ;;  %p12590_p11 = scmp.lt.s32.totalorder %s12584_s28, %s12584_s28 }
  0x8a   :  { %p12591_p12 = por %p12590_p11, %p12589_p10 }
  0x8c   :  { %p12592_p13 = pnand %p12591_p12, %p12585_p9 }
  0x8e   :  { %12595 = shalt.err (!%p12592_p13)
}
  0x8f   :  { %45 = dma.hbm_to_vmem [thread:$0]  %s14637_s9, 128, %s43_s7, [#allocation3]  }
  0x90   :  { %s12823_s5 = smov [#allocation7]   ;;  %s12824_s4 = smov [#allocation10]  }
  0x91   :  { %s68_s23 = sshll.u32 %s12823_s5, 4  ;;  %s87_s2 = sshll.u32 %s12824_s4, 4  ;;  %s69_s23 = int_to_ptr.vmem [resolvable:$true] %s68_s23  ;;  %s88_s2 = int_to_ptr.vmem [resolvable:$true] %s87_s2 }
  0x92   :  { %s14638_s21 = sld [smem:[#allocation42_spill]] }
  0x98   :  { %s12596_s1 = scalar_lea.hbm %s14638_s21, 48 }
  0x99   :  { %p12597_p0 = scmp.ne.s32.totalorder %s14638_s21, %s12596_s1  ;;  %p12600_p1 = scmp.lt.u32.totalorder %s12596_s1, %s14638_s21 }
  0x9b   :  { %p12602_p2 = pnand %p12600_p1, %p12597_p0 }
  0x9d   :  { %12605 = shalt.err (!%p12602_p2)
}
  0x9e   :  { %s12606_s7 = scalar_lea.vmem %s69_s23, 48  ;;  %s12610_s9 = scalar_lea.vmem %s69_s23, 64 }
  0x9f   :  { %p12607_p3 = scmp.ne.s32.totalorder %s69_s23, %s12606_s7  ;;  %p12611_p4 = scmp.lt.s32.totalorder %s69_s23, %s69_s23 }
  0xa0   :  { %p12612_p5 = scmp.lt.s32.totalorder %s12610_s9, %s12606_s7 }
  0xa2   :  { %p12613_p6 = por %p12612_p5, %p12611_p4 }
  0xa4   :  { %p12614_p7 = pnand %p12613_p6, %p12607_p3 }
  0xa6   :  { %12617 = shalt.err (!%p12614_p7)
}
  0xa7   :  { %71 = dma.hbm_to_vmem [thread:$0]  %s14638_s21, 48, %s69_s23, [#allocation6]  }
  0xa8   :  { %s12618_s13 = scalar_lea.hbm %s14607_s6, 1536 }
  0xa9   :  { %p12619_p8 = scmp.ne.s32.totalorder %s14607_s6, %s12618_s13  ;;  %p12622_p9 = scmp.lt.u32.totalorder %s12618_s13, %s14607_s6 }
  0xab   :  { %p12624_p10 = pnand %p12622_p9, %p12619_p8 }
  0xad   :  { %12627 = shalt.err (!%p12624_p10)
}
  0xae   :  { %s12628_s0 = scalar_lea.vmem %s88_s2, 1536  ;;  %p12633_p12 = scmp.lt.s32.totalorder %s88_s2, %s88_s2 }
  0xaf   :  { %p12629_p11 = scmp.ne.s32.totalorder %s88_s2, %s12628_s0  ;;  %p12634_p13 = scmp.lt.s32.totalorder %s12628_s0, %s12628_s0 }
  0xb1   :  { %p12635_p0 = por %p12634_p13, %p12633_p12 }
  0xb3   :  { %p12636_p1 = pnand %p12635_p0, %p12629_p11 }
  0xb5   :  { %12639 = shalt.err (!%p12636_p1)
}
  0xb6   :  { %93 = dma.hbm_to_vmem [thread:$0]  %s14607_s6, 1536, %s88_s2, [#allocation9], %s12815_s29, %s12815_s29, %s12816_s30  }
  0xb7   :  { %s12825_s1 = smov [#allocation13]   ;;  %s12826_s19 = smov [#allocation16]  }
  0xb8   :  { %s112_s24 = sshll.u32 %s12825_s1, 4  ;;  %s131_s22 = sshll.u32 %s12826_s19, 4  ;;  %s113_s24 = int_to_ptr.vmem [resolvable:$true] %s112_s24  ;;  %s132_s22 = int_to_ptr.vmem [resolvable:$true] %s131_s22 }
  0xb9   :  { %s12640_s9 = scalar_lea.hbm %s14609_s8, 48 }
  0xba   :  { %p12641_p2 = scmp.ne.s32.totalorder %s14609_s8, %s12640_s9  ;;  %p12644_p3 = scmp.lt.u32.totalorder %s12640_s9, %s14609_s8 }
  0xbc   :  { %p12646_p4 = pnand %p12644_p3, %p12641_p2 }
  0xbe   :  { %12649 = shalt.err (!%p12646_p4)
}
  0xbf   :  { %s12650_s6 = scalar_lea.vmem %s113_s24, 48  ;;  %s12654_s2 = scalar_lea.vmem %s113_s24, 64 }
  0xc0   :  { %p12651_p5 = scmp.ne.s32.totalorder %s113_s24, %s12650_s6  ;;  %p12655_p6 = scmp.lt.s32.totalorder %s113_s24, %s113_s24 }
  0xc1   :  { %p12656_p7 = scmp.lt.s32.totalorder %s12654_s2, %s12650_s6 }
  0xc3   :  { %p12657_p8 = por %p12656_p7, %p12655_p6 }
  0xc5   :  { %p12658_p9 = pnand %p12657_p8, %p12651_p5 }
  0xc7   :  { %12661 = shalt.err (!%p12658_p9)
}
  0xc8   :  { %115 = dma.hbm_to_vmem [thread:$0]  %s14609_s8, 48, %s113_s24, [#allocation12]  }
  0xc9   :  { %s12662_s11 = scalar_lea.hbm %s14611_s10, 1536 }
  0xca   :  { %p12663_p10 = scmp.ne.s32.totalorder %s14611_s10, %s12662_s11  ;;  %p12666_p11 = scmp.lt.u32.totalorder %s12662_s11, %s14611_s10 }
  0xcc   :  { %p12668_p12 = pnand %p12666_p11, %p12663_p10 }
  0xce   :  { %12671 = shalt.err (!%p12668_p12)
}
  0xcf   :  { %s12672_s19 = scalar_lea.vmem %s132_s22, 1536  ;;  %p12677_p0 = scmp.lt.s32.totalorder %s132_s22, %s132_s22 }
  0xd0   :  { %p12673_p13 = scmp.ne.s32.totalorder %s132_s22, %s12672_s19  ;;  %p12678_p1 = scmp.lt.s32.totalorder %s12672_s19, %s12672_s19 }
  0xd2   :  { %p12679_p2 = por %p12678_p1, %p12677_p0 }
  0xd4   :  { %p12680_p3 = pnand %p12679_p2, %p12673_p13 }
  0xd6   :  { %12683 = shalt.err (!%p12680_p3)
}
  0xd7   :  { %137 = dma.hbm_to_vmem [thread:$0]  %s14611_s10, 1536, %s132_s22, [#allocation15], %s12815_s29, %s12815_s29, %s12816_s30  }
  0xd8   :  { %s12827_s20 = smov [#allocation19]   ;;  %s12828_s9 = smov [#allocation22]  }
  0xd9   :  { %s156_s7 = sshll.u32 %s12827_s20, 4  ;;  %s177_s26 = sshll.u32 %s12828_s9, 4  ;;  %s157_s7 = int_to_ptr.vmem [resolvable:$true] %s156_s7  ;;  %s178_s26 = int_to_ptr.vmem [resolvable:$true] %s177_s26 }
  0xda   :  { %s12684_s28 = scalar_lea.hbm %s14613_s12, 48 }
  0xdb   :  { %p12685_p4 = scmp.ne.s32.totalorder %s14613_s12, %s12684_s28  ;;  %p12688_p5 = scmp.lt.u32.totalorder %s12684_s28, %s14613_s12 }
  0xdd   :  { %p12690_p6 = pnand %p12688_p5, %p12685_p4 }
  0xdf   :  { %12693 = shalt.err (!%p12690_p6)
}
  0xe0   :  { %s12694_s10 = scalar_lea.vmem %s157_s7, 48  ;;  %s12698_s29 = scalar_lea.vmem %s157_s7, 64 }
  0xe1   :  { %p12695_p7 = scmp.ne.s32.totalorder %s157_s7, %s12694_s10  ;;  %p12699_p8 = scmp.lt.s32.totalorder %s157_s7, %s157_s7 }
  0xe2   :  { %p12700_p9 = scmp.lt.s32.totalorder %s12698_s29, %s12694_s10 }
  0xe4   :  { %p12701_p10 = por %p12700_p9, %p12699_p8 }
  0xe6   :  { %p12702_p11 = pnand %p12701_p10, %p12695_p7 }
  0xe8   :  { %12705 = shalt.err (!%p12702_p11)
}
  0xe9   :  { %159 = dma.hbm_to_vmem [thread:$0]  %s14613_s12, 48, %s157_s7, [#allocation18]  }
  0xea   :  { %s12706_s11 = scalar_lea.hbm %s14616_s15, 512 }
  0xeb   :  { %p12707_p12 = scmp.ne.s32.totalorder %s14616_s15, %s12706_s11  ;;  %p12710_p13 = scmp.lt.u32.totalorder %s12706_s11, %s14616_s15 }
  0xed   :  { %p12712_p0 = pnand %p12710_p13, %p12707_p12 }
  0xef   :  { %12715 = shalt.err (!%p12712_p0)
}
  0xf0   :  { %s12716_s19 = scalar_lea.vmem %s178_s26, 512  ;;  %p12721_p2 = scmp.lt.s32.totalorder %s178_s26, %s178_s26 }
  0xf1   :  { %p12717_p1 = scmp.ne.s32.totalorder %s178_s26, %s12716_s19  ;;  %p12722_p3 = scmp.lt.s32.totalorder %s12716_s19, %s12716_s19 }
  0xf3   :  { %p12723_p4 = por %p12722_p3, %p12721_p2 }
  0xf5   :  { %p12724_p5 = pnand %p12723_p4, %p12717_p1 }
  0xf7   :  { %12727 = shalt.err (!%p12724_p5)
}
  0xf8   :  { %s12829_s12 = smov 128   ;;  %s12830_s8 = smov 8  }
  0xf9   :  { %183 = dma.hbm_to_vmem [thread:$0]  %s14616_s15, 512, %s178_s26, [#allocation21], %s12829_s12, %s12829_s12, %s12830_s8  }
  0xfa   :  { %s12831_s7 = smov [#allocation23]   ;;  %s12728_s28 = scalar_lea.hbm %s14617_s16, 16 }
  0xfb   :  { %s190_s9 = sshll.u32 %s12831_s7, 4  ;;  %p12729_p6 = scmp.ne.s32.totalorder %s14617_s16, %s12728_s28  ;;  %s191_s9 = int_to_ptr.vmem [resolvable:$true] %s190_s9 }
  0xfc   :  { %p12732_p7 = scmp.lt.u32.totalorder %s12728_s28, %s14617_s16 }
  0xfe   :  { %p12734_p8 = pnand %p12732_p7, %p12729_p6 }
 0x100   :  { %12737 = shalt.err (!%p12734_p8)
}
 0x101   :  { %s12738_s10 = scalar_lea.vmem %s191_s9, 16  ;;  %s12742_s15 = scalar_lea.vmem %s191_s9, 32 }
 0x102   :  { %p12739_p9 = scmp.ne.s32.totalorder %s191_s9, %s12738_s10  ;;  %p12743_p10 = scmp.lt.s32.totalorder %s191_s9, %s191_s9 }
 0x103   :  { %p12744_p11 = scmp.lt.s32.totalorder %s12742_s15, %s12738_s10 }
 0x105   :  { %p12745_p12 = por %p12744_p11, %p12743_p10 }
 0x107   :  { %p12746_p13 = pnand %p12745_p12, %p12739_p9 }
 0x109   :  { %12749 = shalt.err (!%p12746_p13)
}
 0x10a   :  { %193 = dma.hbm_to_vmem [thread:$0]  %s14617_s16, 16, %s191_s9, [#allocation24]  }
 0x10b   :  { %12794 = dma.done.wait [#allocation3], 128  }
 0x10c   :  { %12795 = vsyncadd [#allocation3], 4294967168 }
 0x10d   :  { %12796 = dma.done.wait [#allocation6], 1584  }
 0x10e   :  { %12797 = vsyncadd [#allocation6], 4294965712 }
 0x10f   :  { %12798 = dma.done.wait [#allocation9], 1584  }
 0x110   :  { %12799 = vsyncadd [#allocation9], 4294965712 }
 0x111   :  { %12800 = dma.done.wait [#allocation12], 1584  }
 0x112   :  { %12801 = vsyncadd [#allocation12], 4294965712 }
 0x113   :  { %12802 = dma.done.wait [#allocation15], 1584  }
 0x114   :  { %12803 = vsyncadd [#allocation15], 4294965712 }
 0x115   :  { %12804 = dma.done.wait [#allocation18], 1584  }
 0x116   :  { %12805 = vsyncadd [#allocation18], 4294965712 }
 0x117   :  { %12806 = dma.done.wait [#allocation21], 560  }
 0x118   :  { %12807 = vsyncadd [#allocation21], 4294966736 }
 0x119   :  { %12808 = dma.done.wait [#allocation24], 16  }
 0x11a   :  { %12809 = vsyncadd [#allocation24], 4294967280  ;;  %v12832_v0 = vmov 0.0   ;;  %v12833_v1 = vmov 0.0|0.0   ;;  %vm12834_vm0 = vmmov 0   ;;  %s14639_s22 = sld [smem:[#allocation40_spill]]  ;;  %v255_v58 = vlaneseq }
 0x11b   :  { %338 = vmatprep.mubr.f32.mxu0 %v12832_v0  ;;  %11341 = vmatprep.subr.bf16.mxu1 %v12833_v1  ;;  %v416_v13 = vld [vmem:[#allocation10 + $0x8] sm:$0xff]  ;;  %v419_v14 = vld [vmem:[#allocation10 + $0x20] sm:$0xff]  ;;  %v418_v18 = vld [vmem:[#allocation10 + $0x18] sm:$0xff]  ;;  %vm270_vm1 = vcmask 261120   ;;  %vm3446_vm2 = vcmask 1040384   ;;  %vm3448_vm3 = vcmask 1041408  }
 0x11c   :  { %10471 = vmatprep.mubr.msk.f32.mxu1 %vm12834_vm0, %v12832_v0  ;;  %v11347_v16 = vpack.c.bf16 %v419_v14, %v416_v13  ;;  %v415_v17 = vld [vmem:[#allocation10] sm:$0xff]  ;;  %v422_v19 = vld [vmem:[#allocation10 + $0x38] sm:$0xff]  ;;  %v425_v20 = vld [vmem:[#allocation10 + $0x50] sm:$0xff]  ;;  %v256_v60 = vshrl.u32 %v255_v58, 7  ;;  %vm3450_vm4 = vcmask 1042432   ;;  %vm3452_vm5 = vcmask 1043456  }
 0x11d   :  { %v240_v21 = vld [vmem:[#allocation2] sm:$0xff]  ;;  %v11349_v22 = vpack.c.bf16 %v418_v18, %v415_v17  ;;  %v11351_v26 = vpack.c.bf16 %v425_v20, %v422_v19  ;;  %v424_v27 = vld [vmem:[#allocation10 + $0x48] sm:$0xff]  ;;  %v586_v31 = vld [vmem:[#allocation5 + $0x8] sm:$0xff]  ;;  %vm3454_vm6 = vcmask 1044480   ;;  %vm3456_vm7 = vcmask 1045504   ;;  %s14640_s29 = sld [smem:[#allocation39_spill]] }
 0x11e   :  { %v421_v23 = vld [vmem:[#allocation10 + $0x30] sm:$0xff]  ;;  %v589_v32 = vld [vmem:[#allocation5 + $0x20] sm:$0xff]  ;;  %v420_v36 = vld [vmem:[#allocation10 + $0x28] sm:$0xff]  ;;  %vm3458_vm8 = vcmask 1046528   ;;  %vm3481_vm10 = vcmask 523264   ;;  %vm4000_vm11 = vcmask 57344  }
 0x11f   :  { %v11353_v34 = vpack.c.bf16 %v424_v27, %v421_v23  ;;  %v417_v35 = vld [vmem:[#allocation10 + $0x10] sm:$0xff]  ;;  %v13167_v37 = vpack.c.bf16 %v589_v32, %v586_v31  ;;  %v585_v38 = vld [vmem:[#allocation5] sm:$0xff]  ;;  %v595_v41 = vld [vmem:[#allocation5 + $0x50] sm:$0xff]  ;;  %v13240_v27 = vsub.s32 2, %v256_v60  ;;  %vm4012_vm12 = vcmask 64512  }
 0x120   :  { %v242_v2 = vld [vmem:[%s14639_s22 + $0x8] sm:$0xff]  ;;  %v245_v3 = vld [vmem:[%s14639_s22 + $0x20] sm:$0xff]  ;;  %v244_v6 = vld [vmem:[%s14639_s22 + $0x18] sm:$0xff]  ;;  %v11356_v42 = vpack.c.bf16 %v420_v36, %v417_v35  ;;  %vm4318_vm13 = vcmask 516096  }
 0x121   :  { %v241_v4 = vld [vmem:[%s14639_s22] sm:$0xff]  ;;  %v11333_v5 = vpack.c.bf16 %v245_v3, %v242_v2  ;;  %v248_v7 = vld [vmem:[%s14639_s22 + $0x38] sm:$0xff]  ;;  %v251_v8 = vld [vmem:[%s14639_s22 + $0x50] sm:$0xff]  ;;  %v13216_v2 = vsub.s32 0, %v256_v60 }
 0x122   :  { %v11335_v9 = vpack.c.bf16 %v244_v6, %v241_v4  ;;  %v11337_v10 = vpack.c.bf16 %v251_v8, %v248_v7  ;;  %v247_v11 = vld [vmem:[%s14639_s22 + $0x30] sm:$0xff]  ;;  %v250_v12 = vld [vmem:[%s14639_s22 + $0x48] sm:$0xff]  ;;  %v249_v29 = vld [vmem:[%s14639_s22 + $0x40] sm:$0xff]  ;;  %v13220_v6 = vsub.s32 1, %v256_v60 }
 0x123   :  { %11334 = vmatprep.subr.bf16.mxu0 %v11333_v5  ;;  %v11339_v15 = vpack.c.bf16 %v250_v12, %v247_v11  ;;  %v243_v24 = vld [vmem:[%s14639_s22 + $0x10] sm:$0xff]  ;;  %v246_v25 = vld [vmem:[%s14639_s22 + $0x28] sm:$0xff]  ;;  %v252_v30 = vld [vmem:[%s14639_s22 + $0x58] sm:$0xff] }
 0x124   :  { %11336 = vmatpush1.bf16.msra.mxu0 %v11335_v9  ;;  %v11342_v28 = vpack.c.bf16 %v246_v25, %v243_v24  ;;  %v11345_v33 = vpack.c.bf16 %v252_v30, %v249_v29  ;;  %v588_v39 = vld [vmem:[#allocation5 + $0x18] sm:$0xff]  ;;  %v423_v44 = vld [vmem:[#allocation10 + $0x40] sm:$0xff]  ;;  %v426_v45 = vld [vmem:[#allocation10 + $0x58] sm:$0xff] }
 0x125   :  { %11338 = vmatprep.subr.bf16.mxu0 %v11337_v10  ;;  %v592_v40 = vld [vmem:[#allocation5 + $0x38] sm:$0xff]  ;;  %v13170_v43 = vpack.c.bf16 %v588_v39, %v585_v38  ;;  %v591_v47 = vld [vmem:[#allocation5 + $0x30] sm:$0xff]  ;;  %v594_v48 = vld [vmem:[#allocation5 + $0x48] sm:$0xff]  ;;  %v11359_v49 = vpack.c.bf16 %v426_v45, %v423_v44 }
 0x126   :  { %11343 = vmatpush3.bf16.msra.mxu1 %v11342_v28  ;;  %v13174_v46 = vpack.c.bf16 %v595_v41, %v592_v40  ;;  %v13179_v50 = vpack.c.bf16 %v594_v48, %v591_v47  ;;  %v587_v51 = vld [vmem:[#allocation5 + $0x10] sm:$0xff]  ;;  %v590_v52 = vld [vmem:[#allocation5 + $0x28] sm:$0xff]  ;;  %v593_v54 = vld [vmem:[#allocation5 + $0x40] sm:$0xff] }
 0x127   :  { %11344 = vmatprep.subr.bf16.mxu1 %v12833_v1  ;;  %v13186_v53 = vpack.c.bf16 %v590_v52, %v587_v51  ;;  %v596_v55 = vld [vmem:[#allocation5 + $0x58] sm:$0xff]  ;;  %v253_v4 = vld [vmem:[#allocation7] sm:$0x7]  ;;  %v597_v5 = vld [vmem:[#allocation8] sm:$0x7] }
 0x128   :  { %11340 = vmatpush1.bf16.msra.mxu0 %v11339_v15  ;;  %v13194_v56 = vpack.c.bf16 %v596_v55, %v593_v54  ;;  %v258_v7 = vrot.slane %v253_v4, %v13216_v2  ;;  %v13224_v8 = vrot.slane %v597_v5, %v13216_v2  ;;  %v13227_v9 = vrot.slane %v597_v5, %v13220_v6 }
 0x129   :  { %11348 = vmatprep.subr.bf16.mxu0 %v11347_v16  ;;  %v262_v11 = vrot.slane %v253_v4, %v13220_v6  ;;  %v13243_v28 = vrot.slane %v597_v5, %v13240_v27  ;;  %v266_v31 = vrot.slane %v253_v4, %v13240_v27 }
 0x12a   :  { %11346 = vmatpush3.bf16.msra.mxu1 %v11345_v33 }
 0x12b   :  { %9893 = vmatmul.mubr.msk.f32.vlgmr.msra.gmra.mrb[0].mxu0 %vm270_vm1, %v240_v21  ;;  %11355 = vmatprep.subr.bf16.mxu1 %v12833_v1 }
 0x12c   :  { %11350 = vmatpush1.bf16.msra.mxu0 %v11349_v22  ;;  %508 = vmatprep.mubr.f32.mxu0 %v12832_v0 }
 0x12d   :  { %11352 = vmatprep.subr.bf16.mxu0 %v11351_v26  ;;  %10472 = vmatmul.mubr.msk.f32.vlgmr.msra.gmra.mrb[0].mxu1 %vm270_vm1, %v240_v21 }
 0x12e   :  { %11357 = vmatpush3.bf16.msra.mxu1 %v11356_v42  ;;  %10482 = vmatprep.mubr.msk.f32.mxu1 %vm12834_vm0, %v12832_v0 }
 0x12f   :  { %11358 = vmatprep.subr.bf16.mxu1 %v12833_v1 }
 0x130   :  { %11354 = vmatpush1.bf16.msra.mxu0 %v11353_v34 }
 0x131   :  { %11362 = vmatprep.subr.bf16.mxu0 %v13167_v37 }
 0x132   :  { %11360 = vmatpush3.bf16.msra.mxu1 %v11359_v49 }
 0x133   :  { %9895 = vmatmul.mubr.msk.f32.vlgmr.msra.gmra.mrb[2].mxu0 %vm270_vm1, %v240_v21  ;;  %11369 = vmatprep.subr.bf16.mxu1 %v12833_v1 }
 0x134   :  { %11364 = vmatpush1.bf16.msra.mxu0 %v13170_v43  ;;  %681 = vmatprep.mubr.f32.mxu0 %v12832_v0 }
 0x135   :  { %11366 = vmatprep.subr.bf16.mxu0 %v13174_v46  ;;  %10483 = vmatmul.mubr.msk.f32.vlgmr.msra.gmra.mrb[2].mxu1 %vm270_vm1, %v240_v21 }
 0x136   :  { %11371 = vmatpush3.bf16.msra.mxu1 %v13186_v53  ;;  %10493 = vmatprep.mubr.msk.f32.mxu1 %vm12834_vm0, %v12832_v0 }
 0x137   :  { %11372 = vmatprep.subr.bf16.mxu1 %v12833_v1 }
 0x138   :  { %11368 = vmatpush1.bf16.msra.mxu0 %v13179_v50 }
 0x139   :  { %11376 = vmatprep.subr.bf16.mxu0 %v13167_v37 }
 0x13a   :  { %11374 = vmatpush3.bf16.msra.mxu1 %v13194_v56 }
 0x13b   :  { %682 = vmatmul.mubr.f32.vlgmr.msra.gmra.mrb[4].mxu0 %v12832_v0  ;;  %11383 = vmatprep.subr.bf16.mxu1 %v12833_v1 }
 0x13c   :  { %11378 = vmatpush1.bf16.msra.mxu0 %v13170_v43  ;;  %846 = vmatprep.mubr.f32.mxu0 %v12832_v0 }
 0x13d   :  { %11380 = vmatprep.subr.bf16.mxu0 %v13174_v46  ;;  %10494 = vmatmul.mubr.f32.vlgmr.msra.gmra.mrb[4].mxu1 %v12832_v0 }
 0x13e   :  { %11385 = vmatpush3.bf16.msra.mxu1 %v13186_v53  ;;  %10504 = vmatprep.mubr.msk.f32.mxu1 %vm12834_vm0, %v12832_v0 }
 0x13f   :  { %11386 = vmatprep.subr.bf16.mxu1 %v12833_v1 }
 0x140   :  { %11382 = vmatpush1.bf16.msra.mxu0 %v13179_v50 }
 0x141   :  { %11390 = vmatprep.subr.bf16.mxu0 %v13167_v37 }
 0x142   :  { %11388 = vmatpush3.bf16.msra.mxu1 %v13194_v56 }
 0x143   :  { %11397 = vmatprep.subr.bf16.mxu1 %v12833_v1 }
 0x1fe   :  { %v340_v57 = vpop.f32.mrb[0].mxu0 }
 0x1ff   :  { %v342_v59 = vpop.f32.mrb[1].mxu0  ;;  %v13232_v14 = vadd.f32 %v340_v57, %v258_v7 }
 0x200   :  { %v411_v61 = vpop.f32.mrb[0].mxu1  ;;  %v13237_v19 = vadd.f32 %v342_v59, %v262_v11 }
 0x201   :  { %v10473_v63 = vpop.f32.mrb[1].mxu1  ;;  %v13247_v34 = vadd.f32 %v411_v61, %v266_v31 }
 0x206   :  { %v13214_v62 = vpop.f32.mrb[2].mxu0 }
 0x207   :  { %v13218_v3 = vpop.f32.mrb[3].mxu0 }
 0x208   :  { %v13229_v10 = vpop.f32.mrb[2].mxu1 }
 0x209   :  { %v10484_v13 = vpop.f32.mrb[3].mxu1 }
 0x20e   :  { %v683_v12 = vpop.f32.mrb[4].mxu0 }
 0x20f   :  { %v684_v15 = vadd.f32 %v683_v12, %v13224_v8  ;;  %v685_v16 = vpop.f32.mrb[5].mxu0 }
 0x210   :  { %v686_v17 = vadd.f32 %v685_v16, %v13227_v9  ;;  %v754_v22 = vpop.f32.mrb[4].mxu1 }
 0x211   :  { %v758_v18 = vadd.f32 %v684_v15, %v13232_v14  ;;  %v10495_v23 = vpop.f32.mrb[5].mxu1  ;;  %v755_v32 = vadd.f32 %v754_v22, %v13243_v28 }
 0x212   :  { %v765_v21 = vadd.f32 %v686_v17, %v13237_v19 }
 0x213   :  { %v9897_v20 = vmul.f32 -1.442695, %v758_v18 }
 0x214   :  { %v9898_v24 = vmul.f32 -1.442695, %v765_v21 }
 0x215   :  { %12120 = vpow2.f32 %v9897_v20 }
 0x216   :  { %12122 = vpow2.f32 %v9898_v24 }
 0x21f   :  { %v12121_v25 = vpop.eup %12120 }
 0x220   :  { %v762_v26 = vadd.f32 1.0, %v12121_v25  ;;  %v12123_v29 = vpop.eup %12122 }
 0x221   :  { %v769_v30 = vadd.f32 1.0, %v12123_v29 }
 0x222   :  { %12124 = vrcp.f32 %v762_v26 }
 0x223   :  { %12126 = vrcp.f32 %v769_v30 }
 0x22c   :  { %v12125_v33 = vpop.eup %12124 }
 0x22d   :  { %v772_v35 = vmul.f32 %v12125_v33, %v755_v32  ;;  %v12127_v38 = vpop.eup %12126 }
 0x22e   :  { %v775_v39 = vsub.f32 1.0, %v12127_v38  ;;  %v777_v42 = vmul.f32 0.0, %v12127_v38 }
 0x22f   :  { %v773_v36 = vadd.f32 %v772_v35, %v13247_v34 }
 0x231   :  { %12128 = vtanh.f32 %v773_v36 }
 0x23b   :  { %v12129_v40 = vpop.eup %12128 }
 0x23c   :  { %v776_v41 = vmul.f32 %v12129_v40, %v775_v39 }
 0x23e   :  { %v13250_v44 = vadd.f32 %v777_v42, %v776_v41 }
 0x240   :  { %9899 = vmatmul.mubr.msk.f32.vlgmr.msra.gmra.mrb[6].mxu0 %vm270_vm1, %v13250_v44  ;;  %10505 = vmatmul.mubr.msk.f32.vlgmr.msra.gmra.mrb[6].mxu1 %vm270_vm1, %v13250_v44  ;;  %v951_v18 = vrot.slane %v13250_v44, 7 }
 0x241   :  { %11392 = vmatpush1.bf16.msra.mxu0 %v13170_v43  ;;  %11399 = vmatpush3.bf16.msra.mxu1 %v13186_v53 }
 0x242   :  { %11394 = vmatprep.subr.bf16.mxu0 %v13174_v46  ;;  %11400 = vmatprep.subr.bf16.mxu1 %v12833_v1 }
 0x243   :  { %1023 = vmatprep.mubr.f32.mxu0 %v12832_v0  ;;  %10515 = vmatprep.mubr.msk.f32.mxu1 %vm12834_vm0, %v12832_v0 }
 0x245   :  { %11396 = vmatpush1.bf16.msra.mxu0 %v13179_v50  ;;  %11402 = vmatpush3.bf16.msra.mxu1 %v13194_v56 }
 0x246   :  { %11404 = vmatprep.subr.bf16.mxu0 %v13167_v37  ;;  %11411 = vmatprep.subr.bf16.mxu1 %v12833_v1 }
 0x313   :  { %v848_v45 = vpop.f32.mrb[6].mxu0  ;;  %v919_v47 = vpop.f32.mrb[6].mxu1 }
 0x314   :  { %v849_v48 = vadd.f32 %v848_v45, %v13224_v8  ;;  %v850_v49 = vpop.f32.mrb[7].mxu0  ;;  %v10506_v51 = vpop.f32.mrb[7].mxu1  ;;  %v920_v7 = vadd.f32 %v919_v47, %v13243_v28 }
 0x315   :  { %v851_v52 = vadd.f32 %v850_v49, %v13227_v9 }
 0x316   :  { %v924_v54 = vrot.slane %v849_v48, 7  ;;  %v944_v12 = vrot.slane %v920_v7, 7 }
 0x317   :  { %v934_v55 = vrot.slane %v851_v52, 7 }
 0x318   :  { %v926_v57 = vadd.f32 %v924_v54, %v13232_v14 }
 0x319   :  { %v936_v60 = vadd.f32 %v934_v55, %v13237_v19 }
 0x31a   :  { %v9901_v59 = vmul.f32 -1.442695, %v926_v57 }
 0x31b   :  { %v9902_v61 = vmul.f32 -1.442695, %v936_v60 }
 0x31c   :  { %12130 = vpow2.f32 %v9901_v59 }
 0x31d   :  { %12132 = vpow2.f32 %v9902_v61 }
 0x326   :  { %v12131_v63 = vpop.eup %12130 }
 0x327   :  { %v930_v4 = vadd.f32 1.0, %v12131_v63  ;;  %v12133_v5 = vpop.eup %12132 }
 0x328   :  { %v940_v11 = vadd.f32 1.0, %v12133_v5 }
 0x329   :  { %12134 = vrcp.f32 %v930_v4 }
 0x32a   :  { %12136 = vrcp.f32 %v940_v11 }
 0x333   :  { %v12135_v13 = vpop.eup %12134 }
 0x334   :  { %v946_v15 = vmul.f32 %v12135_v13, %v944_v12  ;;  %v12137_v17 = vpop.eup %12136 }
 0x335   :  { %v949_v20 = vsub.f32 1.0, %v12137_v17  ;;  %v953_v22 = vmul.f32 %v12137_v17, %v951_v18 }
 0x336   :  { %v947_v16 = vadd.f32 %v946_v15, %v13247_v34 }
 0x338   :  { %12138 = vtanh.f32 %v947_v16 }
 0x342   :  { %v12139_v21 = vpop.eup %12138 }
 0x343   :  { %v950_v23 = vmul.f32 %v12139_v21, %v949_v20 }
 0x345   :  { %v954_v24 = vadd.f32 %v953_v22, %v950_v23 }
 0x347   :  { %v956_v25 = vrot.slane %v954_v24, 1  ;;  %v1128_v54 = vrot.slane %v954_v24, 7  ;;  %v3447_v7 = vsel %vm3446_vm2, %v13250_v44, %v954_v24 }
 0x349   :  { %9903 = vmatmul.mubr.msk.f32.vlgmr.msra.gmra.mrb[8].mxu0 %vm270_vm1, %v956_v25  ;;  %10516 = vmatmul.mubr.msk.f32.vlgmr.msra.gmra.mrb[8].mxu1 %vm270_vm1, %v956_v25 }
 0x34a   :  { %11406 = vmatpush1.bf16.msra.mxu0 %v13170_v43  ;;  %11413 = vmatpush3.bf16.msra.mxu1 %v13186_v53 }
 0x34b   :  { %11408 = vmatprep.subr.bf16.mxu0 %v13174_v46  ;;  %11414 = vmatprep.subr.bf16.mxu1 %v12833_v1 }
 0x34c   :  { %1200 = vmatprep.mubr.f32.mxu0 %v12832_v0  ;;  %10526 = vmatprep.mubr.msk.f32.mxu1 %vm12834_vm0, %v12832_v0 }
 0x34e   :  { %11410 = vmatpush1.bf16.msra.mxu0 %v13179_v50  ;;  %11416 = vmatpush3.bf16.msra.mxu1 %v13194_v56 }
 0x34f   :  { %11418 = vmatprep.subr.bf16.mxu0 %v13167_v37  ;;  %11425 = vmatprep.subr.bf16.mxu1 %v12833_v1 }
 0x41c   :  { %v1025_v26 = vpop.f32.mrb[8].mxu0  ;;  %v1096_v29 = vpop.f32.mrb[8].mxu1 }
 0x41d   :  { %v1026_v30 = vadd.f32 %v1025_v26, %v13224_v8  ;;  %v1027_v31 = vpop.f32.mrb[9].mxu0  ;;  %v10517_v32 = vpop.f32.mrb[9].mxu1  ;;  %v1097_v49 = vadd.f32 %v1096_v29, %v13243_v28 }
 0x41e   :  { %v1028_v33 = vadd.f32 %v1027_v31, %v13227_v9 }
 0x41f   :  { %v1101_v35 = vrot.slane %v1026_v30, 6  ;;  %v1121_v51 = vrot.slane %v1097_v49, 6 }
 0x420   :  { %v1111_v36 = vrot.slane %v1028_v33, 6 }
 0x421   :  { %v1103_v38 = vadd.f32 %v1101_v35, %v13232_v14 }
 0x422   :  { %v1113_v39 = vadd.f32 %v1111_v36, %v13237_v19 }
 0x423   :  { %v9905_v40 = vmul.f32 -1.442695, %v1103_v38 }
 0x424   :  { %v9906_v41 = vmul.f32 -1.442695, %v1113_v39 }
 0x425   :  { %12140 = vpow2.f32 %v9905_v40 }
 0x426   :  { %12142 = vpow2.f32 %v9906_v41 }
 0x42f   :  { %v12141_v42 = vpop.eup %12140 }
 0x430   :  { %v12143_v45 = vpop.eup %12142  ;;  %v1107_v47 = vadd.f32 1.0, %v12141_v42 }
 0x431   :  { %v1117_v48 = vadd.f32 1.0, %v12143_v45 }
 0x432   :  { %12144 = vrcp.f32 %v1107_v47 }
 0x433   :  { %12146 = vrcp.f32 %v1117_v48 }
 0x43c   :  { %v12145_v52 = vpop.eup %12144 }
 0x43d   :  { %v12147_v55 = vpop.eup %12146  ;;  %v1123_v57 = vmul.f32 %v12145_v52, %v1121_v51 }
 0x43e   :  { %v1130_v59 = vmul.f32 %v12147_v55, %v1128_v54  ;;  %v1126_v61 = vsub.f32 1.0, %v12147_v55 }
 0x43f   :  { %v1124_v60 = vadd.f32 %v1123_v57, %v13247_v34 }
 0x441   :  { %12148 = vtanh.f32 %v1124_v60 }
 0x44b   :  { %v12149_v63 = vpop.eup %12148 }
 0x44c   :  { %v1127_v4 = vmul.f32 %v12149_v63, %v1126_v61 }
 0x44e   :  { %v1131_v5 = vadd.f32 %v1130_v59, %v1127_v4 }
 0x450   :  { %v1133_v11 = vrot.slane %v1131_v5, 2  ;;  %v3449_v12 = vsel %vm3448_vm3, %v3447_v7, %v1131_v5  ;;  %v1305_v36 = vrot.slane %v1131_v5, 7 }
 0x452   :  { %9907 = vmatmul.mubr.msk.f32.vlgmr.msra.gmra.mrb[10].mxu0 %vm270_vm1, %v1133_v11  ;;  %10527 = vmatmul.mubr.msk.f32.vlgmr.msra.gmra.mrb[10].mxu1 %vm270_vm1, %v1133_v11 }
 0x453   :  { %11420 = vmatpush1.bf16.msra.mxu0 %v13170_v43  ;;  %11427 = vmatpush3.bf16.msra.mxu1 %v13186_v53 }
 0x454   :  { %11422 = vmatprep.subr.bf16.mxu0 %v13174_v46  ;;  %11428 = vmatprep.subr.bf16.mxu1 %v12833_v1 }
 0x455   :  { %1377 = vmatprep.mubr.f32.mxu0 %v12832_v0  ;;  %10537 = vmatprep.mubr.msk.f32.mxu1 %vm12834_vm0, %v12832_v0 }
 0x457   :  { %11424 = vmatpush1.bf16.msra.mxu0 %v13179_v50  ;;  %11430 = vmatpush3.bf16.msra.mxu1 %v13194_v56 }
 0x458   :  { %11432 = vmatprep.subr.bf16.mxu0 %v13167_v37  ;;  %11439 = vmatprep.subr.bf16.mxu1 %v12833_v1 }
 0x525   :  { %v1202_v44 = vpop.f32.mrb[10].mxu0  ;;  %v1273_v13 = vpop.f32.mrb[10].mxu1 }
 0x526   :  { %v1203_v15 = vadd.f32 %v1202_v44, %v13224_v8  ;;  %v1204_v16 = vpop.f32.mrb[11].mxu0  ;;  %v10528_v17 = vpop.f32.mrb[11].mxu1  ;;  %v1274_v32 = vadd.f32 %v1273_v13, %v13243_v28 }
 0x527   :  { %v1205_v18 = vadd.f32 %v1204_v16, %v13227_v9 }
 0x528   :  { %v1278_v20 = vrot.slane %v1203_v15, 5  ;;  %v1298_v33 = vrot.slane %v1274_v32, 5 }
 0x529   :  { %v1288_v21 = vrot.slane %v1205_v18, 5 }
 0x52a   :  { %v1280_v22 = vadd.f32 %v1278_v20, %v13232_v14 }
 0x52b   :  { %v1290_v23 = vadd.f32 %v1288_v21, %v13237_v19 }
 0x52c   :  { %v9909_v24 = vmul.f32 -1.442695, %v1280_v22 }
 0x52d   :  { %v9910_v25 = vmul.f32 -1.442695, %v1290_v23 }
 0x52e   :  { %12150 = vpow2.f32 %v9909_v24 }
 0x52f   :  { %12152 = vpow2.f32 %v9910_v25 }
 0x538   :  { %v12151_v26 = vpop.eup %12150 }
 0x539   :  { %v12153_v29 = vpop.eup %12152  ;;  %v1284_v30 = vadd.f32 1.0, %v12151_v26 }
 0x53a   :  { %v1294_v31 = vadd.f32 1.0, %v12153_v29 }
 0x53b   :  { %12154 = vrcp.f32 %v1284_v30 }
 0x53c   :  { %12156 = vrcp.f32 %v1294_v31 }
 0x545   :  { %v12155_v35 = vpop.eup %12154 }
 0x546   :  { %v12157_v38 = vpop.eup %12156  ;;  %v1300_v39 = vmul.f32 %v12155_v35, %v1298_v33 }
 0x547   :  { %v1307_v40 = vmul.f32 %v12157_v38, %v1305_v36  ;;  %v1303_v42 = vsub.f32 1.0, %v12157_v38 }
 0x548   :  { %v1301_v41 = vadd.f32 %v1300_v39, %v13247_v34 }
 0x54a   :  { %12158 = vtanh.f32 %v1301_v41 }
 0x554   :  { %v12159_v45 = vpop.eup %12158 }
 0x555   :  { %v1304_v47 = vmul.f32 %v12159_v45, %v1303_v42 }
 0x557   :  { %v1308_v48 = vadd.f32 %v1307_v40, %v1304_v47 }
 0x559   :  { %v1310_v49 = vrot.slane %v1308_v48, 3  ;;  %v3451_v51 = vsel %vm3450_vm4, %v3449_v12, %v1308_v48  ;;  %v1482_v20 = vrot.slane %v1308_v48, 7 }
 0x55b   :  { %9911 = vmatmul.mubr.msk.f32.vlgmr.msra.gmra.mrb[12].mxu0 %vm270_vm1, %v1310_v49  ;;  %10538 = vmatmul.mubr.msk.f32.vlgmr.msra.gmra.mrb[12].mxu1 %vm270_vm1, %v1310_v49 }
 0x55c   :  { %11434 = vmatpush1.bf16.msra.mxu0 %v13170_v43  ;;  %11441 = vmatpush3.bf16.msra.mxu1 %v13186_v53 }
 0x55d   :  { %11436 = vmatprep.subr.bf16.mxu0 %v13174_v46  ;;  %11442 = vmatprep.subr.bf16.mxu1 %v12833_v1 }
 0x55e   :  { %1554 = vmatprep.mubr.f32.mxu0 %v12832_v0  ;;  %10548 = vmatprep.mubr.msk.f32.mxu1 %vm12834_vm0, %v12832_v0 }
 0x560   :  { %11438 = vmatpush1.bf16.msra.mxu0 %v13179_v50  ;;  %11444 = vmatpush3.bf16.msra.mxu1 %v13194_v56 }
 0x561   :  { %11446 = vmatprep.subr.bf16.mxu0 %v13167_v37  ;;  %11453 = vmatprep.subr.bf16.mxu1 %v12833_v1 }
 0x62e   :  { %v1379_v52 = vpop.f32.mrb[12].mxu0  ;;  %v1450_v54 = vpop.f32.mrb[12].mxu1 }
 0x62f   :  { %v1380_v55 = vadd.f32 %v1379_v52, %v13224_v8  ;;  %v1381_v57 = vpop.f32.mrb[13].mxu0  ;;  %v10539_v59 = vpop.f32.mrb[13].mxu1  ;;  %v1451_v16 = vadd.f32 %v1450_v54, %v13243_v28 }
 0x630   :  { %v1382_v60 = vadd.f32 %v1381_v57, %v13227_v9 }
 0x631   :  { %v1455_v61 = vrot.slane %v1380_v55, 4  ;;  %v1475_v17 = vrot.slane %v1451_v16, 4  ;;  %v2018_v16 = vld [vmem:[#allocation11 + $0x8] sm:$0xff] }
 0x632   :  { %v1465_v63 = vrot.slane %v1382_v60, 4 }
 0x633   :  { %v1457_v4 = vadd.f32 %v1455_v61, %v13232_v14 }
 0x634   :  { %v1467_v5 = vadd.f32 %v1465_v63, %v13237_v19 }
 0x635   :  { %v9913_v7 = vmul.f32 -1.442695, %v1457_v4 }
 0x636   :  { %v9914_v11 = vmul.f32 -1.442695, %v1467_v5 }
 0x637   :  { %12160 = vpow2.f32 %v9913_v7 }
 0x638   :  { %12162 = vpow2.f32 %v9914_v11 }
 0x641   :  { %v12161_v12 = vpop.eup %12160 }
 0x642   :  { %v12163_v44 = vpop.eup %12162  ;;  %v1461_v13 = vadd.f32 1.0, %v12161_v12 }
 0x643   :  { %v1471_v15 = vadd.f32 1.0, %v12163_v44 }
 0x644   :  { %12164 = vrcp.f32 %v1461_v13 }
 0x645   :  { %12166 = vrcp.f32 %v1471_v15 }
 0x64e   :  { %v12165_v18 = vpop.eup %12164 }
 0x64f   :  { %v12167_v21 = vpop.eup %12166  ;;  %v1477_v22 = vmul.f32 %v12165_v18, %v1475_v17  ;;  %v2021_v17 = vld [vmem:[#allocation11 + $0x20] sm:$0xff] }
 0x650   :  { %v1484_v23 = vmul.f32 %v12167_v21, %v1482_v20  ;;  %v1480_v25 = vsub.f32 1.0, %v12167_v21 }
 0x651   :  { %v1478_v24 = vadd.f32 %v1477_v22, %v13247_v34 }
 0x653   :  { %12168 = vtanh.f32 %v1478_v24 }
 0x65d   :  { %v12169_v26 = vpop.eup %12168 }
 0x65e   :  { %v1481_v29 = vmul.f32 %v12169_v26, %v1480_v25 }
 0x660   :  { %v1485_v30 = vadd.f32 %v1484_v23, %v1481_v29 }
 0x662   :  { %v1487_v31 = vrot.slane %v1485_v30, 4  ;;  %v3453_v32 = vsel %vm3452_vm5, %v3451_v51, %v1485_v30  ;;  %v1659_v60 = vrot.slane %v1485_v30, 7 }
 0x664   :  { %9915 = vmatmul.mubr.msk.f32.vlgmr.msra.gmra.mrb[14].mxu0 %vm270_vm1, %v1487_v31  ;;  %10549 = vmatmul.mubr.msk.f32.vlgmr.msra.gmra.mrb[14].mxu1 %vm270_vm1, %v1487_v31 }
 0x665   :  { %11448 = vmatpush1.bf16.msra.mxu0 %v13170_v43  ;;  %11455 = vmatpush3.bf16.msra.mxu1 %v13186_v53 }
 0x666   :  { %11450 = vmatprep.subr.bf16.mxu0 %v13174_v46  ;;  %11456 = vmatprep.subr.bf16.mxu1 %v12833_v1 }
 0x667   :  { %1731 = vmatprep.mubr.f32.mxu0 %v12832_v0  ;;  %10559 = vmatprep.mubr.msk.f32.mxu1 %vm12834_vm0, %v12832_v0 }
 0x669   :  { %11452 = vmatpush1.bf16.msra.mxu0 %v13179_v50  ;;  %11458 = vmatpush3.bf16.msra.mxu1 %v13194_v56 }
 0x66a   :  { %11460 = vmatprep.subr.bf16.mxu0 %v13167_v37  ;;  %11467 = vmatprep.subr.bf16.mxu1 %v12833_v1 }
 0x737   :  { %v1556_v33 = vpop.f32.mrb[14].mxu0  ;;  %v1627_v35 = vpop.f32.mrb[14].mxu1 }
 0x738   :  { %v1557_v36 = vadd.f32 %v1556_v33, %v13224_v8  ;;  %v1558_v38 = vpop.f32.mrb[15].mxu0  ;;  %v10550_v39 = vpop.f32.mrb[15].mxu1  ;;  %v1628_v55 = vadd.f32 %v1627_v35, %v13243_v28 }
 0x739   :  { %v1559_v40 = vadd.f32 %v1558_v38, %v13227_v9 }
 0x73a   :  { %v1632_v41 = vrot.slane %v1557_v36, 3  ;;  %v1652_v57 = vrot.slane %v1628_v55, 3  ;;  %v2022_v55 = vld [vmem:[#allocation11 + $0x28] sm:$0xff] }
 0x73b   :  { %v1642_v42 = vrot.slane %v1559_v40, 3 }
 0x73c   :  { %v1634_v45 = vadd.f32 %v1632_v41, %v13232_v14 }
 0x73d   :  { %v1644_v47 = vadd.f32 %v1642_v42, %v13237_v19 }
 0x73e   :  { %v9917_v48 = vmul.f32 -1.442695, %v1634_v45 }
 0x73f   :  { %v9918_v49 = vmul.f32 -1.442695, %v1644_v47 }
 0x740   :  { %12170 = vpow2.f32 %v9917_v48 }
 0x741   :  { %12172 = vpow2.f32 %v9918_v49  ;;  %v2017_v49 = vld [vmem:[#allocation11] sm:$0xff] }
 0x74a   :  { %v12171_v37 = vpop.eup %12170 }
 0x74b   :  { %v12173_v51 = vpop.eup %12172  ;;  %v1638_v52 = vadd.f32 1.0, %v12171_v37  ;;  %v2020_v37 = vld [vmem:[#allocation11 + $0x18] sm:$0xff] }
 0x74c   :  { %v1648_v54 = vadd.f32 1.0, %v12173_v51  ;;  %v2024_v51 = vld [vmem:[#allocation11 + $0x38] sm:$0xff] }
 0x74d   :  { %12174 = vrcp.f32 %v1638_v52  ;;  %v2027_v52 = vld [vmem:[#allocation11 + $0x50] sm:$0xff] }
 0x74e   :  { %12176 = vrcp.f32 %v1648_v54  ;;  %v2019_v54 = vld [vmem:[#allocation11 + $0x10] sm:$0xff] }
 0x757   :  { %v12175_v59 = vpop.eup %12174 }
 0x758   :  { %v12177_v61 = vpop.eup %12176  ;;  %v1654_v63 = vmul.f32 %v12175_v59, %v1652_v57  ;;  %v13381_v59 = vpack.c.bf16 %v2020_v37, %v2017_v49 }
 0x759   :  { %v1661_v4 = vmul.f32 %v12177_v61, %v1659_v60  ;;  %v1657_v7 = vsub.f32 1.0, %v12177_v61  ;;  %v13384_v61 = vpack.c.bf16 %v2027_v52, %v2024_v51 }
 0x75a   :  { %v1655_v5 = vadd.f32 %v1654_v63, %v13247_v34  ;;  %v2023_v63 = vld [vmem:[#allocation11 + $0x30] sm:$0xff] }
 0x75c   :  { %12178 = vtanh.f32 %v1655_v5  ;;  %v13386_v5 = vpack.c.bf16 %v2022_v55, %v2019_v54 }
 0x766   :  { %v12179_v11 = vpop.eup %12178 }
 0x767   :  { %v1658_v12 = vmul.f32 %v12179_v11, %v1657_v7  ;;  %v2025_v11 = vld [vmem:[#allocation11 + $0x40] sm:$0xff] }
 0x769   :  { %v1662_v44 = vadd.f32 %v1661_v4, %v1658_v12  ;;  %v2026_v4 = vld [vmem:[#allocation11 + $0x48] sm:$0xff]  ;;  %v2028_v12 = vld [vmem:[#allocation11 + $0x58] sm:$0xff] }
 0x76b   :  { %v1664_v13 = vrot.slane %v1662_v44, 5  ;;  %v13356_v15 = vsel %vm3454_vm6, %v3453_v32, %v1662_v44  ;;  %v1836_v38 = vrot.slane %v1662_v44, 7  ;;  %v13396_v44 = vpack.c.bf16 %v2026_v4, %v2023_v63 }
 0x76d   :  { %9919 = vmatmul.mubr.msk.f32.vlgmr.msra.gmra.mrb[16].mxu0 %vm270_vm1, %v1664_v13  ;;  %10560 = vmatmul.mubr.msk.f32.vlgmr.msra.gmra.mrb[16].mxu1 %vm270_vm1, %v1664_v13  ;;  %v13401_v13 = vpack.c.bf16 %v2028_v12, %v2025_v11 }
 0x76e   :  { %11462 = vmatpush1.bf16.msra.mxu0 %v13170_v43  ;;  %11469 = vmatpush3.bf16.msra.mxu1 %v13186_v53  ;;  %v13370_v43 = vpack.c.bf16 %v2021_v17, %v2018_v16 }
 0x76f   :  { %11464 = vmatprep.subr.bf16.mxu0 %v13174_v46  ;;  %11470 = vmatprep.subr.bf16.mxu1 %v12833_v1 }
 0x770   :  { %1908 = vmatprep.mubr.f32.mxu0 %v12832_v0  ;;  %10570 = vmatprep.mubr.msk.f32.mxu1 %vm12834_vm0, %v12832_v0 }
 0x772   :  { %11466 = vmatpush1.bf16.msra.mxu0 %v13179_v50  ;;  %11472 = vmatpush3.bf16.msra.mxu1 %v13194_v56 }
 0x773   :  { %11481 = vmatprep.subr.bf16.mxu1 %v12833_v1  ;;  %11474 = vmatprep.subr.bf16.mxu0 %v13370_v43 }
 0x840   :  { %v1733_v46 = vpop.f32.mrb[16].mxu0  ;;  %v1804_v53 = vpop.f32.mrb[16].mxu1 }
 0x841   :  { %v1734_v18 = vadd.f32 %v1733_v46, %v13224_v8  ;;  %v1735_v20 = vpop.f32.mrb[17].mxu0  ;;  %v10561_v21 = vpop.f32.mrb[17].mxu1  ;;  %v1805_v33 = vadd.f32 %v1804_v53, %v13243_v28 }
 0x842   :  { %v1736_v22 = vadd.f32 %v1735_v20, %v13227_v9  ;;  %v2029_v20 = vld [vmem:[#allocation14] sm:$0x7] }
 0x843   :  { %v1809_v23 = vrot.slane %v1734_v18, 2  ;;  %v1829_v35 = vrot.slane %v1805_v33, 2  ;;  %v13447_v54 = vrot.slane %v2029_v20, %v13240_v27 }
 0x844   :  { %v1819_v50 = vrot.slane %v1736_v22, 2  ;;  %v427_v22 = vld [vmem:[#allocation13] sm:$0x7] }
 0x845   :  { %v1811_v56 = vadd.f32 %v1809_v23, %v13232_v14 }
 0x846   :  { %v1821_v24 = vadd.f32 %v1819_v50, %v13237_v19 }
 0x847   :  { %v9921_v25 = vmul.f32 -1.442695, %v1811_v56  ;;  %v13427_v56 = vrot.slane %v2029_v20, %v13216_v2 }
 0x848   :  { %v9922_v26 = vmul.f32 -1.442695, %v1821_v24 }
 0x849   :  { %12180 = vpow2.f32 %v9921_v25  ;;  %v13431_v25 = vrot.slane %v2029_v20, %v13220_v6 }
 0x84a   :  { %12182 = vpow2.f32 %v9922_v26 }
 0x853   :  { %v12181_v29 = vpop.eup %12180 }
 0x854   :  { %v12183_v30 = vpop.eup %12182  ;;  %v1815_v31 = vadd.f32 1.0, %v12181_v29 }
 0x855   :  { %v1825_v32 = vadd.f32 1.0, %v12183_v30 }
 0x856   :  { %12184 = vrcp.f32 %v1815_v31 }
 0x857   :  { %12186 = vrcp.f32 %v1825_v32 }
 0x860   :  { %v12185_v36 = vpop.eup %12184 }
 0x861   :  { %v12187_v39 = vpop.eup %12186  ;;  %v1831_v40 = vmul.f32 %v12185_v36, %v1829_v35 }
 0x862   :  { %v1838_v41 = vmul.f32 %v12187_v39, %v1836_v38  ;;  %v1834_v45 = vsub.f32 1.0, %v12187_v39 }
 0x863   :  { %v1832_v42 = vadd.f32 %v1831_v40, %v13247_v34 }
 0x865   :  { %12188 = vtanh.f32 %v1832_v42 }
 0x86f   :  { %v12189_v47 = vpop.eup %12188 }
 0x870   :  { %v1835_v48 = vmul.f32 %v12189_v47, %v1834_v45 }
 0x872   :  { %v13379_v57 = vadd.f32 %v1838_v41, %v1835_v48 }
 0x874   :  { %v1841_v60 = vrot.slane %v13379_v57, 6  ;;  %v13391_v7 = vsel %vm3456_vm7, %v13356_v15, %v13379_v57 }
 0x876   :  { %9923 = vmatmul.mubr.msk.f32.vlgmr.msra.gmra.mrb[18].mxu0 %vm270_vm1, %v1841_v60  ;;  %10571 = vmatmul.mubr.msk.f32.vlgmr.msra.gmra.mrb[18].mxu1 %vm270_vm1, %v1841_v60  ;;  %v2013_v60 = vrot.slane %v13379_v57, 7 }
 0x877   :  { %11476 = vmatpush1.bf16.msra.mxu0 %v13381_v59  ;;  %2110 = vmatprep.mubr.f32.mxu0 %v12832_v0 }
 0x878   :  { %11478 = vmatprep.subr.bf16.mxu0 %v13384_v61  ;;  %11483 = vmatpush3.bf16.msra.mxu1 %v13386_v5 }
 0x879   :  { %11484 = vmatprep.subr.bf16.mxu1 %v12833_v1  ;;  %10581 = vmatprep.mubr.msk.f32.mxu1 %vm12834_vm0, %v12832_v0 }
 0x87b   :  { %11480 = vmatpush1.bf16.msra.mxu0 %v13396_v44 }
 0x87c   :  { %11486 = vmatpush3.bf16.msra.mxu1 %v13401_v13  ;;  %11488 = vmatprep.subr.bf16.mxu0 %v13370_v43 }
 0x87d   :  { %11495 = vmatprep.subr.bf16.mxu1 %v12833_v1 }
 0x87e   :  { %2111 = vmatmul.mubr.f32.vlgmr.msra.gmra.mrb[20].mxu0 %v12832_v0 }
 0x87f   :  { %10582 = vmatmul.mubr.f32.vlgmr.msra.gmra.mrb[20].mxu1 %v12832_v0  ;;  %11490 = vmatpush1.bf16.msra.mxu0 %v13381_v59 }
 0x880   :  { %11497 = vmatpush3.bf16.msra.mxu1 %v13386_v5  ;;  %11492 = vmatprep.subr.bf16.mxu0 %v13384_v61 }
 0x881   :  { %11498 = vmatprep.subr.bf16.mxu1 %v12833_v1  ;;  %2285 = vmatprep.mubr.f32.mxu0 %v12832_v0 }
 0x882   :  { %10592 = vmatprep.mubr.msk.f32.mxu1 %vm12834_vm0, %v12832_v0 }
 0x883   :  { %11494 = vmatpush1.bf16.msra.mxu0 %v13396_v44 }
 0x884   :  { %11500 = vmatpush3.bf16.msra.mxu1 %v13401_v13  ;;  %11502 = vmatprep.subr.bf16.mxu0 %v13370_v43 }
 0x885   :  { %11509 = vmatprep.subr.bf16.mxu1 %v12833_v1 }
 0x949   :  { %v1910_v15 = vpop.f32.mrb[18].mxu0  ;;  %v1981_v16 = vpop.f32.mrb[18].mxu1 }
 0x94a   :  { %v1911_v17 = vadd.f32 %v1910_v15, %v13224_v8  ;;  %v1912_v46 = vpop.f32.mrb[19].mxu0  ;;  %v10572_v53 = vpop.f32.mrb[19].mxu1  ;;  %v432_v8 = vrot.slane %v427_v22, %v13216_v2  ;;  %v1982_v51 = vadd.f32 %v1981_v16, %v13243_v28 }
 0x94b   :  { %v1913_v18 = vadd.f32 %v1912_v46, %v13227_v9  ;;  %v440_v46 = vrot.slane %v427_v22, %v13240_v27 }
 0x94c   :  { %v1986_v21 = vrot.slane %v1911_v17, 1 }
 0x94d   :  { %v1996_v23 = vrot.slane %v1913_v18, 1  ;;  %v13454_v18 = vadd.f32 %v13229_v10, %v440_v46 }
 0x94e   :  { %v1988_v50 = vadd.f32 %v1986_v21, %v13232_v14  ;;  %v436_v14 = vrot.slane %v427_v22, %v13220_v6 }
 0x94f   :  { %v1998_v24 = vadd.f32 %v1996_v23, %v13237_v19  ;;  %v13438_v19 = vadd.f32 %v13214_v62, %v432_v8 }
 0x950   :  { %v9925_v26 = vmul.f32 -1.442695, %v1988_v50  ;;  %v13442_v40 = vadd.f32 %v13218_v3, %v436_v14  ;;  %v2006_v3 = vrot.slane %v1982_v51, 1 }
 0x951   :  { %v9926_v29 = vmul.f32 -1.442695, %v1998_v24  ;;  %v2112_v30 = vpop.f32.mrb[20].mxu0 }
 0x952   :  { %12190 = vpow2.f32 %v9925_v26  ;;  %v2113_v9 = vadd.f32 %v2112_v30, %v13427_v56  ;;  %v2114_v31 = vpop.f32.mrb[21].mxu0  ;;  %v2183_v32 = vpop.f32.mrb[20].mxu1 }
 0x953   :  { %12192 = vpow2.f32 %v9926_v29  ;;  %v2115_v33 = vadd.f32 %v2114_v31, %v13431_v25  ;;  %v10583_v35 = vpop.f32.mrb[21].mxu1  ;;  %v2184_v11 = vadd.f32 %v2183_v32, %v13447_v54 }
 0x954   :  { %v2188_v36 = vrot.slane %v2113_v9, 1 }
 0x955   :  { %v2198_v38 = vrot.slane %v2115_v33, 1  ;;  %v2208_v16 = vrot.slane %v2184_v11, 1 }
 0x956   :  { %v2190_v39 = vadd.f32 %v2188_v36, %v13438_v19 }
 0x957   :  { %v2200_v42 = vadd.f32 %v2198_v38, %v13442_v40 }
 0x958   :  { %v9927_v41 = vmul.f32 -1.442695, %v2190_v39 }
 0x959   :  { %v9928_v49 = vmul.f32 -1.442695, %v2200_v42 }
 0x95a   :  { %12194 = vpow2.f32 %v9927_v41 }
 0x95c   :  { %v12191_v45 = vpop.eup %12190 }
 0x95d   :  { %v12193_v47 = vpop.eup %12192  ;;  %v1992_v48 = vadd.f32 1.0, %v12191_v45 }
 0x95e   :  { %v2002_v37 = vadd.f32 1.0, %v12193_v47 }
 0x95f   :  { %12196 = vrcp.f32 %v1992_v48 }
 0x960   :  { %12198 = vrcp.f32 %v2002_v37 }
 0x961   :  { %12200 = vpow2.f32 %v9928_v49 }
 0x964   :  { %v12195_v62 = vpop.eup %12194 }
 0x965   :  { %v2194_v52 = vadd.f32 1.0, %v12195_v62 }
 0x967   :  { %12202 = vrcp.f32 %v2194_v52 }
 0x969   :  { %v12197_v55 = vpop.eup %12196 }
 0x96a   :  { %v12199_v63 = vpop.eup %12198  ;;  %v2008_v4 = vmul.f32 %v12197_v55, %v2006_v3 }
 0x96b   :  { %v12201_v12 = vpop.eup %12200  ;;  %v2015_v15 = vmul.f32 %v12199_v63, %v2013_v60  ;;  %v2011_v21 = vsub.f32 1.0, %v12199_v63 }
 0x96c   :  { %v2009_v17 = vadd.f32 %v2008_v4, %v13247_v34  ;;  %v2204_v28 = vadd.f32 1.0, %v12201_v12 }
 0x96e   :  { %12204 = vtanh.f32 %v2009_v17 }
 0x96f   :  { %12206 = vrcp.f32 %v2204_v28 }
 0x971   :  { %v12203_v53 = vpop.eup %12202 }
 0x972   :  { %v2210_v20 = vmul.f32 %v12203_v53, %v2208_v16 }
 0x974   :  { %v2211_v57 = vadd.f32 %v2210_v20, %v13454_v18 }
 0x976   :  { %12208 = vtanh.f32 %v2211_v57 }
 0x978   :  { %v12205_v23 = vpop.eup %12204 }
 0x979   :  { %v2012_v50 = vmul.f32 %v12205_v23, %v2011_v21  ;;  %v12207_v34 = vpop.eup %12206 }
 0x97a   :  { %v2213_v8 = vsub.f32 1.0, %v12207_v34  ;;  %v2215_v26 = vmul.f32 0.0, %v12207_v34 }
 0x97b   :  { %v13457_v24 = vadd.f32 %v2015_v15, %v2012_v50 }
 0x97d   :  { %v13462_v22 = vsel %vm3458_vm8, %v13391_v7, %v13457_v24 }
 0x980   :  { %v12209_v10 = vpop.eup %12208 }
 0x981   :  { %v2214_v29 = vmul.f32 %v12209_v10, %v2213_v8 }
 0x983   :  { %v13464_v30 = vadd.f32 %v2215_v26, %v2214_v29 }
 0x985   :  { %v2218_v9 = vrot.slane %v13464_v30, 7  ;;  %v2390_v4 = vrot.slane %v13464_v30, 1 }
 0x987   :  { %9929 = vmatmul.mubr.msk.f32.vlgmr.msra.gmra.mrb[22].mxu0 %vm270_vm1, %v2218_v9  ;;  %10593 = vmatmul.mubr.msk.f32.vlgmr.msra.gmra.mrb[22].mxu1 %vm270_vm1, %v2218_v9 }
 0x988   :  { %11504 = vmatpush1.bf16.msra.mxu0 %v13381_v59  ;;  %11511 = vmatpush3.bf16.msra.mxu1 %v13386_v5 }
 0x989   :  { %11506 = vmatprep.subr.bf16.mxu0 %v13384_v61  ;;  %11512 = vmatprep.subr.bf16.mxu1 %v12833_v1 }
 0x98a   :  { %2462 = vmatprep.mubr.f32.mxu0 %v12832_v0  ;;  %10603 = vmatprep.mubr.msk.f32.mxu1 %vm12834_vm0, %v12832_v0 }
 0x98c   :  { %11508 = vmatpush1.bf16.msra.mxu0 %v13396_v44  ;;  %11514 = vmatpush3.bf16.msra.mxu1 %v13401_v13 }
 0x98d   :  { %11516 = vmatprep.subr.bf16.mxu0 %v13370_v43  ;;  %11523 = vmatprep.subr.bf16.mxu1 %v12833_v1 }
 0xa5a   :  { %v2287_v7 = vpop.f32.mrb[22].mxu0  ;;  %v2358_v31 = vpop.f32.mrb[22].mxu1 }
 0xa5b   :  { %v2288_v32 = vadd.f32 %v2287_v7, %v13427_v56  ;;  %v2289_v14 = vpop.f32.mrb[23].mxu0  ;;  %v10594_v33 = vpop.f32.mrb[23].mxu1  ;;  %v2359_v37 = vadd.f32 %v2358_v31, %v13447_v54 }
 0xa5c   :  { %v2290_v35 = vadd.f32 %v2289_v14, %v13431_v25 }
 0xa5d   :  { %v2363_v36 = vrot.slane %v2288_v32, 2  ;;  %v2383_v51 = vrot.slane %v2359_v37, 2 }
 0xa5e   :  { %v2373_v38 = vrot.slane %v2290_v35, 2 }
 0xa5f   :  { %v2365_v39 = vadd.f32 %v2363_v36, %v13438_v19 }
 0xa60   :  { %v2375_v42 = vadd.f32 %v2373_v38, %v13442_v40 }
 0xa61   :  { %v9931_v41 = vmul.f32 -1.442695, %v2365_v39 }
 0xa62   :  { %v9932_v45 = vmul.f32 -1.442695, %v2375_v42 }
 0xa63   :  { %12210 = vpow2.f32 %v9931_v41 }
 0xa64   :  { %12212 = vpow2.f32 %v9932_v45 }
 0xa6d   :  { %v12211_v47 = vpop.eup %12210 }
 0xa6e   :  { %v2369_v48 = vadd.f32 1.0, %v12211_v47  ;;  %v12213_v49 = vpop.eup %12212 }
 0xa6f   :  { %v2379_v62 = vadd.f32 1.0, %v12213_v49 }
 0xa70   :  { %12214 = vrcp.f32 %v2369_v48 }
 0xa71   :  { %12216 = vrcp.f32 %v2379_v62 }
 0xa7a   :  { %v12215_v52 = vpop.eup %12214 }
 0xa7b   :  { %v2385_v3 = vmul.f32 %v12215_v52, %v2383_v51  ;;  %v12217_v60 = vpop.eup %12216 }
 0xa7c   :  { %v2388_v63 = vsub.f32 1.0, %v12217_v60  ;;  %v2392_v12 = vmul.f32 %v12217_v60, %v2390_v4 }
 0xa7d   :  { %v2386_v55 = vadd.f32 %v2385_v3, %v13454_v18 }
 0xa7f   :  { %12218 = vtanh.f32 %v2386_v55 }
 0xa89   :  { %v12219_v11 = vpop.eup %12218 }
 0xa8a   :  { %v2389_v15 = vmul.f32 %v12219_v11, %v2388_v63 }
 0xa8c   :  { %v13487_v17 = vadd.f32 %v2392_v12, %v2389_v15 }
 0xa8e   :  { %v2395_v46 = vrot.slane %v13487_v17, 6  ;;  %v2567_v41 = vrot.slane %v13487_v17, 1 }
 0xa90   :  { %9933 = vmatmul.mubr.msk.f32.vlgmr.msra.gmra.mrb[24].mxu0 %vm270_vm1, %v2395_v46  ;;  %10604 = vmatmul.mubr.msk.f32.vlgmr.msra.gmra.mrb[24].mxu1 %vm270_vm1, %v2395_v46 }
 0xa91   :  { %11518 = vmatpush1.bf16.msra.mxu0 %v13381_v59  ;;  %11525 = vmatpush3.bf16.msra.mxu1 %v13386_v5 }
 0xa92   :  { %11520 = vmatprep.subr.bf16.mxu0 %v13384_v61  ;;  %11526 = vmatprep.subr.bf16.mxu1 %v12833_v1 }
 0xa93   :  { %2639 = vmatprep.mubr.f32.mxu0 %v12832_v0  ;;  %10614 = vmatprep.mubr.msk.f32.mxu1 %vm12834_vm0, %v12832_v0 }
 0xa95   :  { %11522 = vmatpush1.bf16.msra.mxu0 %v13396_v44  ;;  %11528 = vmatpush3.bf16.msra.mxu1 %v13401_v13 }
 0xa96   :  { %11530 = vmatprep.subr.bf16.mxu0 %v13370_v43  ;;  %11537 = vmatprep.subr.bf16.mxu1 %v12833_v1 }
 0xb63   :  { %v2464_v28 = vpop.f32.mrb[24].mxu0  ;;  %v2535_v16 = vpop.f32.mrb[24].mxu1 }
 0xb64   :  { %v2465_v53 = vadd.f32 %v2464_v28, %v13427_v56  ;;  %v2466_v20 = vpop.f32.mrb[25].mxu0  ;;  %v10605_v57 = vpop.f32.mrb[25].mxu1  ;;  %v2536_v31 = vadd.f32 %v2535_v16, %v13447_v54 }
 0xb65   :  { %v2467_v21 = vadd.f32 %v2466_v20, %v13431_v25 }
 0xb66   :  { %v2540_v23 = vrot.slane %v2465_v53, 3  ;;  %v2560_v14 = vrot.slane %v2536_v31, 3 }
 0xb67   :  { %v2550_v50 = vrot.slane %v2467_v21, 3 }
 0xb68   :  { %v2542_v34 = vadd.f32 %v2540_v23, %v13438_v19 }
 0xb69   :  { %v2552_v10 = vadd.f32 %v2550_v50, %v13442_v40 }
 0xb6a   :  { %v9935_v8 = vmul.f32 -1.442695, %v2542_v34 }
 0xb6b   :  { %v9936_v26 = vmul.f32 -1.442695, %v2552_v10 }
 0xb6c   :  { %12220 = vpow2.f32 %v9935_v8 }
 0xb6d   :  { %12222 = vpow2.f32 %v9936_v26 }
 0xb76   :  { %v12221_v29 = vpop.eup %12220 }
 0xb77   :  { %v2546_v9 = vadd.f32 1.0, %v12221_v29  ;;  %v12223_v7 = vpop.eup %12222 }
 0xb78   :  { %v2556_v32 = vadd.f32 1.0, %v12223_v7 }
 0xb79   :  { %12224 = vrcp.f32 %v2546_v9 }
 0xb7a   :  { %12226 = vrcp.f32 %v2556_v32 }
 0xb83   :  { %v12225_v33 = vpop.eup %12224 }
 0xb84   :  { %v2562_v35 = vmul.f32 %v12225_v33, %v2560_v14  ;;  %v12227_v38 = vpop.eup %12226 }
 0xb85   :  { %v2565_v39 = vsub.f32 1.0, %v12227_v38  ;;  %v2569_v45 = vmul.f32 %v12227_v38, %v2567_v41 }
 0xb86   :  { %v2563_v36 = vadd.f32 %v2562_v35, %v13454_v18 }
 0xb88   :  { %12228 = vtanh.f32 %v2563_v36 }
 0xb92   :  { %v12229_v42 = vpop.eup %12228 }
 0xb93   :  { %v2566_v47 = vmul.f32 %v12229_v42, %v2565_v39 }
 0xb95   :  { %v13510_v48 = vadd.f32 %v2569_v45, %v2566_v47 }
 0xb97   :  { %v2572_v49 = vrot.slane %v13510_v48, 5  ;;  %v2744_v10 = vrot.slane %v13510_v48, 1 }
 0xb99   :  { %9937 = vmatmul.mubr.msk.f32.vlgmr.msra.gmra.mrb[26].mxu0 %vm270_vm1, %v2572_v49  ;;  %10615 = vmatmul.mubr.msk.f32.vlgmr.msra.gmra.mrb[26].mxu1 %vm270_vm1, %v2572_v49 }
 0xb9a   :  { %11532 = vmatpush1.bf16.msra.mxu0 %v13381_v59  ;;  %11539 = vmatpush3.bf16.msra.mxu1 %v13386_v5 }
 0xb9b   :  { %11534 = vmatprep.subr.bf16.mxu0 %v13384_v61  ;;  %11540 = vmatprep.subr.bf16.mxu1 %v12833_v1 }
 0xb9c   :  { %2816 = vmatprep.mubr.f32.mxu0 %v12832_v0  ;;  %10625 = vmatprep.mubr.msk.f32.mxu1 %vm12834_vm0, %v12832_v0 }
 0xb9e   :  { %11536 = vmatpush1.bf16.msra.mxu0 %v13396_v44  ;;  %11542 = vmatpush3.bf16.msra.mxu1 %v13401_v13 }
 0xb9f   :  { %11544 = vmatprep.subr.bf16.mxu0 %v13370_v43  ;;  %11551 = vmatprep.subr.bf16.mxu1 %v12833_v1 }
 0xc6c   :  { %v2641_v37 = vpop.f32.mrb[26].mxu0  ;;  %v2712_v62 = vpop.f32.mrb[26].mxu1 }
 0xc6d   :  { %v2642_v51 = vadd.f32 %v2641_v37, %v13427_v56  ;;  %v2643_v52 = vpop.f32.mrb[27].mxu0  ;;  %v10616_v3 = vpop.f32.mrb[27].mxu1  ;;  %v2713_v53 = vadd.f32 %v2712_v62, %v13447_v54 }
 0xc6e   :  { %v2644_v55 = vadd.f32 %v2643_v52, %v13431_v25 }
 0xc6f   :  { %v2717_v60 = vrot.slane %v2642_v51, 4  ;;  %v2737_v57 = vrot.slane %v2713_v53, 4 }
 0xc70   :  { %v2727_v63 = vrot.slane %v2644_v55, 4 }
 0xc71   :  { %v2719_v4 = vadd.f32 %v2717_v60, %v13438_v19 }
 0xc72   :  { %v2729_v12 = vadd.f32 %v2727_v63, %v13442_v40 }
 0xc73   :  { %v9939_v11 = vmul.f32 -1.442695, %v2719_v4 }
 0xc74   :  { %v9940_v15 = vmul.f32 -1.442695, %v2729_v12 }
 0xc75   :  { %12230 = vpow2.f32 %v9939_v11 }
 0xc76   :  { %12232 = vpow2.f32 %v9940_v15 }
 0xc7f   :  { %v12231_v46 = vpop.eup %12230 }
 0xc80   :  { %v2723_v28 = vadd.f32 1.0, %v12231_v46  ;;  %v12233_v16 = vpop.eup %12232 }
 0xc81   :  { %v2733_v20 = vadd.f32 1.0, %v12233_v16 }
 0xc82   :  { %12234 = vrcp.f32 %v2723_v28 }
 0xc83   :  { %12236 = vrcp.f32 %v2733_v20 }
 0xc8c   :  { %v12235_v21 = vpop.eup %12234 }
 0xc8d   :  { %v2739_v23 = vmul.f32 %v12235_v21, %v2737_v57  ;;  %v12237_v34 = vpop.eup %12236 }
 0xc8e   :  { %v2742_v8 = vsub.f32 1.0, %v12237_v34  ;;  %v2746_v29 = vmul.f32 %v12237_v34, %v2744_v10 }
 0xc8f   :  { %v2740_v50 = vadd.f32 %v2739_v23, %v13454_v18 }
 0xc91   :  { %12238 = vtanh.f32 %v2740_v50 }
 0xc9b   :  { %v12239_v26 = vpop.eup %12238 }
 0xc9c   :  { %v2743_v9 = vmul.f32 %v12239_v26, %v2742_v8 }
 0xc9e   :  { %v13533_v7 = vadd.f32 %v2746_v29, %v2743_v9 }
 0xca0   :  { %v2749_v31 = vrot.slane %v13533_v7, 4  ;;  %v2921_v15 = vrot.slane %v13533_v7, 1 }
 0xca2   :  { %9941 = vmatmul.mubr.msk.f32.vlgmr.msra.gmra.mrb[28].mxu0 %vm270_vm1, %v2749_v31  ;;  %10626 = vmatmul.mubr.msk.f32.vlgmr.msra.gmra.mrb[28].mxu1 %vm270_vm1, %v2749_v31 }
 0xca3   :  { %11546 = vmatpush1.bf16.msra.mxu0 %v13381_v59  ;;  %11553 = vmatpush3.bf16.msra.mxu1 %v13386_v5 }
 0xca4   :  { %11548 = vmatprep.subr.bf16.mxu0 %v13384_v61  ;;  %11554 = vmatprep.subr.bf16.mxu1 %v12833_v1 }
 0xca5   :  { %2993 = vmatprep.mubr.f32.mxu0 %v12832_v0  ;;  %10636 = vmatprep.mubr.msk.f32.mxu1 %vm12834_vm0, %v12832_v0 }
 0xca7   :  { %11550 = vmatpush1.bf16.msra.mxu0 %v13396_v44  ;;  %11556 = vmatpush3.bf16.msra.mxu1 %v13401_v13 }
 0xca8   :  { %11558 = vmatprep.subr.bf16.mxu0 %v13370_v43  ;;  %11565 = vmatprep.subr.bf16.mxu1 %v12833_v1 }
 0xd75   :  { %v2818_v32 = vpop.f32.mrb[28].mxu0  ;;  %v2889_v14 = vpop.f32.mrb[28].mxu1 }
 0xd76   :  { %v2819_v33 = vadd.f32 %v2818_v32, %v13427_v56  ;;  %v2820_v35 = vpop.f32.mrb[29].mxu0  ;;  %v10627_v36 = vpop.f32.mrb[29].mxu1  ;;  %v2890_v52 = vadd.f32 %v2889_v14, %v13447_v54 }
 0xd77   :  { %v2821_v38 = vadd.f32 %v2820_v35, %v13431_v25 }
 0xd78   :  { %v2894_v39 = vrot.slane %v2819_v33, 5  ;;  %v2914_v55 = vrot.slane %v2890_v52, 5 }
 0xd79   :  { %v2904_v41 = vrot.slane %v2821_v38, 5 }
 0xd7a   :  { %v2896_v42 = vadd.f32 %v2894_v39, %v13438_v19 }
 0xd7b   :  { %v2906_v47 = vadd.f32 %v2904_v41, %v13442_v40 }
 0xd7c   :  { %v9943_v45 = vmul.f32 -1.442695, %v2896_v42 }
 0xd7d   :  { %v9944_v49 = vmul.f32 -1.442695, %v2906_v47 }
 0xd7e   :  { %12240 = vpow2.f32 %v9943_v45 }
 0xd7f   :  { %12242 = vpow2.f32 %v9944_v49 }
 0xd88   :  { %v12241_v37 = vpop.eup %12240 }
 0xd89   :  { %v2900_v62 = vadd.f32 1.0, %v12241_v37  ;;  %v12243_v51 = vpop.eup %12242 }
 0xd8a   :  { %v2910_v3 = vadd.f32 1.0, %v12243_v51 }
 0xd8b   :  { %12244 = vrcp.f32 %v2900_v62 }
 0xd8c   :  { %12246 = vrcp.f32 %v2910_v3 }
 0xd95   :  { %v12245_v60 = vpop.eup %12244 }
 0xd96   :  { %v2916_v63 = vmul.f32 %v12245_v60, %v2914_v55  ;;  %v12247_v11 = vpop.eup %12246 }
 0xd97   :  { %v2919_v12 = vsub.f32 1.0, %v12247_v11  ;;  %v2923_v28 = vmul.f32 %v12247_v11, %v2921_v15 }
 0xd98   :  { %v2917_v4 = vadd.f32 %v2916_v63, %v13454_v18 }
 0xd9a   :  { %12248 = vtanh.f32 %v2917_v4 }
 0xda4   :  { %v12249_v46 = vpop.eup %12248 }
 0xda5   :  { %v2920_v16 = vmul.f32 %v12249_v46, %v2919_v12 }
 0xda7   :  { %v13556_v53 = vadd.f32 %v2923_v28, %v2920_v16 }
 0xda9   :  { %v2926_v20 = vrot.slane %v13556_v53, 3  ;;  %v3098_v49 = vrot.slane %v13556_v53, 1 }
 0xdab   :  { %9945 = vmatmul.mubr.msk.f32.vlgmr.msra.gmra.mrb[30].mxu0 %vm270_vm1, %v2926_v20  ;;  %10637 = vmatmul.mubr.msk.f32.vlgmr.msra.gmra.mrb[30].mxu1 %vm270_vm1, %v2926_v20 }
 0xdac   :  { %11560 = vmatpush1.bf16.msra.mxu0 %v13381_v59  ;;  %11567 = vmatpush3.bf16.msra.mxu1 %v13386_v5 }
 0xdad   :  { %11562 = vmatprep.subr.bf16.mxu0 %v13384_v61  ;;  %11568 = vmatprep.subr.bf16.mxu1 %v12833_v1 }
 0xdae   :  { %3170 = vmatprep.mubr.f32.mxu0 %v12832_v0  ;;  %10647 = vmatprep.mubr.msk.f32.mxu1 %vm12834_vm0, %v12832_v0 }
 0xdb0   :  { %11564 = vmatpush1.bf16.msra.mxu0 %v13396_v44  ;;  %11570 = vmatpush3.bf16.msra.mxu1 %v13401_v13 }
 0xdb1   :  { %11572 = vmatprep.subr.bf16.mxu0 %v13370_v43  ;;  %11579 = vmatprep.subr.bf16.mxu1 %v12833_v1 }
 0xe7e   :  { %v2995_v57 = vpop.f32.mrb[30].mxu0  ;;  %v3066_v21 = vpop.f32.mrb[30].mxu1 }
 0xe7f   :  { %v2996_v23 = vadd.f32 %v2995_v57, %v13427_v56  ;;  %v2997_v50 = vpop.f32.mrb[31].mxu0  ;;  %v10638_v34 = vpop.f32.mrb[31].mxu1  ;;  %v3067_v35 = vadd.f32 %v3066_v21, %v13447_v54 }
 0xe80   :  { %v2998_v8 = vadd.f32 %v2997_v50, %v13431_v25 }
 0xe81   :  { %v3071_v10 = vrot.slane %v2996_v23, 6  ;;  %v3091_v38 = vrot.slane %v3067_v35, 6 }
 0xe82   :  { %v3081_v26 = vrot.slane %v2998_v8, 6 }
 0xe83   :  { %v3073_v29 = vadd.f32 %v3071_v10, %v13438_v19 }
 0xe84   :  { %v3083_v31 = vadd.f32 %v3081_v26, %v13442_v40 }
 0xe85   :  { %v9947_v9 = vmul.f32 -1.442695, %v3073_v29 }
 0xe86   :  { %v9948_v32 = vmul.f32 -1.442695, %v3083_v31 }
 0xe87   :  { %12250 = vpow2.f32 %v9947_v9 }
 0xe88   :  { %12252 = vpow2.f32 %v9948_v32  ;;  %v3473_v32 = vld [vmem:[%s14640_s29] sm:$0xff] }
 0xe91   :  { %v12251_v43 = vpop.eup %12250 }
 0xe92   :  { %v3077_v14 = vadd.f32 1.0, %v12251_v43  ;;  %v12253_v33 = vpop.eup %12252  ;;  %v3474_v43 = vld [vmem:[%s14640_s29 + $0x8] sm:$0xff] }
 0xe93   :  { %v3087_v36 = vadd.f32 1.0, %v12253_v33  ;;  %v13609_v33 = vpack.c.bf16 %v3474_v43, %v3473_v32  ;;  %v3560_v32 = vld [vmem:[#allocation16 + $0x28] sm:$0xff] }
 0xe94   :  { %12254 = vrcp.f32 %v3077_v14 }
 0xe95   :  { %12256 = vrcp.f32 %v3087_v36  ;;  %v3475_v36 = vld [vmem:[%s14640_s29 + $0x10] sm:$0xff] }
 0xe9e   :  { %v12255_v39 = vpop.eup %12254 }
 0xe9f   :  { %v3093_v41 = vmul.f32 %v12255_v39, %v3091_v38  ;;  %v12257_v45 = vpop.eup %12256  ;;  %v3476_v38 = vld [vmem:[%s14640_s29 + $0x18] sm:$0xff] }
 0xea0   :  { %v3096_v47 = vsub.f32 1.0, %v12257_v45  ;;  %v3100_v62 = vmul.f32 %v12257_v45, %v3098_v49  ;;  %v13625_v39 = vpack.c.bf16 %v3476_v38, %v3475_v36  ;;  %v3479_v49 = vld [vmem:[%s14640_s29 + $0x30] sm:$0xff]  ;;  %v3563_v36 = vld [vmem:[#allocation16 + $0x40] sm:$0xff] }
 0xea1   :  { %v3094_v42 = vadd.f32 %v3093_v41, %v13454_v18  ;;  %v3477_v41 = vld [vmem:[%s14640_s29 + $0x20] sm:$0xff]  ;;  %v3566_v38 = vld [vmem:[#allocation16 + $0x58] sm:$0xff] }
 0xea3   :  { %12258 = vtanh.f32 %v3094_v42  ;;  %v3478_v42 = vld [vmem:[%s14640_s29 + $0x28] sm:$0xff] }
 0xea4   :  { %v13638_v45 = vpack.c.bf16 %v3478_v42, %v3477_v41  ;;  %v3732_v42 = vld [vmem:[#allocation17 + $0x20] sm:$0xff] }
 0xead   :  { %v12259_v37 = vpop.eup %12258 }
 0xeae   :  { %v3097_v51 = vmul.f32 %v12259_v37, %v3096_v47  ;;  %v13641_v47 = vand.u32 127, %v255_v58  ;;  %v3480_v37 = vld [vmem:[%s14640_s29 + $0x38] sm:$0xff]  ;;  %v3730_v58 = vld [vmem:[#allocation17 + $0x10] sm:$0xff] }
 0xeb0   :  { %v13579_v52 = vadd.f32 %v3100_v62, %v3097_v51  ;;  %v13651_v62 = vpack.c.bf16 %v3480_v37, %v3479_v49  ;;  %vm3470_vm9 = vcmp.eq.s32.totalorder %v13641_v47, 1  ;;  %v3733_v51 = vld [vmem:[#allocation17 + $0x28] sm:$0xff] }
 0xeb2   :  { %v3103_v3 = vrot.slane %v13579_v52, 2  ;;  %v3275_v26 = vrot.slane %v13579_v52, 1 }
 0xeb4   :  { %9949 = vmatmul.mubr.msk.f32.vlgmr.msra.gmra.mrb[32].mxu0 %vm270_vm1, %v3103_v3  ;;  %10648 = vmatmul.mubr.msk.f32.vlgmr.msra.gmra.mrb[32].mxu1 %vm270_vm1, %v3103_v3  ;;  %v9957_v3 = vsel %vm3470_vm9, 1.0, %v12832_v0  ;;  %vm9836_vm9 = vcmask 15360  }
 0xeb5   :  { %11574 = vmatpush1.bf16.msra.mxu0 %v13381_v59  ;;  %11581 = vmatpush3.bf16.msra.mxu1 %v13386_v5 }
 0xeb6   :  { %11576 = vmatprep.subr.bf16.mxu0 %v13384_v61  ;;  %11582 = vmatprep.subr.bf16.mxu1 %v12833_v1 }
 0xeb7   :  { %3347 = vmatprep.mubr.f32.mxu0 %v12832_v0  ;;  %10658 = vmatprep.mubr.msk.f32.mxu1 %vm12834_vm0, %v12832_v0 }
 0xeb9   :  { %11578 = vmatpush1.bf16.msra.mxu0 %v13396_v44  ;;  %11584 = vmatpush3.bf16.msra.mxu1 %v13401_v13 }
 0xeba   :  { %11585 = vmatprep.subr.bf16.mxu0 %v12833_v1 }
 0xf87   :  { %v3172_v55 = vpop.f32.mrb[32].mxu0  ;;  %v3243_v60 = vpop.f32.mrb[32].mxu1 }
 0xf88   :  { %v3173_v59 = vadd.f32 %v3172_v55, %v13427_v56  ;;  %v3174_v5 = vpop.f32.mrb[33].mxu0  ;;  %v10649_v63 = vpop.f32.mrb[33].mxu1  ;;  %v3244_v20 = vadd.f32 %v3243_v60, %v13447_v54  ;;  %v13657_v55 = vpack.c.bf16 %v3733_v51, %v3730_v58  ;;  %v3736_v60 = vld [vmem:[#allocation17 + $0x40] sm:$0xff]  ;;  %v3731_v51 = vld [vmem:[#allocation17 + $0x18] sm:$0xff] }
 0xf89   :  { %v3175_v61 = vadd.f32 %v3174_v5, %v13431_v25  ;;  %v13669_v63 = vrot.slane %v13457_v24, 7  ;;  %v3562_v24 = vld [vmem:[#allocation16 + $0x38] sm:$0xff]  ;;  %v3728_v58 = vld [vmem:[#allocation17] sm:$0xff] }
 0xf8a   :  { %v3248_v4 = vrot.slane %v3173_v59, 7  ;;  %v3268_v21 = vrot.slane %v3244_v20, 7  ;;  %v3739_v59 = vld [vmem:[#allocation17 + $0x58] sm:$0xff] }
 0xf8b   :  { %v3258_v11 = vrot.slane %v3175_v61, 7  ;;  %v13662_v5 = vpack.c.bf16 %v3739_v59, %v3736_v60  ;;  %v3556_v61 = vld [vmem:[#allocation16 + $0x8] sm:$0xff]  ;;  %v3738_v60 = vld [vmem:[#allocation17 + $0x50] sm:$0xff]  ;;  %v13705_v59 = vpack.c.bf16 %v3731_v51, %v3728_v58 }
 0xf8c   :  { %v3250_v12 = vadd.f32 %v3248_v4, %v13438_v19  ;;  %v3559_v4 = vld [vmem:[#allocation16 + $0x20] sm:$0xff] }
 0xf8d   :  { %v3260_v46 = vadd.f32 %v3258_v11, %v13442_v40  ;;  %v13676_v11 = vpack.c.bf16 %v3559_v4, %v3556_v61  ;;  %v3734_v4 = vld [vmem:[#allocation17 + $0x30] sm:$0xff] }
 0xf8e   :  { %v9951_v15 = vmul.f32 -1.442695, %v3250_v12  ;;  %v3555_v12 = vld [vmem:[#allocation16] sm:$0xff] }
 0xf8f   :  { %v9952_v44 = vmul.f32 -1.442695, %v3260_v46  ;;  %11598 = vmatprep.subr.bf16.mxu1 %v13676_v11 }
 0xf90   :  { %12260 = vpow2.f32 %v9951_v15  ;;  %v3558_v15 = vld [vmem:[#allocation16 + $0x18] sm:$0xff] }
 0xf91   :  { %12262 = vpow2.f32 %v9952_v44  ;;  %v13678_v46 = vpack.c.bf16 %v3558_v15, %v3555_v12  ;;  %v3565_v44 = vld [vmem:[#allocation16 + $0x50] sm:$0xff]  ;;  %v3737_v12 = vld [vmem:[#allocation17 + $0x48] sm:$0xff] }
 0xf9a   :  { %v12261_v13 = vpop.eup %12260 }
 0xf9b   :  { %v3254_v28 = vadd.f32 1.0, %v12261_v13  ;;  %v12263_v16 = vpop.eup %12262  ;;  %v13682_v13 = vpack.c.bf16 %v3565_v44, %v3562_v24 }
 0xf9c   :  { %v3264_v57 = vadd.f32 1.0, %v12263_v16  ;;  %v3564_v16 = vld [vmem:[#allocation16 + $0x48] sm:$0xff] }
 0xf9d   :  { %12264 = vrcp.f32 %v3254_v28  ;;  %v3561_v28 = vld [vmem:[#allocation16 + $0x30] sm:$0xff] }
 0xf9e   :  { %12266 = vrcp.f32 %v3264_v57  ;;  %v13684_v20 = vpack.c.bf16 %v3564_v16, %v3561_v28  ;;  %v13712_v28 = vpack.c.bf16 %v3737_v12, %v3734_v4 }
 0xfa7   :  { %v12265_v23 = vpop.eup %12264 }
 0xfa8   :  { %v3270_v50 = vmul.f32 %v12265_v23, %v3268_v21  ;;  %v12267_v8 = vpop.eup %12266 }
 0xfa9   :  { %v3273_v10 = vsub.f32 1.0, %v12267_v8  ;;  %v3277_v31 = vmul.f32 %v12267_v8, %v3275_v26 }
 0xfaa   :  { %v3271_v34 = vadd.f32 %v3270_v50, %v13454_v18 }
 0xfac   :  { %12268 = vtanh.f32 %v3271_v34 }
 0xfb6   :  { %v12269_v29 = vpop.eup %12268 }
 0xfb7   :  { %v3274_v9 = vmul.f32 %v12269_v29, %v3273_v10 }
 0xfb9   :  { %v13607_v14 = vadd.f32 %v3277_v31, %v3274_v9  ;;  %v3557_v31 = vld [vmem:[#allocation16 + $0x10] sm:$0xff] }
 0xfba   :  { %v13693_v43 = vpack.c.bf16 %v3560_v32, %v3557_v31 }
 0xfbb   :  { %v13612_v35 = vrot.slane %v13607_v14, 1 }
 0xfbd   :  { %9953 = vmatmul.mubr.msk.f32.vlgmr.msra.gmra.mrb[34].mxu0 %vm270_vm1, %v13612_v35  ;;  %10659 = vmatmul.mubr.msk.f32.vlgmr.msra.gmra.mrb[34].mxu1 %vm270_vm1, %v13612_v35 }
 0xfbe   :  { %11587 = vmatpush3.bf16.msra.mxu0 %v13609_v33  ;;  %10677 = vmatprep.mubr.msk.f32.mxu0 %vm12834_vm0, %v12832_v0 }
 0xfbf   :  { %11588 = vmatprep.subr.bf16.mxu0 %v12833_v1  ;;  %3651 = vmatprep.mubr.f32.mxu1 %v12832_v0 }
 0xfc0   :  { %11600 = vmatpush1.bf16.msra.mxu1 %v13678_v46 }
 0xfc1   :  { %11602 = vmatprep.subr.bf16.mxu1 %v13682_v13 }
 0xfc2   :  { %11590 = vmatpush3.bf16.msra.mxu0 %v13625_v39 }
 0xfc3   :  { %11591 = vmatprep.subr.bf16.mxu0 %v12833_v1 }
 0xfc4   :  { %11604 = vmatpush1.bf16.msra.mxu1 %v13684_v20 }
 0xfc5   :  { %11605 = vmatprep.subr.bf16.mxu1 %v12833_v1 }
 0xfc6   :  { %11593 = vmatpush3.bf16.msra.mxu0 %v13638_v45 }
 0xfc7   :  { %11594 = vmatprep.subr.bf16.mxu0 %v12833_v1 }
 0xfca   :  { %11596 = vmatpush3.bf16.msra.mxu0 %v13651_v62 }
 0xfcb   :  { %11619 = vmatprep.subr.bf16.mxu0 %v12833_v1 }
 0xfcd   :  { %10678 = vmatmul.mubr.msk.f32.vlgmr.msra.gmra.mrb[36].mxu0 %vm3481_vm10, %v9957_v3  ;;  %v3735_v3 = vld [vmem:[#allocation17 + $0x38] sm:$0xff] }
 0xfce   :  { %11621 = vmatpush3.bf16.msra.mxu0 %v13657_v55  ;;  %10699 = vmatprep.mubr.msk.f32.mxu0 %vm12834_vm0, %v12832_v0  ;;  %v13708_v61 = vpack.c.bf16 %v3738_v60, %v3735_v3 }
 0xfcf   :  { %11622 = vmatprep.subr.bf16.mxu0 %v12833_v1 }
 0xfd2   :  { %11624 = vmatpush3.bf16.msra.mxu0 %v13662_v5 }
 0xfd3   :  { %11625 = vmatprep.subr.bf16.mxu0 %v12833_v1 }
 0xfd5   :  { %10700 = vmatmul.mubr.msk.f32.vlgmr.msra.gmra.mrb[38].mxu0 %vm270_vm1, %v13669_v63 }
 0xfd6   :  { %10720 = vmatprep.mubr.msk.f32.mxu0 %vm12834_vm0, %v12832_v0 }
0x1090   :  { %v3349_v57 = vpop.f32.mrb[34].mxu0  ;;  %v3420_v21 = vpop.f32.mrb[34].mxu1 }
0x1091   :  { %v3350_v23 = vadd.f32 %v3349_v57, %v13427_v56  ;;  %v3351_v50 = vpop.f32.mrb[35].mxu0  ;;  %v10660_v34 = vpop.f32.mrb[35].mxu1  ;;  %v3729_v56 = vld [vmem:[#allocation17 + $0x8] sm:$0xff]  ;;  %v3421_v57 = vadd.f32 %v3420_v21, %v13447_v54 }
0x1092   :  { %v3352_v8 = vadd.f32 %v3351_v50, %v13431_v25 }
0x1093   :  { %v3424_v10 = vadd.f32 %v3350_v23, %v13438_v19  ;;  %v13697_v19 = vpack.c.bf16 %v3566_v38, %v3563_v36 }
0x1094   :  { %v3431_v29 = vadd.f32 %v3352_v8, %v13442_v40  ;;  %v13702_v40 = vpack.c.bf16 %v3732_v42, %v3729_v56 }
0x1095   :  { %v9955_v26 = vmul.f32 -1.442695, %v3424_v10 }
0x1096   :  { %v9956_v9 = vmul.f32 -1.442695, %v3431_v29 }
0x1097   :  { %12270 = vpow2.f32 %v9955_v26 }
0x1098   :  { %12272 = vpow2.f32 %v9956_v9 }
0x10a0   :  { %v3551_v41 = vpop.f32.mrb[36].mxu0 }
0x10a1   :  { %v12271_v49 = vpop.eup %12270  ;;  %v10679_v37 = vpop.f32.mrb[37].mxu0  ;;  %9959 = vmatmul.mubr.msk.f32.vlgmr.msra.gmra.mrb[36].mxu1 %vm270_vm1, %v3551_v41 }
0x10a2   :  { %v3428_v25 = vadd.f32 1.0, %v12271_v49  ;;  %11607 = vmatpush3.bf16.msra.mxu1 %v13693_v43  ;;  %10688 = vmatprep.mubr.msk.f32.mxu1 %vm12834_vm0, %v12832_v0  ;;  %v12273_v15 = vpop.eup %12272 }
0x10a3   :  { %11608 = vmatprep.subr.bf16.mxu1 %v12833_v1  ;;  %v3435_v16 = vadd.f32 1.0, %v12273_v15 }
0x10a4   :  { %12274 = vrcp.f32 %v3428_v25 }
0x10a5   :  { %12276 = vrcp.f32 %v3435_v16 }
0x10a6   :  { %11610 = vmatpush3.bf16.msra.mxu1 %v13697_v19 }
0x10a7   :  { %11612 = vmatprep.subr.bf16.mxu1 %v13702_v40 }
0x10a8   :  { %v3898_v24 = vpop.f32.mrb[38].mxu0 }
0x10a9   :  { %10689 = vmatmul.mubr.msk.f32.vlgmr.msra.gmra.mrb[38].mxu1 %vm270_vm1, %v3551_v41  ;;  %v10701_v44 = vpop.f32.mrb[39].mxu0 }
0x10aa   :  { %11614 = vmatpush1.bf16.msra.mxu1 %v13705_v59  ;;  %3825 = vmatprep.mubr.f32.mxu1 %v12832_v0 }
0x10ab   :  { %11616 = vmatprep.subr.bf16.mxu1 %v13708_v61 }
0x10ae   :  { %v12275_v23 = vpop.eup %12274  ;;  %11618 = vmatpush1.bf16.msra.mxu1 %v13712_v28 }
0x10af   :  { %v3438_v50 = vmul.f32 %v12275_v23, %v3421_v57  ;;  %10702 = vmatprep.subr.mxu1 %v12832_v0  ;;  %v12277_v8 = vpop.eup %12276 }
0x10b0   :  { %v3441_v10 = vsub.f32 1.0, %v12277_v8  ;;  %v3444_v21 = vmul.f32 %v12277_v8, %v13612_v35 }
0x10b1   :  { %v3439_v34 = vadd.f32 %v3438_v50, %v13454_v18  ;;  %9961 = vmatmul.mubr.msk.f32.vlgmr.msra.gmra.mrb[36].mxu1 %vm270_vm1, %v13669_v63 }
0x10b2   :  { %10704 = vmatprep.mubr.msk.f32.mxu1 %vm12834_vm0, %v12832_v0 }
0x10b3   :  { %12278 = vtanh.f32 %v3439_v34 }
0x10bd   :  { %v12279_v26 = vpop.eup %12278 }
0x10be   :  { %v3442_v54 = vmul.f32 %v12279_v26, %v3441_v10 }
0x10c0   :  { %v3445_v29 = vadd.f32 %v3444_v21, %v3442_v54 }
0x10c2   :  { %v3460_v9 = vsel %vm3446_vm2, %v3445_v29, %v13607_v14 }
0x10c3   :  { %v3461_v18 = vsel %vm3448_vm3, %v3460_v9, %v13579_v52  ;;  %v3567_v52 = vld [vmem:[#allocation19] sm:$0x7] }
0x10c4   :  { %v3462_v31 = vsel %vm3450_vm4, %v3461_v18, %v13556_v53  ;;  %v3740_v53 = vld [vmem:[#allocation20] sm:$0x7]  ;;  %v13759_v12 = vrot.slane %v3567_v52, %v13240_v27 }
0x10c5   :  { %v3463_v32 = vsel %vm3452_vm5, %v3462_v31, %v13533_v7  ;;  %v3747_v56 = vrot.slane %v3740_v53, %v13216_v2 }
0x10c6   :  { %v3464_v36 = vsel %vm3454_vm6, %v3463_v32, %v13510_v48  ;;  %v3572_v48 = vrot.slane %v3567_v52, %v13216_v2 }
0x10c7   :  { %v3465_v38 = vsel %vm3456_vm7, %v3464_v36, %v13487_v17  ;;  %v3576_v17 = vrot.slane %v3567_v52, %v13220_v6  ;;  %v4090_v36 = vld [vmem:[#allocation22] sm:$0xff]  ;;  %v4093_v52 = vld [vmem:[#allocation22 + $0x18] sm:$0xff] }
0x10c8   :  { %v3466_v35 = vsel %vm3458_vm8, %v3465_v38, %v13464_v30  ;;  %v3751_v30 = vrot.slane %v3740_v53, %v13220_v6  ;;  %v13749_v42 = vadd.f32 %v3747_v56, %v3572_v48  ;;  %v13756_v6 = vrot.slane %v3740_v53, %v13240_v27  ;;  %v4091_v38 = vld [vmem:[#allocation22 + $0x8] sm:$0xff]  ;;  %v4086_v48 = vld [vmem:[%s14615_s14] sm:$0xff] }
0x10c9   :  { %v13740_v14 = vadd.f32 %v3466_v35, %v13462_v22  ;;  %v4092_v35 = vld [vmem:[#allocation22 + $0x10] sm:$0xff]  ;;  %v13774_v53 = vpack.c.bf16 %v4091_v38, %v4090_v36  ;;  %v4087_v56 = vld [vmem:[%s14615_s14 + $0x8] sm:$0xff]  ;;  %vm9834_vm8 = vcmask 7168  }
0x10ca   :  { %v13751_v49 = vadd.f32 %v3751_v30, %v3576_v17  ;;  %v3899_v44 = vadd.f32 %v3898_v24, %v13756_v6  ;;  %v13788_v30 = vpack.c.bf16 %v4087_v56, %v4086_v48 }
0x10cb   :  { %10703 = vmatpush3.xpose.msk.msra.mxu1 %vm270_vm1, %v13740_v14  ;;  %11627 = vmatpush3.bf16.msra.mxu0 %v13774_v53 }
0x10cc   :  { %10707 = vmatprep.subr.mxu1 %v12832_v0  ;;  %11628 = vmatprep.subr.bf16.mxu0 %v12833_v1 }
0x117c   :  { %v3724_v7 = vpop.f32.mrb[38].mxu1 }
0x117d   :  { %v10690_v41 = vpop.f32.mrb[39].mxu1  ;;  %v3725_v57 = vadd.f32 %v3724_v7, %v13759_v12  ;;  %v13777_v7 = vpack.c.bf16 %v4093_v52, %v4092_v35 }
0x117f   :  { %11630 = vmatpush3.bf16.msra.mxu0 %v13777_v7 }
0x1180   :  { %11637 = vmatprep.subr.bf16.mxu0 %v12833_v1 }
0x1184   :  { %v3827_v22 = vpop.f32.mrb[36].mxu1 }
0x1185   :  { %v12050_v37 = vadd.f32 %v13749_v42, %v3827_v22  ;;  %v3829_v25 = vpop.f32.mrb[37].mxu1 }
0x1186   :  { %v12052_v51 = vadd.f32 %v13751_v49, %v3829_v25  ;;  %v4089_v25 = vld [vmem:[%s14615_s14 + $0x18] sm:$0xff] }
0x1187   :  { %v9963_v58 = vmul.f32 -1.442695, %v12050_v37  ;;  %v4088_v37 = vld [vmem:[%s14615_s14 + $0x10] sm:$0xff] }
0x1188   :  { %v9964_v3 = vmul.f32 -1.442695, %v12052_v51 }
0x1189   :  { %12280 = vpow2.f32 %v9963_v58  ;;  %v13798_v58 = vpack.c.bf16 %v4089_v25, %v4088_v37 }
0x118a   :  { %12282 = vpow2.f32 %v9964_v3 }
0x1193   :  { %v12281_v60 = vpop.eup %12280 }
0x1194   :  { %v3906_v2 = vadd.f32 1.0, %v12281_v60  ;;  %v12283_v4 = vpop.eup %12282 }
0x1195   :  { %v3913_v15 = vadd.f32 1.0, %v12283_v4  ;;  %v4240_v4 = vld [vmem:[%s14618_s17] sm:$0xff] }
0x1196   :  { %12284 = vrcp.f32 %v3906_v2 }
0x1197   :  { %12286 = vrcp.f32 %v3913_v15  ;;  %v4241_v15 = vld [vmem:[%s14618_s17 + $0x8] sm:$0xff] }
0x11a0   :  { %v12285_v16 = vpop.eup %12284 }
0x11a1   :  { %v3916_v23 = vmul.f32 %v12285_v16, %v3899_v44  ;;  %v12287_v34 = vpop.eup %12286  ;;  %v4242_v44 = vld [vmem:[%s14618_s17 + $0x10] sm:$0xff]  ;;  %v13829_v16 = vpack.c.bf16 %v4241_v15, %v4240_v4 }
0x11a2   :  { %v3919_v8 = vsub.f32 1.0, %v12287_v34  ;;  %v3922_v54 = vmul.f32 %v12287_v34, %v13669_v63  ;;  %v13840_v34 = vld [vmem:[#allocation23] sm:$0x1] }
0x11a3   :  { %v3917_v50 = vadd.f32 %v3916_v23, %v3725_v57  ;;  %v4243_v57 = vld [vmem:[%s14618_s17 + $0x18] sm:$0xff] }
0x11a4   :  { %v13835_v23 = vpack.c.bf16 %v4243_v57, %v4242_v44 }
0x11a5   :  { %12288 = vtanh.f32 %v3917_v50 }
0x11af   :  { %v12289_v10 = vpop.eup %12288 }
0x11b0   :  { %v3920_v26 = vmul.f32 %v12289_v10, %v3919_v8 }
0x11b2   :  { %v13764_v21 = vadd.f32 %v3922_v54, %v3920_v26 }
0x11b4   :  { %10705 = vmatmul.mubr.msk.f32.vlgmr.msra.gmra.mrb[40].mxu1 %vm270_vm1, %v13764_v21 }
0x11b5   :  { %10708 = vmatpush3.msra.mxu1 %v13740_v14  ;;  %10709 = vmatprep.mubr.msk.f32.mxu1 %vm12834_vm0, %v12832_v0 }
0x11b6   :  { %11631 = vmatprep.subr.bf16.mxu1 %v12833_v1 }
0x1287   :  { %v3996_v27 = vpop.f32.mrb[40].mxu1 }
0x1288   :  { %v10706_v24 = vpop.f32.mrb[41].mxu1  ;;  %v4001_v29 = vsel %vm4000_vm11, %v3996_v27, -inf }
0x1289   :  { %4002 = vmax.xlane.f32.xlu0 %v4001_v29 }
0x1316   :  { %v4003_v9 = vpop.xlane.xlu0 %4002 }
0x1317   :  { %v4004_v63 = vsub.f32 %v3996_v27, %v4003_v9  ;;  %v13852_v27 = vld [vmem:[%s14619_s18] sm:$0x1] }
0x1319   :  { %v4005_v18 = vmul.f32 1.442695, %v4004_v63 }
0x131b   :  { %12290 = vpow2.f32 %v4005_v18 }
0x1325   :  { %v12291_v31 = vpop.eup %12290 }
0x1326   :  { %v4007_v32 = vsel %vm4000_vm11, %v12291_v31, 0.0 }
0x1327   :  { %4008 = vadd.xlane.f32.xlu0 %v4007_v32 }
0x13b4   :  { %v4009_v41 = vpop.xlane.xlu0 %4008 }
0x13b5   :  { %12292 = vrcp.f32 %v4009_v41 }
0x13bf   :  { %v12293_v17 = vpop.eup %12292 }
0x13c0   :  { %v4011_v22 = vmul.f32 %v12293_v17, %v12291_v31 }
0x13c2   :  { %10710 = vmatmul.mubr.msk.f32.vlgmr.msra.gmra.mrb[42].mxu1 %vm4012_vm12, %v4011_v22 }
0x13c3   :  { %11633 = vmatpush3.bf16.msra.mxu1 %v13788_v30  ;;  %10731 = vmatprep.mubr.msk.f32.mxu1 %vm12834_vm0, %v12832_v0 }
0x13c4   :  { %11634 = vmatprep.subr.bf16.mxu1 %v12833_v1 }
0x13c7   :  { %11636 = vmatpush3.bf16.msra.mxu1 %v13798_v58 }
0x13c8   :  { %11643 = vmatprep.subr.bf16.mxu1 %v12833_v1 }
0x13ca   :  { %10732 = vmatmul.mubr.msk.f32.vlgmr.msra.gmra.mrb[44].mxu1 %vm270_vm1, %v13764_v21 }
0x13cb   :  { %11645 = vmatpush3.bf16.msra.mxu1 %v13609_v33  ;;  %10761 = vmatprep.mubr.msk.f32.mxu1 %vm12834_vm0, %v12832_v0 }
0x13cc   :  { %11646 = vmatprep.subr.bf16.mxu1 %v12833_v1 }
0x13cf   :  { %11648 = vmatpush3.bf16.msra.mxu1 %v13625_v39 }
0x13d0   :  { %11649 = vmatprep.subr.bf16.mxu1 %v12833_v1 }
0x13d3   :  { %11651 = vmatpush3.bf16.msra.mxu1 %v13638_v45 }
0x13d4   :  { %11652 = vmatprep.subr.bf16.mxu1 %v12833_v1 }
0x13d7   :  { %11654 = vmatpush3.bf16.msra.mxu1 %v13651_v62 }
0x13d8   :  { %11677 = vmatprep.subr.bf16.mxu1 %v12833_v1 }
0x1495   :  { %v4082_v51 = vpop.f32.mrb[42].mxu1 }
0x1496   :  { %v10711_v3 = vpop.f32.mrb[43].mxu1  ;;  %10721 = vmatmul.mubr.msk.f32.vlgmr.msra.gmra.mrb[40].mxu0 %vm270_vm1, %v4082_v51 }
0x1497   :  { %10742 = vmatprep.mubr.msk.f32.mxu0 %vm12834_vm0, %v12832_v0  ;;  %11639 = vmatpush3.bf16.msra.mxu0 %v13829_v16 }
0x1498   :  { %11640 = vmatprep.subr.bf16.mxu0 %v12833_v1 }
0x149b   :  { %11642 = vmatpush3.bf16.msra.mxu0 %v13835_v23 }
0x149c   :  { %11656 = vmatprep.subr.bf16.mxu0 %v13676_v11 }
0x149d   :  { %v4233_v60 = vpop.f32.mrb[44].mxu1 }
0x149e   :  { %v10733_v2 = vpop.f32.mrb[45].mxu1 }
0x1569   :  { %v4163_v50 = vpop.f32.mrb[40].mxu0 }
0x156a   :  { %v4234_v8 = vadd.f32 %v4233_v60, %v4163_v50  ;;  %v10722_v10 = vpop.f32.mrb[41].mxu0 }
0x156c   :  { %v4238_v26 = vadd.f32 %v13840_v34, %v4234_v8 }
0x156e   :  { %12294 = vtanh.f32 %v4238_v26 }
0x1578   :  { %v12295_v54 = vpop.eup %12294 }
0x1579   :  { %10743 = vmatmul.mubr.msk.f32.vlgmr.msra.gmra.mrb[42].mxu0 %vm270_vm1, %v12295_v54 }
0x157a   :  { %11658 = vmatpush1.bf16.msra.mxu0 %v13678_v46  ;;  %4489 = vmatprep.mubr.f32.mxu0 %v12832_v0 }
0x157b   :  { %11660 = vmatprep.subr.bf16.mxu0 %v13682_v13 }
0x157e   :  { %11662 = vmatpush1.bf16.msra.mxu0 %v13684_v20 }
0x157f   :  { %11663 = vmatprep.subr.bf16.mxu0 %v12833_v1 }
0x164c   :  { %v4314_v24 = vpop.f32.mrb[42].mxu0 }
0x164d   :  { %v13855_v29 = vadd.f32 %v4314_v24, %v13852_v27  ;;  %v10744_v9 = vpop.f32.mrb[43].mxu0 }
0x164f   :  { %v4319_v63 = vsel %vm4318_vm13, %v13855_v29, -inf }
0x1650   :  { %4320 = vmax.xlane.f32.xlu1 %v4319_v63 }
0x16dd   :  { %v13859_v18 = vpop.xlane.xlu1 %4320 }
0x16de   :  { %vm4329_vm14 = vcmp.eq.f32.partialorder %v13855_v29, %v13859_v18 }
0x16df   :  { %v4330_v31 = vsel %vm4329_vm14, %v13641_v47, 64 }
0x16e0   :  { %v4331_v32 = vsel %vm4318_vm13, %v4330_v31, 2147483647 }
0x16e1   :  { %v4333_v36 = vshra.s32 %v4331_v32, 16  ;;  %v4332_v35 = vand.u32 65535, %v4331_v32 }
0x16e3   :  { %v4335_v38 = vcvt.s32.f32 %v4333_v36  ;;  %v4334_v41 = vcvt.s32.f32 %v4332_v35 }
0x16e5   :  { %4336 = vmin.xlane.f32.xlu1 %v4335_v38 }
0x1772   :  { %v4337_v52 = vpop.xlane.xlu1 %4336 }
0x1773   :  { %vm4338_vm15 = vcmp.eq.f32.partialorder %v4335_v38, %v4337_v52  ;;  %v4343_v56 = vcvt.f32.s32 %v4337_v52 }
0x1774   :  { %v4339_v48 = vsel %vm4338_vm15, %v4334_v41, inf }
0x1775   :  { %4340 = vmin.xlane.f32.xlu0 %v4339_v48  ;;  %v4344_v22 = vshll.u32 %v4343_v56, 16 }
0x1802   :  { %v4341_v17 = vpop.xlane.xlu0 %4340 }
0x1803   :  { %v4342_v37 = vcvt.f32.s32 %v4341_v17 }
0x1805   :  { %v13865_v25 = vadd.s32 %v4344_v22, %v4342_v37 }
0x1807   :  { %vm4346_vm2 = vcmp.eq.s32.totalorder %v13641_v47, %v13865_v25 }
0x1808   :  { %v9971_v51 = vsel %vm4346_vm2, 1.0, %v12832_v0 }
0x1809   :  { %10762 = vmatmul.mubr.msk.f32.vlgmr.msra.gmra.mrb[46].mxu1 %vm3481_vm10, %v9971_v51 }
0x180a   :  { %11679 = vmatpush3.bf16.msra.mxu1 %v13657_v55  ;;  %10783 = vmatprep.mubr.msk.f32.mxu1 %vm12834_vm0, %v12832_v0 }
0x180b   :  { %11680 = vmatprep.subr.bf16.mxu1 %v12833_v1 }
0x180e   :  { %11682 = vmatpush3.bf16.msra.mxu1 %v13662_v5 }
0x180f   :  { %10786 = vmatprep.subr.mxu1 %v12832_v0 }
0x1811   :  { %10784 = vmatmul.mubr.msk.f32.vlgmr.msra.gmra.mrb[48].mxu1 %vm270_vm1, %v13764_v21 }
0x1812   :  { %10788 = vmatprep.mubr.msk.f32.mxu1 %vm12834_vm0, %v12832_v0 }
0x1817   :  { %10787 = vmatpush3.xpose.msk.msra.mxu1 %vm270_vm1, %v13740_v14 }
0x1818   :  { %10791 = vmatprep.subr.mxu1 %v12832_v0 }
0x18dc   :  { %v4418_v3 = vpop.f32.mrb[46].mxu1 }
0x18dd   :  { %v10763_v60 = vpop.f32.mrb[47].mxu1  ;;  %9973 = vmatmul.mubr.msk.f32.vlgmr.msra.gmra.mrb[44].mxu0 %vm270_vm1, %v4418_v3 }
0x18de   :  { %11665 = vmatpush3.bf16.msra.mxu0 %v13693_v43  ;;  %10772 = vmatprep.mubr.msk.f32.mxu0 %vm12834_vm0, %v12832_v0 }
0x18df   :  { %11666 = vmatprep.subr.bf16.mxu0 %v12833_v1 }
0x18e2   :  { %11668 = vmatpush3.bf16.msra.mxu0 %v13697_v19 }
0x18e3   :  { %11670 = vmatprep.subr.bf16.mxu0 %v13702_v40 }
0x18e4   :  { %v4703_v2 = vpop.f32.mrb[48].mxu1 }
0x18e5   :  { %10773 = vmatmul.mubr.msk.f32.vlgmr.msra.gmra.mrb[46].mxu0 %vm270_vm1, %v4418_v3  ;;  %v10785_v4 = vpop.f32.mrb[49].mxu1  ;;  %v4704_v32 = vadd.f32 %v4703_v2, %v13756_v6 }
0x18e6   :  { %11672 = vmatpush1.bf16.msra.mxu0 %v13705_v59  ;;  %4630 = vmatprep.mubr.f32.mxu0 %v12832_v0 }
0x18e7   :  { %11674 = vmatprep.subr.bf16.mxu0 %v13708_v61 }
0x18ea   :  { %11676 = vmatpush1.bf16.msra.mxu0 %v13712_v28 }
0x18eb   :  { %11683 = vmatprep.subr.bf16.mxu0 %v12833_v1 }
0x18ed   :  { %9975 = vmatmul.mubr.msk.f32.vlgmr.msra.gmra.mrb[44].mxu0 %vm270_vm1, %v13764_v21 }
0x18ee   :  { %11685 = vmatpush3.bf16.msra.mxu0 %v13774_v53  ;;  %10804 = vmatprep.mubr.msk.f32.mxu0 %vm12834_vm0, %v12832_v0 }
0x18ef   :  { %11686 = vmatprep.subr.bf16.mxu0 %v12833_v1 }
0x18f2   :  { %11688 = vmatpush3.bf16.msra.mxu0 %v13777_v7 }
0x18f3   :  { %11695 = vmatprep.subr.bf16.mxu0 %v12833_v1 }
0x19b8   :  { %v4562_v15 = vpop.f32.mrb[46].mxu0 }
0x19b9   :  { %v10774_v44 = vpop.f32.mrb[47].mxu0  ;;  %v4563_v38 = vadd.f32 %v4562_v15, %v13759_v12 }
0x19c0   :  { %v4632_v57 = vpop.f32.mrb[44].mxu0 }
0x19c1   :  { %v12054_v50 = vadd.f32 %v13749_v42, %v4632_v57  ;;  %v4634_v8 = vpop.f32.mrb[45].mxu0 }
0x19c2   :  { %v12056_v26 = vadd.f32 %v13751_v49, %v4634_v8 }
0x19c3   :  { %v9977_v10 = vmul.f32 -1.442695, %v12054_v50 }
0x19c4   :  { %v9978_v54 = vmul.f32 -1.442695, %v12056_v26 }
0x19c5   :  { %12296 = vpow2.f32 %v9977_v10 }
0x19c6   :  { %12298 = vpow2.f32 %v9978_v54 }
0x19cf   :  { %v12297_v24 = vpop.eup %12296 }
0x19d0   :  { %v4711_v9 = vadd.f32 1.0, %v12297_v24  ;;  %v12299_v63 = vpop.eup %12298 }
0x19d1   :  { %v4718_v31 = vadd.f32 1.0, %v12299_v63 }
0x19d2   :  { %12300 = vrcp.f32 %v4711_v9 }
0x19d3   :  { %12302 = vrcp.f32 %v4718_v31 }
0x19dc   :  { %v12301_v36 = vpop.eup %12300 }
0x19dd   :  { %v4721_v35 = vmul.f32 %v12301_v36, %v4704_v32  ;;  %v12303_v41 = vpop.eup %12302 }
0x19de   :  { %v4724_v48 = vsub.f32 1.0, %v12303_v41  ;;  %v4726_v22 = vmul.f32 %v12303_v41, %v13764_v21 }
0x19df   :  { %v4722_v52 = vadd.f32 %v4721_v35, %v4563_v38 }
0x19e1   :  { %12304 = vtanh.f32 %v4722_v52 }
0x19eb   :  { %v12305_v56 = vpop.eup %12304 }
0x19ec   :  { %v4725_v17 = vmul.f32 %v12305_v56, %v4724_v48 }
0x19ee   :  { %v13910_v37 = vadd.f32 %v4726_v22, %v4725_v17 }
0x19f0   :  { %10789 = vmatmul.mubr.msk.f32.vlgmr.msra.gmra.mrb[50].mxu1 %vm270_vm1, %v13910_v37 }
0x19f1   :  { %10792 = vmatpush3.msra.mxu1 %v13740_v14  ;;  %10793 = vmatprep.mubr.msk.f32.mxu1 %vm12834_vm0, %v12832_v0 }
0x19f2   :  { %11689 = vmatprep.subr.bf16.mxu1 %v12833_v1 }
0x1ac3   :  { %v4797_v51 = vpop.f32.mrb[50].mxu1 }
0x1ac4   :  { %v10790_v3 = vpop.f32.mrb[51].mxu1  ;;  %v4801_v60 = vsel %vm4000_vm11, %v4797_v51, -inf }
0x1ac5   :  { %4802 = vmax.xlane.f32.xlu1 %v4801_v60 }
0x1b52   :  { %v4803_v2 = vpop.xlane.xlu1 %4802 }
0x1b53   :  { %v4804_v4 = vsub.f32 %v4797_v51, %v4803_v2 }
0x1b55   :  { %v4805_v21 = vmul.f32 1.442695, %v4804_v4 }
0x1b57   :  { %12306 = vpow2.f32 %v4805_v21 }
0x1b61   :  { %v12307_v15 = vpop.eup %12306 }
0x1b62   :  { %v4807_v44 = vsel %vm4000_vm11, %v12307_v15, 0.0 }
0x1b63   :  { %4808 = vadd.xlane.f32.xlu0 %v4807_v44 }
0x1bf0   :  { %v4809_v57 = vpop.xlane.xlu0 %4808 }
0x1bf1   :  { %12308 = vrcp.f32 %v4809_v57 }
0x1bfb   :  { %v12309_v50 = vpop.eup %12308 }
0x1bfc   :  { %v4811_v8 = vmul.f32 %v12309_v50, %v12307_v15 }
0x1bfe   :  { %10794 = vmatmul.mubr.msk.f32.vlgmr.msra.gmra.mrb[52].mxu1 %vm4012_vm12, %v4811_v8 }
0x1bff   :  { %11691 = vmatpush3.bf16.msra.mxu1 %v13788_v30  ;;  %10815 = vmatprep.mubr.msk.f32.mxu1 %vm12834_vm0, %v12832_v0 }
0x1c00   :  { %11692 = vmatprep.subr.bf16.mxu1 %v12833_v1 }
0x1c03   :  { %11694 = vmatpush3.bf16.msra.mxu1 %v13798_v58 }
0x1c04   :  { %11701 = vmatprep.subr.bf16.mxu1 %v12833_v1 }
0x1c06   :  { %10816 = vmatmul.mubr.msk.f32.vlgmr.msra.gmra.mrb[54].mxu1 %vm270_vm1, %v13910_v37 }
0x1c07   :  { %11703 = vmatpush3.bf16.msra.mxu1 %v13609_v33  ;;  %10845 = vmatprep.mubr.msk.f32.mxu1 %vm12834_vm0, %v12832_v0 }
0x1c08   :  { %11704 = vmatprep.subr.bf16.mxu1 %v12833_v1 }
0x1c0b   :  { %11706 = vmatpush3.bf16.msra.mxu1 %v13625_v39 }
0x1c0c   :  { %11707 = vmatprep.subr.bf16.mxu1 %v12833_v1 }
0x1c0f   :  { %11709 = vmatpush3.bf16.msra.mxu1 %v13638_v45 }
0x1c10   :  { %11710 = vmatprep.subr.bf16.mxu1 %v12833_v1 }
0x1c13   :  { %11712 = vmatpush3.bf16.msra.mxu1 %v13651_v62 }
0x1c14   :  { %11735 = vmatprep.subr.bf16.mxu1 %v12833_v1 }
0x1cd1   :  { %v4881_v10 = vpop.f32.mrb[52].mxu1 }
0x1cd2   :  { %v10795_v26 = vpop.f32.mrb[53].mxu1  ;;  %10805 = vmatmul.mubr.msk.f32.vlgmr.msra.gmra.mrb[48].mxu0 %vm270_vm1, %v4881_v10 }
0x1cd3   :  { %11697 = vmatpush3.bf16.msra.mxu0 %v13829_v16  ;;  %10826 = vmatprep.mubr.msk.f32.mxu0 %vm12834_vm0, %v12832_v0 }
0x1cd4   :  { %11698 = vmatprep.subr.bf16.mxu0 %v12833_v1 }
0x1cd7   :  { %11700 = vmatpush3.bf16.msra.mxu0 %v13835_v23 }
0x1cd8   :  { %11714 = vmatprep.subr.bf16.mxu0 %v13676_v11 }
0x1cd9   :  { %v5024_v54 = vpop.f32.mrb[54].mxu1 }
0x1cda   :  { %v10817_v24 = vpop.f32.mrb[55].mxu1 }
0x1da5   :  { %v4954_v9 = vpop.f32.mrb[48].mxu0 }
0x1da6   :  { %v5025_v63 = vadd.f32 %v5024_v54, %v4954_v9  ;;  %v10806_v31 = vpop.f32.mrb[49].mxu0 }
0x1da8   :  { %v5028_v32 = vadd.f32 %v5025_v63, %v13840_v34 }
0x1daa   :  { %12310 = vtanh.f32 %v5028_v32 }
0x1db4   :  { %v12311_v36 = vpop.eup %12310 }
0x1db5   :  { %10827 = vmatmul.mubr.msk.f32.vlgmr.msra.gmra.mrb[50].mxu0 %vm270_vm1, %v12311_v36 }
0x1db6   :  { %11716 = vmatpush1.bf16.msra.mxu0 %v13678_v46  ;;  %5273 = vmatprep.mubr.f32.mxu0 %v12832_v0 }
0x1db7   :  { %11718 = vmatprep.subr.bf16.mxu0 %v13682_v13 }
0x1dba   :  { %11720 = vmatpush1.bf16.msra.mxu0 %v13684_v20 }
0x1dbb   :  { %11721 = vmatprep.subr.bf16.mxu0 %v12833_v1 }
0x1e88   :  { %v5099_v38 = vpop.f32.mrb[50].mxu0 }
0x1e89   :  { %v13954_v35 = vadd.f32 %v5099_v38, %v13852_v27  ;;  %v10828_v52 = vpop.f32.mrb[51].mxu0 }
0x1e8b   :  { %v5103_v41 = vsel %vm4318_vm13, %v13954_v35, -inf }
0x1e8c   :  { %5104 = vmax.xlane.f32.xlu1 %v5103_v41 }
0x1f19   :  { %v13958_v48 = vpop.xlane.xlu1 %5104 }
0x1f1a   :  { %vm5113_vm3 = vcmp.eq.f32.partialorder %v13954_v35, %v13958_v48 }
0x1f1b   :  { %v5114_v56 = vsel %vm5113_vm3, %v13641_v47, 64  ;;  %vm9838_vm3 = vcmask 23552  }
0x1f1c   :  { %v5115_v17 = vsel %vm4318_vm13, %v5114_v56, 2147483647 }
0x1f1d   :  { %v5117_v22 = vshra.s32 %v5115_v17, 16  ;;  %v5116_v3 = vand.u32 65535, %v5115_v17 }
0x1f1f   :  { %v5119_v51 = vcvt.s32.f32 %v5117_v22  ;;  %v5118_v2 = vcvt.s32.f32 %v5116_v3 }
0x1f21   :  { %5120 = vmin.xlane.f32.xlu0 %v5119_v51 }
0x1fae   :  { %v5121_v60 = vpop.xlane.xlu0 %5120 }
0x1faf   :  { %vm5122_vm4 = vcmp.eq.f32.partialorder %v5119_v51, %v5121_v60  ;;  %v5127_v21 = vcvt.f32.s32 %v5121_v60 }
0x1fb0   :  { %v5123_v4 = vsel %vm5122_vm4, %v5118_v2, inf }
0x1fb1   :  { %5124 = vmin.xlane.f32.xlu1 %v5123_v4  ;;  %v5128_v44 = vshll.u32 %v5127_v21, 16 }
0x203e   :  { %v5125_v15 = vpop.xlane.xlu1 %5124 }
0x203f   :  { %v5126_v57 = vcvt.f32.s32 %v5125_v15 }
0x2041   :  { %v13964_v50 = vadd.s32 %v5128_v44, %v5126_v57 }
0x2043   :  { %vm5130_vm5 = vcmp.eq.s32.totalorder %v13641_v47, %v13964_v50 }
0x2044   :  { %v9985_v8 = vsel %vm5130_vm5, 1.0, %v12832_v0 }
0x2045   :  { %10846 = vmatmul.mubr.msk.f32.vlgmr.msra.gmra.mrb[56].mxu1 %vm3481_vm10, %v9985_v8 }
0x2046   :  { %11737 = vmatpush3.bf16.msra.mxu1 %v13657_v55  ;;  %10867 = vmatprep.mubr.msk.f32.mxu1 %vm12834_vm0, %v12832_v0 }
0x2047   :  { %11738 = vmatprep.subr.bf16.mxu1 %v12833_v1 }
0x204a   :  { %11740 = vmatpush3.bf16.msra.mxu1 %v13662_v5 }
0x204b   :  { %10870 = vmatprep.subr.mxu1 %v12832_v0 }
0x204d   :  { %10868 = vmatmul.mubr.msk.f32.vlgmr.msra.gmra.mrb[58].mxu1 %vm270_vm1, %v13910_v37 }
0x204e   :  { %10872 = vmatprep.mubr.msk.f32.mxu1 %vm12834_vm0, %v12832_v0 }
0x2053   :  { %10871 = vmatpush3.xpose.msk.msra.mxu1 %vm270_vm1, %v13740_v14 }
0x2054   :  { %10875 = vmatprep.subr.mxu1 %v12832_v0 }
0x2118   :  { %v5202_v10 = vpop.f32.mrb[56].mxu1 }
0x2119   :  { %v10847_v26 = vpop.f32.mrb[57].mxu1  ;;  %9987 = vmatmul.mubr.msk.f32.vlgmr.msra.gmra.mrb[52].mxu0 %vm270_vm1, %v5202_v10 }
0x211a   :  { %11723 = vmatpush3.bf16.msra.mxu0 %v13693_v43  ;;  %10856 = vmatprep.mubr.msk.f32.mxu0 %vm12834_vm0, %v12832_v0 }
0x211b   :  { %11724 = vmatprep.subr.bf16.mxu0 %v12833_v1 }
0x211e   :  { %11726 = vmatpush3.bf16.msra.mxu0 %v13697_v19 }
0x211f   :  { %11728 = vmatprep.subr.bf16.mxu0 %v13702_v40 }
0x2120   :  { %v5487_v54 = vpop.f32.mrb[58].mxu1 }
0x2121   :  { %10857 = vmatmul.mubr.msk.f32.vlgmr.msra.gmra.mrb[54].mxu0 %vm270_vm1, %v5202_v10  ;;  %v10869_v24 = vpop.f32.mrb[59].mxu1  ;;  %v5488_v3 = vadd.f32 %v5487_v54, %v13756_v6 }
0x2122   :  { %11730 = vmatpush1.bf16.msra.mxu0 %v13705_v59  ;;  %5414 = vmatprep.mubr.f32.mxu0 %v12832_v0 }
0x2123   :  { %11732 = vmatprep.subr.bf16.mxu0 %v13708_v61 }
0x2126   :  { %11734 = vmatpush1.bf16.msra.mxu0 %v13712_v28 }
0x2127   :  { %11741 = vmatprep.subr.bf16.mxu0 %v12833_v1 }
0x2129   :  { %9989 = vmatmul.mubr.msk.f32.vlgmr.msra.gmra.mrb[52].mxu0 %vm270_vm1, %v13910_v37 }
0x212a   :  { %11743 = vmatpush3.bf16.msra.mxu0 %v13774_v53  ;;  %10888 = vmatprep.mubr.msk.f32.mxu0 %vm12834_vm0, %v12832_v0 }
0x212b   :  { %11744 = vmatprep.subr.bf16.mxu0 %v12833_v1 }
0x212e   :  { %11746 = vmatpush3.bf16.msra.mxu0 %v13777_v7 }
0x212f   :  { %11753 = vmatprep.subr.bf16.mxu0 %v12833_v1 }
0x21f4   :  { %v5346_v9 = vpop.f32.mrb[54].mxu0 }
0x21f5   :  { %v10858_v63 = vpop.f32.mrb[55].mxu0  ;;  %v5347_v2 = vadd.f32 %v5346_v9, %v13759_v12 }
0x21fc   :  { %v5416_v31 = vpop.f32.mrb[52].mxu0 }
0x21fd   :  { %v12058_v32 = vadd.f32 %v13749_v42, %v5416_v31  ;;  %v5418_v36 = vpop.f32.mrb[53].mxu0 }
0x21fe   :  { %v12060_v52 = vadd.f32 %v13751_v49, %v5418_v36 }
0x21ff   :  { %v9991_v38 = vmul.f32 -1.442695, %v12058_v32 }
0x2200   :  { %v9992_v41 = vmul.f32 -1.442695, %v12060_v52 }
0x2201   :  { %12312 = vpow2.f32 %v9991_v38 }
0x2202   :  { %12314 = vpow2.f32 %v9992_v41 }
0x220b   :  { %v12313_v56 = vpop.eup %12312 }
0x220c   :  { %v5495_v17 = vadd.f32 1.0, %v12313_v56  ;;  %v12315_v22 = vpop.eup %12314 }
0x220d   :  { %v5502_v51 = vadd.f32 1.0, %v12315_v22 }
0x220e   :  { %12316 = vrcp.f32 %v5495_v17 }
0x220f   :  { %12318 = vrcp.f32 %v5502_v51 }
0x2218   :  { %v12317_v60 = vpop.eup %12316 }
0x2219   :  { %v5505_v4 = vmul.f32 %v12317_v60, %v5488_v3  ;;  %v12319_v15 = vpop.eup %12318 }
0x221a   :  { %v5508_v44 = vsub.f32 1.0, %v12319_v15  ;;  %v5510_v10 = vmul.f32 %v12319_v15, %v13910_v37 }
0x221b   :  { %v5506_v21 = vadd.f32 %v5505_v4, %v5347_v2 }
0x221d   :  { %12320 = vtanh.f32 %v5506_v21 }
0x2227   :  { %v12321_v57 = vpop.eup %12320 }
0x2228   :  { %v5509_v8 = vmul.f32 %v12321_v57, %v5508_v44 }
0x222a   :  { %v14009_v26 = vadd.f32 %v5510_v10, %v5509_v8 }
0x222c   :  { %10873 = vmatmul.mubr.msk.f32.vlgmr.msra.gmra.mrb[60].mxu1 %vm270_vm1, %v14009_v26 }
0x222d   :  { %10876 = vmatpush3.msra.mxu1 %v13740_v14  ;;  %10877 = vmatprep.mubr.msk.f32.mxu1 %vm12834_vm0, %v12832_v0 }
0x222e   :  { %11747 = vmatprep.subr.bf16.mxu1 %v12833_v1 }
0x22ff   :  { %v5581_v54 = vpop.f32.mrb[60].mxu1 }
0x2300   :  { %v10874_v24 = vpop.f32.mrb[61].mxu1  ;;  %v5585_v9 = vsel %vm4000_vm11, %v5581_v54, -inf }
0x2301   :  { %5586 = vmax.xlane.f32.xlu0 %v5585_v9 }
0x238e   :  { %v5587_v63 = vpop.xlane.xlu0 %5586 }
0x238f   :  { %v5588_v31 = vsub.f32 %v5581_v54, %v5587_v63 }
0x2391   :  { %v5589_v37 = vmul.f32 1.442695, %v5588_v31 }
0x2393   :  { %12322 = vpow2.f32 %v5589_v37 }
0x239d   :  { %v12323_v32 = vpop.eup %12322 }
0x239e   :  { %v5591_v36 = vsel %vm4000_vm11, %v12323_v32, 0.0 }
0x239f   :  { %5592 = vadd.xlane.f32.xlu1 %v5591_v36 }
0x242c   :  { %v5593_v38 = vpop.xlane.xlu1 %5592 }
0x242d   :  { %12324 = vrcp.f32 %v5593_v38 }
0x2437   :  { %v12325_v52 = vpop.eup %12324 }
0x2438   :  { %v5595_v41 = vmul.f32 %v12325_v52, %v12323_v32 }
0x243a   :  { %10878 = vmatmul.mubr.msk.f32.vlgmr.msra.gmra.mrb[62].mxu1 %vm4012_vm12, %v5595_v41 }
0x243b   :  { %11749 = vmatpush3.bf16.msra.mxu1 %v13788_v30  ;;  %10899 = vmatprep.mubr.msk.f32.mxu1 %vm12834_vm0, %v12832_v0 }
0x243c   :  { %11750 = vmatprep.subr.bf16.mxu1 %v12833_v1 }
0x243f   :  { %11752 = vmatpush3.bf16.msra.mxu1 %v13798_v58 }
0x2440   :  { %11759 = vmatprep.subr.bf16.mxu1 %v12833_v1 }
0x2442   :  { %10900 = vmatmul.mubr.msk.f32.vlgmr.msra.gmra.mrb[64].mxu1 %vm270_vm1, %v14009_v26 }
0x2443   :  { %11761 = vmatpush3.bf16.msra.mxu1 %v13609_v33  ;;  %10929 = vmatprep.mubr.msk.f32.mxu1 %vm12834_vm0, %v12832_v0 }
0x2444   :  { %11762 = vmatprep.subr.bf16.mxu1 %v12833_v1 }
0x2447   :  { %11764 = vmatpush3.bf16.msra.mxu1 %v13625_v39 }
0x2448   :  { %11765 = vmatprep.subr.bf16.mxu1 %v12833_v1 }
0x244b   :  { %11767 = vmatpush3.bf16.msra.mxu1 %v13638_v45 }
0x244c   :  { %11768 = vmatprep.subr.bf16.mxu1 %v12833_v1 }
0x244f   :  { %11770 = vmatpush3.bf16.msra.mxu1 %v13651_v62 }
0x2450   :  { %11793 = vmatprep.subr.bf16.mxu1 %v12833_v1 }
0x250d   :  { %v5665_v56 = vpop.f32.mrb[62].mxu1 }
0x250e   :  { %v10879_v17 = vpop.f32.mrb[63].mxu1  ;;  %10889 = vmatmul.mubr.msk.f32.vlgmr.msra.gmra.mrb[56].mxu0 %vm270_vm1, %v5665_v56 }
0x250f   :  { %11755 = vmatpush3.bf16.msra.mxu0 %v13829_v16  ;;  %10910 = vmatprep.mubr.msk.f32.mxu0 %vm12834_vm0, %v12832_v0 }
0x2510   :  { %11756 = vmatprep.subr.bf16.mxu0 %v12833_v1 }
0x2513   :  { %11758 = vmatpush3.bf16.msra.mxu0 %v13835_v23 }
0x2514   :  { %11772 = vmatprep.subr.bf16.mxu0 %v13676_v11 }
0x2515   :  { %v5808_v22 = vpop.f32.mrb[64].mxu1 }
0x2516   :  { %v10901_v51 = vpop.f32.mrb[65].mxu1 }
0x25e1   :  { %v5738_v3 = vpop.f32.mrb[56].mxu0 }
0x25e2   :  { %v5809_v60 = vadd.f32 %v5808_v22, %v5738_v3  ;;  %v10890_v2 = vpop.f32.mrb[57].mxu0  ;;  %v9835_v22 = vsel %vm9834_vm8, %v13865_v25, %v13964_v50 }
0x25e4   :  { %v5812_v4 = vadd.f32 %v5809_v60, %v13840_v34 }
0x25e6   :  { %12326 = vtanh.f32 %v5812_v4 }
0x25f0   :  { %v12327_v21 = vpop.eup %12326 }
0x25f1   :  { %10911 = vmatmul.mubr.msk.f32.vlgmr.msra.gmra.mrb[58].mxu0 %vm270_vm1, %v12327_v21 }
0x25f2   :  { %11774 = vmatpush1.bf16.msra.mxu0 %v13678_v46  ;;  %6057 = vmatprep.mubr.f32.mxu0 %v12832_v0 }
0x25f3   :  { %11776 = vmatprep.subr.bf16.mxu0 %v13682_v13 }
0x25f6   :  { %11778 = vmatpush1.bf16.msra.mxu0 %v13684_v20 }
0x25f7   :  { %11779 = vmatprep.subr.bf16.mxu0 %v12833_v1 }
0x26c4   :  { %v5883_v15 = vpop.f32.mrb[58].mxu0 }
0x26c5   :  { %v14053_v44 = vadd.f32 %v5883_v15, %v13852_v27  ;;  %v10912_v57 = vpop.f32.mrb[59].mxu0 }
0x26c7   :  { %v5887_v8 = vsel %vm4318_vm13, %v14053_v44, -inf }
0x26c8   :  { %5888 = vmax.xlane.f32.xlu0 %v5887_v8 }
0x2755   :  { %v14057_v10 = vpop.xlane.xlu0 %5888 }
0x2756   :  { %vm5897_vm6 = vcmp.eq.f32.partialorder %v14053_v44, %v14057_v10 }
0x2757   :  { %v5898_v54 = vsel %vm5897_vm6, %v13641_v47, 64 }
0x2758   :  { %v5899_v24 = vsel %vm4318_vm13, %v5898_v54, 2147483647 }
0x2759   :  { %v5901_v9 = vshra.s32 %v5899_v24, 16  ;;  %v5900_v31 = vand.u32 65535, %v5899_v24 }
0x275b   :  { %v5903_v63 = vcvt.s32.f32 %v5901_v9  ;;  %v5902_v32 = vcvt.s32.f32 %v5900_v31 }
0x275d   :  { %5904 = vmin.xlane.f32.xlu1 %v5903_v63 }
0x27ea   :  { %v5905_v37 = vpop.xlane.xlu1 %5904 }
0x27eb   :  { %vm5906_vm7 = vcmp.eq.f32.partialorder %v5903_v63, %v5905_v37  ;;  %v5911_v38 = vcvt.f32.s32 %v5905_v37 }
0x27ec   :  { %v5907_v36 = vsel %vm5906_vm7, %v5902_v32, inf  ;;  %vm9840_vm7 = vcmask 31744  }
0x27ed   :  { %5908 = vmin.xlane.f32.xlu0 %v5907_v36  ;;  %v5912_v41 = vshll.u32 %v5911_v38, 16 }
0x287a   :  { %v5909_v52 = vpop.xlane.xlu0 %5908 }
0x287b   :  { %v5910_v56 = vcvt.f32.s32 %v5909_v52 }
0x287d   :  { %v5913_v17 = vadd.s32 %v5912_v41, %v5910_v56 }
0x287f   :  { %vm5914_vm14 = vcmp.eq.s32.totalorder %v13641_v47, %v5913_v17  ;;  %v14068_v51 = vsel %vm9836_vm9, %v9835_v22, %v5913_v17 }
0x2880   :  { %v9999_v3 = vsel %vm5914_vm14, 1.0, %v12832_v0 }
0x2881   :  { %10930 = vmatmul.mubr.msk.f32.vlgmr.msra.gmra.mrb[66].mxu1 %vm3481_vm10, %v9999_v3 }
0x2882   :  { %11795 = vmatpush3.bf16.msra.mxu1 %v13657_v55  ;;  %10951 = vmatprep.mubr.msk.f32.mxu1 %vm12834_vm0, %v12832_v0 }
0x2883   :  { %11796 = vmatprep.subr.bf16.mxu1 %v12833_v1 }
0x2886   :  { %11798 = vmatpush3.bf16.msra.mxu1 %v13662_v5 }
0x2887   :  { %10954 = vmatprep.subr.mxu1 %v12832_v0 }
0x2889   :  { %10952 = vmatmul.mubr.msk.f32.vlgmr.msra.gmra.mrb[68].mxu1 %vm270_vm1, %v14009_v26 }
0x288a   :  { %10956 = vmatprep.mubr.msk.f32.mxu1 %vm12834_vm0, %v12832_v0 }
0x288f   :  { %10955 = vmatpush3.xpose.msk.msra.mxu1 %vm270_vm1, %v13740_v14 }
0x2890   :  { %10959 = vmatprep.subr.mxu1 %v12832_v0 }
0x2954   :  { %v5986_v25 = vpop.f32.mrb[66].mxu1 }
0x2955   :  { %v10931_v50 = vpop.f32.mrb[67].mxu1  ;;  %10001 = vmatmul.mubr.msk.f32.vlgmr.msra.gmra.mrb[60].mxu0 %vm270_vm1, %v5986_v25 }
0x2956   :  { %11781 = vmatpush3.bf16.msra.mxu0 %v13693_v43  ;;  %10940 = vmatprep.mubr.msk.f32.mxu0 %vm12834_vm0, %v12832_v0 }
0x2957   :  { %11782 = vmatprep.subr.bf16.mxu0 %v12833_v1 }
0x295a   :  { %11784 = vmatpush3.bf16.msra.mxu0 %v13697_v19 }
0x295b   :  { %11786 = vmatprep.subr.bf16.mxu0 %v13702_v40 }
0x295c   :  { %v6271_v60 = vpop.f32.mrb[68].mxu1 }
0x295d   :  { %10941 = vmatmul.mubr.msk.f32.vlgmr.msra.gmra.mrb[62].mxu0 %vm270_vm1, %v5986_v25  ;;  %v10953_v2 = vpop.f32.mrb[69].mxu1  ;;  %v6272_v36 = vadd.f32 %v6271_v60, %v13756_v6 }
0x295e   :  { %11788 = vmatpush1.bf16.msra.mxu0 %v13705_v59  ;;  %6198 = vmatprep.mubr.f32.mxu0 %v12832_v0 }
0x295f   :  { %11790 = vmatprep.subr.bf16.mxu0 %v13708_v61 }
0x2962   :  { %11792 = vmatpush1.bf16.msra.mxu0 %v13712_v28 }
0x2963   :  { %11799 = vmatprep.subr.bf16.mxu0 %v12833_v1 }
0x2965   :  { %10003 = vmatmul.mubr.msk.f32.vlgmr.msra.gmra.mrb[60].mxu0 %vm270_vm1, %v14009_v26 }
0x2966   :  { %11801 = vmatpush3.bf16.msra.mxu0 %v13774_v53  ;;  %10972 = vmatprep.mubr.msk.f32.mxu0 %vm12834_vm0, %v12832_v0 }
0x2967   :  { %11802 = vmatprep.subr.bf16.mxu0 %v12833_v1 }
0x296a   :  { %11804 = vmatpush3.bf16.msra.mxu0 %v13777_v7 }
0x296b   :  { %11811 = vmatprep.subr.bf16.mxu0 %v12833_v1 }
0x2a30   :  { %v6130_v4 = vpop.f32.mrb[62].mxu0 }
0x2a31   :  { %v10942_v21 = vpop.f32.mrb[63].mxu0  ;;  %v6131_v52 = vadd.f32 %v6130_v4, %v13759_v12 }
0x2a38   :  { %v6200_v15 = vpop.f32.mrb[60].mxu0 }
0x2a39   :  { %v12062_v57 = vadd.f32 %v13749_v42, %v6200_v15  ;;  %v6202_v8 = vpop.f32.mrb[61].mxu0 }
0x2a3a   :  { %v12064_v24 = vadd.f32 %v13751_v49, %v6202_v8 }
0x2a3b   :  { %v10005_v54 = vmul.f32 -1.442695, %v12062_v57 }
0x2a3c   :  { %v10006_v9 = vmul.f32 -1.442695, %v12064_v24 }
0x2a3d   :  { %12328 = vpow2.f32 %v10005_v54 }
0x2a3e   :  { %12330 = vpow2.f32 %v10006_v9 }
0x2a47   :  { %v12329_v63 = vpop.eup %12328 }
0x2a48   :  { %v6279_v31 = vadd.f32 1.0, %v12329_v63  ;;  %v12331_v37 = vpop.eup %12330 }
0x2a49   :  { %v6286_v32 = vadd.f32 1.0, %v12331_v37 }
0x2a4a   :  { %12332 = vrcp.f32 %v6279_v31 }
0x2a4b   :  { %12334 = vrcp.f32 %v6286_v32 }
0x2a54   :  { %v12333_v38 = vpop.eup %12332 }
0x2a55   :  { %v6289_v41 = vmul.f32 %v12333_v38, %v6272_v36  ;;  %v12335_v17 = vpop.eup %12334 }
0x2a56   :  { %v6292_v22 = vsub.f32 1.0, %v12335_v17  ;;  %v6294_v50 = vmul.f32 %v12335_v17, %v14009_v26 }
0x2a57   :  { %v6290_v56 = vadd.f32 %v6289_v41, %v6131_v52 }
0x2a59   :  { %12336 = vtanh.f32 %v6290_v56 }
0x2a63   :  { %v12337_v3 = vpop.eup %12336 }
0x2a64   :  { %v6293_v25 = vmul.f32 %v12337_v3, %v6292_v22 }
0x2a66   :  { %v14111_v2 = vadd.f32 %v6294_v50, %v6293_v25 }
0x2a68   :  { %10957 = vmatmul.mubr.msk.f32.vlgmr.msra.gmra.mrb[70].mxu1 %vm270_vm1, %v14111_v2 }
0x2a69   :  { %10960 = vmatpush3.msra.mxu1 %v13740_v14  ;;  %10961 = vmatprep.mubr.msk.f32.mxu1 %vm12834_vm0, %v12832_v0 }
0x2a6a   :  { %11805 = vmatprep.subr.bf16.mxu1 %v12833_v1 }
0x2b3b   :  { %v6365_v60 = vpop.f32.mrb[70].mxu1 }
0x2b3c   :  { %v10958_v4 = vpop.f32.mrb[71].mxu1  ;;  %v6369_v21 = vsel %vm4000_vm11, %v6365_v60, -inf }
0x2b3d   :  { %6370 = vmax.xlane.f32.xlu1 %v6369_v21 }
0x2bca   :  { %v6371_v15 = vpop.xlane.xlu1 %6370 }
0x2bcb   :  { %v6372_v57 = vsub.f32 %v6365_v60, %v6371_v15 }
0x2bcd   :  { %v6373_v26 = vmul.f32 1.442695, %v6372_v57 }
0x2bcf   :  { %12338 = vpow2.f32 %v6373_v26 }
0x2bd9   :  { %v12339_v8 = vpop.eup %12338 }
0x2bda   :  { %v6375_v54 = vsel %vm4000_vm11, %v12339_v8, 0.0 }
0x2bdb   :  { %6376 = vadd.xlane.f32.xlu0 %v6375_v54 }
0x2c68   :  { %v6377_v24 = vpop.xlane.xlu0 %6376 }
0x2c69   :  { %12340 = vrcp.f32 %v6377_v24 }
0x2c73   :  { %v12341_v9 = vpop.eup %12340 }
0x2c74   :  { %v6379_v63 = vmul.f32 %v12341_v9, %v12339_v8 }
0x2c76   :  { %10962 = vmatmul.mubr.msk.f32.vlgmr.msra.gmra.mrb[72].mxu1 %vm4012_vm12, %v6379_v63 }
0x2c77   :  { %11807 = vmatpush3.bf16.msra.mxu1 %v13788_v30  ;;  %10983 = vmatprep.mubr.msk.f32.mxu1 %vm12834_vm0, %v12832_v0 }
0x2c78   :  { %11808 = vmatprep.subr.bf16.mxu1 %v12833_v1 }
0x2c7b   :  { %11810 = vmatpush3.bf16.msra.mxu1 %v13798_v58 }
0x2c7c   :  { %11817 = vmatprep.subr.bf16.mxu1 %v12833_v1 }
0x2c7e   :  { %10984 = vmatmul.mubr.msk.f32.vlgmr.msra.gmra.mrb[74].mxu1 %vm270_vm1, %v14111_v2 }
0x2c7f   :  { %11819 = vmatpush3.bf16.msra.mxu1 %v13609_v33  ;;  %11013 = vmatprep.mubr.msk.f32.mxu1 %vm12834_vm0, %v12832_v0 }
0x2c80   :  { %11820 = vmatprep.subr.bf16.mxu1 %v12833_v1 }
0x2c83   :  { %11822 = vmatpush3.bf16.msra.mxu1 %v13625_v39 }
0x2c84   :  { %11823 = vmatprep.subr.bf16.mxu1 %v12833_v1 }
0x2c87   :  { %11825 = vmatpush3.bf16.msra.mxu1 %v13638_v45 }
0x2c88   :  { %11826 = vmatprep.subr.bf16.mxu1 %v12833_v1 }
0x2c8b   :  { %11828 = vmatpush3.bf16.msra.mxu1 %v13651_v62 }
0x2c8c   :  { %11851 = vmatprep.subr.bf16.mxu1 %v12833_v1 }
0x2d49   :  { %v6449_v31 = vpop.f32.mrb[72].mxu1 }
0x2d4a   :  { %v10963_v37 = vpop.f32.mrb[73].mxu1  ;;  %10973 = vmatmul.mubr.msk.f32.vlgmr.msra.gmra.mrb[64].mxu0 %vm270_vm1, %v6449_v31 }
0x2d4b   :  { %11813 = vmatpush3.bf16.msra.mxu0 %v13829_v16  ;;  %10994 = vmatprep.mubr.msk.f32.mxu0 %vm12834_vm0, %v12832_v0 }
0x2d4c   :  { %11814 = vmatprep.subr.bf16.mxu0 %v12833_v1 }
0x2d4f   :  { %11816 = vmatpush3.bf16.msra.mxu0 %v13835_v23 }
0x2d50   :  { %11830 = vmatprep.subr.bf16.mxu0 %v13676_v11 }
0x2d51   :  { %v6592_v32 = vpop.f32.mrb[74].mxu1 }
0x2d52   :  { %v10985_v36 = vpop.f32.mrb[75].mxu1 }
0x2e1d   :  { %v6522_v38 = vpop.f32.mrb[64].mxu0 }
0x2e1e   :  { %v6593_v52 = vadd.f32 %v6592_v32, %v6522_v38  ;;  %v10974_v41 = vpop.f32.mrb[65].mxu0 }
0x2e20   :  { %v6596_v56 = vadd.f32 %v6593_v52, %v13840_v34 }
0x2e22   :  { %12342 = vtanh.f32 %v6596_v56 }
0x2e2c   :  { %v12343_v17 = vpop.eup %12342 }
0x2e2d   :  { %10995 = vmatmul.mubr.msk.f32.vlgmr.msra.gmra.mrb[66].mxu0 %vm270_vm1, %v12343_v17 }
0x2e2e   :  { %11832 = vmatpush1.bf16.msra.mxu0 %v13678_v46  ;;  %6841 = vmatprep.mubr.f32.mxu0 %v12832_v0 }
0x2e2f   :  { %11834 = vmatprep.subr.bf16.mxu0 %v13682_v13 }
0x2e32   :  { %11836 = vmatpush1.bf16.msra.mxu0 %v13684_v20 }
0x2e33   :  { %11837 = vmatprep.subr.bf16.mxu0 %v12833_v1 }
0x2f00   :  { %v6667_v22 = vpop.f32.mrb[66].mxu0 }
0x2f01   :  { %v14155_v3 = vadd.f32 %v6667_v22, %v13852_v27  ;;  %v10996_v25 = vpop.f32.mrb[67].mxu0 }
0x2f03   :  { %v6671_v34 = vsel %vm4318_vm13, %v14155_v3, -inf }
0x2f04   :  { %6672 = vmax.xlane.f32.xlu1 %v6671_v34 }
0x2f91   :  { %v14159_v50 = vpop.xlane.xlu1 %6672 }
0x2f92   :  { %vm6681_vm15 = vcmp.eq.f32.partialorder %v14155_v3, %v14159_v50 }
0x2f93   :  { %v6682_v60 = vsel %vm6681_vm15, %v13641_v47, 64 }
0x2f94   :  { %v6683_v4 = vsel %vm4318_vm13, %v6682_v60, 2147483647 }
0x2f95   :  { %v6685_v21 = vshra.s32 %v6683_v4, 16  ;;  %v6684_v57 = vand.u32 65535, %v6683_v4 }
0x2f97   :  { %v6687_v15 = vcvt.s32.f32 %v6685_v21  ;;  %v6686_v26 = vcvt.s32.f32 %v6684_v57 }
0x2f99   :  { %6688 = vmin.xlane.f32.xlu0 %v6687_v15 }
0x3026   :  { %v6689_v27 = vpop.xlane.xlu0 %6688 }
0x3027   :  { %vm6690_vm2 = vcmp.eq.f32.partialorder %v6687_v15, %v6689_v27  ;;  %v6695_v54 = vcvt.f32.s32 %v6689_v27 }
0x3028   :  { %v6691_v8 = vsel %vm6690_vm2, %v6686_v26, inf }
0x3029   :  { %6692 = vmin.xlane.f32.xlu1 %v6691_v8  ;;  %v6696_v9 = vshll.u32 %v6695_v54, 16 }
0x30b6   :  { %v6693_v24 = vpop.xlane.xlu1 %6692 }
0x30b7   :  { %v6694_v63 = vcvt.f32.s32 %v6693_v24 }
0x30b9   :  { %v6697_v31 = vadd.s32 %v6696_v9, %v6694_v63 }
0x30bb   :  { %vm6698_vm4 = vcmp.eq.s32.totalorder %v13641_v47, %v6697_v31  ;;  %v14168_v37 = vsel %vm9838_vm3, %v14068_v51, %v6697_v31 }
0x30bc   :  { %v10013_v32 = vsel %vm6698_vm4, 1.0, %v12832_v0  ;;  %vm9842_vm4 = vcmask 39936  }
0x30bd   :  { %11014 = vmatmul.mubr.msk.f32.vlgmr.msra.gmra.mrb[76].mxu1 %vm3481_vm10, %v10013_v32 }
0x30be   :  { %11853 = vmatpush3.bf16.msra.mxu1 %v13657_v55  ;;  %11035 = vmatprep.mubr.msk.f32.mxu1 %vm12834_vm0, %v12832_v0 }
0x30bf   :  { %11854 = vmatprep.subr.bf16.mxu1 %v12833_v1 }
0x30c2   :  { %11856 = vmatpush3.bf16.msra.mxu1 %v13662_v5 }
0x30c3   :  { %11038 = vmatprep.subr.mxu1 %v12832_v0 }
0x30c5   :  { %11036 = vmatmul.mubr.msk.f32.vlgmr.msra.gmra.mrb[78].mxu1 %vm270_vm1, %v14111_v2 }
0x30c6   :  { %11040 = vmatprep.mubr.msk.f32.mxu1 %vm12834_vm0, %v12832_v0 }
0x30cb   :  { %11039 = vmatpush3.xpose.msk.msra.mxu1 %vm270_vm1, %v13740_v14 }
0x30cc   :  { %11043 = vmatprep.subr.mxu1 %v12832_v0 }
0x3190   :  { %v6770_v51 = vpop.f32.mrb[76].mxu1 }
0x3191   :  { %v11015_v36 = vpop.f32.mrb[77].mxu1  ;;  %10015 = vmatmul.mubr.msk.f32.vlgmr.msra.gmra.mrb[68].mxu0 %vm270_vm1, %v6770_v51 }
0x3192   :  { %11839 = vmatpush3.bf16.msra.mxu0 %v13693_v43  ;;  %11024 = vmatprep.mubr.msk.f32.mxu0 %vm12834_vm0, %v12832_v0 }
0x3193   :  { %11840 = vmatprep.subr.bf16.mxu0 %v12833_v1 }
0x3196   :  { %11842 = vmatpush3.bf16.msra.mxu0 %v13697_v19 }
0x3197   :  { %11844 = vmatprep.subr.bf16.mxu0 %v13702_v40 }
0x3198   :  { %v7055_v38 = vpop.f32.mrb[78].mxu1 }
0x3199   :  { %11025 = vmatmul.mubr.msk.f32.vlgmr.msra.gmra.mrb[70].mxu0 %vm270_vm1, %v6770_v51  ;;  %v11037_v52 = vpop.f32.mrb[79].mxu1  ;;  %v7056_v26 = vadd.f32 %v7055_v38, %v13756_v6 }
0x319a   :  { %11846 = vmatpush1.bf16.msra.mxu0 %v13705_v59  ;;  %6982 = vmatprep.mubr.f32.mxu0 %v12832_v0 }
0x319b   :  { %11848 = vmatprep.subr.bf16.mxu0 %v13708_v61 }
0x319e   :  { %11850 = vmatpush1.bf16.msra.mxu0 %v13712_v28 }
0x319f   :  { %11857 = vmatprep.subr.bf16.mxu0 %v12833_v1 }
0x31a1   :  { %10017 = vmatmul.mubr.msk.f32.vlgmr.msra.gmra.mrb[68].mxu0 %vm270_vm1, %v14111_v2 }
0x31a2   :  { %11859 = vmatpush3.bf16.msra.mxu0 %v13774_v53  ;;  %11056 = vmatprep.mubr.msk.f32.mxu0 %vm12834_vm0, %v12832_v0 }
0x31a3   :  { %11860 = vmatprep.subr.bf16.mxu0 %v12833_v1 }
0x31a6   :  { %11862 = vmatpush3.bf16.msra.mxu0 %v13777_v7 }
0x31a7   :  { %11869 = vmatprep.subr.bf16.mxu0 %v12833_v1 }
0x326c   :  { %v6914_v41 = vpop.f32.mrb[70].mxu0 }
0x326d   :  { %v11026_v56 = vpop.f32.mrb[71].mxu0  ;;  %v6915_v54 = vadd.f32 %v6914_v41, %v13759_v12 }
0x3274   :  { %v6984_v17 = vpop.f32.mrb[68].mxu0 }
0x3275   :  { %v12066_v22 = vadd.f32 %v13749_v42, %v6984_v17  ;;  %v6986_v25 = vpop.f32.mrb[69].mxu0 }
0x3276   :  { %v12068_v60 = vadd.f32 %v13751_v49, %v6986_v25 }
0x3277   :  { %v10019_v34 = vmul.f32 -1.442695, %v12066_v22 }
0x3278   :  { %v10020_v4 = vmul.f32 -1.442695, %v12068_v60 }
0x3279   :  { %12344 = vpow2.f32 %v10019_v34 }
0x327a   :  { %12346 = vpow2.f32 %v10020_v4 }
0x3283   :  { %v12345_v21 = vpop.eup %12344 }
0x3284   :  { %v7063_v15 = vadd.f32 1.0, %v12345_v21  ;;  %v12347_v57 = vpop.eup %12346 }
0x3285   :  { %v7070_v27 = vadd.f32 1.0, %v12347_v57 }
0x3286   :  { %12348 = vrcp.f32 %v7063_v15 }
0x3287   :  { %12350 = vrcp.f32 %v7070_v27 }
0x3290   :  { %v12349_v8 = vpop.eup %12348 }
0x3291   :  { %v7073_v24 = vmul.f32 %v12349_v8, %v7056_v26  ;;  %v12351_v63 = vpop.eup %12350 }
0x3292   :  { %v7076_v31 = vsub.f32 1.0, %v12351_v63  ;;  %v7078_v36 = vmul.f32 %v12351_v63, %v14111_v2 }
0x3293   :  { %v7074_v9 = vadd.f32 %v7073_v24, %v6915_v54 }
0x3295   :  { %12352 = vtanh.f32 %v7074_v9  ;;  %v14247_v9 = vld [vmem:[#allocation23] sm:$0x1] }
0x329f   :  { %v12353_v32 = vpop.eup %12352 }
0x32a0   :  { %v7077_v51 = vmul.f32 %v12353_v32, %v7076_v31 }
0x32a2   :  { %v14211_v52 = vadd.f32 %v7078_v36, %v7077_v51  ;;  %v14259_v51 = vld [vmem:[%s14619_s18] sm:$0x1]  ;;  %s12835_s18 = smov [#allocation26]  }
0x32a3   :  { %s9873_s4 = sshll.u32 %s12835_s18, 4  ;;  %s9874_s4 = int_to_ptr.vmem [resolvable:$true] %s9873_s4 }
0x32a4   :  { %11041 = vmatmul.mubr.msk.f32.vlgmr.msra.gmra.mrb[80].mxu1 %vm270_vm1, %v14211_v52  ;;  %s12750_s11 = scalar_lea.vmem %s9874_s4, 16  ;;  %s12754_s0 = scalar_lea.vmem %s9874_s4, 32 }
0x32a5   :  { %11044 = vmatpush3.msra.mxu1 %v13740_v14  ;;  %11045 = vmatprep.mubr.msk.f32.mxu1 %vm12834_vm0, %v12832_v0  ;;  %p12751_p0 = scmp.ne.s32.totalorder %s9874_s4, %s12750_s11  ;;  %p12755_p1 = scmp.lt.s32.totalorder %s9874_s4, %s9874_s4 }
0x32a6   :  { %11863 = vmatprep.subr.bf16.mxu1 %v12833_v1  ;;  %p12756_p2 = scmp.lt.s32.totalorder %s12754_s0, %s12750_s11 }
0x32a8   :  { %p12757_p3 = por %p12756_p2, %p12755_p1 }
0x32aa   :  { %p12758_p4 = pnand %p12757_p3, %p12751_p0 }
0x3377   :  { %v7149_v38 = vpop.f32.mrb[80].mxu1 }
0x3378   :  { %v11042_v41 = vpop.f32.mrb[81].mxu1  ;;  %v7153_v56 = vsel %vm4000_vm11, %v7149_v38, -inf }
0x3379   :  { %7154 = vmax.xlane.f32.xlu0 %v7153_v56 }
0x3406   :  { %v7155_v17 = vpop.xlane.xlu0 %7154 }
0x3407   :  { %v7156_v22 = vsub.f32 %v7149_v38, %v7155_v17 }
0x3409   :  { %v7157_v2 = vmul.f32 1.442695, %v7156_v22 }
0x340b   :  { %12354 = vpow2.f32 %v7157_v2 }
0x3415   :  { %v12355_v25 = vpop.eup %12354 }
0x3416   :  { %v7159_v34 = vsel %vm4000_vm11, %v12355_v25, 0.0 }
0x3417   :  { %7160 = vadd.xlane.f32.xlu1 %v7159_v34 }
0x34a4   :  { %v7161_v60 = vpop.xlane.xlu1 %7160 }
0x34a5   :  { %12356 = vrcp.f32 %v7161_v60 }
0x34af   :  { %v12357_v4 = vpop.eup %12356 }
0x34b0   :  { %v7163_v21 = vmul.f32 %v12357_v4, %v12355_v25 }
0x34b2   :  { %11046 = vmatmul.mubr.msk.f32.vlgmr.msra.gmra.mrb[82].mxu1 %vm4012_vm12, %v7163_v21 }
0x34b3   :  { %11865 = vmatpush3.bf16.msra.mxu1 %v13788_v30  ;;  %11067 = vmatprep.mubr.msk.f32.mxu1 %vm12834_vm0, %v12832_v0 }
0x34b4   :  { %11866 = vmatprep.subr.bf16.mxu1 %v12833_v1 }
0x34b7   :  { %11868 = vmatpush3.bf16.msra.mxu1 %v13798_v58 }
0x34b8   :  { %11875 = vmatprep.subr.bf16.mxu1 %v12833_v1 }
0x34ba   :  { %11068 = vmatmul.mubr.msk.f32.vlgmr.msra.gmra.mrb[84].mxu1 %vm270_vm1, %v14211_v52 }
0x34bb   :  { %11877 = vmatpush3.bf16.msra.mxu1 %v13609_v33  ;;  %11097 = vmatprep.mubr.msk.f32.mxu1 %vm12834_vm0, %v12832_v0 }
0x34bc   :  { %11878 = vmatprep.subr.bf16.mxu1 %v12833_v1 }
0x34bf   :  { %11880 = vmatpush3.bf16.msra.mxu1 %v13625_v39 }
0x34c0   :  { %11881 = vmatprep.subr.bf16.mxu1 %v12833_v1 }
0x34c3   :  { %11883 = vmatpush3.bf16.msra.mxu1 %v13638_v45 }
0x34c4   :  { %11884 = vmatprep.subr.bf16.mxu1 %v12833_v1 }
0x34c7   :  { %11886 = vmatpush3.bf16.msra.mxu1 %v13651_v62 }
0x34c8   :  { %11909 = vmatprep.subr.bf16.mxu1 %v12833_v1 }
0x3585   :  { %v7233_v15 = vpop.f32.mrb[82].mxu1 }
0x3586   :  { %v11047_v57 = vpop.f32.mrb[83].mxu1  ;;  %11057 = vmatmul.mubr.msk.f32.vlgmr.msra.gmra.mrb[72].mxu0 %vm270_vm1, %v7233_v15 }
0x3587   :  { %11871 = vmatpush3.bf16.msra.mxu0 %v13829_v16  ;;  %11078 = vmatprep.mubr.msk.f32.mxu0 %vm12834_vm0, %v12832_v0 }
0x3588   :  { %11872 = vmatprep.subr.bf16.mxu0 %v12833_v1 }
0x358b   :  { %11874 = vmatpush3.bf16.msra.mxu0 %v13835_v23 }
0x358c   :  { %11888 = vmatprep.subr.bf16.mxu0 %v13676_v11 }
0x358d   :  { %v7376_v27 = vpop.f32.mrb[84].mxu1 }
0x358e   :  { %v11069_v26 = vpop.f32.mrb[85].mxu1 }
0x3659   :  { %v7306_v8 = vpop.f32.mrb[72].mxu0 }
0x365a   :  { %v7377_v54 = vadd.f32 %v7376_v27, %v7306_v8  ;;  %v11058_v24 = vpop.f32.mrb[73].mxu0 }
0x365c   :  { %v7380_v63 = vadd.f32 %v14247_v9, %v7377_v54 }
0x365e   :  { %12358 = vtanh.f32 %v7380_v63 }
0x3668   :  { %v12359_v31 = vpop.eup %12358 }
0x3669   :  { %11079 = vmatmul.mubr.msk.f32.vlgmr.msra.gmra.mrb[74].mxu0 %vm270_vm1, %v12359_v31 }
0x366a   :  { %11890 = vmatpush1.bf16.msra.mxu0 %v13678_v46  ;;  %7625 = vmatprep.mubr.f32.mxu0 %v12832_v0 }
0x366b   :  { %11892 = vmatprep.subr.bf16.mxu0 %v13682_v13 }
0x366e   :  { %11894 = vmatpush1.bf16.msra.mxu0 %v13684_v20 }
0x366f   :  { %11895 = vmatprep.subr.bf16.mxu0 %v12833_v1 }
0x373c   :  { %v7451_v32 = vpop.f32.mrb[74].mxu0 }
0x373d   :  { %v14262_v36 = vadd.f32 %v14259_v51, %v7451_v32  ;;  %v11080_v38 = vpop.f32.mrb[75].mxu0 }
0x373f   :  { %v7455_v41 = vsel %vm4318_vm13, %v14262_v36, -inf }
0x3740   :  { %7456 = vmax.xlane.f32.xlu0 %v7455_v41 }
0x37cd   :  { %v14266_v56 = vpop.xlane.xlu0 %7456 }
0x37ce   :  { %vm7465_vm5 = vcmp.eq.f32.partialorder %v14262_v36, %v14266_v56 }
0x37cf   :  { %v7466_v17 = vsel %vm7465_vm5, %v13641_v47, 64 }
0x37d0   :  { %v7467_v22 = vsel %vm4318_vm13, %v7466_v17, 2147483647 }
0x37d1   :  { %v7469_v2 = vshra.s32 %v7467_v22, 16  ;;  %v7468_v34 = vand.u32 65535, %v7467_v22 }
0x37d3   :  { %v7471_v25 = vcvt.s32.f32 %v7469_v2  ;;  %v7470_v4 = vcvt.s32.f32 %v7468_v34 }
0x37d5   :  { %7472 = vmin.xlane.f32.xlu1 %v7471_v25 }
0x3862   :  { %v7473_v60 = vpop.xlane.xlu1 %7472 }
0x3863   :  { %vm7474_vm6 = vcmp.eq.f32.partialorder %v7471_v25, %v7473_v60  ;;  %v7479_v15 = vcvt.f32.s32 %v7473_v60 }
0x3864   :  { %v7475_v21 = vsel %vm7474_vm6, %v7470_v4, inf }
0x3865   :  { %7476 = vmin.xlane.f32.xlu0 %v7475_v21  ;;  %v7480_v27 = vshll.u32 %v7479_v15, 16 }
0x38f2   :  { %v7477_v57 = vpop.xlane.xlu0 %7476 }
0x38f3   :  { %v7478_v26 = vcvt.f32.s32 %v7477_v57 }
0x38f5   :  { %v7481_v8 = vadd.s32 %v7480_v27, %v7478_v26 }
0x38f7   :  { %vm7482_vm14 = vcmp.eq.s32.totalorder %v13641_v47, %v7481_v8  ;;  %v14275_v54 = vsel %vm9840_vm7, %v14168_v37, %v7481_v8 }
0x38f8   :  { %v10027_v24 = vsel %vm7482_vm14, 1.0, %v12832_v0 }
0x38f9   :  { %11098 = vmatmul.mubr.msk.f32.vlgmr.msra.gmra.mrb[86].mxu1 %vm3481_vm10, %v10027_v24 }
0x38fa   :  { %11911 = vmatpush3.bf16.msra.mxu1 %v13657_v55  ;;  %11119 = vmatprep.mubr.msk.f32.mxu1 %vm12834_vm0, %v12832_v0 }
0x38fb   :  { %11912 = vmatprep.subr.bf16.mxu1 %v12833_v1 }
0x38fe   :  { %11914 = vmatpush3.bf16.msra.mxu1 %v13662_v5 }
0x38ff   :  { %11122 = vmatprep.subr.mxu1 %v12832_v0 }
0x3901   :  { %11120 = vmatmul.mubr.msk.f32.vlgmr.msra.gmra.mrb[88].mxu1 %vm270_vm1, %v14211_v52 }
0x3902   :  { %11124 = vmatprep.mubr.msk.f32.mxu1 %vm12834_vm0, %v12832_v0 }
0x3907   :  { %11123 = vmatpush3.xpose.msk.msra.mxu1 %vm270_vm1, %v13740_v14 }
0x3908   :  { %11127 = vmatprep.subr.mxu1 %v12832_v0 }
0x39cc   :  { %v7554_v37 = vpop.f32.mrb[86].mxu1 }
0x39cd   :  { %v11099_v63 = vpop.f32.mrb[87].mxu1  ;;  %10029 = vmatmul.mubr.msk.f32.vlgmr.msra.gmra.mrb[76].mxu0 %vm270_vm1, %v7554_v37 }
0x39ce   :  { %11897 = vmatpush3.bf16.msra.mxu0 %v13693_v43  ;;  %11108 = vmatprep.mubr.msk.f32.mxu0 %vm12834_vm0, %v12832_v0 }
0x39cf   :  { %11898 = vmatprep.subr.bf16.mxu0 %v12833_v1 }
0x39d2   :  { %11900 = vmatpush3.bf16.msra.mxu0 %v13697_v19 }
0x39d3   :  { %11902 = vmatprep.subr.bf16.mxu0 %v13702_v40 }
0x39d4   :  { %v7839_v31 = vpop.f32.mrb[88].mxu1 }
0x39d5   :  { %11109 = vmatmul.mubr.msk.f32.vlgmr.msra.gmra.mrb[78].mxu0 %vm270_vm1, %v7554_v37  ;;  %v11121_v32 = vpop.f32.mrb[89].mxu1  ;;  %v7840_v27 = vadd.f32 %v7839_v31, %v13756_v6 }
0x39d6   :  { %11904 = vmatpush1.bf16.msra.mxu0 %v13705_v59  ;;  %7766 = vmatprep.mubr.f32.mxu0 %v12832_v0 }
0x39d7   :  { %11906 = vmatprep.subr.bf16.mxu0 %v13708_v61 }
0x39da   :  { %11908 = vmatpush1.bf16.msra.mxu0 %v13712_v28 }
0x39db   :  { %11915 = vmatprep.subr.bf16.mxu0 %v12833_v1 }
0x39dd   :  { %10031 = vmatmul.mubr.msk.f32.vlgmr.msra.gmra.mrb[76].mxu0 %vm270_vm1, %v14211_v52 }
0x39de   :  { %11917 = vmatpush3.bf16.msra.mxu0 %v13774_v53  ;;  %11140 = vmatprep.mubr.msk.f32.mxu0 %vm12834_vm0, %v12832_v0 }
0x39df   :  { %11918 = vmatprep.subr.bf16.mxu0 %v12833_v1 }
0x39e2   :  { %11920 = vmatpush3.bf16.msra.mxu0 %v13777_v7 }
0x39e3   :  { %11927 = vmatprep.subr.bf16.mxu0 %v12833_v1 }
0x3aa8   :  { %v7698_v38 = vpop.f32.mrb[78].mxu0 }
0x3aa9   :  { %v11110_v41 = vpop.f32.mrb[79].mxu0  ;;  %v7699_v8 = vadd.f32 %v7698_v38, %v13759_v12 }
0x3ab0   :  { %v7768_v17 = vpop.f32.mrb[76].mxu0 }
0x3ab1   :  { %v12070_v22 = vadd.f32 %v13749_v42, %v7768_v17  ;;  %v7770_v2 = vpop.f32.mrb[77].mxu0 }
0x3ab2   :  { %v12072_v34 = vadd.f32 %v13751_v49, %v7770_v2 }
0x3ab3   :  { %v10033_v25 = vmul.f32 -1.442695, %v12070_v22 }
0x3ab4   :  { %v10034_v60 = vmul.f32 -1.442695, %v12072_v34 }
0x3ab5   :  { %12360 = vpow2.f32 %v10033_v25 }
0x3ab6   :  { %12362 = vpow2.f32 %v10034_v60 }
0x3abf   :  { %v12361_v4 = vpop.eup %12360 }
0x3ac0   :  { %v7847_v21 = vadd.f32 1.0, %v12361_v4  ;;  %v12363_v15 = vpop.eup %12362 }
0x3ac1   :  { %v7854_v57 = vadd.f32 1.0, %v12363_v15 }
0x3ac2   :  { %12364 = vrcp.f32 %v7847_v21 }
0x3ac3   :  { %12366 = vrcp.f32 %v7854_v57 }
0x3acc   :  { %v12365_v26 = vpop.eup %12364 }
0x3acd   :  { %v7857_v24 = vmul.f32 %v12365_v26, %v7840_v27  ;;  %v12367_v63 = vpop.eup %12366 }
0x3ace   :  { %v7860_v32 = vsub.f32 1.0, %v12367_v63  ;;  %v7862_v22 = vmul.f32 %v12367_v63, %v14211_v52 }
0x3acf   :  { %v7858_v37 = vadd.f32 %v7857_v24, %v7699_v8 }
0x3ad1   :  { %12368 = vtanh.f32 %v7858_v37 }
0x3adb   :  { %v12369_v41 = vpop.eup %12368 }
0x3adc   :  { %v7861_v17 = vmul.f32 %v12369_v41, %v7860_v32 }
0x3ade   :  { %v14318_v2 = vadd.f32 %v7862_v22, %v7861_v17 }
0x3ae0   :  { %11125 = vmatmul.mubr.msk.f32.vlgmr.msra.gmra.mrb[90].mxu1 %vm270_vm1, %v14318_v2 }
0x3ae1   :  { %11128 = vmatpush3.msra.mxu1 %v13740_v14  ;;  %11129 = vmatprep.mubr.msk.f32.mxu1 %vm12834_vm0, %v12832_v0 }
0x3ae2   :  { %11921 = vmatprep.subr.bf16.mxu1 %v12833_v1 }
0x3bb3   :  { %v7933_v31 = vpop.f32.mrb[90].mxu1 }
0x3bb4   :  { %v11126_v38 = vpop.f32.mrb[91].mxu1  ;;  %v7937_v25 = vsel %vm4000_vm11, %v7933_v31, -inf }
0x3bb5   :  { %7938 = vmax.xlane.f32.xlu1 %v7937_v25 }
0x3c42   :  { %v7939_v34 = vpop.xlane.xlu1 %7938 }
0x3c43   :  { %v7940_v60 = vsub.f32 %v7933_v31, %v7939_v34 }
0x3c45   :  { %v7941_v52 = vmul.f32 1.442695, %v7940_v60 }
0x3c47   :  { %12370 = vpow2.f32 %v7941_v52 }
0x3c51   :  { %v12371_v4 = vpop.eup %12370 }
0x3c52   :  { %v7943_v21 = vsel %vm4000_vm11, %v12371_v4, 0.0 }
0x3c53   :  { %7944 = vadd.xlane.f32.xlu0 %v7943_v21 }
0x3ce0   :  { %v7945_v15 = vpop.xlane.xlu0 %7944 }
0x3ce1   :  { %12372 = vrcp.f32 %v7945_v15 }
0x3ceb   :  { %v12373_v57 = vpop.eup %12372 }
0x3cec   :  { %v7947_v27 = vmul.f32 %v12373_v57, %v12371_v4 }
0x3cee   :  { %11130 = vmatmul.mubr.msk.f32.vlgmr.msra.gmra.mrb[92].mxu1 %vm4012_vm12, %v7947_v27 }
0x3cef   :  { %11923 = vmatpush3.bf16.msra.mxu1 %v13788_v30  ;;  %11151 = vmatprep.mubr.msk.f32.mxu1 %vm12834_vm0, %v12832_v0 }
0x3cf0   :  { %11924 = vmatprep.subr.bf16.mxu1 %v12833_v1 }
0x3cf3   :  { %11926 = vmatpush3.bf16.msra.mxu1 %v13798_v58 }
0x3cf4   :  { %11933 = vmatprep.subr.bf16.mxu1 %v12833_v1 }
0x3cf6   :  { %11152 = vmatmul.mubr.msk.f32.vlgmr.msra.gmra.mrb[94].mxu1 %vm270_vm1, %v14318_v2 }
0x3cf7   :  { %11935 = vmatpush3.bf16.msra.mxu1 %v13609_v33  ;;  %11181 = vmatprep.mubr.msk.f32.mxu1 %vm12834_vm0, %v12832_v0 }
0x3cf8   :  { %11936 = vmatprep.subr.bf16.mxu1 %v12833_v1 }
0x3cfb   :  { %11938 = vmatpush3.bf16.msra.mxu1 %v13625_v39 }
0x3cfc   :  { %11939 = vmatprep.subr.bf16.mxu1 %v12833_v1 }
0x3cff   :  { %11941 = vmatpush3.bf16.msra.mxu1 %v13638_v45 }
0x3d00   :  { %11942 = vmatprep.subr.bf16.mxu1 %v12833_v1 }
0x3d03   :  { %11944 = vmatpush3.bf16.msra.mxu1 %v13651_v62 }
0x3d04   :  { %11967 = vmatprep.subr.bf16.mxu1 %v12833_v1 }
0x3dc1   :  { %v8017_v26 = vpop.f32.mrb[92].mxu1 }
0x3dc2   :  { %v11131_v8 = vpop.f32.mrb[93].mxu1  ;;  %11141 = vmatmul.mubr.msk.f32.vlgmr.msra.gmra.mrb[80].mxu0 %vm270_vm1, %v8017_v26 }
0x3dc3   :  { %11929 = vmatpush3.bf16.msra.mxu0 %v13829_v16  ;;  %11162 = vmatprep.mubr.msk.f32.mxu0 %vm12834_vm0, %v12832_v0 }
0x3dc4   :  { %11930 = vmatprep.subr.bf16.mxu0 %v12833_v1 }
0x3dc7   :  { %11932 = vmatpush3.bf16.msra.mxu0 %v13835_v23 }
0x3dc8   :  { %11946 = vmatprep.subr.bf16.mxu0 %v13676_v11 }
0x3dc9   :  { %v8160_v24 = vpop.f32.mrb[94].mxu1 }
0x3dca   :  { %v11153_v37 = vpop.f32.mrb[95].mxu1 }
0x3e95   :  { %v8090_v63 = vpop.f32.mrb[80].mxu0 }
0x3e96   :  { %v8161_v32 = vadd.f32 %v8160_v24, %v8090_v63  ;;  %v11142_v41 = vpop.f32.mrb[81].mxu0 }
0x3e98   :  { %v8164_v17 = vadd.f32 %v14247_v9, %v8161_v32 }
0x3e9a   :  { %12374 = vtanh.f32 %v8164_v17 }
0x3ea4   :  { %v12375_v22 = vpop.eup %12374 }
0x3ea5   :  { %11163 = vmatmul.mubr.msk.f32.vlgmr.msra.gmra.mrb[82].mxu0 %vm270_vm1, %v12375_v22 }
0x3ea6   :  { %11948 = vmatpush1.bf16.msra.mxu0 %v13678_v46  ;;  %8409 = vmatprep.mubr.f32.mxu0 %v12832_v0 }
0x3ea7   :  { %11950 = vmatprep.subr.bf16.mxu0 %v13682_v13 }
0x3eaa   :  { %11952 = vmatpush1.bf16.msra.mxu0 %v13684_v20 }
0x3eab   :  { %11953 = vmatprep.subr.bf16.mxu0 %v12833_v1 }
0x3f78   :  { %v8235_v31 = vpop.f32.mrb[82].mxu0 }
0x3f79   :  { %v14362_v38 = vadd.f32 %v14259_v51, %v8235_v31  ;;  %v11164_v25 = vpop.f32.mrb[83].mxu0 }
0x3f7b   :  { %v8239_v34 = vsel %vm4318_vm13, %v14362_v38, -inf }
0x3f7c   :  { %8240 = vmax.xlane.f32.xlu1 %v8239_v34 }
0x4009   :  { %v14366_v60 = vpop.xlane.xlu1 %8240 }
0x400a   :  { %vm8249_vm15 = vcmp.eq.f32.partialorder %v14362_v38, %v14366_v60 }
0x400b   :  { %v8250_v52 = vsel %vm8249_vm15, %v13641_v47, 64  ;;  %vm9844_vm15 = vcmask 48128  }
0x400c   :  { %v8251_v4 = vsel %vm4318_vm13, %v8250_v52, 2147483647 }
0x400d   :  { %v8253_v21 = vshra.s32 %v8251_v4, 16  ;;  %v8252_v57 = vand.u32 65535, %v8251_v4 }
0x400f   :  { %v8255_v15 = vcvt.s32.f32 %v8253_v21  ;;  %v8254_v26 = vcvt.s32.f32 %v8252_v57 }
0x4011   :  { %8256 = vmin.xlane.f32.xlu0 %v8255_v15 }
0x409e   :  { %v8257_v27 = vpop.xlane.xlu0 %8256 }
0x409f   :  { %vm8258_vm2 = vcmp.eq.f32.partialorder %v8255_v15, %v8257_v27  ;;  %v8263_v24 = vcvt.f32.s32 %v8257_v27 }
0x40a0   :  { %v8259_v8 = vsel %vm8258_vm2, %v8254_v26, inf }
0x40a1   :  { %8260 = vmin.xlane.f32.xlu1 %v8259_v8  ;;  %v8264_v63 = vshll.u32 %v8263_v24, 16 }
0x412e   :  { %v8261_v37 = vpop.xlane.xlu1 %8260 }
0x412f   :  { %v8262_v32 = vcvt.f32.s32 %v8261_v37 }
0x4131   :  { %v8265_v41 = vadd.s32 %v8264_v63, %v8262_v32 }
0x4133   :  { %vm8266_vm5 = vcmp.eq.s32.totalorder %v13641_v47, %v8265_v41  ;;  %v14375_v17 = vsel %vm9842_vm4, %v14275_v54, %v8265_v41 }
0x4134   :  { %v10041_v22 = vsel %vm8266_vm5, 1.0, %v12832_v0 }
0x4135   :  { %11182 = vmatmul.mubr.msk.f32.vlgmr.msra.gmra.mrb[96].mxu1 %vm3481_vm10, %v10041_v22 }
0x4136   :  { %11969 = vmatpush3.bf16.msra.mxu1 %v13657_v55  ;;  %11203 = vmatprep.mubr.msk.f32.mxu1 %vm12834_vm0, %v12832_v0 }
0x4137   :  { %11970 = vmatprep.subr.bf16.mxu1 %v12833_v1 }
0x413a   :  { %11972 = vmatpush3.bf16.msra.mxu1 %v13662_v5 }
0x413b   :  { %11206 = vmatprep.subr.mxu1 %v12832_v0 }
0x413d   :  { %11204 = vmatmul.mubr.msk.f32.vlgmr.msra.gmra.mrb[98].mxu1 %vm270_vm1, %v14318_v2 }
0x413e   :  { %11208 = vmatprep.mubr.msk.f32.mxu1 %vm12834_vm0, %v12832_v0 }
0x4143   :  { %11207 = vmatpush3.xpose.msk.msra.mxu1 %vm270_vm1, %v13740_v14 }
0x4144   :  { %11211 = vmatprep.subr.mxu1 %v12832_v0 }
0x4208   :  { %v8338_v54 = vpop.f32.mrb[96].mxu1 }
0x4209   :  { %v11183_v31 = vpop.f32.mrb[97].mxu1  ;;  %10043 = vmatmul.mubr.msk.f32.vlgmr.msra.gmra.mrb[84].mxu0 %vm270_vm1, %v8338_v54 }
0x420a   :  { %11955 = vmatpush3.bf16.msra.mxu0 %v13693_v43  ;;  %11192 = vmatprep.mubr.msk.f32.mxu0 %vm12834_vm0, %v12832_v0 }
0x420b   :  { %11956 = vmatprep.subr.bf16.mxu0 %v12833_v1 }
0x420e   :  { %11958 = vmatpush3.bf16.msra.mxu0 %v13697_v19 }
0x420f   :  { %11960 = vmatprep.subr.bf16.mxu0 %v13702_v40 }
0x4210   :  { %v8623_v25 = vpop.f32.mrb[98].mxu1 }
0x4211   :  { %11193 = vmatmul.mubr.msk.f32.vlgmr.msra.gmra.mrb[86].mxu0 %vm270_vm1, %v8338_v54  ;;  %v11205_v34 = vpop.f32.mrb[99].mxu1  ;;  %v8624_v41 = vadd.f32 %v8623_v25, %v13756_v6 }
0x4212   :  { %11962 = vmatpush1.bf16.msra.mxu0 %v13705_v59  ;;  %8550 = vmatprep.mubr.f32.mxu0 %v12832_v0 }
0x4213   :  { %11964 = vmatprep.subr.bf16.mxu0 %v13708_v61 }
0x4216   :  { %11966 = vmatpush1.bf16.msra.mxu0 %v13712_v28 }
0x4217   :  { %11973 = vmatprep.subr.bf16.mxu0 %v12833_v1 }
0x4219   :  { %10045 = vmatmul.mubr.msk.f32.vlgmr.msra.gmra.mrb[84].mxu0 %vm270_vm1, %v14318_v2 }
0x421a   :  { %11975 = vmatpush3.bf16.msra.mxu0 %v13774_v53  ;;  %11224 = vmatprep.mubr.msk.f32.mxu0 %vm12834_vm0, %v12832_v0 }
0x421b   :  { %11976 = vmatprep.subr.bf16.mxu0 %v12833_v1 }
0x421e   :  { %11978 = vmatpush3.bf16.msra.mxu0 %v13777_v7 }
0x421f   :  { %11985 = vmatprep.subr.bf16.mxu0 %v12833_v1 }
0x42e4   :  { %v8482_v52 = vpop.f32.mrb[86].mxu0 }
0x42e5   :  { %v11194_v4 = vpop.f32.mrb[87].mxu0  ;;  %v8483_v54 = vadd.f32 %v8482_v52, %v13759_v12 }
0x42ec   :  { %v8552_v21 = vpop.f32.mrb[84].mxu0 }
0x42ed   :  { %v12074_v15 = vadd.f32 %v13749_v42, %v8552_v21  ;;  %v8554_v57 = vpop.f32.mrb[85].mxu0 }
0x42ee   :  { %v12076_v26 = vadd.f32 %v13751_v49, %v8554_v57 }
0x42ef   :  { %v10047_v27 = vmul.f32 -1.442695, %v12074_v15 }
0x42f0   :  { %v10048_v8 = vmul.f32 -1.442695, %v12076_v26 }
0x42f1   :  { %12376 = vpow2.f32 %v10047_v27 }
0x42f2   :  { %12378 = vpow2.f32 %v10048_v8 }
0x42fb   :  { %v12377_v24 = vpop.eup %12376 }
0x42fc   :  { %v8631_v37 = vadd.f32 1.0, %v12377_v24  ;;  %v12379_v63 = vpop.eup %12378 }
0x42fd   :  { %v8638_v32 = vadd.f32 1.0, %v12379_v63 }
0x42fe   :  { %12380 = vrcp.f32 %v8631_v37 }
0x42ff   :  { %12382 = vrcp.f32 %v8638_v32 }
0x4308   :  { %v12381_v22 = vpop.eup %12380 }
0x4309   :  { %v8641_v31 = vmul.f32 %v12381_v22, %v8624_v41  ;;  %v12383_v4 = vpop.eup %12382 }
0x430a   :  { %v8644_v21 = vsub.f32 1.0, %v12383_v4  ;;  %v8646_v27 = vmul.f32 %v12383_v4, %v14318_v2 }
0x430b   :  { %v8642_v34 = vadd.f32 %v8641_v31, %v8483_v54 }
0x430d   :  { %12384 = vtanh.f32 %v8642_v34 }
0x4317   :  { %v12385_v15 = vpop.eup %12384 }
0x4318   :  { %v8645_v57 = vmul.f32 %v12385_v15, %v8644_v21 }
0x431a   :  { %v14418_v26 = vadd.f32 %v8646_v27, %v8645_v57 }
0x431c   :  { %11209 = vmatmul.mubr.msk.f32.vlgmr.msra.gmra.mrb[100].mxu1 %vm270_vm1, %v14418_v26 }
0x431d   :  { %11212 = vmatpush3.msra.mxu1 %v13740_v14  ;;  %11213 = vmatprep.mubr.msk.f32.mxu1 %vm12834_vm0, %v12832_v0 }
0x431e   :  { %11979 = vmatprep.subr.bf16.mxu1 %v12833_v1 }
0x43ef   :  { %v8717_v25 = vpop.f32.mrb[100].mxu1 }
0x43f0   :  { %v11210_v52 = vpop.f32.mrb[101].mxu1  ;;  %v8721_v8 = vsel %vm4000_vm11, %v8717_v25, -inf }
0x43f1   :  { %8722 = vmax.xlane.f32.xlu0 %v8721_v8 }
0x447e   :  { %v8723_v24 = vpop.xlane.xlu0 %8722 }
0x447f   :  { %v8724_v37 = vsub.f32 %v8717_v25, %v8723_v24 }
0x4481   :  { %v8725_v2 = vmul.f32 1.442695, %v8724_v37 }
0x4483   :  { %12386 = vpow2.f32 %v8725_v2 }
0x448d   :  { %v12387_v63 = vpop.eup %12386 }
0x448e   :  { %v8727_v32 = vsel %vm4000_vm11, %v12387_v63, 0.0 }
0x448f   :  { %8728 = vadd.xlane.f32.xlu1 %v8727_v32 }
0x451c   :  { %v8729_v41 = vpop.xlane.xlu1 %8728 }
0x451d   :  { %12388 = vrcp.f32 %v8729_v41 }
0x4527   :  { %v12389_v22 = vpop.eup %12388 }
0x4528   :  { %v8731_v54 = vmul.f32 %v12389_v22, %v12387_v63 }
0x452a   :  { %11214 = vmatmul.mubr.msk.f32.vlgmr.msra.gmra.mrb[102].mxu1 %vm4012_vm12, %v8731_v54 }
0x452b   :  { %11981 = vmatpush3.bf16.msra.mxu1 %v13788_v30  ;;  %11235 = vmatprep.mubr.msk.f32.mxu1 %vm12834_vm0, %v12832_v0 }
0x452c   :  { %11982 = vmatprep.subr.bf16.mxu1 %v12833_v1 }
0x452f   :  { %11984 = vmatpush3.bf16.msra.mxu1 %v13798_v58 }
0x4530   :  { %11991 = vmatprep.subr.bf16.mxu1 %v12833_v1 }
0x4532   :  { %11236 = vmatmul.mubr.msk.f32.vlgmr.msra.gmra.mrb[104].mxu1 %vm270_vm1, %v14418_v26 }
0x4533   :  { %11993 = vmatpush3.bf16.msra.mxu1 %v13609_v33  ;;  %11265 = vmatprep.mubr.msk.f32.mxu1 %vm12834_vm0, %v12832_v0 }
0x4534   :  { %11994 = vmatprep.subr.bf16.mxu1 %v12833_v1 }
0x4537   :  { %11996 = vmatpush3.bf16.msra.mxu1 %v13625_v39 }
0x4538   :  { %11997 = vmatprep.subr.bf16.mxu1 %v12833_v1 }
0x453b   :  { %11999 = vmatpush3.bf16.msra.mxu1 %v13638_v45 }
0x453c   :  { %12000 = vmatprep.subr.bf16.mxu1 %v12833_v1 }
0x453f   :  { %12002 = vmatpush3.bf16.msra.mxu1 %v13651_v62 }
0x4540   :  { %12025 = vmatprep.subr.bf16.mxu1 %v12833_v1 }
0x45fd   :  { %v8801_v31 = vpop.f32.mrb[102].mxu1 }
0x45fe   :  { %v11215_v34 = vpop.f32.mrb[103].mxu1  ;;  %11225 = vmatmul.mubr.msk.f32.vlgmr.msra.gmra.mrb[88].mxu0 %vm270_vm1, %v8801_v31 }
0x45ff   :  { %11987 = vmatpush3.bf16.msra.mxu0 %v13829_v16  ;;  %11246 = vmatprep.mubr.msk.f32.mxu0 %vm12834_vm0, %v12832_v0 }
0x4600   :  { %11988 = vmatprep.subr.bf16.mxu0 %v12833_v1 }
0x4603   :  { %11990 = vmatpush3.bf16.msra.mxu0 %v13835_v23 }
0x4604   :  { %12004 = vmatprep.subr.bf16.mxu0 %v13676_v11 }
0x4605   :  { %v8944_v33 = vpop.f32.mrb[104].mxu1 }
0x4606   :  { %v11237_v39 = vpop.f32.mrb[105].mxu1 }
0x46d1   :  { %v8874_v45 = vpop.f32.mrb[88].mxu0 }
0x46d2   :  { %v8945_v62 = vadd.f32 %v8944_v33, %v8874_v45  ;;  %v11226_v4 = vpop.f32.mrb[89].mxu0 }
0x46d4   :  { %v8948_v21 = vadd.f32 %v14247_v9, %v8945_v62 }
0x46d6   :  { %12390 = vtanh.f32 %v8948_v21 }
0x46e0   :  { %v12391_v15 = vpop.eup %12390 }
0x46e1   :  { %11247 = vmatmul.mubr.msk.f32.vlgmr.msra.gmra.mrb[90].mxu0 %vm270_vm1, %v12391_v15 }
0x46e2   :  { %12006 = vmatpush1.bf16.msra.mxu0 %v13678_v46  ;;  %9193 = vmatprep.mubr.f32.mxu0 %v12832_v0 }
0x46e3   :  { %12008 = vmatprep.subr.bf16.mxu0 %v13682_v13 }
0x46e6   :  { %12010 = vmatpush1.bf16.msra.mxu0 %v13684_v20 }
0x46e7   :  { %12011 = vmatprep.subr.bf16.mxu0 %v12833_v1 }
0x47b4   :  { %v9019_v11 = vpop.f32.mrb[90].mxu0 }
0x47b5   :  { %v14462_v57 = vadd.f32 %v14259_v51, %v9019_v11  ;;  %v11248_v27 = vpop.f32.mrb[91].mxu0 }
0x47b7   :  { %v9023_v25 = vsel %vm4318_vm13, %v14462_v57, -inf }
0x47b8   :  { %9024 = vmax.xlane.f32.xlu0 %v9023_v25 }
0x4845   :  { %v14466_v52 = vpop.xlane.xlu0 %9024 }
0x4846   :  { %vm9033_vm6 = vcmp.eq.f32.partialorder %v14462_v57, %v14466_v52 }
0x4847   :  { %v9034_v46 = vsel %vm9033_vm6, %v13641_v47, 64 }
0x4848   :  { %v9035_v13 = vsel %vm4318_vm13, %v9034_v46, 2147483647 }
0x4849   :  { %v9037_v20 = vshra.s32 %v9035_v13, 16  ;;  %v9036_v24 = vand.u32 65535, %v9035_v13 }
0x484b   :  { %v9039_v8 = vcvt.s32.f32 %v9037_v20  ;;  %v9038_v2 = vcvt.s32.f32 %v9036_v24 }
0x484d   :  { %9040 = vmin.xlane.f32.xlu1 %v9039_v8 }
0x48da   :  { %v9041_v37 = vpop.xlane.xlu1 %9040 }
0x48db   :  { %vm9042_vm14 = vcmp.eq.f32.partialorder %v9039_v8, %v9041_v37  ;;  %v9047_v32 = vcvt.f32.s32 %v9041_v37 }
0x48dc   :  { %v9043_v63 = vsel %vm9042_vm14, %v9038_v2, inf }
0x48dd   :  { %9044 = vmin.xlane.f32.xlu0 %v9043_v63  ;;  %v9048_v22 = vshll.u32 %v9047_v32, 16 }
0x496a   :  { %v9045_v41 = vpop.xlane.xlu0 %9044 }
0x496b   :  { %v9046_v54 = vcvt.f32.s32 %v9045_v41 }
0x496d   :  { %v9049_v31 = vadd.s32 %v9048_v22, %v9046_v54 }
0x496f   :  { %vm9050_vm2 = vcmp.eq.s32.totalorder %v13641_v47, %v9049_v31  ;;  %v14475_v34 = vsel %vm9844_vm15, %v14375_v17, %v9049_v31 }
0x4970   :  { %v10055_v33 = vsel %vm9050_vm2, 1.0, %v12832_v0 }
0x4971   :  { %11266 = vmatmul.mubr.msk.f32.vlgmr.msra.gmra.mrb[106].mxu1 %vm3481_vm10, %v10055_v33  ;;  %vm9846_vm10 = vcmask 56320  }
0x4972   :  { %12027 = vmatpush3.bf16.msra.mxu1 %v13657_v55  ;;  %11287 = vmatprep.mubr.msk.f32.mxu1 %vm12834_vm0, %v12832_v0 }
0x4973   :  { %12028 = vmatprep.subr.bf16.mxu1 %v12833_v1 }
0x4976   :  { %12030 = vmatpush3.bf16.msra.mxu1 %v13662_v5 }
0x4977   :  { %11290 = vmatprep.subr.mxu1 %v12832_v0 }
0x4979   :  { %11288 = vmatmul.mubr.msk.f32.vlgmr.msra.gmra.mrb[108].mxu1 %vm270_vm1, %v14418_v26 }
0x497a   :  { %11292 = vmatprep.mubr.msk.f32.mxu1 %vm12834_vm0, %v12832_v0 }
0x497f   :  { %11291 = vmatpush3.xpose.msk.msra.mxu1 %vm270_vm1, %v13740_v14 }
0x4980   :  { %11295 = vmatprep.subr.mxu1 %v12832_v0 }
0x4a44   :  { %v9122_v55 = vpop.f32.mrb[106].mxu1 }
0x4a45   :  { %v11267_v17 = vpop.f32.mrb[107].mxu1  ;;  %10057 = vmatmul.mubr.msk.f32.vlgmr.msra.gmra.mrb[92].mxu0 %vm270_vm1, %v9122_v55 }
0x4a46   :  { %12013 = vmatpush3.bf16.msra.mxu0 %v13693_v43  ;;  %11276 = vmatprep.mubr.msk.f32.mxu0 %vm12834_vm0, %v12832_v0 }
0x4a47   :  { %12014 = vmatprep.subr.bf16.mxu0 %v12833_v1 }
0x4a4a   :  { %12016 = vmatpush3.bf16.msra.mxu0 %v13697_v19 }
0x4a4b   :  { %12018 = vmatprep.subr.bf16.mxu0 %v13702_v40 }
0x4a4c   :  { %v9407_v5 = vpop.f32.mrb[108].mxu1 }
0x4a4d   :  { %11277 = vmatmul.mubr.msk.f32.vlgmr.msra.gmra.mrb[94].mxu0 %vm270_vm1, %v9122_v55  ;;  %v11289_v39 = vpop.f32.mrb[109].mxu1 }
0x4a4e   :  { %12020 = vmatpush1.bf16.msra.mxu0 %v13705_v59  ;;  %9334 = vmatprep.mubr.f32.mxu0 %v12832_v0 }
0x4a4f   :  { %12022 = vmatprep.subr.bf16.mxu0 %v13708_v61 }
0x4a52   :  { %12024 = vmatpush1.bf16.msra.mxu0 %v13712_v28 }
0x4a53   :  { %12031 = vmatprep.subr.bf16.mxu0 %v12833_v1 }
0x4a55   :  { %10059 = vmatmul.mubr.msk.f32.vlgmr.msra.gmra.mrb[92].mxu0 %vm270_vm1, %v14418_v26 }
0x4a56   :  { %12033 = vmatpush3.bf16.msra.mxu0 %v13774_v53  ;;  %11308 = vmatprep.mubr.msk.f32.mxu0 %vm12834_vm0, %v12832_v0 }
0x4a57   :  { %12034 = vmatprep.subr.bf16.mxu0 %v12833_v1 }
0x4a5a   :  { %12036 = vmatpush3.bf16.msra.mxu0 %v13777_v7  ;;  %v9408_v7 = vadd.f32 %v9407_v5, %v13756_v6 }
0x4a5b   :  { %12043 = vmatprep.subr.bf16.mxu0 %v12833_v1 }
0x4b20   :  { %v9266_v43 = vpop.f32.mrb[94].mxu0 }
0x4b21   :  { %v11278_v19 = vpop.f32.mrb[95].mxu0  ;;  %v9267_v27 = vadd.f32 %v9266_v43, %v13759_v12 }
0x4b28   :  { %v9336_v40 = vpop.f32.mrb[92].mxu0 }
0x4b29   :  { %v12078_v59 = vadd.f32 %v13749_v42, %v9336_v40  ;;  %v9338_v61 = vpop.f32.mrb[93].mxu0 }
0x4b2a   :  { %v12080_v45 = vadd.f32 %v13751_v49, %v9338_v61 }
0x4b2b   :  { %v10061_v28 = vmul.f32 -1.442695, %v12078_v59 }
0x4b2c   :  { %v10062_v53 = vmul.f32 -1.442695, %v12080_v45 }
0x4b2d   :  { %12392 = vpow2.f32 %v10061_v28 }
0x4b2e   :  { %12394 = vpow2.f32 %v10062_v53  ;;  %v5106_v53 = vsub.f32 %v13954_v35, %v13958_v48 }
0x4b37   :  { %v12393_v62 = vpop.eup %12392 }
0x4b38   :  { %v9415_v4 = vadd.f32 1.0, %v12393_v62  ;;  %v12395_v21 = vpop.eup %12394  ;;  %v5107_v62 = vmul.f32 1.442695, %v5106_v53 }
0x4b39   :  { %v9422_v15 = vadd.f32 1.0, %v12395_v21 }
0x4b3a   :  { %12396 = vrcp.f32 %v9415_v4  ;;  %v6674_v4 = vsub.f32 %v14155_v3, %v14159_v50 }
0x4b3b   :  { %12398 = vrcp.f32 %v9422_v15  ;;  %v8242_v15 = vsub.f32 %v14362_v38, %v14366_v60 }
0x4b3c   :  { %v6675_v21 = vmul.f32 1.442695, %v6674_v4 }
0x4b44   :  { %v12397_v11 = vpop.eup %12396 }
0x4b45   :  { %v9425_v25 = vmul.f32 %v12397_v11, %v9408_v7  ;;  %v12399_v46 = vpop.eup %12398  ;;  %v8243_v11 = vmul.f32 1.442695, %v8242_v15 }
0x4b46   :  { %v9428_v13 = vsub.f32 1.0, %v12399_v46  ;;  %v9430_v8 = vmul.f32 %v12399_v46, %v14418_v26 }
0x4b47   :  { %v9426_v42 = vadd.f32 %v9425_v25, %v9267_v27 }
0x4b49   :  { %12400 = vtanh.f32 %v9426_v42 }
0x4b53   :  { %v12401_v49 = vpop.eup %12400 }
0x4b54   :  { %v9429_v20 = vmul.f32 %v12401_v49, %v9428_v13 }
0x4b56   :  { %v9431_v24 = vadd.f32 %v9430_v8, %v9429_v20 }
0x4b58   :  { %11293 = vmatmul.mubr.msk.f32.vlgmr.msra.gmra.mrb[110].mxu1 %vm270_vm1, %v9431_v24 }
0x4b59   :  { %11296 = vmatpush3.msra.mxu1 %v13740_v14  ;;  %11297 = vmatprep.mubr.msk.f32.mxu1 %vm12834_vm0, %v12832_v0 }
0x4b5a   :  { %12037 = vmatprep.subr.bf16.mxu1 %v12833_v1 }
0x4c2b   :  { %v9501_v6 = vpop.f32.mrb[110].mxu1 }
0x4c2c   :  { %v11294_v12 = vpop.f32.mrb[111].mxu1  ;;  %v9505_v37 = vsel %vm4000_vm11, %v9501_v6, -inf }
0x4c2d   :  { %9506 = vmax.xlane.f32.xlu1 %v9505_v37 }
0x4cba   :  { %v9507_v2 = vpop.xlane.xlu1 %9506 }
0x4cbb   :  { %v9508_v63 = vsub.f32 %v9501_v6, %v9507_v2 }
0x4cbd   :  { %v9509_v32 = vmul.f32 1.442695, %v9508_v63 }
0x4cbf   :  { %12402 = vpow2.f32 %v9509_v32 }
0x4cc9   :  { %v12403_v26 = vpop.eup %12402 }
0x4cca   :  { %v9511_v41 = vsel %vm4000_vm11, %v12403_v26, 0.0 }
0x4ccb   :  { %9512 = vadd.xlane.f32.xlu0 %v9511_v41 }
0x4d58   :  { %v9513_v22 = vpop.xlane.xlu0 %9512 }
0x4d59   :  { %12404 = vrcp.f32 %v9513_v22 }
0x4d63   :  { %v12405_v14 = vpop.eup %12404 }
0x4d64   :  { %v9515_v54 = vmul.f32 %v12405_v14, %v12403_v26 }
0x4d66   :  { %11298 = vmatmul.mubr.msk.f32.vlgmr.msra.gmra.mrb[112].mxu1 %vm4012_vm12, %v9515_v54 }
0x4d67   :  { %12039 = vmatpush3.bf16.msra.mxu1 %v13788_v30  ;;  %11319 = vmatprep.mubr.msk.f32.mxu1 %vm12834_vm0, %v12832_v0 }
0x4d68   :  { %12040 = vmatprep.subr.bf16.mxu1 %v12833_v1 }
0x4d6b   :  { %12042 = vmatpush3.bf16.msra.mxu1 %v13798_v58 }
0x4d6e   :  { %11320 = vmatmul.mubr.msk.f32.vlgmr.msra.gmra.mrb[114].mxu1 %vm270_vm1, %v9431_v24 }
0x4e39   :  { %v9585_v31 = vpop.f32.mrb[112].mxu1 }
0x4e3a   :  { %v11299_v33 = vpop.f32.mrb[113].mxu1  ;;  %11309 = vmatmul.mubr.msk.f32.vlgmr.msra.gmra.mrb[96].mxu0 %vm270_vm1, %v9585_v31 }
0x4e3b   :  { %12045 = vmatpush3.bf16.msra.mxu0 %v13829_v16  ;;  %11330 = vmatprep.mubr.msk.f32.mxu0 %vm12834_vm0, %v12832_v0  ;;  %v4322_v16 = vsub.f32 %v13855_v29, %v13859_v18  ;;  %v5890_v0 = vsub.f32 %v14053_v44, %v14057_v10 }
0x4e3c   :  { %12046 = vmatprep.subr.bf16.mxu0 %v12833_v1 }
0x4e3d   :  { %v4323_v19 = vmul.f32 1.442695, %v4322_v16  ;;  %v5891_v1 = vmul.f32 1.442695, %v5890_v0 }
0x4e3f   :  { %12048 = vmatpush3.bf16.msra.mxu0 %v13835_v23  ;;  %v7458_v23 = vsub.f32 %v14262_v36, %v14266_v56 }
0x4e41   :  { %v9728_v30 = vpop.f32.mrb[114].mxu1  ;;  %v7459_v40 = vmul.f32 1.442695, %v7458_v23 }
0x4e42   :  { %v11321_v55 = vpop.f32.mrb[115].mxu1 }
0x4f0d   :  { %v9658_v17 = vpop.f32.mrb[96].mxu0 }
0x4f0e   :  { %v9729_v5 = vadd.f32 %v9728_v30, %v9658_v17  ;;  %v11310_v58 = vpop.f32.mrb[97].mxu0 }
0x4f10   :  { %v9732_v39 = vadd.f32 %v14247_v9, %v9729_v5  ;;  %v9026_v9 = vsub.f32 %v14462_v57, %v14466_v52 }
0x4f12   :  { %12406 = vtanh.f32 %v9732_v39  ;;  %v9027_v29 = vmul.f32 1.442695, %v9026_v9 }
0x4f13   :  { %12408 = vpow2.f32 %v4323_v19 }
0x4f14   :  { %12410 = vpow2.f32 %v5891_v1 }
0x4f15   :  { %12412 = vpow2.f32 %v7459_v40 }
0x4f16   :  { %12414 = vpow2.f32 %v9027_v29 }
0x4f17   :  { %12416 = vpow2.f32 %v5107_v62 }
0x4f18   :  { %12418 = vpow2.f32 %v6675_v21 }
0x4f19   :  { %12420 = vpow2.f32 %v8243_v11 }
0x4f1c   :  { %v12407_v43 = vpop.eup %12406 }
0x4f1d   :  { %11331 = vmatmul.mubr.msk.f32.vlgmr.msra.gmra.mrb[98].mxu0 %vm270_vm1, %v12407_v43  ;;  %v12409_v45 = vpop.eup %12408 }
0x4f1e   :  { %v4325_v44 = vsel %vm4318_vm13, %v12409_v45, 0.0  ;;  %v12411_v10 = vpop.eup %12410 }
0x4f1f   :  { %v5893_v36 = vsel %vm4318_vm13, %v12411_v10, 0.0  ;;  %v12413_v56 = vpop.eup %12412 }
0x4f20   :  { %v7461_v57 = vsel %vm4318_vm13, %v12413_v56, 0.0  ;;  %v12415_v52 = vpop.eup %12414 }
0x4f21   :  { %v12417_v13 = vpop.eup %12416 }
0x4f22   :  { %v5109_v3 = vsel %vm4318_vm13, %v12417_v13, 0.0  ;;  %v12419_v50 = vpop.eup %12418 }
0x4f23   :  { %v6677_v38 = vsel %vm4318_vm13, %v12419_v50, 0.0  ;;  %v12421_v60 = vpop.eup %12420 }
0x4f24   :  { %v8245_v49 = vsel %vm4318_vm13, %v12421_v60, 0.0 }
0x4ff0   :  { %v9803_v59 = vpop.f32.mrb[98].mxu0 }
0x4ff1   :  { %v9804_v61 = vadd.f32 %v14259_v51, %v9803_v59  ;;  %v11332_v28 = vpop.f32.mrb[99].mxu0  ;;  %v9029_v51 = vsel %vm4318_vm13, %v12415_v52, 0.0 }
0x4ff3   :  { %v9807_v18 = vsel %vm4318_vm13, %v9804_v61, -inf }
0x4ff4   :  { %9808 = vmax.xlane.f32.xlu1 %v9807_v18 }
0x4ff8   :  { %4326 = vadd.xlane.f32.xlu1 %v4325_v44 }
0x4ffc   :  { %5894 = vadd.xlane.f32.xlu1 %v5893_v36 }
0x5000   :  { %7462 = vadd.xlane.f32.xlu1 %v7461_v57 }
0x5004   :  { %9030 = vadd.xlane.f32.xlu1 %v9029_v51 }
0x5081   :  { %v9809_v7 = vpop.xlane.xlu1 %9808 }
0x5082   :  { %vm9817_vm0 = vcmp.eq.f32.partialorder %v9804_v61, %v9809_v7  ;;  %v9810_v27 = vsub.f32 %v9804_v61, %v9809_v7 }
0x5083   :  { %v9818_v25 = vsel %vm9817_vm0, %v13641_v47, 64 }
0x5084   :  { %v9819_v42 = vsel %vm4318_vm13, %v9818_v25, 2147483647  ;;  %v9811_v35 = vmul.f32 1.442695, %v9810_v27 }
0x5085   :  { %v9821_v46 = vshra.s32 %v9819_v42, 16  ;;  %v4327_v8 = vpop.xlane.xlu1 %4326  ;;  %v9820_v24 = vand.u32 65535, %v9819_v42 }
0x5086   :  { %12422 = vpow2.f32 %v9811_v35 }
0x5087   :  { %v9823_v48 = vcvt.s32.f32 %v9821_v46  ;;  %v9822_v12 = vcvt.s32.f32 %v9820_v24  ;;  %12424 = vrcp.f32 %v4327_v8 }
0x5089   :  { %9824 = vmin.xlane.f32.xlu0 %v9823_v48  ;;  %v5895_v37 = vpop.xlane.xlu1 %5894 }
0x508d   :  { %5110 = vadd.xlane.f32.xlu0 %v5109_v3  ;;  %v7463_v32 = vpop.xlane.xlu1 %7462 }
0x5090   :  { %v12423_v47 = vpop.eup %12422 }
0x5091   :  { %6678 = vadd.xlane.f32.xlu0 %v6677_v38  ;;  %v9813_v20 = vsel %vm4318_vm13, %v12423_v47, 0.0  ;;  %v9031_v22 = vpop.xlane.xlu1 %9030  ;;  %v12425_v14 = vpop.eup %12424 }
0x5095   :  { %8246 = vadd.xlane.f32.xlu0 %v8245_v49 }
0x5099   :  { %9814 = vadd.xlane.f32.xlu0 %v9813_v20 }
0x5116   :  { %v9825_v6 = vpop.xlane.xlu0 %9824 }
0x5117   :  { %vm9826_vm1 = vcmp.eq.f32.partialorder %v9823_v48, %v9825_v6 }
0x5118   :  { %v9827_v2 = vsel %vm9826_vm1, %v9822_v12, inf }
0x5119   :  { %9828 = vmin.xlane.f32.xlu1 %v9827_v2 }
0x511a   :  { %v5111_v63 = vpop.xlane.xlu0 %5110 }
0x511b   :  { %12426 = vrcp.f32 %v5111_v63 }
0x511c   :  { %12428 = vrcp.f32 %v5895_v37 }
0x511e   :  { %v6679_v26 = vpop.xlane.xlu0 %6678 }
0x511f   :  { %12430 = vrcp.f32 %v6679_v26 }
0x5120   :  { %12432 = vrcp.f32 %v7463_v32 }
0x5122   :  { %v8247_v41 = vpop.xlane.xlu0 %8246 }
0x5123   :  { %12434 = vrcp.f32 %v8247_v41 }
0x5124   :  { %12436 = vrcp.f32 %v9031_v22 }
0x5125   :  { %v12427_v54 = vpop.eup %12426 }
0x5126   :  { %v9815_v31 = vpop.xlane.xlu0 %9814  ;;  %v9849_v33 = vsel %vm9834_vm8, %v12425_v14, %v12427_v54  ;;  %v12429_v30 = vpop.eup %12428 }
0x5127   :  { %12438 = vrcp.f32 %v9815_v31  ;;  %v9850_v17 = vsel %vm9836_vm9, %v9849_v33, %v12429_v30 }
0x5129   :  { %v12431_v55 = vpop.eup %12430 }
0x512a   :  { %v9851_v5 = vsel %vm9838_vm3, %v9850_v17, %v12431_v55  ;;  %v12433_v58 = vpop.eup %12432 }
0x512b   :  { %v9852_v43 = vsel %vm9840_vm7, %v9851_v5, %v12433_v58 }
0x512d   :  { %v12435_v39 = vpop.eup %12434 }
0x512e   :  { %v9853_v16 = vsel %vm9842_vm4, %v9852_v43, %v12435_v39  ;;  %v12437_v19 = vpop.eup %12436 }
0x512f   :  { %v9854_v1 = vsel %vm9844_vm15, %v9853_v16, %v12437_v19 }
0x5131   :  { %v12439_v0 = vpop.eup %12438 }
0x5132   :  { %v9855_v23 = vsel %vm9846_vm10, %v9854_v1, %v12439_v0 }
0x5133   :  { %9856 = vst.msk [vmem:[#allocation26] sm:$0x1] %vm4000_vm11, %v9855_v23 }
0x5134   :  { %12761 = shalt.err (!%p12758_p4)
}
0x5135   :  { %s14641_s1 = sld [smem:[#allocation44_spill]] }
0x513b   :  { %s12762_s19 = scalar_lea.hbm %s14641_s1, 16 }
0x513c   :  { %p12763_p5 = scmp.ne.s32.totalorder %s14641_s1, %s12762_s19  ;;  %p12766_p6 = scmp.lt.u32.totalorder %s12762_s19, %s14641_s1 }
0x513e   :  { %p12768_p7 = pnand %p12766_p6, %p12763_p5 }
0x5140   :  { %12771 = shalt.err (!%p12768_p7)
}
0x5141   :  { %9876 = dma.vmem_to_hbm [thread:$0]  %s9874_s4, 16, %s14641_s1, [#allocation27]   ;;  %v9831_v40 = vcvt.f32.s32 %v9825_v6 }
0x5142   :  { %s12836_s25 = smov [#allocation25]  }
0x5143   :  { %v9832_v59 = vshll.u32 %v9831_v40, 16  ;;  %s9863_s27 = sshll.u32 %s12836_s25, 4  ;;  %s9864_s27 = int_to_ptr.vmem [resolvable:$true] %s9863_s27 }
0x5144   :  { %s12772_s28 = scalar_lea.vmem %s9864_s27, 16  ;;  %s12776_s6 = scalar_lea.vmem %s9864_s27, 32 }
0x5145   :  { %p12773_p8 = scmp.ne.s32.totalorder %s9864_s27, %s12772_s28  ;;  %p12777_p9 = scmp.lt.s32.totalorder %s9864_s27, %s9864_s27 }
0x5146   :  { %p12778_p10 = scmp.lt.s32.totalorder %s12776_s6, %s12772_s28 }
0x5148   :  { %p12779_p11 = por %p12778_p10, %p12777_p9 }
0x514a   :  { %p12780_p12 = pnand %p12779_p11, %p12773_p8 }
0x51a6   :  { %v9829_v9 = vpop.xlane.xlu1 %9828 }
0x51a7   :  { %v9830_v61 = vcvt.f32.s32 %v9829_v9 }
0x51a9   :  { %v9833_v28 = vadd.s32 %v9832_v59, %v9830_v61 }
0x51ab   :  { %v9847_v29 = vsel %vm9846_vm10, %v14475_v34, %v9833_v28 }
0x51ac   :  { %9848 = vst.msk [vmem:[#allocation25] sm:$0x1] %vm4000_vm11, %v9847_v29 }
0x51ad   :  { %12783 = shalt.err (!%p12780_p12)
}
0x51ae   :  { %s14642_s13 = sld [smem:[#allocation43_spill]] }
0x51b4   :  { %s12784_s3 = scalar_lea.hbm %s14642_s13, 16 }
0x51b5   :  { %p12785_p13 = scmp.ne.s32.totalorder %s14642_s13, %s12784_s3  ;;  %p12788_p0 = scmp.lt.u32.totalorder %s12784_s3, %s14642_s13 }
0x51b7   :  { %p12790_p1 = pnand %p12788_p0, %p12785_p13 }
0x51b9   :  { %12793 = shalt.err (!%p12790_p1)
}
0x51ba   :  { %9866 = dma.vmem_to_hbm [thread:$0]  %s9864_s27, 16, %s14642_s13, [#allocation4]  }
0x51bb   :  { %12810 = dma.done.wait [#allocation4], 16  }
0x51bc   :  { %12811 = vsyncadd [#allocation4], 4294967280 }
0x51bd   :  { %12812 = dma.done.wait [#allocation27], 16  }
0x51be   :  { %12813 = vsyncadd [#allocation27], 4294967280 }
0x51bf   :  { %9883 = vsyncpa [#allocation3], 1 }
0x51c0   :  { %9884 = vsyncpa [#allocation6], 1 }
0x51c1   :  { %9885 = vsyncpa [#allocation9], 1 }
0x51c2   :  { %9886 = vsyncpa [#allocation12], 1 }
0x51c3   :  { %9887 = vsyncpa [#allocation15], 1 }
0x51c4   :  { %9888 = vsyncpa [#allocation18], 1 }
0x51c5   :  { %9889 = vsyncpa [#allocation21], 1 }
0x51c6   :  { %9890 = vsyncpa [#allocation24], 1 }
0x51c7   :  { %9891 = vsyncpa [#allocation4], 1 }
0x51c8   :  { %9892 = vsyncpa [#allocation27], 1 }

</bundles_post_ra>
